<compile_context>
chip_gen: v5e
topology: v5e:2x2
jax: 0.10.0
libtpu: 0.0.40
codegen_flags: <defaults>
</compile_context>

<pallas_src>
import jax
import jax.numpy as jnp
from jax import lax
from jax.experimental import pallas as pl
from jax.experimental.pallas import tpu as pltpu

NEG_SLOPE = 0.01   # nn.LeakyReLU default
BN_EPS = 1e-5      # nn.BatchNorm1d default
CPAD = 128         # every layer's channel dims zero-padded to this (lane-dense / MXU aligned)
CHANS = [(1, 32), (32, 32), (32, 32), (32, 64), (64, 64),
         (64, 64), (64, 128), (128, 128), (128, 128)]


def _make_fused_kernel(N, L1):
    """Kernel closure over static batch N and layer-1 output length L1."""
    n_layers = len(CHANS)

    def _bn_lrelu(ys, gb):
        # ys: list (per batch sample) of (Lout, CPAD) fp32 conv outputs.
        # Single-pass batch stats over all N*Lout rows, then fused scale/shift + LeakyReLU.
        m = sum(y.shape[0] for y in ys)
        s = jnp.sum(ys[0], axis=0, keepdims=True)
        s2 = jnp.sum(ys[0] * ys[0], axis=0, keepdims=True)
        for y in ys[1:]:
            s = s + jnp.sum(y, axis=0, keepdims=True)
            s2 = s2 + jnp.sum(y * y, axis=0, keepdims=True)
        inv_m = 1.0 / m
        mean = s * inv_m
        var = jnp.maximum(s2 * inv_m - mean * mean, 0.0)   # biased variance (train-mode BN)
        gamma = gb[0:1, :]
        beta = gb[1:2, :]
        scale = gamma * lax.rsqrt(var + BN_EPS)            # (1, CPAD)
        shift = beta - mean * scale
        outs = []
        for y in ys:
            z = y * scale + shift
            outs.append(jnp.where(z >= 0.0, z, NEG_SLOPE * z))
        return outs

    def kernel(p1_ref, w_ref, gb_ref, o_ref):
        # ---------------- layer 1 (Cin = 1): pure VPU multiply-adds ----------------
        ys = []
        for n in range(N):
            p = p1_ref[n]                                  # (L1, 3) im2col taps of raw signal
            y = p[:, 0:1] * w_ref[0][0:1, :]               # (L1,1)*(1,CPAD) broadcast FMA
            y = y + p[:, 1:2] * w_ref[1][0:1, :]
            y = y + p[:, 2:3] * w_ref[2][0:1, :]
            ys.append(y)
        acts = _bn_lrelu(ys, gb_ref[0])                    # list of (L1, CPAD)

        # --------- layers 2..9: in-VMEM tap gather (one-hot matmul) + weight matmul --------
        L = L1
        for i in range(1, n_layers):
            Lout = (L + 1) // 2
            row = lax.broadcasted_iota(jnp.int32, (Lout, L), 0)
            col = lax.broadcasted_iota(jnp.int32, (Lout, L), 1)
            # sel_k[l, j] = 1  iff  j == 2*l + k - 1 ; out-of-range taps -> all-zero row
            # which reproduces the conv's zero padding on both ends.
            sels = [(col == (2 * row + (k - 1))).astype(jnp.float32) for k in range(3)]
            ys = []
            for n in range(N):
                a = acts[n]                                # (L, CPAD)
                y = jnp.zeros((Lout, CPAD), jnp.float32)
                for k in range(3):
                    pk = jnp.dot(sels[k], a, preferred_element_type=jnp.float32)   # (Lout, CPAD)
                    y = y + jnp.dot(pk, w_ref[3 * i + k],
                                    preferred_element_type=jnp.float32)            # (Lout, CPAD)
                ys.append(y)
            acts = _bn_lrelu(ys, gb_ref[i])
            L = Lout

        for n in range(N):
            o_ref[n] = acts[n]                             # (L_final, CPAD)

    return kernel


def pack_params(params):
    """Pack all layer weights / BN affine params into two padded operands (done once)."""
    n_layers = len(params)
    w_all = jnp.zeros((3 * n_layers, CPAD, CPAD), jnp.float32)   # [3i+k, cin, cout]
    gb_all = jnp.zeros((n_layers, 2, CPAD), jnp.float32)         # [i, {gamma,beta}, cout]
    for i, (w, _b, gamma, beta) in enumerate(params):
        cout, cin, _ = w.shape
        wt = jnp.transpose(w, (2, 1, 0))                         # (3, cin, cout)
        w_all = w_all.at[3 * i:3 * i + 3, :cin, :cout].set(wt)
        gb_all = gb_all.at[i, 0, :cout].set(gamma)
        gb_all = gb_all.at[i, 1, :cout].set(beta)
        # conv bias _b intentionally dropped: train-mode BatchNorm cancels it exactly.
    return w_all, gb_all


def vggnet_forward(x_ncl, packed):
    """x_ncl: (N, 1, L) PyTorch NCW layout.  Returns (N, 128, L_final)."""
    w_all, gb_all = packed
    N, cin, L = x_ncl.shape
    assert cin == CHANS[0][0] == 1

    # Layer-1 im2col only (tiny, Cin=1): (N, L1, 3). Deeper layers gather in-kernel.
    L1 = (L + 1) // 2
    xp = jnp.pad(x_ncl[:, 0, :], ((0, 0), (1, 1)))               # (N, L+2)
    p1 = jnp.stack([xp[:, k:k + 2 * (L1 - 1) + 1:2] for k in range(3)], axis=-1)

    # final spatial length after 9 stride-2 convs
    Lf = L
    for _ in CHANS:
        Lf = (Lf + 1) // 2

    out = pl.pallas_call(
        _make_fused_kernel(N, L1),
        out_shape=jax.ShapeDtypeStruct((N, Lf, CPAD), jnp.float32),
        in_specs=[pl.BlockSpec(memory_space=pltpu.MemorySpace.VMEM)] * 3,
        out_specs=pl.BlockSpec(memory_space=pltpu.MemorySpace.VMEM),
    )(p1, w_all, gb_all)

    cout_final = CHANS[-1][1]
    return jnp.transpose(out[:, :, :cout_final], (0, 2, 1))      # back to NCW


def init_params(key):
    params = []
    for cin, cout in CHANS:
        k1, k2, k3, k4, key = jax.random.split(key, 5)
        bound = 1.0 / ((cin * 3) ** 0.5)  # PyTorch Conv1d default init range
        w = jax.random.uniform(k1, (cout, cin, 3), jnp.float32, -bound, bound)
        b = jax.random.uniform(k2, (cout,), jnp.float32, -bound, bound)
        gamma = 1.0 + 0.1 * jax.random.normal(k3, (cout,), jnp.float32)
        beta = 0.1 * jax.random.normal(k4, (cout,), jnp.float32)
        params.append((w, b, gamma, beta))
    return params


# ----- pure-JAX reference (correctness check only; keeps the conv bias) -----
def _ref_conv_module(x_ncl, w, b, gamma, beta):
    y = jax.lax.conv_general_dilated(
        x_ncl, w, window_strides=(2,), padding=[(1, 1)],
        dimension_numbers=("NCH", "OIH", "NCH"))
    y = y + b[None, :, None]
    mean = jnp.mean(y, axis=(0, 2), keepdims=True)
    var = jnp.mean((y - mean) ** 2, axis=(0, 2), keepdims=True)
    z = (y - mean) * jax.lax.rsqrt(var + BN_EPS) * gamma[None, :, None] + beta[None, :, None]
    return jnp.where(z >= 0.0, z, NEG_SLOPE * z)


if __name__ == "__main__":
    key = jax.random.PRNGKey(0)
    pkey, xkey = jax.random.split(key)
    params = init_params(pkey)
    packed = pack_params(params)

    N, C, L = 2, 1, 256
    x = jax.random.normal(xkey, (N, C, L), jnp.float32)

    out = jax.block_until_ready(jax.jit(vggnet_forward)(x, packed))

    ref = x
    for (w, b, g, bt) in params:
        ref = _ref_conv_module(ref, w, b, g, bt)

    assert out.shape == ref.shape, (out.shape, ref.shape)
    max_err = float(jnp.max(jnp.abs(out - ref)))
    assert jnp.allclose(out, ref, rtol=1e-3, atol=1e-3), f"max abs err {max_err}"
    print("KERNEL_OK")
</pallas_src>

<mosaic_0001>
module attributes {stable_mosaic.version = 11 : i64} {
  func.func @kernel(%arg0: memref<2x128x3xf32, #tpu.memory_space<vmem>>, %arg1: memref<27x128x128xf32, #tpu.memory_space<vmem>>, %arg2: memref<9x2x128xf32, #tpu.memory_space<vmem>>, %arg3: memref<2x1x128xf32, #tpu.memory_space<vmem>>) attributes {dimension_semantics = [], scalar_prefetch = 0 : i64, scratch_operands = 0 : i64, tpu.core_type = #tpu.core_type<tc>} {
    %c0 = arith.constant 0 : index
    %c0_0 = arith.constant 0 : index
    %c0_1 = arith.constant 0 : index
    %0 = vector.load %arg0[%c0, %c0_0, %c0_1] : memref<2x128x3xf32, #tpu.memory_space<vmem>>, vector<1x128x3xf32>
    %1 = vector.shape_cast %0 : vector<1x128x3xf32> to vector<128x3xf32>
    %2 = vector.extract_strided_slice %1 {offsets = [0, 0], sizes = [128, 1], strides = [1, 1]} : vector<128x3xf32> to vector<128x1xf32>
    %c0_2 = arith.constant 0 : index
    %c0_3 = arith.constant 0 : index
    %c0_4 = arith.constant 0 : index
    %3 = vector.load %arg1[%c0_2, %c0_3, %c0_4] : memref<27x128x128xf32, #tpu.memory_space<vmem>>, vector<1x128x128xf32>
    %4 = vector.shape_cast %3 : vector<1x128x128xf32> to vector<128x128xf32>
    %5 = vector.extract_strided_slice %4 {offsets = [0, 0], sizes = [1, 128], strides = [1, 1]} : vector<128x128xf32> to vector<1x128xf32>
    %6 = vector.broadcast %2 : vector<128x1xf32> to vector<128x128xf32>
    %7 = vector.broadcast %5 : vector<1x128xf32> to vector<128x128xf32>
    %8 = arith.mulf %6, %7 : vector<128x128xf32>
    %9 = vector.extract_strided_slice %1 {offsets = [0, 1], sizes = [128, 1], strides = [1, 1]} : vector<128x3xf32> to vector<128x1xf32>
    %c1 = arith.constant 1 : index
    %c0_5 = arith.constant 0 : index
    %c0_6 = arith.constant 0 : index
    %10 = vector.load %arg1[%c1, %c0_5, %c0_6] : memref<27x128x128xf32, #tpu.memory_space<vmem>>, vector<1x128x128xf32>
    %11 = vector.shape_cast %10 : vector<1x128x128xf32> to vector<128x128xf32>
    %12 = vector.extract_strided_slice %11 {offsets = [0, 0], sizes = [1, 128], strides = [1, 1]} : vector<128x128xf32> to vector<1x128xf32>
    %13 = vector.broadcast %9 : vector<128x1xf32> to vector<128x128xf32>
    %14 = vector.broadcast %12 : vector<1x128xf32> to vector<128x128xf32>
    %15 = arith.mulf %13, %14 : vector<128x128xf32>
    %16 = arith.addf %8, %15 : vector<128x128xf32>
    %17 = vector.extract_strided_slice %1 {offsets = [0, 2], sizes = [128, 1], strides = [1, 1]} : vector<128x3xf32> to vector<128x1xf32>
    %c2 = arith.constant 2 : index
    %c0_7 = arith.constant 0 : index
    %c0_8 = arith.constant 0 : index
    %18 = vector.load %arg1[%c2, %c0_7, %c0_8] : memref<27x128x128xf32, #tpu.memory_space<vmem>>, vector<1x128x128xf32>
    %19 = vector.shape_cast %18 : vector<1x128x128xf32> to vector<128x128xf32>
    %20 = vector.extract_strided_slice %19 {offsets = [0, 0], sizes = [1, 128], strides = [1, 1]} : vector<128x128xf32> to vector<1x128xf32>
    %21 = vector.broadcast %17 : vector<128x1xf32> to vector<128x128xf32>
    %22 = vector.broadcast %20 : vector<1x128xf32> to vector<128x128xf32>
    %23 = arith.mulf %21, %22 : vector<128x128xf32>
    %24 = arith.addf %16, %23 : vector<128x128xf32>
    %c1_9 = arith.constant 1 : index
    %c0_10 = arith.constant 0 : index
    %c0_11 = arith.constant 0 : index
    %25 = vector.load %arg0[%c1_9, %c0_10, %c0_11] : memref<2x128x3xf32, #tpu.memory_space<vmem>>, vector<1x128x3xf32>
    %26 = vector.shape_cast %25 : vector<1x128x3xf32> to vector<128x3xf32>
    %27 = vector.extract_strided_slice %26 {offsets = [0, 0], sizes = [128, 1], strides = [1, 1]} : vector<128x3xf32> to vector<128x1xf32>
    %c0_12 = arith.constant 0 : index
    %c0_13 = arith.constant 0 : index
    %c0_14 = arith.constant 0 : index
    %28 = vector.load %arg1[%c0_12, %c0_13, %c0_14] : memref<27x128x128xf32, #tpu.memory_space<vmem>>, vector<1x128x128xf32>
    %29 = vector.shape_cast %28 : vector<1x128x128xf32> to vector<128x128xf32>
    %30 = vector.extract_strided_slice %29 {offsets = [0, 0], sizes = [1, 128], strides = [1, 1]} : vector<128x128xf32> to vector<1x128xf32>
    %31 = vector.broadcast %27 : vector<128x1xf32> to vector<128x128xf32>
    %32 = vector.broadcast %30 : vector<1x128xf32> to vector<128x128xf32>
    %33 = arith.mulf %31, %32 : vector<128x128xf32>
    %34 = vector.extract_strided_slice %26 {offsets = [0, 1], sizes = [128, 1], strides = [1, 1]} : vector<128x3xf32> to vector<128x1xf32>
    %c1_15 = arith.constant 1 : index
    %c0_16 = arith.constant 0 : index
    %c0_17 = arith.constant 0 : index
    %35 = vector.load %arg1[%c1_15, %c0_16, %c0_17] : memref<27x128x128xf32, #tpu.memory_space<vmem>>, vector<1x128x128xf32>
    %36 = vector.shape_cast %35 : vector<1x128x128xf32> to vector<128x128xf32>
    %37 = vector.extract_strided_slice %36 {offsets = [0, 0], sizes = [1, 128], strides = [1, 1]} : vector<128x128xf32> to vector<1x128xf32>
    %38 = vector.broadcast %34 : vector<128x1xf32> to vector<128x128xf32>
    %39 = vector.broadcast %37 : vector<1x128xf32> to vector<128x128xf32>
    %40 = arith.mulf %38, %39 : vector<128x128xf32>
    %41 = arith.addf %33, %40 : vector<128x128xf32>
    %42 = vector.extract_strided_slice %26 {offsets = [0, 2], sizes = [128, 1], strides = [1, 1]} : vector<128x3xf32> to vector<128x1xf32>
    %c2_18 = arith.constant 2 : index
    %c0_19 = arith.constant 0 : index
    %c0_20 = arith.constant 0 : index
    %43 = vector.load %arg1[%c2_18, %c0_19, %c0_20] : memref<27x128x128xf32, #tpu.memory_space<vmem>>, vector<1x128x128xf32>
    %44 = vector.shape_cast %43 : vector<1x128x128xf32> to vector<128x128xf32>
    %45 = vector.extract_strided_slice %44 {offsets = [0, 0], sizes = [1, 128], strides = [1, 1]} : vector<128x128xf32> to vector<1x128xf32>
    %46 = vector.broadcast %42 : vector<128x1xf32> to vector<128x128xf32>
    %47 = vector.broadcast %45 : vector<1x128xf32> to vector<128x128xf32>
    %48 = arith.mulf %46, %47 : vector<128x128xf32>
    %49 = arith.addf %41, %48 : vector<128x128xf32>
    %c0_21 = arith.constant 0 : index
    %c0_22 = arith.constant 0 : index
    %c0_23 = arith.constant 0 : index
    %50 = vector.load %arg2[%c0_21, %c0_22, %c0_23] : memref<9x2x128xf32, #tpu.memory_space<vmem>>, vector<1x2x128xf32>
    %51 = vector.shape_cast %50 : vector<1x2x128xf32> to vector<2x128xf32>
    %cst = arith.constant dense<0.000000e+00> : vector<128xf32>
    %52 = vector.multi_reduction <add>, %24, %cst [0] : vector<128x128xf32> to vector<128xf32>
    %53 = vector.shape_cast %52 : vector<128xf32> to vector<1x128xf32>
    %54 = arith.mulf %24, %24 : vector<128x128xf32>
    %cst_24 = arith.constant dense<0.000000e+00> : vector<128xf32>
    %55 = vector.multi_reduction <add>, %54, %cst_24 [0] : vector<128x128xf32> to vector<128xf32>
    %56 = vector.shape_cast %55 : vector<128xf32> to vector<1x128xf32>
    %cst_25 = arith.constant dense<0.000000e+00> : vector<128xf32>
    %57 = vector.multi_reduction <add>, %49, %cst_25 [0] : vector<128x128xf32> to vector<128xf32>
    %58 = vector.shape_cast %57 : vector<128xf32> to vector<1x128xf32>
    %59 = arith.addf %53, %58 : vector<1x128xf32>
    %60 = arith.mulf %49, %49 : vector<128x128xf32>
    %cst_26 = arith.constant dense<0.000000e+00> : vector<128xf32>
    %61 = vector.multi_reduction <add>, %60, %cst_26 [0] : vector<128x128xf32> to vector<128xf32>
    %62 = vector.shape_cast %61 : vector<128xf32> to vector<1x128xf32>
    %63 = arith.addf %56, %62 : vector<1x128xf32>
    %cst_27 = arith.constant 3.906250e-03 : f32
    %64 = vector.broadcast %cst_27 : f32 to vector<1x128xf32>
    %65 = arith.mulf %59, %64 : vector<1x128xf32>
    %cst_28 = arith.constant 3.906250e-03 : f32
    %66 = vector.broadcast %cst_28 : f32 to vector<1x128xf32>
    %67 = arith.mulf %63, %66 : vector<1x128xf32>
    %68 = arith.mulf %65, %65 : vector<1x128xf32>
    %69 = arith.subf %67, %68 : vector<1x128xf32>
    %cst_29 = arith.constant 0.000000e+00 : f32
    %70 = vector.broadcast %cst_29 : f32 to vector<1x128xf32>
    %71 = arith.maximumf %69, %70 : vector<1x128xf32>
    %72 = vector.extract_strided_slice %51 {offsets = [0, 0], sizes = [1, 128], strides = [1, 1]} : vector<2x128xf32> to vector<1x128xf32>
    %73 = vector.extract_strided_slice %51 {offsets = [1, 0], sizes = [1, 128], strides = [1, 1]} : vector<2x128xf32> to vector<1x128xf32>
    %cst_30 = arith.constant 9.99999974E-6 : f32
    %74 = vector.broadcast %cst_30 : f32 to vector<1x128xf32>
    %75 = arith.addf %71, %74 : vector<1x128xf32>
    %76 = math.rsqrt %75 : vector<1x128xf32>
    %77 = arith.mulf %72, %76 : vector<1x128xf32>
    %78 = arith.mulf %65, %77 : vector<1x128xf32>
    %79 = arith.subf %73, %78 : vector<1x128xf32>
    %80 = vector.broadcast %77 : vector<1x128xf32> to vector<128x128xf32>
    %81 = arith.mulf %24, %80 : vector<128x128xf32>
    %82 = vector.broadcast %79 : vector<1x128xf32> to vector<128x128xf32>
    %83 = arith.addf %81, %82 : vector<128x128xf32>
    %cst_31 = arith.constant 0.000000e+00 : f32
    %84 = vector.broadcast %cst_31 : f32 to vector<128x128xf32>
    %85 = arith.cmpf oge, %83, %84 : vector<128x128xf32>
    %cst_32 = arith.constant 0.00999999977 : f32
    %86 = vector.broadcast %cst_32 : f32 to vector<128x128xf32>
    %87 = arith.mulf %86, %83 : vector<128x128xf32>
    %88 = arith.select %85, %83, %87 : vector<128x128xi1>, vector<128x128xf32>
    %89 = vector.broadcast %77 : vector<1x128xf32> to vector<128x128xf32>
    %90 = arith.mulf %49, %89 : vector<128x128xf32>
    %91 = vector.broadcast %79 : vector<1x128xf32> to vector<128x128xf32>
    %92 = arith.addf %90, %91 : vector<128x128xf32>
    %cst_33 = arith.constant 0.000000e+00 : f32
    %93 = vector.broadcast %cst_33 : f32 to vector<128x128xf32>
    %94 = arith.cmpf oge, %92, %93 : vector<128x128xf32>
    %cst_34 = arith.constant 0.00999999977 : f32
    %95 = vector.broadcast %cst_34 : f32 to vector<128x128xf32>
    %96 = arith.mulf %95, %92 : vector<128x128xf32>
    %97 = arith.select %94, %92, %96 : vector<128x128xi1>, vector<128x128xf32>
    %98 = tpu.iota {dimensions = array<i32: 0>} : vector<64x128xi32>
    %99 = tpu.iota {dimensions = array<i32: 1>} : vector<64x128xi32>
    %c2_i32 = arith.constant 2 : i32
    %100 = vector.broadcast %c2_i32 : i32 to vector<64x128xi32>
    %101 = arith.muli %100, %98 : vector<64x128xi32>
    %c-1_i32 = arith.constant -1 : i32
    %102 = vector.broadcast %c-1_i32 : i32 to vector<64x128xi32>
    %103 = arith.addi %101, %102 : vector<64x128xi32>
    %104 = arith.cmpi eq, %99, %103 : vector<64x128xi32>
    %105 = arith.extui %104 : vector<64x128xi1> to vector<64x128xi32>
    %106 = arith.sitofp %105 : vector<64x128xi32> to vector<64x128xf32>
    %c2_i32_35 = arith.constant 2 : i32
    %107 = vector.broadcast %c2_i32_35 : i32 to vector<64x128xi32>
    %108 = arith.muli %107, %98 : vector<64x128xi32>
    %c0_i32 = arith.constant 0 : i32
    %109 = vector.broadcast %c0_i32 : i32 to vector<64x128xi32>
    %110 = arith.addi %108, %109 : vector<64x128xi32>
    %111 = arith.cmpi eq, %99, %110 : vector<64x128xi32>
    %112 = arith.extui %111 : vector<64x128xi1> to vector<64x128xi32>
    %113 = arith.sitofp %112 : vector<64x128xi32> to vector<64x128xf32>
    %c2_i32_36 = arith.constant 2 : i32
    %114 = vector.broadcast %c2_i32_36 : i32 to vector<64x128xi32>
    %115 = arith.muli %114, %98 : vector<64x128xi32>
    %c1_i32 = arith.constant 1 : i32
    %116 = vector.broadcast %c1_i32 : i32 to vector<64x128xi32>
    %117 = arith.addi %115, %116 : vector<64x128xi32>
    %118 = arith.cmpi eq, %99, %117 : vector<64x128xi32>
    %119 = arith.extui %118 : vector<64x128xi1> to vector<64x128xi32>
    %120 = arith.sitofp %119 : vector<64x128xi32> to vector<64x128xf32>
    %cst_37 = arith.constant 0.000000e+00 : f32
    %121 = vector.broadcast %cst_37 : f32 to vector<64x128xf32>
    %cst_38 = arith.constant dense<0.000000e+00> : vector<64x128xf32>
    %122 = tpu.matmul %106, %88, %cst_38 {dimension_numbers = #tpu.dot_dimension_numbers<[1], [0], [0], [1], [0, 0, 1, 1], [], []>} : vector<64x128xf32>, vector<128x128xf32>, vector<64x128xf32> -> vector<64x128xf32>
    %c3 = arith.constant 3 : index
    %c0_39 = arith.constant 0 : index
    %c0_40 = arith.constant 0 : index
    %123 = vector.load %arg1[%c3, %c0_39, %c0_40] : memref<27x128x128xf32, #tpu.memory_space<vmem>>, vector<1x128x128xf32>
    %124 = vector.shape_cast %123 : vector<1x128x128xf32> to vector<128x128xf32>
    %cst_41 = arith.constant dense<0.000000e+00> : vector<64x128xf32>
    %125 = tpu.matmul %122, %124, %cst_41 {dimension_numbers = #tpu.dot_dimension_numbers<[1], [0], [0], [1], [0, 0, 1, 1], [], []>} : vector<64x128xf32>, vector<128x128xf32>, vector<64x128xf32> -> vector<64x128xf32>
    %126 = arith.addf %121, %125 : vector<64x128xf32>
    %cst_42 = arith.constant dense<0.000000e+00> : vector<64x128xf32>
    %127 = tpu.matmul %113, %88, %cst_42 {dimension_numbers = #tpu.dot_dimension_numbers<[1], [0], [0], [1], [0, 0, 1, 1], [], []>} : vector<64x128xf32>, vector<128x128xf32>, vector<64x128xf32> -> vector<64x128xf32>
    %c4 = arith.constant 4 : index
    %c0_43 = arith.constant 0 : index
    %c0_44 = arith.constant 0 : index
    %128 = vector.load %arg1[%c4, %c0_43, %c0_44] : memref<27x128x128xf32, #tpu.memory_space<vmem>>, vector<1x128x128xf32>
    %129 = vector.shape_cast %128 : vector<1x128x128xf32> to vector<128x128xf32>
    %cst_45 = arith.constant dense<0.000000e+00> : vector<64x128xf32>
    %130 = tpu.matmul %127, %129, %cst_45 {dimension_numbers = #tpu.dot_dimension_numbers<[1], [0], [0], [1], [0, 0, 1, 1], [], []>} : vector<64x128xf32>, vector<128x128xf32>, vector<64x128xf32> -> vector<64x128xf32>
    %131 = arith.addf %126, %130 : vector<64x128xf32>
    %cst_46 = arith.constant dense<0.000000e+00> : vector<64x128xf32>
    %132 = tpu.matmul %120, %88, %cst_46 {dimension_numbers = #tpu.dot_dimension_numbers<[1], [0], [0], [1], [0, 0, 1, 1], [], []>} : vector<64x128xf32>, vector<128x128xf32>, vector<64x128xf32> -> vector<64x128xf32>
    %c5 = arith.constant 5 : index
    %c0_47 = arith.constant 0 : index
    %c0_48 = arith.constant 0 : index
    %133 = vector.load %arg1[%c5, %c0_47, %c0_48] : memref<27x128x128xf32, #tpu.memory_space<vmem>>, vector<1x128x128xf32>
    %134 = vector.shape_cast %133 : vector<1x128x128xf32> to vector<128x128xf32>
    %cst_49 = arith.constant dense<0.000000e+00> : vector<64x128xf32>
    %135 = tpu.matmul %132, %134, %cst_49 {dimension_numbers = #tpu.dot_dimension_numbers<[1], [0], [0], [1], [0, 0, 1, 1], [], []>} : vector<64x128xf32>, vector<128x128xf32>, vector<64x128xf32> -> vector<64x128xf32>
    %136 = arith.addf %131, %135 : vector<64x128xf32>
    %cst_50 = arith.constant 0.000000e+00 : f32
    %137 = vector.broadcast %cst_50 : f32 to vector<64x128xf32>
    %cst_51 = arith.constant dense<0.000000e+00> : vector<64x128xf32>
    %138 = tpu.matmul %106, %97, %cst_51 {dimension_numbers = #tpu.dot_dimension_numbers<[1], [0], [0], [1], [0, 0, 1, 1], [], []>} : vector<64x128xf32>, vector<128x128xf32>, vector<64x128xf32> -> vector<64x128xf32>
    %c3_52 = arith.constant 3 : index
    %c0_53 = arith.constant 0 : index
    %c0_54 = arith.constant 0 : index
    %139 = vector.load %arg1[%c3_52, %c0_53, %c0_54] : memref<27x128x128xf32, #tpu.memory_space<vmem>>, vector<1x128x128xf32>
    %140 = vector.shape_cast %139 : vector<1x128x128xf32> to vector<128x128xf32>
    %cst_55 = arith.constant dense<0.000000e+00> : vector<64x128xf32>
    %141 = tpu.matmul %138, %140, %cst_55 {dimension_numbers = #tpu.dot_dimension_numbers<[1], [0], [0], [1], [0, 0, 1, 1], [], []>} : vector<64x128xf32>, vector<128x128xf32>, vector<64x128xf32> -> vector<64x128xf32>
    %142 = arith.addf %137, %141 : vector<64x128xf32>
    %cst_56 = arith.constant dense<0.000000e+00> : vector<64x128xf32>
    %143 = tpu.matmul %113, %97, %cst_56 {dimension_numbers = #tpu.dot_dimension_numbers<[1], [0], [0], [1], [0, 0, 1, 1], [], []>} : vector<64x128xf32>, vector<128x128xf32>, vector<64x128xf32> -> vector<64x128xf32>
    %c4_57 = arith.constant 4 : index
    %c0_58 = arith.constant 0 : index
    %c0_59 = arith.constant 0 : index
    %144 = vector.load %arg1[%c4_57, %c0_58, %c0_59] : memref<27x128x128xf32, #tpu.memory_space<vmem>>, vector<1x128x128xf32>
    %145 = vector.shape_cast %144 : vector<1x128x128xf32> to vector<128x128xf32>
    %cst_60 = arith.constant dense<0.000000e+00> : vector<64x128xf32>
    %146 = tpu.matmul %143, %145, %cst_60 {dimension_numbers = #tpu.dot_dimension_numbers<[1], [0], [0], [1], [0, 0, 1, 1], [], []>} : vector<64x128xf32>, vector<128x128xf32>, vector<64x128xf32> -> vector<64x128xf32>
    %147 = arith.addf %142, %146 : vector<64x128xf32>
    %cst_61 = arith.constant dense<0.000000e+00> : vector<64x128xf32>
    %148 = tpu.matmul %120, %97, %cst_61 {dimension_numbers = #tpu.dot_dimension_numbers<[1], [0], [0], [1], [0, 0, 1, 1], [], []>} : vector<64x128xf32>, vector<128x128xf32>, vector<64x128xf32> -> vector<64x128xf32>
    %c5_62 = arith.constant 5 : index
    %c0_63 = arith.constant 0 : index
    %c0_64 = arith.constant 0 : index
    %149 = vector.load %arg1[%c5_62, %c0_63, %c0_64] : memref<27x128x128xf32, #tpu.memory_space<vmem>>, vector<1x128x128xf32>
    %150 = vector.shape_cast %149 : vector<1x128x128xf32> to vector<128x128xf32>
    %cst_65 = arith.constant dense<0.000000e+00> : vector<64x128xf32>
    %151 = tpu.matmul %148, %150, %cst_65 {dimension_numbers = #tpu.dot_dimension_numbers<[1], [0], [0], [1], [0, 0, 1, 1], [], []>} : vector<64x128xf32>, vector<128x128xf32>, vector<64x128xf32> -> vector<64x128xf32>
    %152 = arith.addf %147, %151 : vector<64x128xf32>
    %c1_66 = arith.constant 1 : index
    %c0_67 = arith.constant 0 : index
    %c0_68 = arith.constant 0 : index
    %153 = vector.load %arg2[%c1_66, %c0_67, %c0_68] : memref<9x2x128xf32, #tpu.memory_space<vmem>>, vector<1x2x128xf32>
    %154 = vector.shape_cast %153 : vector<1x2x128xf32> to vector<2x128xf32>
    %cst_69 = arith.constant dense<0.000000e+00> : vector<128xf32>
    %155 = vector.multi_reduction <add>, %136, %cst_69 [0] : vector<64x128xf32> to vector<128xf32>
    %156 = vector.shape_cast %155 : vector<128xf32> to vector<1x128xf32>
    %157 = arith.mulf %136, %136 : vector<64x128xf32>
    %cst_70 = arith.constant dense<0.000000e+00> : vector<128xf32>
    %158 = vector.multi_reduction <add>, %157, %cst_70 [0] : vector<64x128xf32> to vector<128xf32>
    %159 = vector.shape_cast %158 : vector<128xf32> to vector<1x128xf32>
    %cst_71 = arith.constant dense<0.000000e+00> : vector<128xf32>
    %160 = vector.multi_reduction <add>, %152, %cst_71 [0] : vector<64x128xf32> to vector<128xf32>
    %161 = vector.shape_cast %160 : vector<128xf32> to vector<1x128xf32>
    %162 = arith.addf %156, %161 : vector<1x128xf32>
    %163 = arith.mulf %152, %152 : vector<64x128xf32>
    %cst_72 = arith.constant dense<0.000000e+00> : vector<128xf32>
    %164 = vector.multi_reduction <add>, %163, %cst_72 [0] : vector<64x128xf32> to vector<128xf32>
    %165 = vector.shape_cast %164 : vector<128xf32> to vector<1x128xf32>
    %166 = arith.addf %159, %165 : vector<1x128xf32>
    %cst_73 = arith.constant 7.812500e-03 : f32
    %167 = vector.broadcast %cst_73 : f32 to vector<1x128xf32>
    %168 = arith.mulf %162, %167 : vector<1x128xf32>
    %cst_74 = arith.constant 7.812500e-03 : f32
    %169 = vector.broadcast %cst_74 : f32 to vector<1x128xf32>
    %170 = arith.mulf %166, %169 : vector<1x128xf32>
    %171 = arith.mulf %168, %168 : vector<1x128xf32>
    %172 = arith.subf %170, %171 : vector<1x128xf32>
    %cst_75 = arith.constant 0.000000e+00 : f32
    %173 = vector.broadcast %cst_75 : f32 to vector<1x128xf32>
    %174 = arith.maximumf %172, %173 : vector<1x128xf32>
    %175 = vector.extract_strided_slice %154 {offsets = [0, 0], sizes = [1, 128], strides = [1, 1]} : vector<2x128xf32> to vector<1x128xf32>
    %176 = vector.extract_strided_slice %154 {offsets = [1, 0], sizes = [1, 128], strides = [1, 1]} : vector<2x128xf32> to vector<1x128xf32>
    %cst_76 = arith.constant 9.99999974E-6 : f32
    %177 = vector.broadcast %cst_76 : f32 to vector<1x128xf32>
    %178 = arith.addf %174, %177 : vector<1x128xf32>
    %179 = math.rsqrt %178 : vector<1x128xf32>
    %180 = arith.mulf %175, %179 : vector<1x128xf32>
    %181 = arith.mulf %168, %180 : vector<1x128xf32>
    %182 = arith.subf %176, %181 : vector<1x128xf32>
    %183 = vector.broadcast %180 : vector<1x128xf32> to vector<64x128xf32>
    %184 = arith.mulf %136, %183 : vector<64x128xf32>
    %185 = vector.broadcast %182 : vector<1x128xf32> to vector<64x128xf32>
    %186 = arith.addf %184, %185 : vector<64x128xf32>
    %cst_77 = arith.constant 0.000000e+00 : f32
    %187 = vector.broadcast %cst_77 : f32 to vector<64x128xf32>
    %188 = arith.cmpf oge, %186, %187 : vector<64x128xf32>
    %cst_78 = arith.constant 0.00999999977 : f32
    %189 = vector.broadcast %cst_78 : f32 to vector<64x128xf32>
    %190 = arith.mulf %189, %186 : vector<64x128xf32>
    %191 = arith.select %188, %186, %190 : vector<64x128xi1>, vector<64x128xf32>
    %192 = vector.broadcast %180 : vector<1x128xf32> to vector<64x128xf32>
    %193 = arith.mulf %152, %192 : vector<64x128xf32>
    %194 = vector.broadcast %182 : vector<1x128xf32> to vector<64x128xf32>
    %195 = arith.addf %193, %194 : vector<64x128xf32>
    %cst_79 = arith.constant 0.000000e+00 : f32
    %196 = vector.broadcast %cst_79 : f32 to vector<64x128xf32>
    %197 = arith.cmpf oge, %195, %196 : vector<64x128xf32>
    %cst_80 = arith.constant 0.00999999977 : f32
    %198 = vector.broadcast %cst_80 : f32 to vector<64x128xf32>
    %199 = arith.mulf %198, %195 : vector<64x128xf32>
    %200 = arith.select %197, %195, %199 : vector<64x128xi1>, vector<64x128xf32>
    %201 = tpu.iota {dimensions = array<i32: 0>} : vector<32x64xi32>
    %202 = tpu.iota {dimensions = array<i32: 1>} : vector<32x64xi32>
    %c2_i32_81 = arith.constant 2 : i32
    %203 = vector.broadcast %c2_i32_81 : i32 to vector<32x64xi32>
    %204 = arith.muli %203, %201 : vector<32x64xi32>
    %c-1_i32_82 = arith.constant -1 : i32
    %205 = vector.broadcast %c-1_i32_82 : i32 to vector<32x64xi32>
    %206 = arith.addi %204, %205 : vector<32x64xi32>
    %207 = arith.cmpi eq, %202, %206 : vector<32x64xi32>
    %208 = arith.extui %207 : vector<32x64xi1> to vector<32x64xi32>
    %209 = arith.sitofp %208 : vector<32x64xi32> to vector<32x64xf32>
    %c2_i32_83 = arith.constant 2 : i32
    %210 = vector.broadcast %c2_i32_83 : i32 to vector<32x64xi32>
    %211 = arith.muli %210, %201 : vector<32x64xi32>
    %c0_i32_84 = arith.constant 0 : i32
    %212 = vector.broadcast %c0_i32_84 : i32 to vector<32x64xi32>
    %213 = arith.addi %211, %212 : vector<32x64xi32>
    %214 = arith.cmpi eq, %202, %213 : vector<32x64xi32>
    %215 = arith.extui %214 : vector<32x64xi1> to vector<32x64xi32>
    %216 = arith.sitofp %215 : vector<32x64xi32> to vector<32x64xf32>
    %c2_i32_85 = arith.constant 2 : i32
    %217 = vector.broadcast %c2_i32_85 : i32 to vector<32x64xi32>
    %218 = arith.muli %217, %201 : vector<32x64xi32>
    %c1_i32_86 = arith.constant 1 : i32
    %219 = vector.broadcast %c1_i32_86 : i32 to vector<32x64xi32>
    %220 = arith.addi %218, %219 : vector<32x64xi32>
    %221 = arith.cmpi eq, %202, %220 : vector<32x64xi32>
    %222 = arith.extui %221 : vector<32x64xi1> to vector<32x64xi32>
    %223 = arith.sitofp %222 : vector<32x64xi32> to vector<32x64xf32>
    %cst_87 = arith.constant 0.000000e+00 : f32
    %224 = vector.broadcast %cst_87 : f32 to vector<32x128xf32>
    %cst_88 = arith.constant dense<0.000000e+00> : vector<32x128xf32>
    %225 = tpu.matmul %209, %191, %cst_88 {dimension_numbers = #tpu.dot_dimension_numbers<[1], [0], [0], [1], [0, 0, 1, 1], [], []>} : vector<32x64xf32>, vector<64x128xf32>, vector<32x128xf32> -> vector<32x128xf32>
    %c6 = arith.constant 6 : index
    %c0_89 = arith.constant 0 : index
    %c0_90 = arith.constant 0 : index
    %226 = vector.load %arg1[%c6, %c0_89, %c0_90] : memref<27x128x128xf32, #tpu.memory_space<vmem>>, vector<1x128x128xf32>
    %227 = vector.shape_cast %226 : vector<1x128x128xf32> to vector<128x128xf32>
    %cst_91 = arith.constant dense<0.000000e+00> : vector<32x128xf32>
    %228 = tpu.matmul %225, %227, %cst_91 {dimension_numbers = #tpu.dot_dimension_numbers<[1], [0], [0], [1], [0, 0, 1, 1], [], []>} : vector<32x128xf32>, vector<128x128xf32>, vector<32x128xf32> -> vector<32x128xf32>
    %229 = arith.addf %224, %228 : vector<32x128xf32>
    %cst_92 = arith.constant dense<0.000000e+00> : vector<32x128xf32>
    %230 = tpu.matmul %216, %191, %cst_92 {dimension_numbers = #tpu.dot_dimension_numbers<[1], [0], [0], [1], [0, 0, 1, 1], [], []>} : vector<32x64xf32>, vector<64x128xf32>, vector<32x128xf32> -> vector<32x128xf32>
    %c7 = arith.constant 7 : index
    %c0_93 = arith.constant 0 : index
    %c0_94 = arith.constant 0 : index
    %231 = vector.load %arg1[%c7, %c0_93, %c0_94] : memref<27x128x128xf32, #tpu.memory_space<vmem>>, vector<1x128x128xf32>
    %232 = vector.shape_cast %231 : vector<1x128x128xf32> to vector<128x128xf32>
    %cst_95 = arith.constant dense<0.000000e+00> : vector<32x128xf32>
    %233 = tpu.matmul %230, %232, %cst_95 {dimension_numbers = #tpu.dot_dimension_numbers<[1], [0], [0], [1], [0, 0, 1, 1], [], []>} : vector<32x128xf32>, vector<128x128xf32>, vector<32x128xf32> -> vector<32x128xf32>
    %234 = arith.addf %229, %233 : vector<32x128xf32>
    %cst_96 = arith.constant dense<0.000000e+00> : vector<32x128xf32>
    %235 = tpu.matmul %223, %191, %cst_96 {dimension_numbers = #tpu.dot_dimension_numbers<[1], [0], [0], [1], [0, 0, 1, 1], [], []>} : vector<32x64xf32>, vector<64x128xf32>, vector<32x128xf32> -> vector<32x128xf32>
    %c8 = arith.constant 8 : index
    %c0_97 = arith.constant 0 : index
    %c0_98 = arith.constant 0 : index
    %236 = vector.load %arg1[%c8, %c0_97, %c0_98] : memref<27x128x128xf32, #tpu.memory_space<vmem>>, vector<1x128x128xf32>
    %237 = vector.shape_cast %236 : vector<1x128x128xf32> to vector<128x128xf32>
    %cst_99 = arith.constant dense<0.000000e+00> : vector<32x128xf32>
    %238 = tpu.matmul %235, %237, %cst_99 {dimension_numbers = #tpu.dot_dimension_numbers<[1], [0], [0], [1], [0, 0, 1, 1], [], []>} : vector<32x128xf32>, vector<128x128xf32>, vector<32x128xf32> -> vector<32x128xf32>
    %239 = arith.addf %234, %238 : vector<32x128xf32>
    %cst_100 = arith.constant 0.000000e+00 : f32
    %240 = vector.broadcast %cst_100 : f32 to vector<32x128xf32>
    %cst_101 = arith.constant dense<0.000000e+00> : vector<32x128xf32>
    %241 = tpu.matmul %209, %200, %cst_101 {dimension_numbers = #tpu.dot_dimension_numbers<[1], [0], [0], [1], [0, 0, 1, 1], [], []>} : vector<32x64xf32>, vector<64x128xf32>, vector<32x128xf32> -> vector<32x128xf32>
    %c6_102 = arith.constant 6 : index
    %c0_103 = arith.constant 0 : index
    %c0_104 = arith.constant 0 : index
    %242 = vector.load %arg1[%c6_102, %c0_103, %c0_104] : memref<27x128x128xf32, #tpu.memory_space<vmem>>, vector<1x128x128xf32>
    %243 = vector.shape_cast %242 : vector<1x128x128xf32> to vector<128x128xf32>
    %cst_105 = arith.constant dense<0.000000e+00> : vector<32x128xf32>
    %244 = tpu.matmul %241, %243, %cst_105 {dimension_numbers = #tpu.dot_dimension_numbers<[1], [0], [0], [1], [0, 0, 1, 1], [], []>} : vector<32x128xf32>, vector<128x128xf32>, vector<32x128xf32> -> vector<32x128xf32>
    %245 = arith.addf %240, %244 : vector<32x128xf32>
    %cst_106 = arith.constant dense<0.000000e+00> : vector<32x128xf32>
    %246 = tpu.matmul %216, %200, %cst_106 {dimension_numbers = #tpu.dot_dimension_numbers<[1], [0], [0], [1], [0, 0, 1, 1], [], []>} : vector<32x64xf32>, vector<64x128xf32>, vector<32x128xf32> -> vector<32x128xf32>
    %c7_107 = arith.constant 7 : index
    %c0_108 = arith.constant 0 : index
    %c0_109 = arith.constant 0 : index
    %247 = vector.load %arg1[%c7_107, %c0_108, %c0_109] : memref<27x128x128xf32, #tpu.memory_space<vmem>>, vector<1x128x128xf32>
    %248 = vector.shape_cast %247 : vector<1x128x128xf32> to vector<128x128xf32>
    %cst_110 = arith.constant dense<0.000000e+00> : vector<32x128xf32>
    %249 = tpu.matmul %246, %248, %cst_110 {dimension_numbers = #tpu.dot_dimension_numbers<[1], [0], [0], [1], [0, 0, 1, 1], [], []>} : vector<32x128xf32>, vector<128x128xf32>, vector<32x128xf32> -> vector<32x128xf32>
    %250 = arith.addf %245, %249 : vector<32x128xf32>
    %cst_111 = arith.constant dense<0.000000e+00> : vector<32x128xf32>
    %251 = tpu.matmul %223, %200, %cst_111 {dimension_numbers = #tpu.dot_dimension_numbers<[1], [0], [0], [1], [0, 0, 1, 1], [], []>} : vector<32x64xf32>, vector<64x128xf32>, vector<32x128xf32> -> vector<32x128xf32>
    %c8_112 = arith.constant 8 : index
    %c0_113 = arith.constant 0 : index
    %c0_114 = arith.constant 0 : index
    %252 = vector.load %arg1[%c8_112, %c0_113, %c0_114] : memref<27x128x128xf32, #tpu.memory_space<vmem>>, vector<1x128x128xf32>
    %253 = vector.shape_cast %252 : vector<1x128x128xf32> to vector<128x128xf32>
    %cst_115 = arith.constant dense<0.000000e+00> : vector<32x128xf32>
    %254 = tpu.matmul %251, %253, %cst_115 {dimension_numbers = #tpu.dot_dimension_numbers<[1], [0], [0], [1], [0, 0, 1, 1], [], []>} : vector<32x128xf32>, vector<128x128xf32>, vector<32x128xf32> -> vector<32x128xf32>
    %255 = arith.addf %250, %254 : vector<32x128xf32>
    %c2_116 = arith.constant 2 : index
    %c0_117 = arith.constant 0 : index
    %c0_118 = arith.constant 0 : index
    %256 = vector.load %arg2[%c2_116, %c0_117, %c0_118] : memref<9x2x128xf32, #tpu.memory_space<vmem>>, vector<1x2x128xf32>
    %257 = vector.shape_cast %256 : vector<1x2x128xf32> to vector<2x128xf32>
    %cst_119 = arith.constant dense<0.000000e+00> : vector<128xf32>
    %258 = vector.multi_reduction <add>, %239, %cst_119 [0] : vector<32x128xf32> to vector<128xf32>
    %259 = vector.shape_cast %258 : vector<128xf32> to vector<1x128xf32>
    %260 = arith.mulf %239, %239 : vector<32x128xf32>
    %cst_120 = arith.constant dense<0.000000e+00> : vector<128xf32>
    %261 = vector.multi_reduction <add>, %260, %cst_120 [0] : vector<32x128xf32> to vector<128xf32>
    %262 = vector.shape_cast %261 : vector<128xf32> to vector<1x128xf32>
    %cst_121 = arith.constant dense<0.000000e+00> : vector<128xf32>
    %263 = vector.multi_reduction <add>, %255, %cst_121 [0] : vector<32x128xf32> to vector<128xf32>
    %264 = vector.shape_cast %263 : vector<128xf32> to vector<1x128xf32>
    %265 = arith.addf %259, %264 : vector<1x128xf32>
    %266 = arith.mulf %255, %255 : vector<32x128xf32>
    %cst_122 = arith.constant dense<0.000000e+00> : vector<128xf32>
    %267 = vector.multi_reduction <add>, %266, %cst_122 [0] : vector<32x128xf32> to vector<128xf32>
    %268 = vector.shape_cast %267 : vector<128xf32> to vector<1x128xf32>
    %269 = arith.addf %262, %268 : vector<1x128xf32>
    %cst_123 = arith.constant 1.562500e-02 : f32
    %270 = vector.broadcast %cst_123 : f32 to vector<1x128xf32>
    %271 = arith.mulf %265, %270 : vector<1x128xf32>
    %cst_124 = arith.constant 1.562500e-02 : f32
    %272 = vector.broadcast %cst_124 : f32 to vector<1x128xf32>
    %273 = arith.mulf %269, %272 : vector<1x128xf32>
    %274 = arith.mulf %271, %271 : vector<1x128xf32>
    %275 = arith.subf %273, %274 : vector<1x128xf32>
    %cst_125 = arith.constant 0.000000e+00 : f32
    %276 = vector.broadcast %cst_125 : f32 to vector<1x128xf32>
    %277 = arith.maximumf %275, %276 : vector<1x128xf32>
    %278 = vector.extract_strided_slice %257 {offsets = [0, 0], sizes = [1, 128], strides = [1, 1]} : vector<2x128xf32> to vector<1x128xf32>
    %279 = vector.extract_strided_slice %257 {offsets = [1, 0], sizes = [1, 128], strides = [1, 1]} : vector<2x128xf32> to vector<1x128xf32>
    %cst_126 = arith.constant 9.99999974E-6 : f32
    %280 = vector.broadcast %cst_126 : f32 to vector<1x128xf32>
    %281 = arith.addf %277, %280 : vector<1x128xf32>
    %282 = math.rsqrt %281 : vector<1x128xf32>
    %283 = arith.mulf %278, %282 : vector<1x128xf32>
    %284 = arith.mulf %271, %283 : vector<1x128xf32>
    %285 = arith.subf %279, %284 : vector<1x128xf32>
    %286 = vector.broadcast %283 : vector<1x128xf32> to vector<32x128xf32>
    %287 = arith.mulf %239, %286 : vector<32x128xf32>
    %288 = vector.broadcast %285 : vector<1x128xf32> to vector<32x128xf32>
    %289 = arith.addf %287, %288 : vector<32x128xf32>
    %cst_127 = arith.constant 0.000000e+00 : f32
    %290 = vector.broadcast %cst_127 : f32 to vector<32x128xf32>
    %291 = arith.cmpf oge, %289, %290 : vector<32x128xf32>
    %cst_128 = arith.constant 0.00999999977 : f32
    %292 = vector.broadcast %cst_128 : f32 to vector<32x128xf32>
    %293 = arith.mulf %292, %289 : vector<32x128xf32>
    %294 = arith.select %291, %289, %293 : vector<32x128xi1>, vector<32x128xf32>
    %295 = vector.broadcast %283 : vector<1x128xf32> to vector<32x128xf32>
    %296 = arith.mulf %255, %295 : vector<32x128xf32>
    %297 = vector.broadcast %285 : vector<1x128xf32> to vector<32x128xf32>
    %298 = arith.addf %296, %297 : vector<32x128xf32>
    %cst_129 = arith.constant 0.000000e+00 : f32
    %299 = vector.broadcast %cst_129 : f32 to vector<32x128xf32>
    %300 = arith.cmpf oge, %298, %299 : vector<32x128xf32>
    %cst_130 = arith.constant 0.00999999977 : f32
    %301 = vector.broadcast %cst_130 : f32 to vector<32x128xf32>
    %302 = arith.mulf %301, %298 : vector<32x128xf32>
    %303 = arith.select %300, %298, %302 : vector<32x128xi1>, vector<32x128xf32>
    %304 = tpu.iota {dimensions = array<i32: 0>} : vector<16x32xi32>
    %305 = tpu.iota {dimensions = array<i32: 1>} : vector<16x32xi32>
    %c2_i32_131 = arith.constant 2 : i32
    %306 = vector.broadcast %c2_i32_131 : i32 to vector<16x32xi32>
    %307 = arith.muli %306, %304 : vector<16x32xi32>
    %c-1_i32_132 = arith.constant -1 : i32
    %308 = vector.broadcast %c-1_i32_132 : i32 to vector<16x32xi32>
    %309 = arith.addi %307, %308 : vector<16x32xi32>
    %310 = arith.cmpi eq, %305, %309 : vector<16x32xi32>
    %311 = arith.extui %310 : vector<16x32xi1> to vector<16x32xi32>
    %312 = arith.sitofp %311 : vector<16x32xi32> to vector<16x32xf32>
    %c2_i32_133 = arith.constant 2 : i32
    %313 = vector.broadcast %c2_i32_133 : i32 to vector<16x32xi32>
    %314 = arith.muli %313, %304 : vector<16x32xi32>
    %c0_i32_134 = arith.constant 0 : i32
    %315 = vector.broadcast %c0_i32_134 : i32 to vector<16x32xi32>
    %316 = arith.addi %314, %315 : vector<16x32xi32>
    %317 = arith.cmpi eq, %305, %316 : vector<16x32xi32>
    %318 = arith.extui %317 : vector<16x32xi1> to vector<16x32xi32>
    %319 = arith.sitofp %318 : vector<16x32xi32> to vector<16x32xf32>
    %c2_i32_135 = arith.constant 2 : i32
    %320 = vector.broadcast %c2_i32_135 : i32 to vector<16x32xi32>
    %321 = arith.muli %320, %304 : vector<16x32xi32>
    %c1_i32_136 = arith.constant 1 : i32
    %322 = vector.broadcast %c1_i32_136 : i32 to vector<16x32xi32>
    %323 = arith.addi %321, %322 : vector<16x32xi32>
    %324 = arith.cmpi eq, %305, %323 : vector<16x32xi32>
    %325 = arith.extui %324 : vector<16x32xi1> to vector<16x32xi32>
    %326 = arith.sitofp %325 : vector<16x32xi32> to vector<16x32xf32>
    %cst_137 = arith.constant 0.000000e+00 : f32
    %327 = vector.broadcast %cst_137 : f32 to vector<16x128xf32>
    %cst_138 = arith.constant dense<0.000000e+00> : vector<16x128xf32>
    %328 = tpu.matmul %312, %294, %cst_138 {dimension_numbers = #tpu.dot_dimension_numbers<[1], [0], [0], [1], [0, 0, 1, 1], [], []>} : vector<16x32xf32>, vector<32x128xf32>, vector<16x128xf32> -> vector<16x128xf32>
    %c9 = arith.constant 9 : index
    %c0_139 = arith.constant 0 : index
    %c0_140 = arith.constant 0 : index
    %329 = vector.load %arg1[%c9, %c0_139, %c0_140] : memref<27x128x128xf32, #tpu.memory_space<vmem>>, vector<1x128x128xf32>
    %330 = vector.shape_cast %329 : vector<1x128x128xf32> to vector<128x128xf32>
    %cst_141 = arith.constant dense<0.000000e+00> : vector<16x128xf32>
    %331 = tpu.matmul %328, %330, %cst_141 {dimension_numbers = #tpu.dot_dimension_numbers<[1], [0], [0], [1], [0, 0, 1, 1], [], []>} : vector<16x128xf32>, vector<128x128xf32>, vector<16x128xf32> -> vector<16x128xf32>
    %332 = arith.addf %327, %331 : vector<16x128xf32>
    %cst_142 = arith.constant dense<0.000000e+00> : vector<16x128xf32>
    %333 = tpu.matmul %319, %294, %cst_142 {dimension_numbers = #tpu.dot_dimension_numbers<[1], [0], [0], [1], [0, 0, 1, 1], [], []>} : vector<16x32xf32>, vector<32x128xf32>, vector<16x128xf32> -> vector<16x128xf32>
    %c10 = arith.constant 10 : index
    %c0_143 = arith.constant 0 : index
    %c0_144 = arith.constant 0 : index
    %334 = vector.load %arg1[%c10, %c0_143, %c0_144] : memref<27x128x128xf32, #tpu.memory_space<vmem>>, vector<1x128x128xf32>
    %335 = vector.shape_cast %334 : vector<1x128x128xf32> to vector<128x128xf32>
    %cst_145 = arith.constant dense<0.000000e+00> : vector<16x128xf32>
    %336 = tpu.matmul %333, %335, %cst_145 {dimension_numbers = #tpu.dot_dimension_numbers<[1], [0], [0], [1], [0, 0, 1, 1], [], []>} : vector<16x128xf32>, vector<128x128xf32>, vector<16x128xf32> -> vector<16x128xf32>
    %337 = arith.addf %332, %336 : vector<16x128xf32>
    %cst_146 = arith.constant dense<0.000000e+00> : vector<16x128xf32>
    %338 = tpu.matmul %326, %294, %cst_146 {dimension_numbers = #tpu.dot_dimension_numbers<[1], [0], [0], [1], [0, 0, 1, 1], [], []>} : vector<16x32xf32>, vector<32x128xf32>, vector<16x128xf32> -> vector<16x128xf32>
    %c11 = arith.constant 11 : index
    %c0_147 = arith.constant 0 : index
    %c0_148 = arith.constant 0 : index
    %339 = vector.load %arg1[%c11, %c0_147, %c0_148] : memref<27x128x128xf32, #tpu.memory_space<vmem>>, vector<1x128x128xf32>
    %340 = vector.shape_cast %339 : vector<1x128x128xf32> to vector<128x128xf32>
    %cst_149 = arith.constant dense<0.000000e+00> : vector<16x128xf32>
    %341 = tpu.matmul %338, %340, %cst_149 {dimension_numbers = #tpu.dot_dimension_numbers<[1], [0], [0], [1], [0, 0, 1, 1], [], []>} : vector<16x128xf32>, vector<128x128xf32>, vector<16x128xf32> -> vector<16x128xf32>
    %342 = arith.addf %337, %341 : vector<16x128xf32>
    %cst_150 = arith.constant 0.000000e+00 : f32
    %343 = vector.broadcast %cst_150 : f32 to vector<16x128xf32>
    %cst_151 = arith.constant dense<0.000000e+00> : vector<16x128xf32>
    %344 = tpu.matmul %312, %303, %cst_151 {dimension_numbers = #tpu.dot_dimension_numbers<[1], [0], [0], [1], [0, 0, 1, 1], [], []>} : vector<16x32xf32>, vector<32x128xf32>, vector<16x128xf32> -> vector<16x128xf32>
    %c9_152 = arith.constant 9 : index
    %c0_153 = arith.constant 0 : index
    %c0_154 = arith.constant 0 : index
    %345 = vector.load %arg1[%c9_152, %c0_153, %c0_154] : memref<27x128x128xf32, #tpu.memory_space<vmem>>, vector<1x128x128xf32>
    %346 = vector.shape_cast %345 : vector<1x128x128xf32> to vector<128x128xf32>
    %cst_155 = arith.constant dense<0.000000e+00> : vector<16x128xf32>
    %347 = tpu.matmul %344, %346, %cst_155 {dimension_numbers = #tpu.dot_dimension_numbers<[1], [0], [0], [1], [0, 0, 1, 1], [], []>} : vector<16x128xf32>, vector<128x128xf32>, vector<16x128xf32> -> vector<16x128xf32>
    %348 = arith.addf %343, %347 : vector<16x128xf32>
    %cst_156 = arith.constant dense<0.000000e+00> : vector<16x128xf32>
    %349 = tpu.matmul %319, %303, %cst_156 {dimension_numbers = #tpu.dot_dimension_numbers<[1], [0], [0], [1], [0, 0, 1, 1], [], []>} : vector<16x32xf32>, vector<32x128xf32>, vector<16x128xf32> -> vector<16x128xf32>
    %c10_157 = arith.constant 10 : index
    %c0_158 = arith.constant 0 : index
    %c0_159 = arith.constant 0 : index
    %350 = vector.load %arg1[%c10_157, %c0_158, %c0_159] : memref<27x128x128xf32, #tpu.memory_space<vmem>>, vector<1x128x128xf32>
    %351 = vector.shape_cast %350 : vector<1x128x128xf32> to vector<128x128xf32>
    %cst_160 = arith.constant dense<0.000000e+00> : vector<16x128xf32>
    %352 = tpu.matmul %349, %351, %cst_160 {dimension_numbers = #tpu.dot_dimension_numbers<[1], [0], [0], [1], [0, 0, 1, 1], [], []>} : vector<16x128xf32>, vector<128x128xf32>, vector<16x128xf32> -> vector<16x128xf32>
    %353 = arith.addf %348, %352 : vector<16x128xf32>
    %cst_161 = arith.constant dense<0.000000e+00> : vector<16x128xf32>
    %354 = tpu.matmul %326, %303, %cst_161 {dimension_numbers = #tpu.dot_dimension_numbers<[1], [0], [0], [1], [0, 0, 1, 1], [], []>} : vector<16x32xf32>, vector<32x128xf32>, vector<16x128xf32> -> vector<16x128xf32>
    %c11_162 = arith.constant 11 : index
    %c0_163 = arith.constant 0 : index
    %c0_164 = arith.constant 0 : index
    %355 = vector.load %arg1[%c11_162, %c0_163, %c0_164] : memref<27x128x128xf32, #tpu.memory_space<vmem>>, vector<1x128x128xf32>
    %356 = vector.shape_cast %355 : vector<1x128x128xf32> to vector<128x128xf32>
    %cst_165 = arith.constant dense<0.000000e+00> : vector<16x128xf32>
    %357 = tpu.matmul %354, %356, %cst_165 {dimension_numbers = #tpu.dot_dimension_numbers<[1], [0], [0], [1], [0, 0, 1, 1], [], []>} : vector<16x128xf32>, vector<128x128xf32>, vector<16x128xf32> -> vector<16x128xf32>
    %358 = arith.addf %353, %357 : vector<16x128xf32>
    %c3_166 = arith.constant 3 : index
    %c0_167 = arith.constant 0 : index
    %c0_168 = arith.constant 0 : index
    %359 = vector.load %arg2[%c3_166, %c0_167, %c0_168] : memref<9x2x128xf32, #tpu.memory_space<vmem>>, vector<1x2x128xf32>
    %360 = vector.shape_cast %359 : vector<1x2x128xf32> to vector<2x128xf32>
    %cst_169 = arith.constant dense<0.000000e+00> : vector<128xf32>
    %361 = vector.multi_reduction <add>, %342, %cst_169 [0] : vector<16x128xf32> to vector<128xf32>
    %362 = vector.shape_cast %361 : vector<128xf32> to vector<1x128xf32>
    %363 = arith.mulf %342, %342 : vector<16x128xf32>
    %cst_170 = arith.constant dense<0.000000e+00> : vector<128xf32>
    %364 = vector.multi_reduction <add>, %363, %cst_170 [0] : vector<16x128xf32> to vector<128xf32>
    %365 = vector.shape_cast %364 : vector<128xf32> to vector<1x128xf32>
    %cst_171 = arith.constant dense<0.000000e+00> : vector<128xf32>
    %366 = vector.multi_reduction <add>, %358, %cst_171 [0] : vector<16x128xf32> to vector<128xf32>
    %367 = vector.shape_cast %366 : vector<128xf32> to vector<1x128xf32>
    %368 = arith.addf %362, %367 : vector<1x128xf32>
    %369 = arith.mulf %358, %358 : vector<16x128xf32>
    %cst_172 = arith.constant dense<0.000000e+00> : vector<128xf32>
    %370 = vector.multi_reduction <add>, %369, %cst_172 [0] : vector<16x128xf32> to vector<128xf32>
    %371 = vector.shape_cast %370 : vector<128xf32> to vector<1x128xf32>
    %372 = arith.addf %365, %371 : vector<1x128xf32>
    %cst_173 = arith.constant 3.125000e-02 : f32
    %373 = vector.broadcast %cst_173 : f32 to vector<1x128xf32>
    %374 = arith.mulf %368, %373 : vector<1x128xf32>
    %cst_174 = arith.constant 3.125000e-02 : f32
    %375 = vector.broadcast %cst_174 : f32 to vector<1x128xf32>
    %376 = arith.mulf %372, %375 : vector<1x128xf32>
    %377 = arith.mulf %374, %374 : vector<1x128xf32>
    %378 = arith.subf %376, %377 : vector<1x128xf32>
    %cst_175 = arith.constant 0.000000e+00 : f32
    %379 = vector.broadcast %cst_175 : f32 to vector<1x128xf32>
    %380 = arith.maximumf %378, %379 : vector<1x128xf32>
    %381 = vector.extract_strided_slice %360 {offsets = [0, 0], sizes = [1, 128], strides = [1, 1]} : vector<2x128xf32> to vector<1x128xf32>
    %382 = vector.extract_strided_slice %360 {offsets = [1, 0], sizes = [1, 128], strides = [1, 1]} : vector<2x128xf32> to vector<1x128xf32>
    %cst_176 = arith.constant 9.99999974E-6 : f32
    %383 = vector.broadcast %cst_176 : f32 to vector<1x128xf32>
    %384 = arith.addf %380, %383 : vector<1x128xf32>
    %385 = math.rsqrt %384 : vector<1x128xf32>
    %386 = arith.mulf %381, %385 : vector<1x128xf32>
    %387 = arith.mulf %374, %386 : vector<1x128xf32>
    %388 = arith.subf %382, %387 : vector<1x128xf32>
    %389 = vector.broadcast %386 : vector<1x128xf32> to vector<16x128xf32>
    %390 = arith.mulf %342, %389 : vector<16x128xf32>
    %391 = vector.broadcast %388 : vector<1x128xf32> to vector<16x128xf32>
    %392 = arith.addf %390, %391 : vector<16x128xf32>
    %cst_177 = arith.constant 0.000000e+00 : f32
    %393 = vector.broadcast %cst_177 : f32 to vector<16x128xf32>
    %394 = arith.cmpf oge, %392, %393 : vector<16x128xf32>
    %cst_178 = arith.constant 0.00999999977 : f32
    %395 = vector.broadcast %cst_178 : f32 to vector<16x128xf32>
    %396 = arith.mulf %395, %392 : vector<16x128xf32>
    %397 = arith.select %394, %392, %396 : vector<16x128xi1>, vector<16x128xf32>
    %398 = vector.broadcast %386 : vector<1x128xf32> to vector<16x128xf32>
    %399 = arith.mulf %358, %398 : vector<16x128xf32>
    %400 = vector.broadcast %388 : vector<1x128xf32> to vector<16x128xf32>
    %401 = arith.addf %399, %400 : vector<16x128xf32>
    %cst_179 = arith.constant 0.000000e+00 : f32
    %402 = vector.broadcast %cst_179 : f32 to vector<16x128xf32>
    %403 = arith.cmpf oge, %401, %402 : vector<16x128xf32>
    %cst_180 = arith.constant 0.00999999977 : f32
    %404 = vector.broadcast %cst_180 : f32 to vector<16x128xf32>
    %405 = arith.mulf %404, %401 : vector<16x128xf32>
    %406 = arith.select %403, %401, %405 : vector<16x128xi1>, vector<16x128xf32>
    %407 = tpu.iota {dimensions = array<i32: 0>} : vector<8x16xi32>
    %408 = tpu.iota {dimensions = array<i32: 1>} : vector<8x16xi32>
    %c2_i32_181 = arith.constant 2 : i32
    %409 = vector.broadcast %c2_i32_181 : i32 to vector<8x16xi32>
    %410 = arith.muli %409, %407 : vector<8x16xi32>
    %c-1_i32_182 = arith.constant -1 : i32
    %411 = vector.broadcast %c-1_i32_182 : i32 to vector<8x16xi32>
    %412 = arith.addi %410, %411 : vector<8x16xi32>
    %413 = arith.cmpi eq, %408, %412 : vector<8x16xi32>
    %414 = arith.extui %413 : vector<8x16xi1> to vector<8x16xi32>
    %415 = arith.sitofp %414 : vector<8x16xi32> to vector<8x16xf32>
    %c2_i32_183 = arith.constant 2 : i32
    %416 = vector.broadcast %c2_i32_183 : i32 to vector<8x16xi32>
    %417 = arith.muli %416, %407 : vector<8x16xi32>
    %c0_i32_184 = arith.constant 0 : i32
    %418 = vector.broadcast %c0_i32_184 : i32 to vector<8x16xi32>
    %419 = arith.addi %417, %418 : vector<8x16xi32>
    %420 = arith.cmpi eq, %408, %419 : vector<8x16xi32>
    %421 = arith.extui %420 : vector<8x16xi1> to vector<8x16xi32>
    %422 = arith.sitofp %421 : vector<8x16xi32> to vector<8x16xf32>
    %c2_i32_185 = arith.constant 2 : i32
    %423 = vector.broadcast %c2_i32_185 : i32 to vector<8x16xi32>
    %424 = arith.muli %423, %407 : vector<8x16xi32>
    %c1_i32_186 = arith.constant 1 : i32
    %425 = vector.broadcast %c1_i32_186 : i32 to vector<8x16xi32>
    %426 = arith.addi %424, %425 : vector<8x16xi32>
    %427 = arith.cmpi eq, %408, %426 : vector<8x16xi32>
    %428 = arith.extui %427 : vector<8x16xi1> to vector<8x16xi32>
    %429 = arith.sitofp %428 : vector<8x16xi32> to vector<8x16xf32>
    %cst_187 = arith.constant 0.000000e+00 : f32
    %430 = vector.broadcast %cst_187 : f32 to vector<8x128xf32>
    %cst_188 = arith.constant dense<0.000000e+00> : vector<8x128xf32>
    %431 = tpu.matmul %415, %397, %cst_188 {dimension_numbers = #tpu.dot_dimension_numbers<[1], [0], [0], [1], [0, 0, 1, 1], [], []>} : vector<8x16xf32>, vector<16x128xf32>, vector<8x128xf32> -> vector<8x128xf32>
    %c12 = arith.constant 12 : index
    %c0_189 = arith.constant 0 : index
    %c0_190 = arith.constant 0 : index
    %432 = vector.load %arg1[%c12, %c0_189, %c0_190] : memref<27x128x128xf32, #tpu.memory_space<vmem>>, vector<1x128x128xf32>
    %433 = vector.shape_cast %432 : vector<1x128x128xf32> to vector<128x128xf32>
    %cst_191 = arith.constant dense<0.000000e+00> : vector<8x128xf32>
    %434 = tpu.matmul %431, %433, %cst_191 {dimension_numbers = #tpu.dot_dimension_numbers<[1], [0], [0], [1], [0, 0, 1, 1], [], []>} : vector<8x128xf32>, vector<128x128xf32>, vector<8x128xf32> -> vector<8x128xf32>
    %435 = arith.addf %430, %434 : vector<8x128xf32>
    %cst_192 = arith.constant dense<0.000000e+00> : vector<8x128xf32>
    %436 = tpu.matmul %422, %397, %cst_192 {dimension_numbers = #tpu.dot_dimension_numbers<[1], [0], [0], [1], [0, 0, 1, 1], [], []>} : vector<8x16xf32>, vector<16x128xf32>, vector<8x128xf32> -> vector<8x128xf32>
    %c13 = arith.constant 13 : index
    %c0_193 = arith.constant 0 : index
    %c0_194 = arith.constant 0 : index
    %437 = vector.load %arg1[%c13, %c0_193, %c0_194] : memref<27x128x128xf32, #tpu.memory_space<vmem>>, vector<1x128x128xf32>
    %438 = vector.shape_cast %437 : vector<1x128x128xf32> to vector<128x128xf32>
    %cst_195 = arith.constant dense<0.000000e+00> : vector<8x128xf32>
    %439 = tpu.matmul %436, %438, %cst_195 {dimension_numbers = #tpu.dot_dimension_numbers<[1], [0], [0], [1], [0, 0, 1, 1], [], []>} : vector<8x128xf32>, vector<128x128xf32>, vector<8x128xf32> -> vector<8x128xf32>
    %440 = arith.addf %435, %439 : vector<8x128xf32>
    %cst_196 = arith.constant dense<0.000000e+00> : vector<8x128xf32>
    %441 = tpu.matmul %429, %397, %cst_196 {dimension_numbers = #tpu.dot_dimension_numbers<[1], [0], [0], [1], [0, 0, 1, 1], [], []>} : vector<8x16xf32>, vector<16x128xf32>, vector<8x128xf32> -> vector<8x128xf32>
    %c14 = arith.constant 14 : index
    %c0_197 = arith.constant 0 : index
    %c0_198 = arith.constant 0 : index
    %442 = vector.load %arg1[%c14, %c0_197, %c0_198] : memref<27x128x128xf32, #tpu.memory_space<vmem>>, vector<1x128x128xf32>
    %443 = vector.shape_cast %442 : vector<1x128x128xf32> to vector<128x128xf32>
    %cst_199 = arith.constant dense<0.000000e+00> : vector<8x128xf32>
    %444 = tpu.matmul %441, %443, %cst_199 {dimension_numbers = #tpu.dot_dimension_numbers<[1], [0], [0], [1], [0, 0, 1, 1], [], []>} : vector<8x128xf32>, vector<128x128xf32>, vector<8x128xf32> -> vector<8x128xf32>
    %445 = arith.addf %440, %444 : vector<8x128xf32>
    %cst_200 = arith.constant 0.000000e+00 : f32
    %446 = vector.broadcast %cst_200 : f32 to vector<8x128xf32>
    %cst_201 = arith.constant dense<0.000000e+00> : vector<8x128xf32>
    %447 = tpu.matmul %415, %406, %cst_201 {dimension_numbers = #tpu.dot_dimension_numbers<[1], [0], [0], [1], [0, 0, 1, 1], [], []>} : vector<8x16xf32>, vector<16x128xf32>, vector<8x128xf32> -> vector<8x128xf32>
    %c12_202 = arith.constant 12 : index
    %c0_203 = arith.constant 0 : index
    %c0_204 = arith.constant 0 : index
    %448 = vector.load %arg1[%c12_202, %c0_203, %c0_204] : memref<27x128x128xf32, #tpu.memory_space<vmem>>, vector<1x128x128xf32>
    %449 = vector.shape_cast %448 : vector<1x128x128xf32> to vector<128x128xf32>
    %cst_205 = arith.constant dense<0.000000e+00> : vector<8x128xf32>
    %450 = tpu.matmul %447, %449, %cst_205 {dimension_numbers = #tpu.dot_dimension_numbers<[1], [0], [0], [1], [0, 0, 1, 1], [], []>} : vector<8x128xf32>, vector<128x128xf32>, vector<8x128xf32> -> vector<8x128xf32>
    %451 = arith.addf %446, %450 : vector<8x128xf32>
    %cst_206 = arith.constant dense<0.000000e+00> : vector<8x128xf32>
    %452 = tpu.matmul %422, %406, %cst_206 {dimension_numbers = #tpu.dot_dimension_numbers<[1], [0], [0], [1], [0, 0, 1, 1], [], []>} : vector<8x16xf32>, vector<16x128xf32>, vector<8x128xf32> -> vector<8x128xf32>
    %c13_207 = arith.constant 13 : index
    %c0_208 = arith.constant 0 : index
    %c0_209 = arith.constant 0 : index
    %453 = vector.load %arg1[%c13_207, %c0_208, %c0_209] : memref<27x128x128xf32, #tpu.memory_space<vmem>>, vector<1x128x128xf32>
    %454 = vector.shape_cast %453 : vector<1x128x128xf32> to vector<128x128xf32>
    %cst_210 = arith.constant dense<0.000000e+00> : vector<8x128xf32>
    %455 = tpu.matmul %452, %454, %cst_210 {dimension_numbers = #tpu.dot_dimension_numbers<[1], [0], [0], [1], [0, 0, 1, 1], [], []>} : vector<8x128xf32>, vector<128x128xf32>, vector<8x128xf32> -> vector<8x128xf32>
    %456 = arith.addf %451, %455 : vector<8x128xf32>
    %cst_211 = arith.constant dense<0.000000e+00> : vector<8x128xf32>
    %457 = tpu.matmul %429, %406, %cst_211 {dimension_numbers = #tpu.dot_dimension_numbers<[1], [0], [0], [1], [0, 0, 1, 1], [], []>} : vector<8x16xf32>, vector<16x128xf32>, vector<8x128xf32> -> vector<8x128xf32>
    %c14_212 = arith.constant 14 : index
    %c0_213 = arith.constant 0 : index
    %c0_214 = arith.constant 0 : index
    %458 = vector.load %arg1[%c14_212, %c0_213, %c0_214] : memref<27x128x128xf32, #tpu.memory_space<vmem>>, vector<1x128x128xf32>
    %459 = vector.shape_cast %458 : vector<1x128x128xf32> to vector<128x128xf32>
    %cst_215 = arith.constant dense<0.000000e+00> : vector<8x128xf32>
    %460 = tpu.matmul %457, %459, %cst_215 {dimension_numbers = #tpu.dot_dimension_numbers<[1], [0], [0], [1], [0, 0, 1, 1], [], []>} : vector<8x128xf32>, vector<128x128xf32>, vector<8x128xf32> -> vector<8x128xf32>
    %461 = arith.addf %456, %460 : vector<8x128xf32>
    %c4_216 = arith.constant 4 : index
    %c0_217 = arith.constant 0 : index
    %c0_218 = arith.constant 0 : index
    %462 = vector.load %arg2[%c4_216, %c0_217, %c0_218] : memref<9x2x128xf32, #tpu.memory_space<vmem>>, vector<1x2x128xf32>
    %463 = vector.shape_cast %462 : vector<1x2x128xf32> to vector<2x128xf32>
    %cst_219 = arith.constant dense<0.000000e+00> : vector<128xf32>
    %464 = vector.multi_reduction <add>, %445, %cst_219 [0] : vector<8x128xf32> to vector<128xf32>
    %465 = vector.shape_cast %464 : vector<128xf32> to vector<1x128xf32>
    %466 = arith.mulf %445, %445 : vector<8x128xf32>
    %cst_220 = arith.constant dense<0.000000e+00> : vector<128xf32>
    %467 = vector.multi_reduction <add>, %466, %cst_220 [0] : vector<8x128xf32> to vector<128xf32>
    %468 = vector.shape_cast %467 : vector<128xf32> to vector<1x128xf32>
    %cst_221 = arith.constant dense<0.000000e+00> : vector<128xf32>
    %469 = vector.multi_reduction <add>, %461, %cst_221 [0] : vector<8x128xf32> to vector<128xf32>
    %470 = vector.shape_cast %469 : vector<128xf32> to vector<1x128xf32>
    %471 = arith.addf %465, %470 : vector<1x128xf32>
    %472 = arith.mulf %461, %461 : vector<8x128xf32>
    %cst_222 = arith.constant dense<0.000000e+00> : vector<128xf32>
    %473 = vector.multi_reduction <add>, %472, %cst_222 [0] : vector<8x128xf32> to vector<128xf32>
    %474 = vector.shape_cast %473 : vector<128xf32> to vector<1x128xf32>
    %475 = arith.addf %468, %474 : vector<1x128xf32>
    %cst_223 = arith.constant 6.250000e-02 : f32
    %476 = vector.broadcast %cst_223 : f32 to vector<1x128xf32>
    %477 = arith.mulf %471, %476 : vector<1x128xf32>
    %cst_224 = arith.constant 6.250000e-02 : f32
    %478 = vector.broadcast %cst_224 : f32 to vector<1x128xf32>
    %479 = arith.mulf %475, %478 : vector<1x128xf32>
    %480 = arith.mulf %477, %477 : vector<1x128xf32>
    %481 = arith.subf %479, %480 : vector<1x128xf32>
    %cst_225 = arith.constant 0.000000e+00 : f32
    %482 = vector.broadcast %cst_225 : f32 to vector<1x128xf32>
    %483 = arith.maximumf %481, %482 : vector<1x128xf32>
    %484 = vector.extract_strided_slice %463 {offsets = [0, 0], sizes = [1, 128], strides = [1, 1]} : vector<2x128xf32> to vector<1x128xf32>
    %485 = vector.extract_strided_slice %463 {offsets = [1, 0], sizes = [1, 128], strides = [1, 1]} : vector<2x128xf32> to vector<1x128xf32>
    %cst_226 = arith.constant 9.99999974E-6 : f32
    %486 = vector.broadcast %cst_226 : f32 to vector<1x128xf32>
    %487 = arith.addf %483, %486 : vector<1x128xf32>
    %488 = math.rsqrt %487 : vector<1x128xf32>
    %489 = arith.mulf %484, %488 : vector<1x128xf32>
    %490 = arith.mulf %477, %489 : vector<1x128xf32>
    %491 = arith.subf %485, %490 : vector<1x128xf32>
    %492 = vector.broadcast %489 : vector<1x128xf32> to vector<8x128xf32>
    %493 = arith.mulf %445, %492 : vector<8x128xf32>
    %494 = vector.broadcast %491 : vector<1x128xf32> to vector<8x128xf32>
    %495 = arith.addf %493, %494 : vector<8x128xf32>
    %cst_227 = arith.constant 0.000000e+00 : f32
    %496 = vector.broadcast %cst_227 : f32 to vector<8x128xf32>
    %497 = arith.cmpf oge, %495, %496 : vector<8x128xf32>
    %cst_228 = arith.constant 0.00999999977 : f32
    %498 = vector.broadcast %cst_228 : f32 to vector<8x128xf32>
    %499 = arith.mulf %498, %495 : vector<8x128xf32>
    %500 = arith.select %497, %495, %499 : vector<8x128xi1>, vector<8x128xf32>
    %501 = vector.broadcast %489 : vector<1x128xf32> to vector<8x128xf32>
    %502 = arith.mulf %461, %501 : vector<8x128xf32>
    %503 = vector.broadcast %491 : vector<1x128xf32> to vector<8x128xf32>
    %504 = arith.addf %502, %503 : vector<8x128xf32>
    %cst_229 = arith.constant 0.000000e+00 : f32
    %505 = vector.broadcast %cst_229 : f32 to vector<8x128xf32>
    %506 = arith.cmpf oge, %504, %505 : vector<8x128xf32>
    %cst_230 = arith.constant 0.00999999977 : f32
    %507 = vector.broadcast %cst_230 : f32 to vector<8x128xf32>
    %508 = arith.mulf %507, %504 : vector<8x128xf32>
    %509 = arith.select %506, %504, %508 : vector<8x128xi1>, vector<8x128xf32>
    %510 = tpu.iota {dimensions = array<i32: 0>} : vector<4x8xi32>
    %511 = tpu.iota {dimensions = array<i32: 1>} : vector<4x8xi32>
    %c2_i32_231 = arith.constant 2 : i32
    %512 = vector.broadcast %c2_i32_231 : i32 to vector<4x8xi32>
    %513 = arith.muli %512, %510 : vector<4x8xi32>
    %c-1_i32_232 = arith.constant -1 : i32
    %514 = vector.broadcast %c-1_i32_232 : i32 to vector<4x8xi32>
    %515 = arith.addi %513, %514 : vector<4x8xi32>
    %516 = arith.cmpi eq, %511, %515 : vector<4x8xi32>
    %517 = arith.extui %516 : vector<4x8xi1> to vector<4x8xi32>
    %518 = arith.sitofp %517 : vector<4x8xi32> to vector<4x8xf32>
    %c2_i32_233 = arith.constant 2 : i32
    %519 = vector.broadcast %c2_i32_233 : i32 to vector<4x8xi32>
    %520 = arith.muli %519, %510 : vector<4x8xi32>
    %c0_i32_234 = arith.constant 0 : i32
    %521 = vector.broadcast %c0_i32_234 : i32 to vector<4x8xi32>
    %522 = arith.addi %520, %521 : vector<4x8xi32>
    %523 = arith.cmpi eq, %511, %522 : vector<4x8xi32>
    %524 = arith.extui %523 : vector<4x8xi1> to vector<4x8xi32>
    %525 = arith.sitofp %524 : vector<4x8xi32> to vector<4x8xf32>
    %c2_i32_235 = arith.constant 2 : i32
    %526 = vector.broadcast %c2_i32_235 : i32 to vector<4x8xi32>
    %527 = arith.muli %526, %510 : vector<4x8xi32>
    %c1_i32_236 = arith.constant 1 : i32
    %528 = vector.broadcast %c1_i32_236 : i32 to vector<4x8xi32>
    %529 = arith.addi %527, %528 : vector<4x8xi32>
    %530 = arith.cmpi eq, %511, %529 : vector<4x8xi32>
    %531 = arith.extui %530 : vector<4x8xi1> to vector<4x8xi32>
    %532 = arith.sitofp %531 : vector<4x8xi32> to vector<4x8xf32>
    %cst_237 = arith.constant 0.000000e+00 : f32
    %533 = vector.broadcast %cst_237 : f32 to vector<4x128xf32>
    %cst_238 = arith.constant dense<0.000000e+00> : vector<4x128xf32>
    %534 = tpu.matmul %518, %500, %cst_238 {dimension_numbers = #tpu.dot_dimension_numbers<[1], [0], [0], [1], [0, 0, 1, 1], [], []>} : vector<4x8xf32>, vector<8x128xf32>, vector<4x128xf32> -> vector<4x128xf32>
    %c15 = arith.constant 15 : index
    %c0_239 = arith.constant 0 : index
    %c0_240 = arith.constant 0 : index
    %535 = vector.load %arg1[%c15, %c0_239, %c0_240] : memref<27x128x128xf32, #tpu.memory_space<vmem>>, vector<1x128x128xf32>
    %536 = vector.shape_cast %535 : vector<1x128x128xf32> to vector<128x128xf32>
    %cst_241 = arith.constant dense<0.000000e+00> : vector<4x128xf32>
    %537 = tpu.matmul %534, %536, %cst_241 {dimension_numbers = #tpu.dot_dimension_numbers<[1], [0], [0], [1], [0, 0, 1, 1], [], []>} : vector<4x128xf32>, vector<128x128xf32>, vector<4x128xf32> -> vector<4x128xf32>
    %538 = arith.addf %533, %537 : vector<4x128xf32>
    %cst_242 = arith.constant dense<0.000000e+00> : vector<4x128xf32>
    %539 = tpu.matmul %525, %500, %cst_242 {dimension_numbers = #tpu.dot_dimension_numbers<[1], [0], [0], [1], [0, 0, 1, 1], [], []>} : vector<4x8xf32>, vector<8x128xf32>, vector<4x128xf32> -> vector<4x128xf32>
    %c16 = arith.constant 16 : index
    %c0_243 = arith.constant 0 : index
    %c0_244 = arith.constant 0 : index
    %540 = vector.load %arg1[%c16, %c0_243, %c0_244] : memref<27x128x128xf32, #tpu.memory_space<vmem>>, vector<1x128x128xf32>
    %541 = vector.shape_cast %540 : vector<1x128x128xf32> to vector<128x128xf32>
    %cst_245 = arith.constant dense<0.000000e+00> : vector<4x128xf32>
    %542 = tpu.matmul %539, %541, %cst_245 {dimension_numbers = #tpu.dot_dimension_numbers<[1], [0], [0], [1], [0, 0, 1, 1], [], []>} : vector<4x128xf32>, vector<128x128xf32>, vector<4x128xf32> -> vector<4x128xf32>
    %543 = arith.addf %538, %542 : vector<4x128xf32>
    %cst_246 = arith.constant dense<0.000000e+00> : vector<4x128xf32>
    %544 = tpu.matmul %532, %500, %cst_246 {dimension_numbers = #tpu.dot_dimension_numbers<[1], [0], [0], [1], [0, 0, 1, 1], [], []>} : vector<4x8xf32>, vector<8x128xf32>, vector<4x128xf32> -> vector<4x128xf32>
    %c17 = arith.constant 17 : index
    %c0_247 = arith.constant 0 : index
    %c0_248 = arith.constant 0 : index
    %545 = vector.load %arg1[%c17, %c0_247, %c0_248] : memref<27x128x128xf32, #tpu.memory_space<vmem>>, vector<1x128x128xf32>
    %546 = vector.shape_cast %545 : vector<1x128x128xf32> to vector<128x128xf32>
    %cst_249 = arith.constant dense<0.000000e+00> : vector<4x128xf32>
    %547 = tpu.matmul %544, %546, %cst_249 {dimension_numbers = #tpu.dot_dimension_numbers<[1], [0], [0], [1], [0, 0, 1, 1], [], []>} : vector<4x128xf32>, vector<128x128xf32>, vector<4x128xf32> -> vector<4x128xf32>
    %548 = arith.addf %543, %547 : vector<4x128xf32>
    %cst_250 = arith.constant 0.000000e+00 : f32
    %549 = vector.broadcast %cst_250 : f32 to vector<4x128xf32>
    %cst_251 = arith.constant dense<0.000000e+00> : vector<4x128xf32>
    %550 = tpu.matmul %518, %509, %cst_251 {dimension_numbers = #tpu.dot_dimension_numbers<[1], [0], [0], [1], [0, 0, 1, 1], [], []>} : vector<4x8xf32>, vector<8x128xf32>, vector<4x128xf32> -> vector<4x128xf32>
    %c15_252 = arith.constant 15 : index
    %c0_253 = arith.constant 0 : index
    %c0_254 = arith.constant 0 : index
    %551 = vector.load %arg1[%c15_252, %c0_253, %c0_254] : memref<27x128x128xf32, #tpu.memory_space<vmem>>, vector<1x128x128xf32>
    %552 = vector.shape_cast %551 : vector<1x128x128xf32> to vector<128x128xf32>
    %cst_255 = arith.constant dense<0.000000e+00> : vector<4x128xf32>
    %553 = tpu.matmul %550, %552, %cst_255 {dimension_numbers = #tpu.dot_dimension_numbers<[1], [0], [0], [1], [0, 0, 1, 1], [], []>} : vector<4x128xf32>, vector<128x128xf32>, vector<4x128xf32> -> vector<4x128xf32>
    %554 = arith.addf %549, %553 : vector<4x128xf32>
    %cst_256 = arith.constant dense<0.000000e+00> : vector<4x128xf32>
    %555 = tpu.matmul %525, %509, %cst_256 {dimension_numbers = #tpu.dot_dimension_numbers<[1], [0], [0], [1], [0, 0, 1, 1], [], []>} : vector<4x8xf32>, vector<8x128xf32>, vector<4x128xf32> -> vector<4x128xf32>
    %c16_257 = arith.constant 16 : index
    %c0_258 = arith.constant 0 : index
    %c0_259 = arith.constant 0 : index
    %556 = vector.load %arg1[%c16_257, %c0_258, %c0_259] : memref<27x128x128xf32, #tpu.memory_space<vmem>>, vector<1x128x128xf32>
    %557 = vector.shape_cast %556 : vector<1x128x128xf32> to vector<128x128xf32>
    %cst_260 = arith.constant dense<0.000000e+00> : vector<4x128xf32>
    %558 = tpu.matmul %555, %557, %cst_260 {dimension_numbers = #tpu.dot_dimension_numbers<[1], [0], [0], [1], [0, 0, 1, 1], [], []>} : vector<4x128xf32>, vector<128x128xf32>, vector<4x128xf32> -> vector<4x128xf32>
    %559 = arith.addf %554, %558 : vector<4x128xf32>
    %cst_261 = arith.constant dense<0.000000e+00> : vector<4x128xf32>
    %560 = tpu.matmul %532, %509, %cst_261 {dimension_numbers = #tpu.dot_dimension_numbers<[1], [0], [0], [1], [0, 0, 1, 1], [], []>} : vector<4x8xf32>, vector<8x128xf32>, vector<4x128xf32> -> vector<4x128xf32>
    %c17_262 = arith.constant 17 : index
    %c0_263 = arith.constant 0 : index
    %c0_264 = arith.constant 0 : index
    %561 = vector.load %arg1[%c17_262, %c0_263, %c0_264] : memref<27x128x128xf32, #tpu.memory_space<vmem>>, vector<1x128x128xf32>
    %562 = vector.shape_cast %561 : vector<1x128x128xf32> to vector<128x128xf32>
    %cst_265 = arith.constant dense<0.000000e+00> : vector<4x128xf32>
    %563 = tpu.matmul %560, %562, %cst_265 {dimension_numbers = #tpu.dot_dimension_numbers<[1], [0], [0], [1], [0, 0, 1, 1], [], []>} : vector<4x128xf32>, vector<128x128xf32>, vector<4x128xf32> -> vector<4x128xf32>
    %564 = arith.addf %559, %563 : vector<4x128xf32>
    %c5_266 = arith.constant 5 : index
    %c0_267 = arith.constant 0 : index
    %c0_268 = arith.constant 0 : index
    %565 = vector.load %arg2[%c5_266, %c0_267, %c0_268] : memref<9x2x128xf32, #tpu.memory_space<vmem>>, vector<1x2x128xf32>
    %566 = vector.shape_cast %565 : vector<1x2x128xf32> to vector<2x128xf32>
    %cst_269 = arith.constant dense<0.000000e+00> : vector<128xf32>
    %567 = vector.multi_reduction <add>, %548, %cst_269 [0] : vector<4x128xf32> to vector<128xf32>
    %568 = vector.shape_cast %567 : vector<128xf32> to vector<1x128xf32>
    %569 = arith.mulf %548, %548 : vector<4x128xf32>
    %cst_270 = arith.constant dense<0.000000e+00> : vector<128xf32>
    %570 = vector.multi_reduction <add>, %569, %cst_270 [0] : vector<4x128xf32> to vector<128xf32>
    %571 = vector.shape_cast %570 : vector<128xf32> to vector<1x128xf32>
    %cst_271 = arith.constant dense<0.000000e+00> : vector<128xf32>
    %572 = vector.multi_reduction <add>, %564, %cst_271 [0] : vector<4x128xf32> to vector<128xf32>
    %573 = vector.shape_cast %572 : vector<128xf32> to vector<1x128xf32>
    %574 = arith.addf %568, %573 : vector<1x128xf32>
    %575 = arith.mulf %564, %564 : vector<4x128xf32>
    %cst_272 = arith.constant dense<0.000000e+00> : vector<128xf32>
    %576 = vector.multi_reduction <add>, %575, %cst_272 [0] : vector<4x128xf32> to vector<128xf32>
    %577 = vector.shape_cast %576 : vector<128xf32> to vector<1x128xf32>
    %578 = arith.addf %571, %577 : vector<1x128xf32>
    %cst_273 = arith.constant 1.250000e-01 : f32
    %579 = vector.broadcast %cst_273 : f32 to vector<1x128xf32>
    %580 = arith.mulf %574, %579 : vector<1x128xf32>
    %cst_274 = arith.constant 1.250000e-01 : f32
    %581 = vector.broadcast %cst_274 : f32 to vector<1x128xf32>
    %582 = arith.mulf %578, %581 : vector<1x128xf32>
    %583 = arith.mulf %580, %580 : vector<1x128xf32>
    %584 = arith.subf %582, %583 : vector<1x128xf32>
    %cst_275 = arith.constant 0.000000e+00 : f32
    %585 = vector.broadcast %cst_275 : f32 to vector<1x128xf32>
    %586 = arith.maximumf %584, %585 : vector<1x128xf32>
    %587 = vector.extract_strided_slice %566 {offsets = [0, 0], sizes = [1, 128], strides = [1, 1]} : vector<2x128xf32> to vector<1x128xf32>
    %588 = vector.extract_strided_slice %566 {offsets = [1, 0], sizes = [1, 128], strides = [1, 1]} : vector<2x128xf32> to vector<1x128xf32>
    %cst_276 = arith.constant 9.99999974E-6 : f32
    %589 = vector.broadcast %cst_276 : f32 to vector<1x128xf32>
    %590 = arith.addf %586, %589 : vector<1x128xf32>
    %591 = math.rsqrt %590 : vector<1x128xf32>
    %592 = arith.mulf %587, %591 : vector<1x128xf32>
    %593 = arith.mulf %580, %592 : vector<1x128xf32>
    %594 = arith.subf %588, %593 : vector<1x128xf32>
    %595 = vector.broadcast %592 : vector<1x128xf32> to vector<4x128xf32>
    %596 = arith.mulf %548, %595 : vector<4x128xf32>
    %597 = vector.broadcast %594 : vector<1x128xf32> to vector<4x128xf32>
    %598 = arith.addf %596, %597 : vector<4x128xf32>
    %cst_277 = arith.constant 0.000000e+00 : f32
    %599 = vector.broadcast %cst_277 : f32 to vector<4x128xf32>
    %600 = arith.cmpf oge, %598, %599 : vector<4x128xf32>
    %cst_278 = arith.constant 0.00999999977 : f32
    %601 = vector.broadcast %cst_278 : f32 to vector<4x128xf32>
    %602 = arith.mulf %601, %598 : vector<4x128xf32>
    %603 = arith.select %600, %598, %602 : vector<4x128xi1>, vector<4x128xf32>
    %604 = vector.broadcast %592 : vector<1x128xf32> to vector<4x128xf32>
    %605 = arith.mulf %564, %604 : vector<4x128xf32>
    %606 = vector.broadcast %594 : vector<1x128xf32> to vector<4x128xf32>
    %607 = arith.addf %605, %606 : vector<4x128xf32>
    %cst_279 = arith.constant 0.000000e+00 : f32
    %608 = vector.broadcast %cst_279 : f32 to vector<4x128xf32>
    %609 = arith.cmpf oge, %607, %608 : vector<4x128xf32>
    %cst_280 = arith.constant 0.00999999977 : f32
    %610 = vector.broadcast %cst_280 : f32 to vector<4x128xf32>
    %611 = arith.mulf %610, %607 : vector<4x128xf32>
    %612 = arith.select %609, %607, %611 : vector<4x128xi1>, vector<4x128xf32>
    %613 = tpu.iota {dimensions = array<i32: 0>} : vector<2x4xi32>
    %614 = tpu.iota {dimensions = array<i32: 1>} : vector<2x4xi32>
    %c2_i32_281 = arith.constant 2 : i32
    %615 = vector.broadcast %c2_i32_281 : i32 to vector<2x4xi32>
    %616 = arith.muli %615, %613 : vector<2x4xi32>
    %c-1_i32_282 = arith.constant -1 : i32
    %617 = vector.broadcast %c-1_i32_282 : i32 to vector<2x4xi32>
    %618 = arith.addi %616, %617 : vector<2x4xi32>
    %619 = arith.cmpi eq, %614, %618 : vector<2x4xi32>
    %620 = arith.extui %619 : vector<2x4xi1> to vector<2x4xi32>
    %621 = arith.sitofp %620 : vector<2x4xi32> to vector<2x4xf32>
    %c2_i32_283 = arith.constant 2 : i32
    %622 = vector.broadcast %c2_i32_283 : i32 to vector<2x4xi32>
    %623 = arith.muli %622, %613 : vector<2x4xi32>
    %c0_i32_284 = arith.constant 0 : i32
    %624 = vector.broadcast %c0_i32_284 : i32 to vector<2x4xi32>
    %625 = arith.addi %623, %624 : vector<2x4xi32>
    %626 = arith.cmpi eq, %614, %625 : vector<2x4xi32>
    %627 = arith.extui %626 : vector<2x4xi1> to vector<2x4xi32>
    %628 = arith.sitofp %627 : vector<2x4xi32> to vector<2x4xf32>
    %c2_i32_285 = arith.constant 2 : i32
    %629 = vector.broadcast %c2_i32_285 : i32 to vector<2x4xi32>
    %630 = arith.muli %629, %613 : vector<2x4xi32>
    %c1_i32_286 = arith.constant 1 : i32
    %631 = vector.broadcast %c1_i32_286 : i32 to vector<2x4xi32>
    %632 = arith.addi %630, %631 : vector<2x4xi32>
    %633 = arith.cmpi eq, %614, %632 : vector<2x4xi32>
    %634 = arith.extui %633 : vector<2x4xi1> to vector<2x4xi32>
    %635 = arith.sitofp %634 : vector<2x4xi32> to vector<2x4xf32>
    %cst_287 = arith.constant 0.000000e+00 : f32
    %636 = vector.broadcast %cst_287 : f32 to vector<2x128xf32>
    %cst_288 = arith.constant dense<0.000000e+00> : vector<2x128xf32>
    %637 = tpu.matmul %621, %603, %cst_288 {dimension_numbers = #tpu.dot_dimension_numbers<[1], [0], [0], [1], [0, 0, 1, 1], [], []>} : vector<2x4xf32>, vector<4x128xf32>, vector<2x128xf32> -> vector<2x128xf32>
    %c18 = arith.constant 18 : index
    %c0_289 = arith.constant 0 : index
    %c0_290 = arith.constant 0 : index
    %638 = vector.load %arg1[%c18, %c0_289, %c0_290] : memref<27x128x128xf32, #tpu.memory_space<vmem>>, vector<1x128x128xf32>
    %639 = vector.shape_cast %638 : vector<1x128x128xf32> to vector<128x128xf32>
    %cst_291 = arith.constant dense<0.000000e+00> : vector<2x128xf32>
    %640 = tpu.matmul %637, %639, %cst_291 {dimension_numbers = #tpu.dot_dimension_numbers<[1], [0], [0], [1], [0, 0, 1, 1], [], []>} : vector<2x128xf32>, vector<128x128xf32>, vector<2x128xf32> -> vector<2x128xf32>
    %641 = arith.addf %636, %640 : vector<2x128xf32>
    %cst_292 = arith.constant dense<0.000000e+00> : vector<2x128xf32>
    %642 = tpu.matmul %628, %603, %cst_292 {dimension_numbers = #tpu.dot_dimension_numbers<[1], [0], [0], [1], [0, 0, 1, 1], [], []>} : vector<2x4xf32>, vector<4x128xf32>, vector<2x128xf32> -> vector<2x128xf32>
    %c19 = arith.constant 19 : index
    %c0_293 = arith.constant 0 : index
    %c0_294 = arith.constant 0 : index
    %643 = vector.load %arg1[%c19, %c0_293, %c0_294] : memref<27x128x128xf32, #tpu.memory_space<vmem>>, vector<1x128x128xf32>
    %644 = vector.shape_cast %643 : vector<1x128x128xf32> to vector<128x128xf32>
    %cst_295 = arith.constant dense<0.000000e+00> : vector<2x128xf32>
    %645 = tpu.matmul %642, %644, %cst_295 {dimension_numbers = #tpu.dot_dimension_numbers<[1], [0], [0], [1], [0, 0, 1, 1], [], []>} : vector<2x128xf32>, vector<128x128xf32>, vector<2x128xf32> -> vector<2x128xf32>
    %646 = arith.addf %641, %645 : vector<2x128xf32>
    %cst_296 = arith.constant dense<0.000000e+00> : vector<2x128xf32>
    %647 = tpu.matmul %635, %603, %cst_296 {dimension_numbers = #tpu.dot_dimension_numbers<[1], [0], [0], [1], [0, 0, 1, 1], [], []>} : vector<2x4xf32>, vector<4x128xf32>, vector<2x128xf32> -> vector<2x128xf32>
    %c20 = arith.constant 20 : index
    %c0_297 = arith.constant 0 : index
    %c0_298 = arith.constant 0 : index
    %648 = vector.load %arg1[%c20, %c0_297, %c0_298] : memref<27x128x128xf32, #tpu.memory_space<vmem>>, vector<1x128x128xf32>
    %649 = vector.shape_cast %648 : vector<1x128x128xf32> to vector<128x128xf32>
    %cst_299 = arith.constant dense<0.000000e+00> : vector<2x128xf32>
    %650 = tpu.matmul %647, %649, %cst_299 {dimension_numbers = #tpu.dot_dimension_numbers<[1], [0], [0], [1], [0, 0, 1, 1], [], []>} : vector<2x128xf32>, vector<128x128xf32>, vector<2x128xf32> -> vector<2x128xf32>
    %651 = arith.addf %646, %650 : vector<2x128xf32>
    %cst_300 = arith.constant 0.000000e+00 : f32
    %652 = vector.broadcast %cst_300 : f32 to vector<2x128xf32>
    %cst_301 = arith.constant dense<0.000000e+00> : vector<2x128xf32>
    %653 = tpu.matmul %621, %612, %cst_301 {dimension_numbers = #tpu.dot_dimension_numbers<[1], [0], [0], [1], [0, 0, 1, 1], [], []>} : vector<2x4xf32>, vector<4x128xf32>, vector<2x128xf32> -> vector<2x128xf32>
    %c18_302 = arith.constant 18 : index
    %c0_303 = arith.constant 0 : index
    %c0_304 = arith.constant 0 : index
    %654 = vector.load %arg1[%c18_302, %c0_303, %c0_304] : memref<27x128x128xf32, #tpu.memory_space<vmem>>, vector<1x128x128xf32>
    %655 = vector.shape_cast %654 : vector<1x128x128xf32> to vector<128x128xf32>
    %cst_305 = arith.constant dense<0.000000e+00> : vector<2x128xf32>
    %656 = tpu.matmul %653, %655, %cst_305 {dimension_numbers = #tpu.dot_dimension_numbers<[1], [0], [0], [1], [0, 0, 1, 1], [], []>} : vector<2x128xf32>, vector<128x128xf32>, vector<2x128xf32> -> vector<2x128xf32>
    %657 = arith.addf %652, %656 : vector<2x128xf32>
    %cst_306 = arith.constant dense<0.000000e+00> : vector<2x128xf32>
    %658 = tpu.matmul %628, %612, %cst_306 {dimension_numbers = #tpu.dot_dimension_numbers<[1], [0], [0], [1], [0, 0, 1, 1], [], []>} : vector<2x4xf32>, vector<4x128xf32>, vector<2x128xf32> -> vector<2x128xf32>
    %c19_307 = arith.constant 19 : index
    %c0_308 = arith.constant 0 : index
    %c0_309 = arith.constant 0 : index
    %659 = vector.load %arg1[%c19_307, %c0_308, %c0_309] : memref<27x128x128xf32, #tpu.memory_space<vmem>>, vector<1x128x128xf32>
    %660 = vector.shape_cast %659 : vector<1x128x128xf32> to vector<128x128xf32>
    %cst_310 = arith.constant dense<0.000000e+00> : vector<2x128xf32>
    %661 = tpu.matmul %658, %660, %cst_310 {dimension_numbers = #tpu.dot_dimension_numbers<[1], [0], [0], [1], [0, 0, 1, 1], [], []>} : vector<2x128xf32>, vector<128x128xf32>, vector<2x128xf32> -> vector<2x128xf32>
    %662 = arith.addf %657, %661 : vector<2x128xf32>
    %cst_311 = arith.constant dense<0.000000e+00> : vector<2x128xf32>
    %663 = tpu.matmul %635, %612, %cst_311 {dimension_numbers = #tpu.dot_dimension_numbers<[1], [0], [0], [1], [0, 0, 1, 1], [], []>} : vector<2x4xf32>, vector<4x128xf32>, vector<2x128xf32> -> vector<2x128xf32>
    %c20_312 = arith.constant 20 : index
    %c0_313 = arith.constant 0 : index
    %c0_314 = arith.constant 0 : index
    %664 = vector.load %arg1[%c20_312, %c0_313, %c0_314] : memref<27x128x128xf32, #tpu.memory_space<vmem>>, vector<1x128x128xf32>
    %665 = vector.shape_cast %664 : vector<1x128x128xf32> to vector<128x128xf32>
    %cst_315 = arith.constant dense<0.000000e+00> : vector<2x128xf32>
    %666 = tpu.matmul %663, %665, %cst_315 {dimension_numbers = #tpu.dot_dimension_numbers<[1], [0], [0], [1], [0, 0, 1, 1], [], []>} : vector<2x128xf32>, vector<128x128xf32>, vector<2x128xf32> -> vector<2x128xf32>
    %667 = arith.addf %662, %666 : vector<2x128xf32>
    %c6_316 = arith.constant 6 : index
    %c0_317 = arith.constant 0 : index
    %c0_318 = arith.constant 0 : index
    %668 = vector.load %arg2[%c6_316, %c0_317, %c0_318] : memref<9x2x128xf32, #tpu.memory_space<vmem>>, vector<1x2x128xf32>
    %669 = vector.shape_cast %668 : vector<1x2x128xf32> to vector<2x128xf32>
    %cst_319 = arith.constant dense<0.000000e+00> : vector<128xf32>
    %670 = vector.multi_reduction <add>, %651, %cst_319 [0] : vector<2x128xf32> to vector<128xf32>
    %671 = vector.shape_cast %670 : vector<128xf32> to vector<1x128xf32>
    %672 = arith.mulf %651, %651 : vector<2x128xf32>
    %cst_320 = arith.constant dense<0.000000e+00> : vector<128xf32>
    %673 = vector.multi_reduction <add>, %672, %cst_320 [0] : vector<2x128xf32> to vector<128xf32>
    %674 = vector.shape_cast %673 : vector<128xf32> to vector<1x128xf32>
    %cst_321 = arith.constant dense<0.000000e+00> : vector<128xf32>
    %675 = vector.multi_reduction <add>, %667, %cst_321 [0] : vector<2x128xf32> to vector<128xf32>
    %676 = vector.shape_cast %675 : vector<128xf32> to vector<1x128xf32>
    %677 = arith.addf %671, %676 : vector<1x128xf32>
    %678 = arith.mulf %667, %667 : vector<2x128xf32>
    %cst_322 = arith.constant dense<0.000000e+00> : vector<128xf32>
    %679 = vector.multi_reduction <add>, %678, %cst_322 [0] : vector<2x128xf32> to vector<128xf32>
    %680 = vector.shape_cast %679 : vector<128xf32> to vector<1x128xf32>
    %681 = arith.addf %674, %680 : vector<1x128xf32>
    %cst_323 = arith.constant 2.500000e-01 : f32
    %682 = vector.broadcast %cst_323 : f32 to vector<1x128xf32>
    %683 = arith.mulf %677, %682 : vector<1x128xf32>
    %cst_324 = arith.constant 2.500000e-01 : f32
    %684 = vector.broadcast %cst_324 : f32 to vector<1x128xf32>
    %685 = arith.mulf %681, %684 : vector<1x128xf32>
    %686 = arith.mulf %683, %683 : vector<1x128xf32>
    %687 = arith.subf %685, %686 : vector<1x128xf32>
    %cst_325 = arith.constant 0.000000e+00 : f32
    %688 = vector.broadcast %cst_325 : f32 to vector<1x128xf32>
    %689 = arith.maximumf %687, %688 : vector<1x128xf32>
    %690 = vector.extract_strided_slice %669 {offsets = [0, 0], sizes = [1, 128], strides = [1, 1]} : vector<2x128xf32> to vector<1x128xf32>
    %691 = vector.extract_strided_slice %669 {offsets = [1, 0], sizes = [1, 128], strides = [1, 1]} : vector<2x128xf32> to vector<1x128xf32>
    %cst_326 = arith.constant 9.99999974E-6 : f32
    %692 = vector.broadcast %cst_326 : f32 to vector<1x128xf32>
    %693 = arith.addf %689, %692 : vector<1x128xf32>
    %694 = math.rsqrt %693 : vector<1x128xf32>
    %695 = arith.mulf %690, %694 : vector<1x128xf32>
    %696 = arith.mulf %683, %695 : vector<1x128xf32>
    %697 = arith.subf %691, %696 : vector<1x128xf32>
    %698 = vector.broadcast %695 : vector<1x128xf32> to vector<2x128xf32>
    %699 = arith.mulf %651, %698 : vector<2x128xf32>
    %700 = vector.broadcast %697 : vector<1x128xf32> to vector<2x128xf32>
    %701 = arith.addf %699, %700 : vector<2x128xf32>
    %cst_327 = arith.constant 0.000000e+00 : f32
    %702 = vector.broadcast %cst_327 : f32 to vector<2x128xf32>
    %703 = arith.cmpf oge, %701, %702 : vector<2x128xf32>
    %cst_328 = arith.constant 0.00999999977 : f32
    %704 = vector.broadcast %cst_328 : f32 to vector<2x128xf32>
    %705 = arith.mulf %704, %701 : vector<2x128xf32>
    %706 = arith.select %703, %701, %705 : vector<2x128xi1>, vector<2x128xf32>
    %707 = vector.broadcast %695 : vector<1x128xf32> to vector<2x128xf32>
    %708 = arith.mulf %667, %707 : vector<2x128xf32>
    %709 = vector.broadcast %697 : vector<1x128xf32> to vector<2x128xf32>
    %710 = arith.addf %708, %709 : vector<2x128xf32>
    %cst_329 = arith.constant 0.000000e+00 : f32
    %711 = vector.broadcast %cst_329 : f32 to vector<2x128xf32>
    %712 = arith.cmpf oge, %710, %711 : vector<2x128xf32>
    %cst_330 = arith.constant 0.00999999977 : f32
    %713 = vector.broadcast %cst_330 : f32 to vector<2x128xf32>
    %714 = arith.mulf %713, %710 : vector<2x128xf32>
    %715 = arith.select %712, %710, %714 : vector<2x128xi1>, vector<2x128xf32>
    %716 = tpu.iota {dimensions = array<i32: 0>} : vector<1x2xi32>
    %717 = tpu.iota {dimensions = array<i32: 1>} : vector<1x2xi32>
    %c2_i32_331 = arith.constant 2 : i32
    %718 = vector.broadcast %c2_i32_331 : i32 to vector<1x2xi32>
    %719 = arith.muli %718, %716 : vector<1x2xi32>
    %c-1_i32_332 = arith.constant -1 : i32
    %720 = vector.broadcast %c-1_i32_332 : i32 to vector<1x2xi32>
    %721 = arith.addi %719, %720 : vector<1x2xi32>
    %722 = arith.cmpi eq, %717, %721 : vector<1x2xi32>
    %723 = arith.extui %722 : vector<1x2xi1> to vector<1x2xi32>
    %724 = arith.sitofp %723 : vector<1x2xi32> to vector<1x2xf32>
    %c2_i32_333 = arith.constant 2 : i32
    %725 = vector.broadcast %c2_i32_333 : i32 to vector<1x2xi32>
    %726 = arith.muli %725, %716 : vector<1x2xi32>
    %c0_i32_334 = arith.constant 0 : i32
    %727 = vector.broadcast %c0_i32_334 : i32 to vector<1x2xi32>
    %728 = arith.addi %726, %727 : vector<1x2xi32>
    %729 = arith.cmpi eq, %717, %728 : vector<1x2xi32>
    %730 = arith.extui %729 : vector<1x2xi1> to vector<1x2xi32>
    %731 = arith.sitofp %730 : vector<1x2xi32> to vector<1x2xf32>
    %c2_i32_335 = arith.constant 2 : i32
    %732 = vector.broadcast %c2_i32_335 : i32 to vector<1x2xi32>
    %733 = arith.muli %732, %716 : vector<1x2xi32>
    %c1_i32_336 = arith.constant 1 : i32
    %734 = vector.broadcast %c1_i32_336 : i32 to vector<1x2xi32>
    %735 = arith.addi %733, %734 : vector<1x2xi32>
    %736 = arith.cmpi eq, %717, %735 : vector<1x2xi32>
    %737 = arith.extui %736 : vector<1x2xi1> to vector<1x2xi32>
    %738 = arith.sitofp %737 : vector<1x2xi32> to vector<1x2xf32>
    %cst_337 = arith.constant 0.000000e+00 : f32
    %739 = vector.broadcast %cst_337 : f32 to vector<1x128xf32>
    %cst_338 = arith.constant dense<0.000000e+00> : vector<1x128xf32>
    %740 = tpu.matmul %724, %706, %cst_338 {dimension_numbers = #tpu.dot_dimension_numbers<[1], [0], [0], [1], [0, 0, 1, 1], [], []>} : vector<1x2xf32>, vector<2x128xf32>, vector<1x128xf32> -> vector<1x128xf32>
    %c21 = arith.constant 21 : index
    %c0_339 = arith.constant 0 : index
    %c0_340 = arith.constant 0 : index
    %741 = vector.load %arg1[%c21, %c0_339, %c0_340] : memref<27x128x128xf32, #tpu.memory_space<vmem>>, vector<1x128x128xf32>
    %742 = vector.shape_cast %741 : vector<1x128x128xf32> to vector<128x128xf32>
    %cst_341 = arith.constant dense<0.000000e+00> : vector<1x128xf32>
    %743 = tpu.matmul %740, %742, %cst_341 {dimension_numbers = #tpu.dot_dimension_numbers<[1], [0], [0], [1], [0, 0, 1, 1], [], []>} : vector<1x128xf32>, vector<128x128xf32>, vector<1x128xf32> -> vector<1x128xf32>
    %744 = arith.addf %739, %743 : vector<1x128xf32>
    %cst_342 = arith.constant dense<0.000000e+00> : vector<1x128xf32>
    %745 = tpu.matmul %731, %706, %cst_342 {dimension_numbers = #tpu.dot_dimension_numbers<[1], [0], [0], [1], [0, 0, 1, 1], [], []>} : vector<1x2xf32>, vector<2x128xf32>, vector<1x128xf32> -> vector<1x128xf32>
    %c22 = arith.constant 22 : index
    %c0_343 = arith.constant 0 : index
    %c0_344 = arith.constant 0 : index
    %746 = vector.load %arg1[%c22, %c0_343, %c0_344] : memref<27x128x128xf32, #tpu.memory_space<vmem>>, vector<1x128x128xf32>
    %747 = vector.shape_cast %746 : vector<1x128x128xf32> to vector<128x128xf32>
    %cst_345 = arith.constant dense<0.000000e+00> : vector<1x128xf32>
    %748 = tpu.matmul %745, %747, %cst_345 {dimension_numbers = #tpu.dot_dimension_numbers<[1], [0], [0], [1], [0, 0, 1, 1], [], []>} : vector<1x128xf32>, vector<128x128xf32>, vector<1x128xf32> -> vector<1x128xf32>
    %749 = arith.addf %744, %748 : vector<1x128xf32>
    %cst_346 = arith.constant dense<0.000000e+00> : vector<1x128xf32>
    %750 = tpu.matmul %738, %706, %cst_346 {dimension_numbers = #tpu.dot_dimension_numbers<[1], [0], [0], [1], [0, 0, 1, 1], [], []>} : vector<1x2xf32>, vector<2x128xf32>, vector<1x128xf32> -> vector<1x128xf32>
    %c23 = arith.constant 23 : index
    %c0_347 = arith.constant 0 : index
    %c0_348 = arith.constant 0 : index
    %751 = vector.load %arg1[%c23, %c0_347, %c0_348] : memref<27x128x128xf32, #tpu.memory_space<vmem>>, vector<1x128x128xf32>
    %752 = vector.shape_cast %751 : vector<1x128x128xf32> to vector<128x128xf32>
    %cst_349 = arith.constant dense<0.000000e+00> : vector<1x128xf32>
    %753 = tpu.matmul %750, %752, %cst_349 {dimension_numbers = #tpu.dot_dimension_numbers<[1], [0], [0], [1], [0, 0, 1, 1], [], []>} : vector<1x128xf32>, vector<128x128xf32>, vector<1x128xf32> -> vector<1x128xf32>
    %754 = arith.addf %749, %753 : vector<1x128xf32>
    %cst_350 = arith.constant 0.000000e+00 : f32
    %755 = vector.broadcast %cst_350 : f32 to vector<1x128xf32>
    %cst_351 = arith.constant dense<0.000000e+00> : vector<1x128xf32>
    %756 = tpu.matmul %724, %715, %cst_351 {dimension_numbers = #tpu.dot_dimension_numbers<[1], [0], [0], [1], [0, 0, 1, 1], [], []>} : vector<1x2xf32>, vector<2x128xf32>, vector<1x128xf32> -> vector<1x128xf32>
    %c21_352 = arith.constant 21 : index
    %c0_353 = arith.constant 0 : index
    %c0_354 = arith.constant 0 : index
    %757 = vector.load %arg1[%c21_352, %c0_353, %c0_354] : memref<27x128x128xf32, #tpu.memory_space<vmem>>, vector<1x128x128xf32>
    %758 = vector.shape_cast %757 : vector<1x128x128xf32> to vector<128x128xf32>
    %cst_355 = arith.constant dense<0.000000e+00> : vector<1x128xf32>
    %759 = tpu.matmul %756, %758, %cst_355 {dimension_numbers = #tpu.dot_dimension_numbers<[1], [0], [0], [1], [0, 0, 1, 1], [], []>} : vector<1x128xf32>, vector<128x128xf32>, vector<1x128xf32> -> vector<1x128xf32>
    %760 = arith.addf %755, %759 : vector<1x128xf32>
    %cst_356 = arith.constant dense<0.000000e+00> : vector<1x128xf32>
    %761 = tpu.matmul %731, %715, %cst_356 {dimension_numbers = #tpu.dot_dimension_numbers<[1], [0], [0], [1], [0, 0, 1, 1], [], []>} : vector<1x2xf32>, vector<2x128xf32>, vector<1x128xf32> -> vector<1x128xf32>
    %c22_357 = arith.constant 22 : index
    %c0_358 = arith.constant 0 : index
    %c0_359 = arith.constant 0 : index
    %762 = vector.load %arg1[%c22_357, %c0_358, %c0_359] : memref<27x128x128xf32, #tpu.memory_space<vmem>>, vector<1x128x128xf32>
    %763 = vector.shape_cast %762 : vector<1x128x128xf32> to vector<128x128xf32>
    %cst_360 = arith.constant dense<0.000000e+00> : vector<1x128xf32>
    %764 = tpu.matmul %761, %763, %cst_360 {dimension_numbers = #tpu.dot_dimension_numbers<[1], [0], [0], [1], [0, 0, 1, 1], [], []>} : vector<1x128xf32>, vector<128x128xf32>, vector<1x128xf32> -> vector<1x128xf32>
    %765 = arith.addf %760, %764 : vector<1x128xf32>
    %cst_361 = arith.constant dense<0.000000e+00> : vector<1x128xf32>
    %766 = tpu.matmul %738, %715, %cst_361 {dimension_numbers = #tpu.dot_dimension_numbers<[1], [0], [0], [1], [0, 0, 1, 1], [], []>} : vector<1x2xf32>, vector<2x128xf32>, vector<1x128xf32> -> vector<1x128xf32>
    %c23_362 = arith.constant 23 : index
    %c0_363 = arith.constant 0 : index
    %c0_364 = arith.constant 0 : index
    %767 = vector.load %arg1[%c23_362, %c0_363, %c0_364] : memref<27x128x128xf32, #tpu.memory_space<vmem>>, vector<1x128x128xf32>
    %768 = vector.shape_cast %767 : vector<1x128x128xf32> to vector<128x128xf32>
    %cst_365 = arith.constant dense<0.000000e+00> : vector<1x128xf32>
    %769 = tpu.matmul %766, %768, %cst_365 {dimension_numbers = #tpu.dot_dimension_numbers<[1], [0], [0], [1], [0, 0, 1, 1], [], []>} : vector<1x128xf32>, vector<128x128xf32>, vector<1x128xf32> -> vector<1x128xf32>
    %770 = arith.addf %765, %769 : vector<1x128xf32>
    %c7_366 = arith.constant 7 : index
    %c0_367 = arith.constant 0 : index
    %c0_368 = arith.constant 0 : index
    %771 = vector.load %arg2[%c7_366, %c0_367, %c0_368] : memref<9x2x128xf32, #tpu.memory_space<vmem>>, vector<1x2x128xf32>
    %772 = vector.shape_cast %771 : vector<1x2x128xf32> to vector<2x128xf32>
    %cst_369 = arith.constant dense<0.000000e+00> : vector<128xf32>
    %773 = vector.multi_reduction <add>, %754, %cst_369 [0] : vector<1x128xf32> to vector<128xf32>
    %774 = vector.shape_cast %773 : vector<128xf32> to vector<1x128xf32>
    %775 = arith.mulf %754, %754 : vector<1x128xf32>
    %cst_370 = arith.constant dense<0.000000e+00> : vector<128xf32>
    %776 = vector.multi_reduction <add>, %775, %cst_370 [0] : vector<1x128xf32> to vector<128xf32>
    %777 = vector.shape_cast %776 : vector<128xf32> to vector<1x128xf32>
    %cst_371 = arith.constant dense<0.000000e+00> : vector<128xf32>
    %778 = vector.multi_reduction <add>, %770, %cst_371 [0] : vector<1x128xf32> to vector<128xf32>
    %779 = vector.shape_cast %778 : vector<128xf32> to vector<1x128xf32>
    %780 = arith.addf %774, %779 : vector<1x128xf32>
    %781 = arith.mulf %770, %770 : vector<1x128xf32>
    %cst_372 = arith.constant dense<0.000000e+00> : vector<128xf32>
    %782 = vector.multi_reduction <add>, %781, %cst_372 [0] : vector<1x128xf32> to vector<128xf32>
    %783 = vector.shape_cast %782 : vector<128xf32> to vector<1x128xf32>
    %784 = arith.addf %777, %783 : vector<1x128xf32>
    %cst_373 = arith.constant 5.000000e-01 : f32
    %785 = vector.broadcast %cst_373 : f32 to vector<1x128xf32>
    %786 = arith.mulf %780, %785 : vector<1x128xf32>
    %cst_374 = arith.constant 5.000000e-01 : f32
    %787 = vector.broadcast %cst_374 : f32 to vector<1x128xf32>
    %788 = arith.mulf %784, %787 : vector<1x128xf32>
    %789 = arith.mulf %786, %786 : vector<1x128xf32>
    %790 = arith.subf %788, %789 : vector<1x128xf32>
    %cst_375 = arith.constant 0.000000e+00 : f32
    %791 = vector.broadcast %cst_375 : f32 to vector<1x128xf32>
    %792 = arith.maximumf %790, %791 : vector<1x128xf32>
    %793 = vector.extract_strided_slice %772 {offsets = [0, 0], sizes = [1, 128], strides = [1, 1]} : vector<2x128xf32> to vector<1x128xf32>
    %794 = vector.extract_strided_slice %772 {offsets = [1, 0], sizes = [1, 128], strides = [1, 1]} : vector<2x128xf32> to vector<1x128xf32>
    %cst_376 = arith.constant 9.99999974E-6 : f32
    %795 = vector.broadcast %cst_376 : f32 to vector<1x128xf32>
    %796 = arith.addf %792, %795 : vector<1x128xf32>
    %797 = math.rsqrt %796 : vector<1x128xf32>
    %798 = arith.mulf %793, %797 : vector<1x128xf32>
    %799 = arith.mulf %786, %798 : vector<1x128xf32>
    %800 = arith.subf %794, %799 : vector<1x128xf32>
    %801 = arith.mulf %754, %798 : vector<1x128xf32>
    %802 = arith.addf %801, %800 : vector<1x128xf32>
    %cst_377 = arith.constant 0.000000e+00 : f32
    %803 = vector.broadcast %cst_377 : f32 to vector<1x128xf32>
    %804 = arith.cmpf oge, %802, %803 : vector<1x128xf32>
    %cst_378 = arith.constant 0.00999999977 : f32
    %805 = vector.broadcast %cst_378 : f32 to vector<1x128xf32>
    %806 = arith.mulf %805, %802 : vector<1x128xf32>
    %807 = arith.select %804, %802, %806 : vector<1x128xi1>, vector<1x128xf32>
    %808 = arith.mulf %770, %798 : vector<1x128xf32>
    %809 = arith.addf %808, %800 : vector<1x128xf32>
    %cst_379 = arith.constant 0.000000e+00 : f32
    %810 = vector.broadcast %cst_379 : f32 to vector<1x128xf32>
    %811 = arith.cmpf oge, %809, %810 : vector<1x128xf32>
    %cst_380 = arith.constant 0.00999999977 : f32
    %812 = vector.broadcast %cst_380 : f32 to vector<1x128xf32>
    %813 = arith.mulf %812, %809 : vector<1x128xf32>
    %814 = arith.select %811, %809, %813 : vector<1x128xi1>, vector<1x128xf32>
    %815 = tpu.iota {dimensions = array<i32: 0>} : vector<1x1xi32>
    %816 = tpu.iota {dimensions = array<i32: 1>} : vector<1x1xi32>
    %c2_i32_381 = arith.constant 2 : i32
    %817 = vector.broadcast %c2_i32_381 : i32 to vector<1x1xi32>
    %818 = arith.muli %817, %815 : vector<1x1xi32>
    %c-1_i32_382 = arith.constant -1 : i32
    %819 = vector.broadcast %c-1_i32_382 : i32 to vector<1x1xi32>
    %820 = arith.addi %818, %819 : vector<1x1xi32>
    %821 = arith.cmpi eq, %816, %820 : vector<1x1xi32>
    %822 = arith.extui %821 : vector<1x1xi1> to vector<1x1xi32>
    %823 = arith.sitofp %822 : vector<1x1xi32> to vector<1x1xf32>
    %c2_i32_383 = arith.constant 2 : i32
    %824 = vector.broadcast %c2_i32_383 : i32 to vector<1x1xi32>
    %825 = arith.muli %824, %815 : vector<1x1xi32>
    %c0_i32_384 = arith.constant 0 : i32
    %826 = vector.broadcast %c0_i32_384 : i32 to vector<1x1xi32>
    %827 = arith.addi %825, %826 : vector<1x1xi32>
    %828 = arith.cmpi eq, %816, %827 : vector<1x1xi32>
    %829 = arith.extui %828 : vector<1x1xi1> to vector<1x1xi32>
    %830 = arith.sitofp %829 : vector<1x1xi32> to vector<1x1xf32>
    %c2_i32_385 = arith.constant 2 : i32
    %831 = vector.broadcast %c2_i32_385 : i32 to vector<1x1xi32>
    %832 = arith.muli %831, %815 : vector<1x1xi32>
    %c1_i32_386 = arith.constant 1 : i32
    %833 = vector.broadcast %c1_i32_386 : i32 to vector<1x1xi32>
    %834 = arith.addi %832, %833 : vector<1x1xi32>
    %835 = arith.cmpi eq, %816, %834 : vector<1x1xi32>
    %836 = arith.extui %835 : vector<1x1xi1> to vector<1x1xi32>
    %837 = arith.sitofp %836 : vector<1x1xi32> to vector<1x1xf32>
    %cst_387 = arith.constant 0.000000e+00 : f32
    %838 = vector.broadcast %cst_387 : f32 to vector<1x128xf32>
    %cst_388 = arith.constant dense<0.000000e+00> : vector<1x128xf32>
    %839 = tpu.matmul %823, %807, %cst_388 {dimension_numbers = #tpu.dot_dimension_numbers<[1], [0], [0], [1], [0, 0, 1, 1], [], []>} : vector<1x1xf32>, vector<1x128xf32>, vector<1x128xf32> -> vector<1x128xf32>
    %c24 = arith.constant 24 : index
    %c0_389 = arith.constant 0 : index
    %c0_390 = arith.constant 0 : index
    %840 = vector.load %arg1[%c24, %c0_389, %c0_390] : memref<27x128x128xf32, #tpu.memory_space<vmem>>, vector<1x128x128xf32>
    %841 = vector.shape_cast %840 : vector<1x128x128xf32> to vector<128x128xf32>
    %cst_391 = arith.constant dense<0.000000e+00> : vector<1x128xf32>
    %842 = tpu.matmul %839, %841, %cst_391 {dimension_numbers = #tpu.dot_dimension_numbers<[1], [0], [0], [1], [0, 0, 1, 1], [], []>} : vector<1x128xf32>, vector<128x128xf32>, vector<1x128xf32> -> vector<1x128xf32>
    %843 = arith.addf %838, %842 : vector<1x128xf32>
    %cst_392 = arith.constant dense<0.000000e+00> : vector<1x128xf32>
    %844 = tpu.matmul %830, %807, %cst_392 {dimension_numbers = #tpu.dot_dimension_numbers<[1], [0], [0], [1], [0, 0, 1, 1], [], []>} : vector<1x1xf32>, vector<1x128xf32>, vector<1x128xf32> -> vector<1x128xf32>
    %c25 = arith.constant 25 : index
    %c0_393 = arith.constant 0 : index
    %c0_394 = arith.constant 0 : index
    %845 = vector.load %arg1[%c25, %c0_393, %c0_394] : memref<27x128x128xf32, #tpu.memory_space<vmem>>, vector<1x128x128xf32>
    %846 = vector.shape_cast %845 : vector<1x128x128xf32> to vector<128x128xf32>
    %cst_395 = arith.constant dense<0.000000e+00> : vector<1x128xf32>
    %847 = tpu.matmul %844, %846, %cst_395 {dimension_numbers = #tpu.dot_dimension_numbers<[1], [0], [0], [1], [0, 0, 1, 1], [], []>} : vector<1x128xf32>, vector<128x128xf32>, vector<1x128xf32> -> vector<1x128xf32>
    %848 = arith.addf %843, %847 : vector<1x128xf32>
    %cst_396 = arith.constant dense<0.000000e+00> : vector<1x128xf32>
    %849 = tpu.matmul %837, %807, %cst_396 {dimension_numbers = #tpu.dot_dimension_numbers<[1], [0], [0], [1], [0, 0, 1, 1], [], []>} : vector<1x1xf32>, vector<1x128xf32>, vector<1x128xf32> -> vector<1x128xf32>
    %c26 = arith.constant 26 : index
    %c0_397 = arith.constant 0 : index
    %c0_398 = arith.constant 0 : index
    %850 = vector.load %arg1[%c26, %c0_397, %c0_398] : memref<27x128x128xf32, #tpu.memory_space<vmem>>, vector<1x128x128xf32>
    %851 = vector.shape_cast %850 : vector<1x128x128xf32> to vector<128x128xf32>
    %cst_399 = arith.constant dense<0.000000e+00> : vector<1x128xf32>
    %852 = tpu.matmul %849, %851, %cst_399 {dimension_numbers = #tpu.dot_dimension_numbers<[1], [0], [0], [1], [0, 0, 1, 1], [], []>} : vector<1x128xf32>, vector<128x128xf32>, vector<1x128xf32> -> vector<1x128xf32>
    %853 = arith.addf %848, %852 : vector<1x128xf32>
    %cst_400 = arith.constant 0.000000e+00 : f32
    %854 = vector.broadcast %cst_400 : f32 to vector<1x128xf32>
    %cst_401 = arith.constant dense<0.000000e+00> : vector<1x128xf32>
    %855 = tpu.matmul %823, %814, %cst_401 {dimension_numbers = #tpu.dot_dimension_numbers<[1], [0], [0], [1], [0, 0, 1, 1], [], []>} : vector<1x1xf32>, vector<1x128xf32>, vector<1x128xf32> -> vector<1x128xf32>
    %c24_402 = arith.constant 24 : index
    %c0_403 = arith.constant 0 : index
    %c0_404 = arith.constant 0 : index
    %856 = vector.load %arg1[%c24_402, %c0_403, %c0_404] : memref<27x128x128xf32, #tpu.memory_space<vmem>>, vector<1x128x128xf32>
    %857 = vector.shape_cast %856 : vector<1x128x128xf32> to vector<128x128xf32>
    %cst_405 = arith.constant dense<0.000000e+00> : vector<1x128xf32>
    %858 = tpu.matmul %855, %857, %cst_405 {dimension_numbers = #tpu.dot_dimension_numbers<[1], [0], [0], [1], [0, 0, 1, 1], [], []>} : vector<1x128xf32>, vector<128x128xf32>, vector<1x128xf32> -> vector<1x128xf32>
    %859 = arith.addf %854, %858 : vector<1x128xf32>
    %cst_406 = arith.constant dense<0.000000e+00> : vector<1x128xf32>
    %860 = tpu.matmul %830, %814, %cst_406 {dimension_numbers = #tpu.dot_dimension_numbers<[1], [0], [0], [1], [0, 0, 1, 1], [], []>} : vector<1x1xf32>, vector<1x128xf32>, vector<1x128xf32> -> vector<1x128xf32>
    %c25_407 = arith.constant 25 : index
    %c0_408 = arith.constant 0 : index
    %c0_409 = arith.constant 0 : index
    %861 = vector.load %arg1[%c25_407, %c0_408, %c0_409] : memref<27x128x128xf32, #tpu.memory_space<vmem>>, vector<1x128x128xf32>
    %862 = vector.shape_cast %861 : vector<1x128x128xf32> to vector<128x128xf32>
    %cst_410 = arith.constant dense<0.000000e+00> : vector<1x128xf32>
    %863 = tpu.matmul %860, %862, %cst_410 {dimension_numbers = #tpu.dot_dimension_numbers<[1], [0], [0], [1], [0, 0, 1, 1], [], []>} : vector<1x128xf32>, vector<128x128xf32>, vector<1x128xf32> -> vector<1x128xf32>
    %864 = arith.addf %859, %863 : vector<1x128xf32>
    %cst_411 = arith.constant dense<0.000000e+00> : vector<1x128xf32>
    %865 = tpu.matmul %837, %814, %cst_411 {dimension_numbers = #tpu.dot_dimension_numbers<[1], [0], [0], [1], [0, 0, 1, 1], [], []>} : vector<1x1xf32>, vector<1x128xf32>, vector<1x128xf32> -> vector<1x128xf32>
    %c26_412 = arith.constant 26 : index
    %c0_413 = arith.constant 0 : index
    %c0_414 = arith.constant 0 : index
    %866 = vector.load %arg1[%c26_412, %c0_413, %c0_414] : memref<27x128x128xf32, #tpu.memory_space<vmem>>, vector<1x128x128xf32>
    %867 = vector.shape_cast %866 : vector<1x128x128xf32> to vector<128x128xf32>
    %cst_415 = arith.constant dense<0.000000e+00> : vector<1x128xf32>
    %868 = tpu.matmul %865, %867, %cst_415 {dimension_numbers = #tpu.dot_dimension_numbers<[1], [0], [0], [1], [0, 0, 1, 1], [], []>} : vector<1x128xf32>, vector<128x128xf32>, vector<1x128xf32> -> vector<1x128xf32>
    %869 = arith.addf %864, %868 : vector<1x128xf32>
    %c8_416 = arith.constant 8 : index
    %c0_417 = arith.constant 0 : index
    %c0_418 = arith.constant 0 : index
    %870 = vector.load %arg2[%c8_416, %c0_417, %c0_418] : memref<9x2x128xf32, #tpu.memory_space<vmem>>, vector<1x2x128xf32>
    %871 = vector.shape_cast %870 : vector<1x2x128xf32> to vector<2x128xf32>
    %cst_419 = arith.constant dense<0.000000e+00> : vector<128xf32>
    %872 = vector.multi_reduction <add>, %853, %cst_419 [0] : vector<1x128xf32> to vector<128xf32>
    %873 = vector.shape_cast %872 : vector<128xf32> to vector<1x128xf32>
    %874 = arith.mulf %853, %853 : vector<1x128xf32>
    %cst_420 = arith.constant dense<0.000000e+00> : vector<128xf32>
    %875 = vector.multi_reduction <add>, %874, %cst_420 [0] : vector<1x128xf32> to vector<128xf32>
    %876 = vector.shape_cast %875 : vector<128xf32> to vector<1x128xf32>
    %cst_421 = arith.constant dense<0.000000e+00> : vector<128xf32>
    %877 = vector.multi_reduction <add>, %869, %cst_421 [0] : vector<1x128xf32> to vector<128xf32>
    %878 = vector.shape_cast %877 : vector<128xf32> to vector<1x128xf32>
    %879 = arith.addf %873, %878 : vector<1x128xf32>
    %880 = arith.mulf %869, %869 : vector<1x128xf32>
    %cst_422 = arith.constant dense<0.000000e+00> : vector<128xf32>
    %881 = vector.multi_reduction <add>, %880, %cst_422 [0] : vector<1x128xf32> to vector<128xf32>
    %882 = vector.shape_cast %881 : vector<128xf32> to vector<1x128xf32>
    %883 = arith.addf %876, %882 : vector<1x128xf32>
    %cst_423 = arith.constant 5.000000e-01 : f32
    %884 = vector.broadcast %cst_423 : f32 to vector<1x128xf32>
    %885 = arith.mulf %879, %884 : vector<1x128xf32>
    %cst_424 = arith.constant 5.000000e-01 : f32
    %886 = vector.broadcast %cst_424 : f32 to vector<1x128xf32>
    %887 = arith.mulf %883, %886 : vector<1x128xf32>
    %888 = arith.mulf %885, %885 : vector<1x128xf32>
    %889 = arith.subf %887, %888 : vector<1x128xf32>
    %cst_425 = arith.constant 0.000000e+00 : f32
    %890 = vector.broadcast %cst_425 : f32 to vector<1x128xf32>
    %891 = arith.maximumf %889, %890 : vector<1x128xf32>
    %892 = vector.extract_strided_slice %871 {offsets = [0, 0], sizes = [1, 128], strides = [1, 1]} : vector<2x128xf32> to vector<1x128xf32>
    %893 = vector.extract_strided_slice %871 {offsets = [1, 0], sizes = [1, 128], strides = [1, 1]} : vector<2x128xf32> to vector<1x128xf32>
    %cst_426 = arith.constant 9.99999974E-6 : f32
    %894 = vector.broadcast %cst_426 : f32 to vector<1x128xf32>
    %895 = arith.addf %891, %894 : vector<1x128xf32>
    %896 = math.rsqrt %895 : vector<1x128xf32>
    %897 = arith.mulf %892, %896 : vector<1x128xf32>
    %898 = arith.mulf %885, %897 : vector<1x128xf32>
    %899 = arith.subf %893, %898 : vector<1x128xf32>
    %900 = arith.mulf %853, %897 : vector<1x128xf32>
    %901 = arith.addf %900, %899 : vector<1x128xf32>
    %cst_427 = arith.constant 0.000000e+00 : f32
    %902 = vector.broadcast %cst_427 : f32 to vector<1x128xf32>
    %903 = arith.cmpf oge, %901, %902 : vector<1x128xf32>
    %cst_428 = arith.constant 0.00999999977 : f32
    %904 = vector.broadcast %cst_428 : f32 to vector<1x128xf32>
    %905 = arith.mulf %904, %901 : vector<1x128xf32>
    %906 = arith.select %903, %901, %905 : vector<1x128xi1>, vector<1x128xf32>
    %907 = arith.mulf %869, %897 : vector<1x128xf32>
    %908 = arith.addf %907, %899 : vector<1x128xf32>
    %cst_429 = arith.constant 0.000000e+00 : f32
    %909 = vector.broadcast %cst_429 : f32 to vector<1x128xf32>
    %910 = arith.cmpf oge, %908, %909 : vector<1x128xf32>
    %cst_430 = arith.constant 0.00999999977 : f32
    %911 = vector.broadcast %cst_430 : f32 to vector<1x128xf32>
    %912 = arith.mulf %911, %908 : vector<1x128xf32>
    %913 = arith.select %910, %908, %912 : vector<1x128xi1>, vector<1x128xf32>
    %c0_431 = arith.constant 0 : index
    %c0_432 = arith.constant 0 : index
    %c0_433 = arith.constant 0 : index
    %914 = vector.load %arg3[%c0_431, %c0_432, %c0_433] : memref<2x1x128xf32, #tpu.memory_space<vmem>>, vector<1x1x128xf32>
    %915 = vector.shape_cast %914 : vector<1x1x128xf32> to vector<1x128xf32>
    %916 = vector.shape_cast %906 : vector<1x128xf32> to vector<1x1x128xf32>
    tpu.vector_store %arg3[%c0_431, %c0_432, %c0_433], %916 {strides = array<i32>} : memref<2x1x128xf32, #tpu.memory_space<vmem>>, vector<1x1x128xf32>,
    %c1_434 = arith.constant 1 : index
    %c0_435 = arith.constant 0 : index
    %c0_436 = arith.constant 0 : index
    %917 = vector.load %arg3[%c1_434, %c0_435, %c0_436] : memref<2x1x128xf32, #tpu.memory_space<vmem>>, vector<1x1x128xf32>
    %918 = vector.shape_cast %917 : vector<1x1x128xf32> to vector<1x128xf32>
    %919 = vector.shape_cast %913 : vector<1x128xf32> to vector<1x1x128xf32>
    tpu.vector_store %arg3[%c1_434, %c0_435, %c0_436], %919 {strides = array<i32>} : memref<2x1x128xf32, #tpu.memory_space<vmem>>, vector<1x1x128xf32>,
    return
  }
}

</mosaic_0001>

<bundles_post_ra>
// kernel: vggnet_forward.1
= control target key start
LH: loop header
LB: loop body
LE: loop exit
PB: predicated region body
PF: predicated region fallthrough
CT: control target
= control target key end

     0   :  { %8 = vsyncpa [#allocation3], 0  ;;  %s7653_s0 = inlined_call_operand.vmem [shape: f32[2,128,3], index: 0, kind: input, shape index: {}]   ;;  %s7654_s1 = inlined_call_operand.hbm [shape: f32[27,128,128], index: 1, kind: input, shape index: {}]   ;;  %s7655_s2 = inlined_call_operand.hbm [shape: f32[9,2,128], index: 2, kind: input, shape index: {}]   ;;  %s7656_s3 = inlined_call_operand.hbm [shape: f32[2,1,128], index: 3, kind: output, shape index: {}]  }
   0x1   :  { %9 = vsyncpa [#allocation6], 0 }
   0x2   :  { %10 = vsyncpa [#allocation4], 0  ;;  %s17_s14 = sshll.u32 %s7654_s1, 4  ;;  %s4969_s15 = smov [#allocation2]   ;;  %s18_s14 = int_to_ptr.hbm [resolvable:$true] %s17_s14 }
   0x3   :  { %s19_s16 = sshll.u32 %s4969_s15, 4  ;;  %s30_s19 = sshll.u32 %s7655_s2, 4  ;;  %s20_s16 = int_to_ptr.vmem [resolvable:$true] %s19_s16  ;;  %s31_s19 = int_to_ptr.hbm [resolvable:$true] %s30_s19 }
   0x4   :  { %s4970_s20 = smov 128   ;;  %s4971_s21 = smov 8  }
   0x5   :  { %25 = dma.hbm_to_vmem [thread:$0]  %s18_s14, 55296, %s20_s16, [#allocation3], %s4970_s20, %s4970_s20, %s4971_s21  }
   0x6   :  { %s4972_s22 = smov [#allocation5]   ;;  %s4973_s24 = smov 32  }
   0x7   :  { %s32_s23 = sshll.u32 %s4972_s22, 4  ;;  %s4974_s25 = smov 2   ;;  %s33_s23 = int_to_ptr.vmem [resolvable:$true] %s32_s23 }
   0x8   :  { %38 = dma.hbm_to_vmem [thread:$0]  %s31_s19, 288, %s33_s23, [#allocation6], %s4973_s24, %s4973_s24, %s4974_s25  }
   0x9   :  { %4963 = dma.done.wait [#allocation3], 55296  }
   0xa   :  { %4964 = vsyncadd [#allocation3], 4294912000 }
   0xb   :  { %4965 = dma.done.wait [#allocation6], 288  }
   0xc   :  { %4966 = vsyncadd [#allocation6], 4294967008  ;;  %v4975_v0 = vmov 2   ;;  %v4976_v1 = vmov 1   ;;  %v4977_v2 = vmov 0   ;;  %v4623_v3 = vld [vmem:[%s7653_s0 + $0x80] sm:$0xff] }
   0xd   :  { %4828 = vset.pattern.permute.xlu0 %v4975_v0  ;;  %4825 = vset.pattern.permute.xlu1 %v4976_v1  ;;  %v5018_v4 = vld [vmem:[%s7653_s0 + $0x8] sm:$0xff]  ;;  %v5023_v5 = vld [vmem:[%s7653_s0] sm:$0xff]  ;;  %v4625_v7 = vld [vmem:[%s7653_s0 + $0x90] sm:$0xff]  ;;  %s4609_s6 = sshll.u32 %s7656_s3, 4  ;;  %s4981_s7 = smov 16   ;;  %s4610_s6 = int_to_ptr.hbm [resolvable:$true] %s4609_s6 }
   0xe   :  { %4826 = vset.pattern.permute.xlu2 %v4977_v2  ;;  %267 = vperm.xlu0 %4828, %v5018_v4   ;;  %v4624_v6 = vld [vmem:[%s7653_s0 + $0x88] sm:$0xff]  ;;  %v49_v8 = vld [vmem:[%s7653_s0 + $0x10] sm:$0xff]  ;;  %v5043_v10 = vld [vmem:[%s7653_s0 + $0xb8] sm:$0xff]  ;;  %s4982_s8 = smov 1  }
   0xf   :  { %378 = vperm.xlu2 %4826, %v4623_v3   ;;  %164 = vperm.xlu1 %4825, %v5023_v5   ;;  %v52_v9 = vld [vmem:[%s7653_s0 + $0x28] sm:$0xff]  ;;  %v5051_v11 = vld [vmem:[%s7653_s0 + $0x50] sm:$0xff]  ;;  %v5059_v12 = vld [vmem:[%s7653_s0 + $0xe0] sm:$0xff] }
  0x10   :  { %v50_v13 = vld [vmem:[%s7653_s0 + $0x18] sm:$0xff]  ;;  %v4627_v14 = vld [vmem:[%s7653_s0 + $0xa0] sm:$0xff]  ;;  %v5089_v18 = vld [vmem:[%s7653_s0 + $0xc8] sm:$0xff] }
  0x11   :  { %v4626_v15 = vld [vmem:[%s7653_s0 + $0x98] sm:$0xff]  ;;  %v51_v17 = vld [vmem:[%s7653_s0 + $0x20] sm:$0xff]  ;;  %v5103_v20 = vld [vmem:[%s7653_s0 + $0xf0] sm:$0xff] }
  0x12   :  { %v5080_v16 = vld [vmem:[%s7653_s0 + $0x38] sm:$0xff]  ;;  %v5097_v19 = vld [vmem:[%s7653_s0 + $0x60] sm:$0xff]  ;;  %v4628_v23 = vld [vmem:[%s7653_s0 + $0xa8] sm:$0xff] }
  0x13   :  { %v53_v25 = vld [vmem:[%s7653_s0 + $0x30] sm:$0xff]  ;;  %v63_v33 = vld [vmem:[#allocation2] sm:$0xff] }
  0x14   :  { %v4629_v29 = vld [vmem:[%s7653_s0 + $0xb0] sm:$0xff]  ;;  %v162_v34 = vld [vmem:[#allocation2 + $0x80] sm:$0xff]  ;;  %v5138_v37 = vperm.slane %v63_v33, 0 }
  0x15   :  { %v261_v35 = vld [vmem:[#allocation2 + $0x100] sm:$0xff]  ;;  %v5142_v38 = vperm.slane %v162_v34, 0 }
  0x16   :  { %577 = vperm.xlu0 %4828, %v4625_v7   ;;  %v5136_v36 = vld [vmem:[%s7653_s0 + $0x40] sm:$0xff]  ;;  %v5144_v39 = vperm.slane %v261_v35, 0 }
  0x17   :  { %383 = vperm.xlu2 %4826, %v4624_v6   ;;  %168 = vperm.xlu1 %4825, %v5018_v4  }
  0x1e   :  { %283 = vperm.xlu0 %4828, %v52_v9  }
  0x1f   :  { %76 = vperm.xlu2 %4826, %v49_v8   ;;  %477 = vperm.xlu1 %4825, %v4624_v6  }
  0x26   :  { %597 = vperm.xlu0 %4828, %v5043_v10  }
  0x27   :  { %4827 = vset.pattern.permute.xlu2 %v4975_v0  ;;  %172 = vperm.xlu1 %4825, %v49_v8  }
  0x28   :  { %263 = vperm.xlu2 %4827, %v5023_v5  }
  0x2e   :  { %303 = vperm.xlu0 %4828, %v5051_v11  }
  0x2f   :  { %4829 = vset.pattern.permute.xlu1 %v4977_v2 }
  0x30   :  { %4830 = vset.pattern.permute.xlu2 %v4976_v1  ;;  %388 = vperm.xlu1 %4829, %v4625_v7  }
  0x31   :  { %481 = vperm.xlu2 %4830, %v4625_v7  }
  0x36   :  { %617 = vperm.xlu0 %4828, %v5059_v12  }
  0x38   :  { %4831 = vset.pattern.permute.xlu1 %v4975_v0 }
  0x39   :  { %4832 = vset.pattern.permute.xlu2 %v4975_v0  ;;  %569 = vperm.xlu1 %4831, %v4623_v3  }
  0x3a   :  { %573 = vperm.xlu2 %4832, %v4624_v6   ;;  %v4631_v6 = vld [vmem:[%s7653_s0 + $0xc0] sm:$0xff] }
  0x3e   :  { %4860 = vset.pattern.permute.xlu0 %v4976_v1 }
  0x3f   :  { %473 = vperm.xlu0 %4860, %v4623_v3  }
  0x41   :  { %4833 = vset.pattern.permute.xlu1 %v4976_v1 }
  0x42   :  { %271 = vperm.xlu2 %4832, %v49_v8   ;;  %176 = vperm.xlu1 %4833, %v50_v13  }
  0x47   :  { %489 = vperm.xlu0 %4860, %v4627_v14  }
  0x4a   :  { %4835 = vset.pattern.permute.xlu2 %v4976_v1  ;;  %4834 = vset.pattern.permute.xlu1 %v4977_v2 }
  0x4b   :  { %485 = vperm.xlu2 %4835, %v4626_v15   ;;  %393 = vperm.xlu1 %4834, %v4626_v15  }
  0x4f   :  { %192 = vperm.xlu0 %4860, %v5080_v16  }
  0x53   :  { %180 = vperm.xlu2 %4835, %v51_v17   ;;  %86 = vperm.xlu1 %4834, %v51_v17  }
  0x57   :  { %509 = vperm.xlu0 %4860, %v5089_v18  }
  0x5b   :  { %4837 = vset.pattern.permute.xlu2 %v4977_v2  ;;  %4836 = vset.pattern.permute.xlu1 %v4975_v0 }
  0x5c   :  { %398 = vperm.xlu2 %4837, %v4627_v14   ;;  %275 = vperm.xlu1 %4836, %v50_v13  }
  0x5f   :  { %212 = vperm.xlu0 %4860, %v5097_v19  }
  0x64   :  { %91 = vperm.xlu2 %4837, %v52_v9   ;;  %581 = vperm.xlu1 %4836, %v4626_v15  }
  0x67   :  { %529 = vperm.xlu0 %4860, %v5103_v20  }
  0x69   :  { %v5106_v21 = vpop.permute.xlu2 %378 }
  0x6a   :  { %v456_v8 = vmul.f32 %v5106_v21, %v5138_v37 }
  0x6c   :  { %4839 = vset.pattern.permute.xlu2 %v4975_v0  ;;  %4838 = vset.pattern.permute.xlu1 %v4976_v1 }
  0x6d   :  { %279 = vperm.xlu2 %4839, %v51_v17   ;;  %184 = vperm.xlu1 %4838, %v52_v9  }
  0x6f   :  { %4863 = vset.pattern.permute.xlu0 %v4977_v2 }
  0x70   :  { %66 = vperm.xlu0 %4863, %v5023_v5  }
  0x71   :  { %v384_v22 = vpop.permute.xlu2 %383 }
  0x72   :  { %v457_v42 = vmul.f32 %v384_v22, %v5138_v37 }
  0x75   :  { %585 = vperm.xlu2 %4839, %v4627_v14   ;;  %493 = vperm.xlu1 %4838, %v4628_v23  }
  0x78   :  { %71 = vperm.xlu0 %4863, %v5018_v4  }
  0x79   :  { %v77_v24 = vpop.permute.xlu2 %76 }
  0x7a   :  { %v147_v50 = vmul.f32 %v5138_v37, %v77_v24  ;;  %v5197_v24 = vld [vmem:[%s7653_s0 + $0xd0] sm:$0xff] }
  0x7d   :  { %4841 = vset.pattern.permute.xlu2 %v4976_v1  ;;  %4840 = vset.pattern.permute.xlu1 %v4977_v2 }
  0x7e   :  { %188 = vperm.xlu2 %4841, %v53_v25   ;;  %96 = vperm.xlu1 %4840, %v53_v25  }
  0x80   :  { %81 = vperm.xlu0 %4863, %v50_v13   ;;  %v5121_v26 = vpop.permute.xlu0 %267 }
  0x81   :  { %v5123_v27 = vpop.permute.xlu1 %164 }
  0x82   :  { %v5125_v28 = vpop.permute.xlu2 %263 }
  0x86   :  { %497 = vperm.xlu2 %4841, %v4629_v29   ;;  %408 = vperm.xlu1 %4840, %v4629_v29  }
  0x88   :  { %403 = vperm.xlu0 %4863, %v4628_v23   ;;  %v578_v30 = vpop.permute.xlu0 %577 }
  0x89   :  { %v5130_v31 = vpop.permute.xlu1 %168  ;;  %v634_v59 = vmul.f32 %v578_v30, %v5144_v39 }
  0x8b   :  { %v482_v32 = vpop.permute.xlu2 %481 }
  0x8c   :  { %v538_v57 = vmul.f32 %v482_v32, %v5142_v38 }
  0x8e   :  { %4843 = vset.pattern.permute.xlu2 %v4977_v2  ;;  %4842 = vset.pattern.permute.xlu1 %v4975_v0 }
  0x8f   :  { %101 = vperm.xlu2 %4843, %v5080_v16   ;;  %589 = vperm.xlu1 %4842, %v4628_v23  }
  0x90   :  { %v5146_v40 = vpop.permute.xlu0 %283  ;;  %106 = vperm.xlu0 %4863, %v5136_v36  }
  0x91   :  { %v478_v41 = vpop.permute.xlu1 %477 }
  0x92   :  { %v537_v43 = vmul.f32 %v478_v41, %v5142_v38 }
  0x94   :  { %v574_v44 = vpop.permute.xlu2 %573  ;;  %v553_v45 = vadd.f32 %v537_v43, %v457_v42 }
  0x95   :  { %v633_v46 = vmul.f32 %v574_v44, %v5144_v39 }
  0x97   :  { %v5152_v47 = vadd.f32 %v633_v46, %v553_v45  ;;  %413 = vperm.xlu2 %4843, %v5043_v10   ;;  %287 = vperm.xlu1 %4842, %v53_v25  }
  0x98   :  { %v5155_v48 = vpop.permute.xlu0 %597  ;;  %428 = vperm.xlu0 %4863, %v5197_v24  }
  0x99   :  { %v173_v49 = vpop.permute.xlu1 %172 }
  0x9a   :  { %v230_v51 = vmul.f32 %v5142_v38, %v173_v49 }
  0x9c   :  { %v272_v52 = vpop.permute.xlu2 %271  ;;  %v246_v53 = vadd.f32 %v230_v51, %v147_v50 }
  0x9d   :  { %v329_v54 = vmul.f32 %v5144_v39, %v272_v52 }
  0x9f   :  { %v5160_v55 = vadd.f32 %v329_v54, %v246_v53  ;;  %4845 = vset.pattern.permute.xlu2 %v4975_v0  ;;  %4844 = vset.pattern.permute.xlu1 %v4976_v1 }
  0xa0   :  { %593 = vperm.xlu2 %4845, %v4629_v29   ;;  %501 = vperm.xlu1 %4844, %v5043_v10   ;;  %v5165_v56 = vpop.permute.xlu0 %303 }
  0xa2   :  { %v389_v58 = vpop.permute.xlu1 %388 }
  0xa3   :  { %v458_v60 = vmul.f32 %v389_v58, %v5138_v37 }
  0xa5   :  { %v486_v61 = vpop.permute.xlu2 %485  ;;  %v554_v62 = vadd.f32 %v538_v57, %v458_v60 }
  0xa6   :  { %v539_v25 = vmul.f32 %v486_v61, %v5142_v38 }
  0xa7   :  { %v5170_v63 = vadd.f32 %v634_v59, %v554_v62 }
  0xa8   :  { %291 = vperm.xlu2 %4845, %v5080_v16   ;;  %196 = vperm.xlu1 %4844, %v5136_v36   ;;  %v5174_v3 = vpop.permute.xlu0 %617  ;;  %v56_v16 = vld [vmem:[%s7653_s0 + $0x48] sm:$0xff] }
  0xab   :  { %v570_v4 = vpop.permute.xlu1 %569 }
  0xac   :  { %v632_v10 = vmul.f32 %v570_v4, %v5144_v39 }
  0xad   :  { %v181_v5 = vpop.permute.xlu2 %180 }
  0xae   :  { %v232_v42 = vmul.f32 %v5142_v38, %v181_v5  ;;  %v332_v5 = vmul.f32 %v5144_v39, %v5146_v40 }
  0xb0   :  { %4847 = vset.pattern.permute.xlu2 %v4976_v1  ;;  %4846 = vset.pattern.permute.xlu1 %v4977_v2 }
  0xb1   :  { %505 = vperm.xlu2 %4847, %v4631_v6   ;;  %418 = vperm.xlu1 %4846, %v4631_v6   ;;  %v474_v7 = vpop.permute.xlu0 %473 }
  0xb2   :  { %v536_v9 = vmul.f32 %v474_v7, %v5142_v38  ;;  %v58_v7 = vld [vmem:[%s7653_s0 + $0x58] sm:$0xff] }
  0xb4   :  { %v552_v13 = vadd.f32 %v536_v9, %v456_v8  ;;  %v5185_v14 = vpop.permute.xlu1 %176 }
  0xb6   :  { %v399_v15 = vpop.permute.xlu2 %398  ;;  %v5190_v17 = vadd.f32 %v632_v10, %v552_v13  ;;  %v327_v13 = vmul.f32 %v5144_v39, %v5125_v28 }
  0xb7   :  { %v460_v22 = vmul.f32 %v399_v15, %v5138_v37 }
  0xb9   :  { %200 = vperm.xlu2 %4847, %v56_v16   ;;  %111 = vperm.xlu1 %4846, %v56_v16   ;;  %v490_v23 = vpop.permute.xlu0 %489 }
  0xba   :  { %v540_v21 = vmul.f32 %v490_v23, %v5142_v38 }
  0xbc   :  { %v556_v29 = vadd.f32 %v540_v21, %v460_v22 }
  0xbd   :  { %v394_v30 = vpop.permute.xlu1 %393 }
  0xbe   :  { %v92_v32 = vpop.permute.xlu2 %91  ;;  %v459_v33 = vmul.f32 %v394_v30, %v5138_v37  ;;  %v328_v30 = vmul.f32 %v5144_v39, %v5121_v26 }
  0xc0   :  { %v555_v34 = vadd.f32 %v539_v25, %v459_v33  ;;  %v4634_v25 = vld [vmem:[%s7653_s0 + $0xd8] sm:$0xff] }
  0xc1   :  { %4849 = vset.pattern.permute.xlu2 %v4977_v2  ;;  %4848 = vset.pattern.permute.xlu1 %v4975_v0  ;;  %v193_v35 = vpop.permute.xlu0 %192 }
  0xc2   :  { %423 = vperm.xlu2 %4849, %v5089_v18   ;;  %295 = vperm.xlu1 %4848, %v5136_v36  }
  0xc5   :  { %v87_v41 = vpop.permute.xlu1 %86 }
  0xc6   :  { %v149_v43 = vmul.f32 %v5138_v37, %v87_v41 }
  0xc7   :  { %v280_v44 = vpop.permute.xlu2 %279 }
  0xc8   :  { %v331_v45 = vmul.f32 %v5144_v39, %v280_v44  ;;  %v248_v46 = vadd.f32 %v232_v42, %v149_v43  ;;  %v5271_v43 = vld [vmem:[%s7653_s0 + $0xf8] sm:$0xff] }
  0xc9   :  { %v5210_v49 = vpop.permute.xlu0 %509 }
  0xca   :  { %116 = vperm.xlu2 %4849, %v5051_v11   ;;  %v5212_v50 = vadd.f32 %v331_v45, %v248_v46  ;;  %601 = vperm.xlu1 %4848, %v4631_v6   ;;  %v150_v6 = vmul.f32 %v5138_v37, %v92_v32  ;;  %v229_v32 = vmul.f32 %v5142_v38, %v5130_v31 }
  0xcb   :  { %v231_v46 = vmul.f32 %v5142_v38, %v5185_v14 }
  0xce   :  { %v5214_v51 = vpop.permute.xlu1 %275 }
  0xcf   :  { %v586_v52 = vpop.permute.xlu2 %585 }
  0xd0   :  { %v636_v36 = vmul.f32 %v586_v52, %v5144_v39 }
  0xd1   :  { %v5220_v54 = vpop.permute.xlu0 %212 }
  0xd2   :  { %v5217_v53 = vadd.f32 %v636_v36, %v556_v29  ;;  %4851 = vset.pattern.permute.xlu2 %v4975_v0  ;;  %4850 = vset.pattern.permute.xlu1 %v4976_v1 }
  0xd3   :  { %299 = vperm.xlu2 %4851, %v56_v16   ;;  %204 = vperm.xlu1 %4850, %v5051_v11   ;;  %v235_v16 = vmul.f32 %v5142_v38, %v193_v35 }
  0xd6   :  { %v582_v57 = vpop.permute.xlu1 %581 }
  0xd7   :  { %v635_v58 = vmul.f32 %v582_v57, %v5144_v39  ;;  %v330_v57 = vmul.f32 %v5144_v39, %v5214_v51 }
  0xd8   :  { %v189_v59 = vpop.permute.xlu2 %188 }
  0xd9   :  { %v5225_v60 = vadd.f32 %v635_v58, %v555_v34  ;;  %v5227_v61 = vpop.permute.xlu0 %529  ;;  %v234_v41 = vmul.f32 %v5142_v38, %v189_v59 }
  0xdb   :  { %605 = vperm.xlu2 %4851, %v5089_v18   ;;  %513 = vperm.xlu1 %4850, %v5197_v24   ;;  %v228_v18 = vmul.f32 %v5142_v38, %v5123_v27  ;;  %v5253_v27 = vld [vmem:[%s7653_s0 + $0x68] sm:$0xff] }
  0xdc   :  { %131 = vperm.xlu0 %4863, %v5253_v27  }
  0xdf   :  { %v185_v62 = vpop.permute.xlu1 %184 }
  0xe0   :  { %v498_v4 = vpop.permute.xlu2 %497  ;;  %v233_v11 = vmul.f32 %v5142_v38, %v185_v62 }
  0xe1   :  { %v542_v14 = vmul.f32 %v498_v4, %v5142_v38 }
  0xe2   :  { %v249_v8 = vadd.f32 %v233_v11, %v150_v6  ;;  %v67_v9 = vpop.permute.xlu0 %66 }
  0xe3   :  { %4853 = vset.pattern.permute.xlu2 %v4976_v1  ;;  %v145_v10 = vmul.f32 %v5138_v37, %v67_v9  ;;  %4852 = vset.pattern.permute.xlu1 %v4977_v2 }
  0xe4   :  { %208 = vperm.xlu2 %4853, %v58_v7   ;;  %v5243_v40 = vadd.f32 %v332_v5, %v249_v8  ;;  %121 = vperm.xlu1 %4852, %v58_v7  }
  0xe5   :  { %v244_v15 = vadd.f32 %v228_v18, %v145_v10  ;;  %453 = vperm.xlu0 %4863, %v5271_v43  }
  0xe7   :  { %v5248_v22 = vadd.f32 %v327_v13, %v244_v15  ;;  %v494_v23 = vpop.permute.xlu1 %493 }
  0xe8   :  { %v541_v18 = vmul.f32 %v494_v23, %v5142_v38 }
  0xe9   :  { %v102_v21 = vpop.permute.xlu2 %101 }
  0xea   :  { %v152_v28 = vmul.f32 %v5138_v37, %v102_v21  ;;  %v72_v29 = vpop.permute.xlu0 %71 }
  0xeb   :  { %v146_v34 = vmul.f32 %v5138_v37, %v72_v29 }
  0xec   :  { %v251_v33 = vadd.f32 %v235_v16, %v152_v28  ;;  %517 = vperm.xlu2 %4853, %v4634_v25   ;;  %433 = vperm.xlu1 %4852, %v4634_v25  }
  0xed   :  { %v245_v35 = vadd.f32 %v229_v32, %v146_v34  ;;  %4867 = vset.pattern.permute.xlu0 %v4975_v0  ;;  %v639_v34 = vmul.f32 %v5155_v48, %v5144_v39  ;;  %v545_v48 = vmul.f32 %v5210_v49, %v5142_v38 }
  0xef   :  { %v5266_v42 = vadd.f32 %v328_v30, %v245_v35 }
  0xf0   :  { %v97_v44 = vpop.permute.xlu1 %96 }
  0xf1   :  { %v414_v26 = vpop.permute.xlu2 %413  ;;  %v151_v31 = vmul.f32 %v5138_v37, %v97_v44 }
  0xf2   :  { %v82_v45 = vpop.permute.xlu0 %81  ;;  %v463_v35 = vmul.f32 %v414_v26, %v5138_v37 }
  0xf3   :  { %v250_v52 = vadd.f32 %v234_v41, %v151_v31  ;;  %v148_v36 = vmul.f32 %v5138_v37, %v82_v45  ;;  %v61_v31 = vld [vmem:[%s7653_s0 + $0x70] sm:$0xff] }
  0xf4   :  { %4855 = vset.pattern.permute.xlu2 %v4977_v2  ;;  %4854 = vset.pattern.permute.xlu1 %v4975_v0 }
  0xf5   :  { %126 = vperm.xlu2 %4855, %v5097_v19   ;;  %v247_v58 = vadd.f32 %v231_v46, %v148_v36  ;;  %609 = vperm.xlu1 %4854, %v5197_v24  }
  0xf7   :  { %v5284_v59 = vadd.f32 %v330_v57, %v247_v58 }
  0xf8   :  { %v409_v62 = vpop.permute.xlu1 %408 }
  0xf9   :  { %v462_v5 = vmul.f32 %v409_v62, %v5138_v37 }
  0xfa   :  { %v594_v6 = vpop.permute.xlu2 %593  ;;  %v404_v9 = vpop.permute.xlu0 %403 }
  0xfb   :  { %v638_v11 = vmul.f32 %v594_v6, %v5144_v39  ;;  %v558_v8 = vadd.f32 %v542_v14, %v462_v5  ;;  %v461_v24 = vmul.f32 %v404_v9, %v5138_v37 }
  0xfd   :  { %438 = vperm.xlu2 %4855, %v5059_v12   ;;  %v5291_v51 = vadd.f32 %v638_v11, %v558_v8  ;;  %307 = vperm.xlu1 %4854, %v58_v7   ;;  %v557_v15 = vadd.f32 %v541_v18, %v461_v24  ;;  %v62_v11 = vld [vmem:[%s7653_s0 + $0x78] sm:$0xff] }
 0x101   :  { %v590_v10 = vpop.permute.xlu1 %589 }
 0x102   :  { %v292_v13 = vpop.permute.xlu2 %291  ;;  %v637_v4 = vmul.f32 %v590_v10, %v5144_v39  ;;  %v107_v9 = vpop.permute.xlu0 %106 }
 0x103   :  { %v334_v16 = vmul.f32 %v5144_v39, %v292_v13 }
 0x104   :  { %v5297_v21 = vadd.f32 %v637_v4, %v557_v15 }
 0x105   :  { %v5299_v28 = vadd.f32 %v334_v16, %v251_v33  ;;  %4857 = vset.pattern.permute.xlu2 %v4975_v0  ;;  %4856 = vset.pattern.permute.xlu1 %v4976_v1 }
 0x106   :  { %613 = vperm.xlu2 %4857, %v4634_v25   ;;  %521 = vperm.xlu1 %4856, %v5059_v12   ;;  %v4636_v12 = vld [vmem:[%s7653_s0 + $0xe8] sm:$0xff]  ;;  %s4980_s0 = smov [#allocation7]  }
 0x107   :  { %s4607_s30 = sshll.u32 %s4980_s0, 4  ;;  %s4608_s30 = int_to_ptr.vmem [resolvable:$true] %s4607_s30 }
 0x109   :  { %v288_v7 = vpop.permute.xlu1 %287 }
 0x10a   :  { %v333_v23 = vmul.f32 %v5144_v39, %v288_v7 }
 0x10b   :  { %v506_v29 = vpop.permute.xlu2 %505 }
 0x10c   :  { %v5305_v30 = vadd.f32 %v333_v23, %v250_v52  ;;  %v544_v52 = vmul.f32 %v506_v29, %v5142_v38 }
 0x10e   :  { %311 = vperm.xlu2 %4857, %v5097_v19   ;;  %216 = vperm.xlu1 %4856, %v5253_v27  }
 0x112   :  { %v502_v32 = vpop.permute.xlu1 %501 }
 0x113   :  { %v201_v33 = vpop.permute.xlu2 %200  ;;  %v543_v25 = vmul.f32 %v502_v32, %v5142_v38 }
 0x114   :  { %v237_v14 = vmul.f32 %v5142_v38, %v201_v33 }
 0x115   :  { %v559_v41 = vadd.f32 %v543_v25, %v463_v35 }
 0x116   :  { %4859 = vset.pattern.permute.xlu2 %v4976_v1  ;;  %4858 = vset.pattern.permute.xlu1 %v4977_v2 }
 0x117   :  { %525 = vperm.xlu2 %4859, %v4636_v12   ;;  %v5318_v19 = vadd.f32 %v639_v34, %v559_v41  ;;  %443 = vperm.xlu1 %4858, %v4636_v12  }
 0x11a   :  { %v197_v44 = vpop.permute.xlu1 %196 }
 0x11b   :  { %v236_v18 = vmul.f32 %v5142_v38, %v197_v44 }
 0x11c   :  { %v424_v26 = vpop.permute.xlu2 %423 }
 0x11d   :  { %v465_v45 = vmul.f32 %v424_v26, %v5138_v37 }
 0x11f   :  { %v561_v46 = vadd.f32 %v545_v48, %v465_v45  ;;  %220 = vperm.xlu2 %4859, %v61_v31   ;;  %136 = vperm.xlu1 %4858, %v61_v31  }
 0x123   :  { %v419_v36 = vpop.permute.xlu1 %418 }
 0x124   :  { %v117_v57 = vpop.permute.xlu2 %116  ;;  %v464_v58 = vmul.f32 %v419_v36, %v5138_v37 }
 0x126   :  { %v560_v62 = vadd.f32 %v544_v52, %v464_v58 }
 0x127   :  { %4862 = vset.pattern.permute.xlu2 %v4977_v2  ;;  %4861 = vset.pattern.permute.xlu1 %v4975_v0 }
 0x128   :  { %448 = vperm.xlu2 %4862, %v5103_v20   ;;  %315 = vperm.xlu1 %4861, %v5253_v27   ;;  %v153_v27 = vmul.f32 %v5138_v37, %v107_v9 }
 0x12a   :  { %v252_v15 = vadd.f32 %v236_v18, %v153_v27 }
 0x12b   :  { %v112_v49 = vpop.permute.xlu1 %111 }
 0x12c   :  { %v154_v5 = vmul.f32 %v5138_v37, %v112_v49  ;;  %v429_v49 = vpop.permute.xlu0 %428 }
 0x12d   :  { %v300_v6 = vpop.permute.xlu2 %299 }
 0x12e   :  { %v336_v8 = vmul.f32 %v5144_v39, %v300_v6  ;;  %v253_v2 = vadd.f32 %v237_v14, %v154_v5  ;;  %v466_v14 = vmul.f32 %v429_v49, %v5138_v37 }
 0x130   :  { %141 = vperm.xlu2 %4862, %v62_v11   ;;  %v5338_v24 = vadd.f32 %v336_v8, %v253_v2  ;;  %621 = vperm.xlu1 %4861, %v4636_v12   ;;  %v155_v12 = vmul.f32 %v5138_v37, %v117_v57 }
 0x134   :  { %v296_v10 = vpop.permute.xlu1 %295 }
 0x135   :  { %v606_v13 = vpop.permute.xlu2 %605  ;;  %v335_v4 = vmul.f32 %v5144_v39, %v296_v10 }
 0x136   :  { %v641_v16 = vmul.f32 %v606_v13, %v5144_v39 }
 0x137   :  { %v5344_v7 = vadd.f32 %v335_v4, %v252_v15 }
 0x138   :  { %v5346_v23 = vadd.f32 %v641_v16, %v561_v46  ;;  %4865 = vset.pattern.permute.xlu2 %v4975_v0  ;;  %4864 = vset.pattern.permute.xlu1 %v4976_v1  ;;  %v337_v1 = vmul.f32 %v5144_v39, %v5165_v56 }
 0x139   :  { %319 = vperm.xlu2 %4865, %v61_v31   ;;  %224 = vperm.xlu1 %4864, %v62_v11  }
 0x13c   :  { %v602_v29 = vpop.permute.xlu1 %601 }
 0x13d   :  { %v640_v32 = vmul.f32 %v602_v29, %v5144_v39 }
 0x13e   :  { %v209_v33 = vpop.permute.xlu2 %208 }
 0x13f   :  { %v5351_v34 = vadd.f32 %v640_v32, %v560_v62  ;;  %v239_v52 = vmul.f32 %v5142_v38, %v209_v33  ;;  %v644_v32 = vmul.f32 %v5174_v3, %v5144_v39  ;;  %v746_v3 = vmul.f32 %v5152_v47, %v5152_v47 }
 0x141   :  { %625 = vperm.xlu2 %4865, %v5103_v20   ;;  %533 = vperm.xlu1 %4864, %v5271_v43   ;;  %v240_v20 = vmul.f32 %v5142_v38, %v5220_v54 }
 0x145   :  { %v205_v35 = vpop.permute.xlu1 %204 }
 0x146   :  { %v518_v25 = vpop.permute.xlu2 %517  ;;  %v238_v41 = vmul.f32 %v5142_v38, %v205_v35 }
 0x147   :  { %v547_v58 = vmul.f32 %v518_v25, %v5142_v38 }
 0x148   :  { %v254_v48 = vadd.f32 %v238_v41, %v155_v12 }
 0x149   :  { %629 = vperm.xlu2 %4865, %v5271_v43   ;;  %4866 = vset.pattern.permute.xlu1 %v4975_v0 }
 0x14a   :  { %v5361_v44 = vadd.f32 %v337_v1, %v254_v48  ;;  %323 = vperm.xlu1 %4866, %v62_v11   ;;  %v745_v48 = vmul.f32 %v5190_v17, %v5190_v17 }
 0x14d   :  { %v514_v26 = vpop.permute.xlu1 %513 }
 0x14e   :  { %v546_v5 = vmul.f32 %v514_v26, %v5142_v38 }
 0x14f   :  { %v127_v31 = vpop.permute.xlu2 %126 }
 0x150   :  { %v157_v45 = vmul.f32 %v5138_v37, %v127_v31  ;;  %v562_v8 = vadd.f32 %v546_v5, %v466_v14  ;;  %v723_v31 = vadd.f32 %v5152_v47, %v5190_v17 }
 0x152   :  { %v5366_v46 = vadd.f32 %v240_v20, %v157_v45  ;;  %v687_v20 = vmul.f32 %v5266_v42, %v5266_v42  ;;  %v686_v45 = vmul.f32 %v5248_v22, %v5248_v22 }
 0x156   :  { %v122_v56 = vpop.permute.xlu1 %121 }
 0x157   :  { %v156_v36 = vmul.f32 %v5138_v37, %v122_v56  ;;  %v439_v57 = vpop.permute.xlu2 %438  ;;  %v665_v56 = vadd.f32 %v5266_v42, %v5248_v22 }
 0x158   :  { %v468_v4 = vmul.f32 %v439_v57, %v5138_v37  ;;  %v724_v57 = vadd.f32 %v723_v31, %v5170_v63 }
 0x159   :  { %v255_v43 = vadd.f32 %v239_v52, %v156_v36  ;;  %v761_v52 = vadd.f32 %v746_v3, %v745_v48  ;;  %v702_v36 = vadd.f32 %v687_v20, %v686_v45 }
 0x15a   :  { %v725_v5 = vadd.f32 %v724_v57, %v5225_v60 }
 0x15e   :  { %v434_v0 = vpop.permute.xlu1 %433 }
 0x15f   :  { %v467_v62 = vmul.f32 %v434_v0, %v5138_v37  ;;  %v748_v0 = vmul.f32 %v5225_v60, %v5225_v60 }
 0x160   :  { %v5376_v6 = vpop.permute.xlu2 %613 }
 0x161   :  { %v5372_v54 = vadd.f32 %v547_v58, %v467_v62  ;;  %v688_v58 = vmul.f32 %v5160_v55, %v5160_v55  ;;  %v689_v62 = vmul.f32 %v5284_v59, %v5284_v59 }
 0x167   :  { %v610_v11 = vpop.permute.xlu1 %609 }
 0x168   :  { %v642_v9 = vmul.f32 %v610_v11, %v5144_v39  ;;  %v5382_v10 = vpop.permute.xlu2 %311  ;;  %v666_v11 = vadd.f32 %v665_v56, %v5160_v55  ;;  %v692_v56 = vmul.f32 %v5305_v30, %v5305_v30 }
 0x16a   :  { %v5379_v2 = vadd.f32 %v642_v9, %v562_v8  ;;  %v703_v8 = vadd.f32 %v702_v36, %v688_v58 }
 0x16f   :  { %v308_v27 = vpop.permute.xlu1 %307 }
 0x170   :  { %v338_v18 = vmul.f32 %v5144_v39, %v308_v27 }
 0x171   :  { %v526_v16 = vpop.permute.xlu2 %525 }
 0x172   :  { %v5384_v13 = vadd.f32 %v338_v18, %v255_v43  ;;  %v747_v43 = vmul.f32 %v5170_v63, %v5170_v63  ;;  %v667_v18 = vadd.f32 %v666_v11, %v5284_v59 }
 0x174   :  { %v762_v14 = vadd.f32 %v761_v52, %v747_v43  ;;  %v668_v3 = vadd.f32 %v667_v18, %v5212_v50  ;;  %v691_v52 = vmul.f32 %v5243_v40, %v5243_v40  ;;  %v751_v43 = vmul.f32 %v5291_v51, %v5291_v51 }
 0x176   :  { %v763_v9 = vadd.f32 %v762_v14, %v748_v0  ;;  %v752_v0 = vmul.f32 %v5318_v19, %v5318_v19 }
 0x178   :  { %v522_v15 = vpop.permute.xlu1 %521 }
 0x179   :  { %v548_v29 = vmul.f32 %v522_v15, %v5142_v38  ;;  %v5394_v12 = vpop.permute.xlu2 %220  ;;  %v704_v15 = vadd.f32 %v703_v8, %v689_v62  ;;  %v669_v62 = vadd.f32 %v668_v3, %v5243_v40  ;;  %v753_v8 = vmul.f32 %v5351_v34, %v5351_v34 }
 0x17a   :  { %v549_v3 = vmul.f32 %v526_v16, %v5142_v38 }
 0x17b   :  { %v564_v33 = vadd.f32 %v548_v29, %v468_v4  ;;  %v749_v4 = vmul.f32 %v5217_v53, %v5217_v53  ;;  %v726_v29 = vadd.f32 %v725_v5, %v5217_v53 }
 0x17d   :  { %v5390_v35 = vadd.f32 %v644_v32, %v564_v33  ;;  %v750_v32 = vmul.f32 %v5297_v21, %v5297_v21  ;;  %v690_v33 = vmul.f32 %v5212_v50, %v5212_v50  ;;  %v764_v48 = vadd.f32 %v763_v9, %v749_v4 }
 0x17e   :  { %v727_v20 = vadd.f32 %v726_v29, %v5297_v21  ;;  %v670_v9 = vadd.f32 %v669_v62, %v5305_v30  ;;  %v132_v29 = vpop.permute.xlu0 %131 }
 0x17f   :  { %v705_v31 = vadd.f32 %v704_v15, %v690_v33  ;;  %v765_v45 = vadd.f32 %v764_v48, %v750_v32  ;;  %v693_v32 = vmul.f32 %v5299_v28, %v5299_v28  ;;  %v694_v33 = vmul.f32 %v5344_v7, %v5344_v7 }
 0x180   :  { %v5392_v25 = vpop.permute.xlu1 %216  ;;  %v728_v57 = vadd.f32 %v727_v20, %v5291_v51  ;;  %v643_v20 = vmul.f32 %v5376_v6, %v5144_v39 }
 0x181   :  { %v706_v14 = vadd.f32 %v705_v31, %v691_v52  ;;  %v766_v5 = vadd.f32 %v765_v45, %v751_v43  ;;  %v671_v45 = vadd.f32 %v670_v9, %v5299_v28  ;;  %v695_v9 = vmul.f32 %v5338_v24, %v5338_v24 }
 0x182   :  { %v5396_v1 = vpop.permute.xlu2 %448  ;;  %v729_v11 = vadd.f32 %v728_v57, %v5318_v19  ;;  %v755_v57 = vmul.f32 %v5379_v2, %v5379_v2 }
 0x183   :  { %v707_v18 = vadd.f32 %v706_v14, %v692_v56  ;;  %v767_v15 = vadd.f32 %v766_v5, %v752_v0  ;;  %v754_v56 = vmul.f32 %v5346_v23, %v5346_v23  ;;  %v672_v62 = vadd.f32 %v671_v45, %v5344_v7 }
 0x184   :  { %v730_v4 = vadd.f32 %v729_v11, %v5351_v34 }
 0x185   :  { %v768_v48 = vadd.f32 %v767_v15, %v753_v8  ;;  %v708_v52 = vadd.f32 %v707_v18, %v693_v32  ;;  %v696_v18 = vmul.f32 %v5361_v44, %v5361_v44 }
 0x186   :  { %v731_v43 = vadd.f32 %v730_v4, %v5346_v23  ;;  %v470_v4 = vmul.f32 %v5396_v1, %v5138_v37  ;;  %v454_v45 = vpop.permute.xlu0 %453 }
 0x187   :  { %v709_v6 = vadd.f32 %v708_v52, %v694_v33  ;;  %v769_v5 = vadd.f32 %v768_v48, %v754_v56  ;;  %v158_v48 = vmul.f32 %v5138_v37, %v132_v29  ;;  %v339_v52 = vmul.f32 %v5144_v39, %v5382_v10 }
 0x188   :  { %v732_v11 = vadd.f32 %v731_v43, %v5379_v2 }
 0x189   :  { %v444_v41 = vpop.permute.xlu1 %443  ;;  %v770_v15 = vadd.f32 %v769_v5, %v755_v57  ;;  %v710_v33 = vadd.f32 %v709_v6, %v695_v9  ;;  %v697_v6 = vmul.f32 %v5384_v13, %v5384_v13  ;;  %v471_v5 = vmul.f32 %v454_v45, %v5138_v37 }
 0x18a   :  { %v5421_v49 = vpop.permute.xlu2 %141  ;;  %v469_v31 = vmul.f32 %v444_v41, %v5138_v37  ;;  %v5471_v41 = vadd.f32 %v643_v20, %v5372_v54  ;;  %v673_v54 = vadd.f32 %v672_v62, %v5338_v24  ;;  %v241_v20 = vmul.f32 %v5142_v38, %v5392_v25 }
 0x18b   :  { %v711_v29 = vadd.f32 %v710_v33, %v696_v18 }
 0x18c   :  { %v565_v8 = vadd.f32 %v549_v3, %v469_v31  ;;  %v756_v3 = vmul.f32 %v5471_v41, %v5471_v41  ;;  %v733_v31 = vadd.f32 %v732_v11, %v5471_v41  ;;  %v674_v56 = vadd.f32 %v673_v54, %v5361_v44 }
 0x18d   :  { %v242_v54 = vmul.f32 %v5142_v38, %v5394_v12 }
 0x18e   :  { %v771_v43 = vadd.f32 %v770_v15, %v756_v3  ;;  %v5512_v15 = vadd.f32 %v339_v52, %v5366_v46  ;;  %v712_v3 = vadd.f32 %v711_v29, %v697_v6 }
 0x190   :  { %v698_v12 = vmul.f32 %v5512_v15, %v5512_v15 }
 0x191   :  { %v5402_v26 = vpop.permute.xlu1 %136 }
 0x192   :  { %v159_v10 = vmul.f32 %v5138_v37, %v5402_v26 }
 0x193   :  { %v5441_v36 = vpop.permute.xlu2 %319 }
 0x19a   :  { %v5425_v27 = vpop.permute.xlu1 %315 }
 0x19b   :  { %v626_v14 = vpop.permute.xlu2 %625  ;;  %v340_v25 = vmul.f32 %v5144_v39, %v5425_v27 }
 0x19c   :  { %v646_v1 = vmul.f32 %v626_v14, %v5144_v39  ;;  %v257_v14 = vadd.f32 %v241_v20, %v158_v48 }
 0x19e   :  { %v5517_v33 = vadd.f32 %v340_v25, %v257_v14 }
 0x1a2   :  { %v622_v58 = vpop.permute.xlu1 %621 }
 0x1a3   :  { %v645_v0 = vmul.f32 %v622_v58, %v5144_v39  ;;  %v550_v58 = vmul.f32 %v5227_v61, %v5142_v38  ;;  %v757_v61 = vmul.f32 %v5390_v35, %v5390_v35  ;;  %v630_v11 = vpop.permute.xlu2 %629 }
 0x1a4   :  { %v647_v48 = vmul.f32 %v630_v11, %v5144_v39 }
 0x1a5   :  { %v5482_v32 = vadd.f32 %v645_v0, %v565_v8  ;;  %v566_v57 = vadd.f32 %v550_v58, %v470_v4  ;;  %v734_v0 = vadd.f32 %v733_v31, %v5390_v35  ;;  %v772_v27 = vadd.f32 %v771_v43, %v757_v61 }
 0x1a6   :  { %v675_v4 = vadd.f32 %v674_v56, %v5384_v13  ;;  %v258_v31 = vadd.f32 %v242_v54, %v159_v10  ;;  %v341_v61 = vmul.f32 %v5144_v39, %v5441_v36  ;;  %v699_v56 = vmul.f32 %v5517_v33, %v5517_v33 }
 0x1a7   :  { %v758_v62 = vmul.f32 %v5482_v32, %v5482_v32  ;;  %v5507_v9 = vadd.f32 %v646_v1, %v566_v57  ;;  %v735_v18 = vadd.f32 %v734_v0, %v5482_v32  ;;  %v160_v57 = vmul.f32 %v5138_v37, %v5421_v49 }
 0x1a8   :  { %v676_v52 = vadd.f32 %v675_v4, %v5512_v15  ;;  %v5538_v0 = vadd.f32 %v341_v61, %v258_v31 }
 0x1a9   :  { %v773_v26 = vadd.f32 %v772_v27, %v758_v62  ;;  %v759_v46 = vmul.f32 %v5507_v9, %v5507_v9  ;;  %v736_v45 = vadd.f32 %v735_v18, %v5507_v9  ;;  %v713_v62 = vadd.f32 %v712_v3, %v698_v12 }
 0x1aa   :  { %v677_v6 = vadd.f32 %v676_v52, %v5517_v33  ;;  %v700_v18 = vmul.f32 %v5538_v0, %v5538_v0 }
 0x1ab   :  { %v225_v16 = vpop.permute.xlu1 %224  ;;  %v774_v25 = vadd.f32 %v773_v26, %v759_v46  ;;  %v714_v11 = vadd.f32 %v713_v62, %v699_v56  ;;  %v5553_v46 = vld [vmem:[#allocation2 + $0x270] sm:$0xff]  ;;  %v5559_v62 = vld [vmem:[#allocation2 + $0x260] sm:$0xff] }
 0x1ac   :  { %v243_v29 = vmul.f32 %v5142_v38, %v225_v16 }
 0x1ad   :  { %v715_v54 = vadd.f32 %v714_v11, %v700_v18  ;;  %v5562_v11 = vld [vmem:[#allocation2 + $0x258] sm:$0xff]  ;;  %v5565_v18 = vld [vmem:[#allocation2 + $0x250] sm:$0xff] }
 0x1b3   :  { %v534_v8 = vpop.permute.xlu1 %533 }
 0x1b4   :  { %v551_v58 = vmul.f32 %v534_v8, %v5142_v38  ;;  %v259_v8 = vadd.f32 %v243_v29, %v160_v57  ;;  %v5556_v29 = vld [vmem:[#allocation2 + $0x268] sm:$0xff] }
 0x1b6   :  { %v567_v20 = vadd.f32 %v551_v58, %v471_v5  ;;  %v678_v58 = vadd.f32 %v677_v6, %v5538_v0  ;;  %v1128_v6 = vld [vmem:[#allocation2 + $0x1e0] sm:$0xff] }
 0x1b8   :  { %v5525_v1 = vadd.f32 %v647_v48, %v567_v20  ;;  %v5550_v20 = vld [vmem:[#allocation2 + $0x278] sm:$0xff] }
 0x1b9   :  { %1190 = vmatpush.msra.mxu2 %v5550_v20 }
 0x1ba   :  { %v737_v36 = vadd.f32 %v736_v45, %v5525_v1  ;;  %v760_v43 = vmul.f32 %v5525_v1, %v5525_v1  ;;  %v1130_v45 = vld [vmem:[#allocation2 + $0x1f0] sm:$0xff] }
 0x1bb   :  { %1191 = vmatpush.msra.mxu2 %v5553_v46 }
 0x1bc   :  { %v738_v14 = vrot.slane %v737_v36, 4  ;;  %v775_v5 = vadd.f32 %v774_v25, %v760_v43  ;;  %v324_v10 = vpop.permute.xlu1 %323  ;;  %v1129_v25 = vld [vmem:[#allocation2 + $0x1e8] sm:$0xff] }
 0x1bd   :  { %v342_v38 = vmul.f32 %v5144_v39, %v324_v10  ;;  %v1131_v39 = vld [vmem:[#allocation2 + $0x1f8] sm:$0xff]  ;;  %1192 = vmatpush.msra.mxu2 %v5556_v29 }
 0x1be   :  { %v739_v16 = vadd.f32 %v738_v14, %v737_v36  ;;  %v776_v27 = vrot.slane %v775_v5, 4  ;;  %1231 = vmatpush.msra.mxu3 %v1131_v39 }
 0x1bf   :  { %v5545_v37 = vadd.f32 %v342_v38, %v259_v8  ;;  %1193 = vmatpush.msra.mxu2 %v5559_v62  ;;  %v1127_v8 = vld [vmem:[#allocation2 + $0x1d8] sm:$0xff] }
 0x1c0   :  { %v777_v49 = vadd.f32 %v776_v27, %v775_v5  ;;  %v740_v4 = vrot.slane %v739_v16, 2  ;;  %1232 = vmatpush.msra.mxu3 %v1130_v45  ;;  %v5579_v45 = vld [vmem:[#allocation2 + $0x1c0] sm:$0xff] }
 0x1c1   :  { %v679_v26 = vadd.f32 %v678_v58, %v5545_v37  ;;  %v701_v48 = vmul.f32 %v5545_v37, %v5545_v37  ;;  %1194 = vmatpush.msra.mxu2 %v5562_v11  ;;  %v5567_v58 = vld [vmem:[#allocation2 + $0x1d0] sm:$0xff]  ;;  %7688 = vst [vmem:[#allocation13_spill] sm:$0xff] %v5579_v45 }
 0x1c2   :  { %v778_v3 = vrot.slane %v777_v49, 2  ;;  %v741_v12 = vadd.f32 %v740_v4, %v739_v16  ;;  %1233 = vmatpush.msra.mxu3 %v1129_v25  ;;  %7686 = vst [vmem:[#allocation11_spill] sm:$0xff] %v5567_v58  ;;  %v5585_v25 = vld [vmem:[#allocation2 + $0x1b8] sm:$0xff] }
 0x1c3   :  { %v680_v31 = vrot.slane %v679_v26, 4  ;;  %v716_v61 = vadd.f32 %v715_v54, %v701_v48  ;;  %1195 = vmatpush.msra.mxu2 %v5565_v18  ;;  %v5573_v48 = vld [vmem:[#allocation2 + $0x1c8] sm:$0xff]  ;;  %7689 = vst [vmem:[#allocation14_spill] sm:$0xff] %v5585_v25 }
 0x1c4   :  { %v779_v36 = vadd.f32 %v778_v3, %v777_v49  ;;  %v742_v14 = vrot.slane %v741_v12, 1  ;;  %1234 = vmatpush.msra.mxu3 %v1128_v6  ;;  %7687 = vst [vmem:[#allocation12_spill] sm:$0xff] %v5573_v48  ;;  %v5591_v6 = vld [vmem:[#allocation2 + $0x1b0] sm:$0xff] }
 0x1c5   :  { %v681_v52 = vadd.f32 %v680_v31, %v679_v26  ;;  %v717_v56 = vrot.slane %v716_v61, 4  ;;  %v5571_v26 = vld [vmem:[#allocation2 + $0x248] sm:$0xff]  ;;  %7690 = vst [vmem:[#allocation15_spill] sm:$0xff] %v5591_v6 }
 0x1c6   :  { %v780_v38 = vrot.slane %v779_v36, 1  ;;  %1235 = vmatpush.msra.mxu3 %v1127_v8  ;;  %v743_v49 = vadd.f32 %v742_v14, %v741_v12  ;;  %1196 = vmatpush.msra.mxu2 %v5571_v26 }
 0x1c7   :  { %v682_v43 = vrot.slane %v681_v52, 2  ;;  %v718_v57 = vadd.f32 %v717_v56, %v716_v61  ;;  %v5577_v61 = vld [vmem:[#allocation2 + $0x240] sm:$0xff]  ;;  %v5583_v56 = vld [vmem:[#allocation2 + $0x238] sm:$0xff] }
 0x1c8   :  { %1236 = vmatpush.msra.mxu3 %v5567_v58  ;;  %v781_v39 = vadd.f32 %v780_v38, %v779_v36  ;;  %1197 = vmatpush.msra.mxu2 %v5577_v61  ;;  %v5601_v38 = vld [vmem:[#allocation2 + $0x220] sm:$0xff] }
 0x1c9   :  { %v683_v5 = vadd.f32 %v682_v43, %v681_v52  ;;  %v719_v10 = vrot.slane %v718_v57, 2 }
 0x1ca   :  { %1237 = vmatpush.msra.mxu3 %v5573_v48  ;;  %1198 = vmatpush.msra.mxu2 %v5583_v56 }
 0x1cb   :  { %v684_v16 = vrot.slane %v683_v5, 1  ;;  %v720_v27 = vadd.f32 %v719_v10, %v718_v57  ;;  %v5589_v57 = vld [vmem:[#allocation2 + $0x230] sm:$0xff]  ;;  %v5597_v10 = vld [vmem:[#allocation2 + $0x1a8] sm:$0xff] }
 0x1cc   :  { %1238 = vmatpush.msra.mxu3 %v5579_v45  ;;  %1199 = vmatpush.msra.mxu2 %v5589_v57  ;;  %7691 = vst [vmem:[#allocation16_spill] sm:$0xff] %v5597_v10 }
 0x1cd   :  { %v685_v4 = vadd.f32 %v684_v16, %v683_v5  ;;  %v721_v54 = vrot.slane %v720_v27, 1  ;;  %v5595_v5 = vld [vmem:[#allocation2 + $0x228] sm:$0xff]  ;;  %v5603_v16 = vld [vmem:[#allocation2 + $0x1a0] sm:$0xff] }
 0x1ce   :  { %1239 = vmatpush.msra.mxu3 %v5585_v25  ;;  %1200 = vmatpush.msra.mxu2 %v5595_v5  ;;  %7692 = vst [vmem:[#allocation17_spill] sm:$0xff] %v5603_v16 }
 0x1cf   :  { %v722_v3 = vadd.f32 %v721_v54, %v720_v27  ;;  %v744_v31 = vadd.f32 %v743_v49, %v685_v4  ;;  %v5605_v27 = vld [vmem:[#allocation2 + $0x218] sm:$0xff]  ;;  %v5611_v54 = vld [vmem:[#allocation2 + $0x210] sm:$0xff] }
 0x1d0   :  { %1240 = vmatpush.msra.mxu3 %v5591_v6  ;;  %v5607_v49 = vld [vmem:[#allocation2 + $0x198] sm:$0xff]  ;;  %1201 = vmatpush.msra.mxu2 %v5601_v38 }
 0x1d1   :  { %v782_v12 = vadd.f32 %v781_v39, %v722_v3  ;;  %v783_v52 = vmul.f32 0.00390625, %v744_v31  ;;  %7693 = vst [vmem:[#allocation18_spill] sm:$0xff] %v5607_v49  ;;  %v5613_v39 = vld [vmem:[#allocation2 + $0x190] sm:$0xff]  ;;  %v5617_v3 = vld [vmem:[#allocation2 + $0x208] sm:$0xff] }
 0x1d2   :  { %1241 = vmatpush.msra.mxu3 %v5597_v10  ;;  %7694 = vst [vmem:[#allocation19_spill] sm:$0xff] %v5613_v39  ;;  %1202 = vmatpush.msra.mxu2 %v5605_v27  ;;  %v5619_v31 = vld [vmem:[#allocation2 + $0x188] sm:$0xff]  ;;  %v664_v10 = vld [vmem:[#allocation5] sm:$0x3] }
 0x1d3   :  { %v784_v36 = vmul.f32 0.00390625, %v782_v12  ;;  %v785_v43 = vmul.f32 %v783_v52, %v783_v52  ;;  %7695 = vst [vmem:[#allocation20_spill] sm:$0xff] %v5619_v31  ;;  %v5623_v12 = vld [vmem:[#allocation2 + $0x200] sm:$0xff] }
 0x1d4   :  { %1242 = vmatpush.msra.mxu3 %v5603_v16  ;;  %1203 = vmatpush.msra.mxu2 %v5611_v54 }
 0x1d5   :  { %v786_v14 = vsub.f32 %v784_v36, %v785_v43  ;;  %v5625_v36 = vld [vmem:[#allocation2 + $0x180] sm:$0xff] }
 0x1d6   :  { %1243 = vmatpush.msra.mxu3 %v5607_v49  ;;  %7696 = vst [vmem:[#allocation21_spill] sm:$0xff] %v5625_v36  ;;  %1204 = vmatpush.msra.mxu2 %v5617_v3 }
 0x1d7   :  { %v787_v8 = vmax.f32 %v786_v14, 0.0 }
 0x1d8   :  { %1244 = vmatpush.msra.mxu3 %v5613_v39  ;;  %1205 = vmatpush.msra.mxu2 %v5623_v12 }
 0x1d9   :  { %v788_v4 = vadd.f32 1e-05, %v787_v8 }
 0x1da   :  { %1245 = vmatpush.msra.mxu3 %v5619_v31 }
 0x1db   :  { %4868 = vrsqrt.f32 %v788_v4  ;;  %vm795_vm1 = vweird.f32 %v788_v4 }
 0x1dc   :  { %1246 = vmatpush.msra.mxu3 %v5625_v36 }
 0x1e1   :  { %v4869_v43 = vpop.eup %4868 }
 0x1e2   :  { %v790_v14 = vmul.f32 %v4869_v43, %v788_v4  ;;  %vm796_vm0 = vweird.f32 %v4869_v43 }
 0x1e3   :  { %vm797_vm2 = vmor %vm795_vm1, %vm796_vm0 }
 0x1e4   :  { %v791_v8 = vmul.f32 %v4869_v43, %v790_v14 }
 0x1e6   :  { %v792_v49 = vmul.f32 0.5, %v791_v8 }
 0x1e8   :  { %v793_v16 = vsub.f32 1.5, %v792_v49 }
 0x1ea   :  { %v794_v39 = vmul.f32 %v4869_v43, %v793_v16 }
 0x1ec   :  { %v798_v6 = vsel %vm797_vm2, %v4869_v43, %v794_v39 }
 0x1ed   :  { %v799_v25 = vmul.f32 %v798_v6, %v664_v10 }
 0x1ef   :  { %v800_v45 = vmul.f32 %v799_v25, %v783_v52  ;;  %v5631_v48 = vperm.slane %v799_v25, 0 }
 0x1f1   :  { %v802_v31 = vrot.slane %v800_v45, 7  ;;  %v821_v58 = vmul.f32 %v5631_v48, %v5545_v37  ;;  %v5637_v36 = vmul.f32 %v5631_v48, %v5160_v55  ;;  %v5641_v49 = vmul.f32 %v5631_v48, %v5212_v50 }
 0x1f2   :  { %v5645_v16 = vmul.f32 %v5631_v48, %v5305_v30  ;;  %v5649_v52 = vmul.f32 %v5631_v48, %v5299_v28  ;;  %v5653_v45 = vmul.f32 %v5631_v48, %v5344_v7  ;;  %v5657_v55 = vmul.f32 %v5631_v48, %v5338_v24 }
 0x1f3   :  { %v804_v37 = vsub.f32 %v664_v10, %v802_v31  ;;  %v817_v50 = vmul.f32 %v5631_v48, %v5384_v13  ;;  %v818_v30 = vmul.f32 %v5631_v48, %v5512_v15  ;;  %v819_v25 = vmul.f32 %v5631_v48, %v5517_v33 }
 0x1f4   :  { %v820_v28 = vmul.f32 %v5631_v48, %v5538_v0  ;;  %v5669_v7 = vmul.f32 %v5631_v48, %v5152_v47  ;;  %v5673_v24 = vmul.f32 %v5631_v48, %v5225_v60  ;;  %v5677_v13 = vmul.f32 %v5631_v48, %v5217_v53 }
 0x1f5   :  { %v5679_v6 = vperm.slane %v804_v37, 1  ;;  %v5683_v15 = vmul.f32 %v5631_v48, %v5297_v21  ;;  %v5687_v33 = vmul.f32 %v5631_v48, %v5291_v51  ;;  %v5691_v47 = vmul.f32 %v5631_v48, %v5351_v34 }
 0x1f6   :  { %v5695_v60 = vmul.f32 %v5631_v48, %v5346_v23  ;;  %v897_v53 = vmul.f32 %v5631_v48, %v5379_v2  ;;  %v898_v0 = vmul.f32 %v5631_v48, %v5471_v41  ;;  %v900_v21 = vmul.f32 %v5631_v48, %v5482_v32 }
 0x1f7   :  { %v901_v51 = vmul.f32 %v5631_v48, %v5507_v9  ;;  %v838_v10 = vadd.f32 %v5679_v6, %v821_v58  ;;  %v902_v34 = vmul.f32 %v5631_v48, %v5525_v1  ;;  %v837_v23 = vadd.f32 %v5679_v6, %v820_v28 }
 0x1f8   :  { %v836_v4 = vadd.f32 %v5679_v6, %v819_v25  ;;  %v916_v2 = vadd.f32 %v900_v21, %v5679_v6  ;;  %v835_v39 = vadd.f32 %v5679_v6, %v818_v30  ;;  %v899_v41 = vmul.f32 %v5631_v48, %v5390_v35 }
 0x1f9   :  { %vm854_vm3 = vcmp.ge.f32.partialorder %v838_v10, 0.0  ;;  %v870_v32 = vmul.f32 0.01, %v838_v10  ;;  %v918_v9 = vadd.f32 %v902_v34, %v5679_v6  ;;  %vm853_vm4 = vcmp.ge.f32.partialorder %v837_v23, 0.0 }
 0x1fa   :  { %v869_v58 = vmul.f32 0.01, %v837_v23  ;;  %v917_v31 = vadd.f32 %v901_v51, %v5679_v6  ;;  %vm852_vm5 = vcmp.ge.f32.partialorder %v836_v4, 0.0  ;;  %v868_v1 = vmul.f32 0.01, %v836_v4 }
 0x1fb   :  { %v5716_v43 = vsel %vm854_vm3, %v838_v10, %v870_v32  ;;  %vm934_vm6 = vcmp.ge.f32.partialorder %v918_v9, 0.0  ;;  %v950_v14 = vmul.f32 0.01, %v918_v9  ;;  %vm932_vm7 = vcmp.ge.f32.partialorder %v916_v2, 0.0 }
 0x1fc   :  { %1074 = vmatpush.msra.mxu0 %v5716_v43  ;;  %1132 = vmatpush.msra.mxu1 %v5716_v43  ;;  %v5720_v35 = vsel %vm853_vm4, %v837_v23, %v869_v58  ;;  %vm933_vm8 = vcmp.ge.f32.partialorder %v917_v31, 0.0  ;;  %v949_v8 = vmul.f32 0.01, %v917_v31  ;;  %v5722_v37 = vsel %vm852_vm5, %v836_v4, %v868_v1 }
 0x1fd   :  { %v5724_v30 = vsel %vm934_vm6, %v918_v9, %v950_v14  ;;  %v948_v25 = vmul.f32 0.01, %v916_v2  ;;  %vm851_vm9 = vcmp.ge.f32.partialorder %v835_v39, 0.0  ;;  %v867_v28 = vmul.f32 0.01, %v835_v39 }
 0x1fe   :  { %1379 = vmatpush.msrb.mxu2 %v5724_v30  ;;  %1420 = vmatpush.msrb.mxu3 %v5724_v30  ;;  %v5728_v21 = vsel %vm933_vm8, %v917_v31, %v949_v8  ;;  %v915_v51 = vadd.f32 %v899_v41, %v5679_v6  ;;  %v834_v10 = vadd.f32 %v5679_v6, %v817_v50  ;;  %v967_v31 = vlaneseq }
 0x1ff   :  { %1075 = vmatpush.msra.mxu0 %v5720_v35  ;;  %1133 = vmatpush.msra.mxu1 %v5720_v35  ;;  %v5735_v34 = vsel %vm932_vm7, %v916_v2, %v948_v25  ;;  %v5737_v23 = vsel %vm851_vm9, %v835_v39, %v867_v28  ;;  %v914_v4 = vadd.f32 %v898_v0, %v5679_v6 }
 0x200   :  { %1380 = vmatpush.msrb.mxu2 %v5728_v21  ;;  %1421 = vmatpush.msrb.mxu3 %v5728_v21  ;;  %vm931_vm10 = vcmp.ge.f32.partialorder %v915_v51, 0.0  ;;  %v947_v32 = vmul.f32 0.01, %v915_v51  ;;  %vm850_vm11 = vcmp.ge.f32.partialorder %v834_v10, 0.0  ;;  %v866_v41 = vmul.f32 0.01, %v834_v10 }
 0x201   :  { %1076 = vmatpush.msra.mxu0 %v5722_v37  ;;  %1134 = vmatpush.msra.mxu1 %v5722_v37  ;;  %vm930_vm12 = vcmp.ge.f32.partialorder %v914_v4, 0.0  ;;  %v946_v50 = vmul.f32 0.01, %v914_v4  ;;  %v816_v2 = vmul.f32 %v5631_v48, %v5361_v44  ;;  %v913_v39 = vadd.f32 %v897_v53, %v5679_v6 }
 0x202   :  { %1381 = vmatpush.msrb.mxu2 %v5735_v34  ;;  %1422 = vmatpush.msrb.mxu3 %v5735_v34  ;;  %v5749_v0 = vsel %vm931_vm10, %v915_v51, %v947_v32  ;;  %v5751_v9 = vsel %vm850_vm11, %v834_v10, %v866_v41  ;;  %v832_v58 = vadd.f32 %v5679_v6, %v5657_v55 }
 0x203   :  { %1077 = vmatpush.msra.mxu0 %v5737_v23  ;;  %1135 = vmatpush.msra.mxu1 %v5737_v23  ;;  %v5757_v1 = vsel %vm930_vm12, %v914_v4, %v946_v50  ;;  %v833_v44 = vadd.f32 %v5679_v6, %v816_v2  ;;  %vm929_vm13 = vcmp.ge.f32.partialorder %v913_v39, 0.0  ;;  %v945_v53 = vmul.f32 0.01, %v913_v39 }
 0x204   :  { %1382 = vmatpush.msrb.mxu2 %v5749_v0  ;;  %1423 = vmatpush.msrb.mxu3 %v5749_v0  ;;  %vm848_vm14 = vcmp.ge.f32.partialorder %v832_v58, 0.0  ;;  %v864_v14 = vmul.f32 0.01, %v832_v58  ;;  %v912_v55 = vadd.f32 %v5695_v60, %v5679_v6  ;;  %v831_v8 = vadd.f32 %v5679_v6, %v5653_v45 }
 0x205   :  { %1078 = vmatpush.msra.mxu0 %v5751_v9  ;;  %1136 = vmatpush.msra.mxu1 %v5751_v9  ;;  %vm849_vm15 = vcmp.ge.f32.partialorder %v833_v44, 0.0  ;;  %v865_v25 = vmul.f32 0.01, %v833_v44  ;;  %v5768_v28 = vsel %vm929_vm13, %v913_v39, %v945_v53  ;;  %v911_v51 = vadd.f32 %v5691_v47, %v5679_v6 }
 0x206   :  { %1383 = vmatpush.msrb.mxu2 %v5757_v1  ;;  %1424 = vmatpush.msrb.mxu3 %v5757_v1  ;;  %v5774_v10 = vsel %vm848_vm14, %v832_v58, %v864_v14  ;;  %vm928_vm0 = vcmp.ge.f32.partialorder %v912_v55, 0.0  ;;  %v944_v60 = vmul.f32 0.01, %v912_v55  ;;  %vm847_vm1 = vcmp.ge.f32.partialorder %v831_v8, 0.0 }
 0x207   :  { %v5776_v45 = vsel %vm849_vm15, %v833_v44, %v865_v25  ;;  %v863_v4 = vmul.f32 0.01, %v831_v8  ;;  %vm927_vm2 = vcmp.ge.f32.partialorder %v911_v51, 0.0  ;;  %v943_v32 = vmul.f32 0.01, %v911_v51 }
 0x208   :  { %1079 = vmatpush.msra.mxu0 %v5776_v45  ;;  %1137 = vmatpush.msra.mxu1 %v5776_v45  ;;  %v5780_v41 = vsel %vm928_vm0, %v912_v55, %v944_v60  ;;  %v830_v47 = vadd.f32 %v5679_v6, %v5649_v52  ;;  %v894_v50 = vmul.f32 %v5631_v48, %v5318_v19  ;;  %v5795_v44 = vshrl.u32 %v967_v31, 7 }
 0x209   :  { %1384 = vmatpush.msrb.mxu2 %v5768_v28  ;;  %1425 = vmatpush.msrb.mxu3 %v5768_v28  ;;  %v5788_v2 = vsel %vm847_vm1, %v831_v8, %v863_v4  ;;  %v5790_v39 = vsel %vm927_vm2, %v911_v51, %v943_v32  ;;  %v829_v58 = vadd.f32 %v5679_v6, %v5645_v16 }
 0x20a   :  { %1080 = vmatpush.msra.mxu0 %v5774_v10  ;;  %1138 = vmatpush.msra.mxu1 %v5774_v10  ;;  %vm846_vm3 = vcmp.ge.f32.partialorder %v830_v47, 0.0  ;;  %v862_v19 = vmul.f32 0.01, %v830_v47  ;;  %v910_v52 = vadd.f32 %v894_v50, %v5679_v6  ;;  %v909_v53 = vadd.f32 %v5687_v33, %v5679_v6 }
 0x20b   :  { %1385 = vmatpush.msrb.mxu2 %v5780_v41  ;;  %1426 = vmatpush.msrb.mxu3 %v5780_v41  ;;  %vm845_vm4 = vcmp.ge.f32.partialorder %v829_v58, 0.0  ;;  %v861_v16 = vmul.f32 0.01, %v829_v58  ;;  %v811_v14 = vmul.f32 %v5631_v48, %v5243_v40  ;;  %v908_v55 = vadd.f32 %v5683_v15, %v5679_v6 }
 0x20c   :  { %1081 = vmatpush.msra.mxu0 %v5788_v2  ;;  %1139 = vmatpush.msra.mxu1 %v5788_v2  ;;  %v5810_v8 = vsel %vm846_vm3, %v830_v47, %v862_v19  ;;  %vm926_vm5 = vcmp.ge.f32.partialorder %v910_v52, 0.0  ;;  %v942_v33 = vmul.f32 0.01, %v910_v52  ;;  %vm925_vm6 = vcmp.ge.f32.partialorder %v909_v53, 0.0 }
 0x20d   :  { %1386 = vmatpush.msrb.mxu2 %v5790_v39  ;;  %1427 = vmatpush.msrb.mxu3 %v5790_v39  ;;  %v5814_v25 = vsel %vm845_vm4, %v829_v58, %v861_v16  ;;  %v941_v51 = vmul.f32 0.01, %v909_v53  ;;  %v828_v40 = vadd.f32 %v5679_v6, %v811_v14  ;;  %vm924_vm7 = vcmp.ge.f32.partialorder %v908_v55, 0.0 }
 0x20e   :  { %1082 = vmatpush.msra.mxu0 %v5810_v8  ;;  %1140 = vmatpush.msra.mxu1 %v5810_v8  ;;  %v5819_v15 = vsel %vm926_vm5, %v910_v52, %v942_v33  ;;  %v940_v60 = vmul.f32 0.01, %v908_v55  ;;  %v827_v4 = vadd.f32 %v5679_v6, %v5641_v49  ;;  %v907_v32 = vadd.f32 %v5677_v13, %v5679_v6 }
 0x20f   :  { %1387 = vmatpush.msrb.mxu2 %v5819_v15  ;;  %1428 = vmatpush.msrb.mxu3 %v5819_v15  ;;  %v5827_v47 = vsel %vm925_vm6, %v909_v53, %v941_v51  ;;  %vm844_vm8 = vcmp.ge.f32.partialorder %v828_v40, 0.0  ;;  %v860_v50 = vmul.f32 0.01, %v828_v40  ;;  %v809_v58 = vmul.f32 %v5631_v48, %v5284_v59 }
 0x210   :  { %1083 = vmatpush.msra.mxu0 %v5814_v25  ;;  %1141 = vmatpush.msra.mxu1 %v5814_v25  ;;  %v5833_v19 = vsel %vm924_vm7, %v908_v55, %v940_v60  ;;  %vm843_vm9 = vcmp.ge.f32.partialorder %v827_v4, 0.0  ;;  %v859_v49 = vmul.f32 0.01, %v827_v4  ;;  %vm923_vm10 = vcmp.ge.f32.partialorder %v907_v32, 0.0 }
 0x211   :  { %1388 = vmatpush.msrb.mxu2 %v5827_v47  ;;  %1429 = vmatpush.msrb.mxu3 %v5827_v47  ;;  %v5837_v13 = vsel %vm844_vm8, %v828_v40, %v860_v50  ;;  %v939_v52 = vmul.f32 0.01, %v907_v32  ;;  %v826_v53 = vadd.f32 %v5679_v6, %v809_v58  ;;  %v906_v59 = vadd.f32 %v5673_v24, %v5679_v6 }
 0x212   :  { %1084 = vmatpush.msra.mxu0 %v5837_v13  ;;  %1142 = vmatpush.msra.mxu1 %v5837_v13  ;;  %v5844_v16 = vsel %vm843_vm9, %v827_v4, %v859_v49  ;;  %v825_v14 = vadd.f32 %v5679_v6, %v5637_v36  ;;  %v889_v55 = vmul.f32 %v5631_v48, %v5170_v63  ;;  %v5851_v33 = vmul.u32 2, %v5795_v44 }
 0x213   :  { %1389 = vmatpush.msrb.mxu2 %v5833_v19  ;;  %1430 = vmatpush.msrb.mxu3 %v5833_v19  ;;  %v5855_v24 = vsel %vm923_vm10, %v907_v32, %v939_v52  ;;  %vm842_vm11 = vcmp.ge.f32.partialorder %v826_v53, 0.0  ;;  %v858_v51 = vmul.f32 0.01, %v826_v53  ;;  %vm922_vm12 = vcmp.ge.f32.partialorder %v906_v59, 0.0 }
 0x214   :  { %1085 = vmatpush.msra.mxu0 %v5844_v16  ;;  %1143 = vmatpush.msra.mxu1 %v5844_v16  ;;  %v938_v36 = vmul.f32 0.01, %v906_v59  ;;  %vm841_vm13 = vcmp.ge.f32.partialorder %v825_v14, 0.0  ;;  %v857_v40 = vmul.f32 0.01, %v825_v14  ;;  %v905_v63 = vadd.f32 %v889_v55, %v5679_v6 }
 0x215   :  { %1390 = vmatpush.msrb.mxu2 %v5855_v24  ;;  %1431 = vmatpush.msrb.mxu3 %v5855_v24  ;;  %v5862_v60 = vsel %vm842_vm11, %v826_v53, %v858_v51  ;;  %v807_v4 = vmul.f32 %v5631_v48, %v5266_v42  ;;  %v904_v32 = vadd.f32 %v5669_v7, %v5679_v6  ;;  %v5889_v55 = vadd.s32 4294967295, %v5851_v33 }
 0x216   :  { %1086 = vmatpush.msra.mxu0 %v5862_v60  ;;  %1144 = vmatpush.msra.mxu1 %v5862_v60  ;;  %v5870_v50 = vsel %vm922_vm12, %v906_v59, %v938_v36  ;;  %v5872_v58 = vsel %vm841_vm13, %v825_v14, %v857_v40  ;;  %vm921_vm14 = vcmp.ge.f32.partialorder %v905_v63, 0.0  ;;  %v937_v49 = vmul.f32 0.01, %v905_v63 }
 0x217   :  { %1391 = vmatpush.msrb.mxu2 %v5870_v50  ;;  %1432 = vmatpush.msrb.mxu3 %v5870_v50  ;;  %v824_v52 = vadd.f32 %v5679_v6, %v807_v4  ;;  %vm920_vm15 = vcmp.ge.f32.partialorder %v904_v32, 0.0  ;;  %v936_v42 = vmul.f32 0.01, %v904_v32  ;;  %v806_v7 = vmul.f32 %v5631_v48, %v5248_v22 }
 0x218   :  { %1087 = vmatpush.msra.mxu0 %v5872_v58  ;;  %1145 = vmatpush.msra.mxu1 %v5872_v58  ;;  %v5881_v53 = vsel %vm921_vm14, %v905_v63, %v937_v49  ;;  %v887_v59 = vmul.f32 %v5631_v48, %v5190_v17  ;;  %v5886_v14 = vand.u32 127, %v967_v31  ;;  %v969_v17 = vadd.s32 8, %v5795_v44 }
 0x219   :  { %1392 = vmatpush.msrb.mxu2 %v5881_v53  ;;  %1433 = vmatpush.msrb.mxu3 %v5881_v53  ;;  %vm840_vm0 = vcmp.ge.f32.partialorder %v824_v52, 0.0  ;;  %v856_v22 = vmul.f32 0.01, %v824_v52  ;;  %v823_v51 = vadd.f32 %v5679_v6, %v806_v7  ;;  %v5894_v36 = vsel %vm920_vm15, %v904_v32, %v936_v42 }
 0x21a   :  { %v903_v40 = vadd.f32 %v887_v59, %v5679_v6  ;;  %vm994_vm3 = vcmp.eq.s32.totalorder %v5886_v14, %v5889_v55  ;;  %vm1018_vm4 = vcmp.eq.s32.totalorder %v5886_v14, %v5851_v33  ;;  %v5904_v6 = vmul.u32 2, %v969_v17  ;;  %v1326_v59 = vld [vmem:[#allocation2 + $0x2e0] sm:$0xff] }
 0x21b   :  { %v872_v48 = vsel %vm840_vm0, %v824_v52, %v856_v22  ;;  %1393 = vmatpush.msrb.mxu2 %v5894_v36  ;;  %1434 = vmatpush.msrb.mxu3 %v5894_v36  ;;  %vm839_vm1 = vcmp.ge.f32.partialorder %v823_v51, 0.0  ;;  %v855_v31 = vmul.f32 0.01, %v823_v51  ;;  %v4978_v49 = vmov 1.0   ;;  %v1325_v22 = vld [vmem:[#allocation2 + $0x2d8] sm:$0xff]  ;;  %v1318_v17 = vld [vmem:[#allocation2 + $0x2a0] sm:$0xff] }
 0x21c   :  { %1088 = vmatpush.msra.mxu0 %v872_v48  ;;  %1146 = vmatpush.msra.mxu1 %v872_v48  ;;  %vm919_vm2 = vcmp.ge.f32.partialorder %v903_v40, 0.0  ;;  %v935_v63 = vmul.f32 0.01, %v903_v40  ;;  %v5920_v52 = vadd.s32 4294967295, %v5904_v6  ;;  %v970_v42 = vadd.s32 16, %v5795_v44 }
 0x21d   :  { %v871_v4 = vsel %vm839_vm1, %v823_v51, %v855_v31  ;;  %vm1019_vm6 = vcmp.eq.s32.totalorder %v5886_v14, %v5904_v6  ;;  %v1322_v51 = vld [vmem:[#allocation2 + $0x2c0] sm:$0xff] }
 0x21e   :  { %1089 = vmatpush.msra.mxu0 %v871_v4  ;;  %1147 = vmatpush.msra.mxu1 %v871_v4  ;;  %v5906_v32 = vsel %vm919_vm2, %v903_v40, %v935_v63  ;;  %vm995_vm5 = vcmp.eq.s32.totalorder %v5886_v14, %v5920_v52  ;;  %v5929_v7 = vmul.u32 2, %v970_v42  ;;  %v1314_v31 = vld [vmem:[#allocation2 + $0x280] sm:$0xff]  ;;  %v4888_v63 = vld [vmem:[#allocation2 + $0x1e8] sm:$0xff]  ;;  %v4890_v42 = vld [vmem:[#allocation2 + $0x1d8] sm:$0xff] }
 0x21f   :  { %1394 = vmatpush.msrb.mxu2 %v5906_v32  ;;  %1435 = vmatpush.msrb.mxu3 %v5906_v32 }
 0x220   :  { %4663 = vmatmul.msk.f32.vlgmr.msra.gmra.mxu0 %vm994_vm3, %v4978_v49  ;;  %4671 = vmatmul.msk.f32.vlgmr.msra.gmra.mxu1 %vm1018_vm4, %v4978_v49  ;;  %vm1020_vm8 = vcmp.eq.s32.totalorder %v5886_v14, %v5929_v7 }
 0x221   :  { %1272 = vmatpush.msrb.mxu0 %v5716_v43  ;;  %v5942_v43 = vadd.s32 4294967295, %v5929_v7 }
 0x223   :  { %1273 = vmatpush.msrb.mxu0 %v5720_v35  ;;  %v971_v35 = vadd.s32 24, %v5795_v44  ;;  %vm996_vm7 = vcmp.eq.s32.totalorder %v5886_v14, %v5942_v43 }
 0x225   :  { %1274 = vmatpush.msrb.mxu0 %v5722_v37  ;;  %v5951_v37 = vmul.u32 2, %v971_v35  ;;  %v7700_v35 = vld [vmem:[#allocation11_spill] sm:$0xff] }
 0x227   :  { %1275 = vmatpush.msrb.mxu0 %v5737_v23  ;;  %v5964_v23 = vadd.s32 4294967295, %v5951_v37  ;;  %vm1021_vm10 = vcmp.eq.s32.totalorder %v5886_v14, %v5951_v37 }
 0x228   :  { %4664 = vmatmul.msk.f32.gmra.mxu0 %vm995_vm5, %v4978_v49  ;;  %4672 = vmatmul.msk.f32.gmra.mxu1 %vm1019_vm6, %v4978_v49 }
 0x229   :  { %1276 = vmatpush.msrb.mxu0 %v5751_v9  ;;  %v972_v9 = vadd.s32 32, %v5795_v44  ;;  %vm997_vm9 = vcmp.eq.s32.totalorder %v5886_v14, %v5964_v23 }
 0x22b   :  { %1277 = vmatpush.msrb.mxu0 %v5776_v45 }
 0x22d   :  { %1278 = vmatpush.msrb.mxu0 %v5774_v10  ;;  %v5973_v10 = vmul.u32 2, %v972_v9 }
 0x22f   :  { %1279 = vmatpush.msrb.mxu0 %v5788_v2  ;;  %v5986_v45 = vadd.s32 4294967295, %v5973_v10  ;;  %v973_v2 = vadd.s32 40, %v5795_v44  ;;  %vm1022_vm12 = vcmp.eq.s32.totalorder %v5886_v14, %v5973_v10 }
 0x230   :  { %4665 = vmatmul.msk.f32.gmra.mxu0 %vm996_vm7, %v4978_v49  ;;  %4673 = vmatmul.msk.f32.gmra.mxu1 %vm1020_vm8, %v4978_v49 }
 0x231   :  { %1280 = vmatpush.msrb.mxu0 %v5810_v8  ;;  %vm998_vm11 = vcmp.eq.s32.totalorder %v5886_v14, %v5986_v45  ;;  %v5994_v8 = vmul.u32 2, %v973_v2 }
 0x233   :  { %1281 = vmatpush.msrb.mxu0 %v5814_v25  ;;  %v6005_v25 = vadd.s32 4294967295, %v5994_v8  ;;  %vm1023_vm14 = vcmp.eq.s32.totalorder %v5886_v14, %v5994_v8 }
 0x235   :  { %1282 = vmatpush.msrb.mxu0 %v5837_v13  ;;  %v974_v13 = vadd.s32 48, %v5795_v44  ;;  %vm999_vm13 = vcmp.eq.s32.totalorder %v5886_v14, %v6005_v25 }
 0x237   :  { %1283 = vmatpush.msrb.mxu0 %v5844_v16  ;;  %v6014_v16 = vmul.u32 2, %v974_v13  ;;  %v7701_v13 = vld [vmem:[#allocation12_spill] sm:$0xff] }
 0x238   :  { %4666 = vmatmul.msk.f32.gmra.mxu0 %vm997_vm9, %v4978_v49  ;;  %4674 = vmatmul.msk.f32.gmra.mxu1 %vm1021_vm10, %v4978_v49 }
 0x239   :  { %1284 = vmatpush.msrb.mxu0 %v5862_v60  ;;  %vm7668_vm0 = vcmp.eq.s32.totalorder %v5886_v14, %v6014_v16 }
 0x23b   :  { %1285 = vmatpush.msrb.mxu0 %v5872_v58 }
 0x23d   :  { %1286 = vmatpush.msrb.mxu0 %v872_v48 }
 0x23f   :  { %1287 = vmatpush.msrb.mxu0 %v871_v4 }
 0x240   :  { %4667 = vmatmul.msk.f32.gmra.mxu0 %vm998_vm11, %v4978_v49  ;;  %4675 = vmatmul.msk.f32.gmra.mxu1 %vm1022_vm12, %v4978_v49 }
 0x241   :  { %1461 = vmatpush.msra.mxu0 %v5550_v20  ;;  %v6027_v20 = vadd.s32 4294967295, %v6014_v16 }
 0x243   :  { %1462 = vmatpush.msra.mxu0 %v5553_v46  ;;  %v975_v46 = vadd.s32 56, %v5795_v44  ;;  %vm1000_vm15 = vcmp.eq.s32.totalorder %v5886_v14, %v6027_v20  ;;  %v1327_v44 = vld [vmem:[#allocation2 + $0x2e8] sm:$0xff] }
 0x245   :  { %1463 = vmatpush.msra.mxu0 %v5556_v29  ;;  %v6036_v29 = vmul.u32 2, %v975_v46  ;;  %v7702_v46 = vld [vmem:[#allocation13_spill] sm:$0xff] }
 0x247   :  { %1464 = vmatpush.msra.mxu0 %v5559_v62  ;;  %v6049_v62 = vadd.s32 4294967295, %v6036_v29  ;;  %vm7669_vm2 = vcmp.eq.s32.totalorder %v5886_v14, %v6036_v29 }
 0x248   :  { %4668 = vmatmul.msk.f32.gmra.mxu0 %vm999_vm13, %v4978_v49  ;;  %4676 = vmatmul.msk.f32.gmra.mxu1 %vm1023_vm14, %v4978_v49 }
 0x249   :  { %1465 = vmatpush.msra.mxu0 %v5562_v11  ;;  %vm7670_vm1 = vcmp.eq.s32.totalorder %v5886_v14, %v6049_v62  ;;  %v6068_v11 = vadd.s32 1, %v5851_v33 }
 0x24b   :  { %1466 = vmatpush.msra.mxu0 %v5565_v18  ;;  %v6081_v18 = vadd.s32 1, %v5904_v6 }
 0x24d   :  { %1467 = vmatpush.msra.mxu0 %v5571_v26  ;;  %7697 = vst [vmem:[#allocation22_spill] sm:$0xff] %v6081_v18  ;;  %v6090_v26 = vadd.s32 1, %v5929_v7 }
 0x24f   :  { %1468 = vmatpush.msra.mxu0 %v5577_v61  ;;  %7698 = vst [vmem:[#allocation23_spill] sm:$0xff] %v6090_v26  ;;  %v6099_v61 = vadd.s32 1, %v5951_v37 }
 0x250   :  { %4669 = vmatmul.msk.f32.gmra.mxu0 %vm1000_vm15, %v4978_v49  ;;  %4677 = vmatmul.msk.f32.gmra.mxu1 %vm7668_vm0, %v4978_v49  ;;  %vm7671_vm0 = vcmp.eq.s32.totalorder %v5886_v14, %v6068_v11 }
 0x251   :  { %1469 = vmatpush.msra.mxu0 %v5583_v56  ;;  %7699 = vst [vmem:[#allocation24_spill] sm:$0xff] %v6099_v61  ;;  %v6108_v56 = vadd.s32 1, %v5973_v10 }
 0x253   :  { %1470 = vmatpush.msra.mxu0 %v5589_v57  ;;  %v6117_v57 = vadd.s32 1, %v5994_v8 }
 0x255   :  { %1471 = vmatpush.msra.mxu0 %v5595_v5  ;;  %v6126_v5 = vadd.s32 1, %v6014_v16 }
 0x257   :  { %1472 = vmatpush.msra.mxu0 %v5601_v38  ;;  %v6135_v38 = vadd.s32 1, %v6036_v29 }
 0x258   :  { %4670 = vmatmul.msk.f32.gmra.mxu0 %vm7670_vm1, %v4978_v49  ;;  %4678 = vmatmul.msk.f32.gmra.mxu1 %vm7669_vm2, %v4978_v49  ;;  %vm7672_vm2 = vcmp.eq.s32.totalorder %v5886_v14, %v6081_v18  ;;  %vm7673_vm1 = vcmp.eq.s32.totalorder %v5886_v14, %v6090_v26 }
 0x259   :  { %1473 = vmatpush.msra.mxu0 %v5605_v27 }
 0x25b   :  { %1474 = vmatpush.msra.mxu0 %v5611_v54 }
 0x25d   :  { %1475 = vmatpush.msra.mxu0 %v5617_v3  ;;  %v1329_v3 = vld [vmem:[#allocation2 + $0x2f8] sm:$0xff] }
 0x25e   :  { %1330 = vmatpush.msrb.mxu1 %v1329_v3 }
 0x25f   :  { %1476 = vmatpush.msra.mxu0 %v5623_v12  ;;  %v1328_v12 = vld [vmem:[#allocation2 + $0x2f0] sm:$0xff] }
 0x260   :  { %4679 = vmatmul.msk.f32.vlgmr.msrb.gmra.mxu0 %vm7671_vm0, %v4978_v49  ;;  %vm7674_vm0 = vcmp.eq.s32.totalorder %v5886_v14, %v6099_v61  ;;  %1331 = vmatpush.msrb.mxu1 %v1328_v12 }
 0x262   :  { %1332 = vmatpush.msrb.mxu1 %v1327_v44 }
 0x264   :  { %1333 = vmatpush.msrb.mxu1 %v1326_v59 }
 0x266   :  { %1334 = vmatpush.msrb.mxu1 %v1325_v22 }
 0x268   :  { %4680 = vmatmul.msk.f32.gmra.mxu0 %vm7672_vm2, %v4978_v49  ;;  %vm7675_vm2 = vcmp.eq.s32.totalorder %v5886_v14, %v6108_v56 }
 0x270   :  { %4681 = vmatmul.msk.f32.gmra.mxu0 %vm7673_vm1, %v4978_v49  ;;  %vm1055_vm1 = vcmp.eq.s32.totalorder %v5886_v14, %v6117_v57 }
 0x278   :  { %4682 = vmatmul.msk.f32.gmra.mxu0 %vm7674_vm0, %v4978_v49  ;;  %vm1056_vm0 = vcmp.eq.s32.totalorder %v5886_v14, %v6126_v5 }
 0x280   :  { %4683 = vmatmul.msk.f32.gmra.mxu0 %vm7675_vm2, %v4978_v49  ;;  %vm1057_vm2 = vcmp.eq.s32.totalorder %v5886_v14, %v6135_v38 }
 0x288   :  { %4684 = vmatmul.msk.f32.gmra.mxu0 %vm1055_vm1, %v4978_v49 }
 0x290   :  { %4685 = vmatmul.msk.f32.gmra.mxu0 %vm1056_vm0, %v4978_v49 }
 0x298   :  { %4686 = vmatmul.msk.f32.gmra.mxu0 %vm1057_vm2, %v4978_v49 }
 0x29d   :  { %v1091_v27 = vpop.f32.mrf.mxu0  ;;  %v1149_v54 = vpop.f32.mrf.mxu1 }
 0x29e   :  { %1206 = vmatmul.f32.vlgmr.msra.gmra.mxu2 %v1149_v54  ;;  %1247 = vmatmul.f32.vlgmr.msra.gmra.mxu3 %v1091_v27  ;;  %v7703_v27 = vld [vmem:[#allocation14_spill] sm:$0xff]  ;;  %v7704_v54 = vld [vmem:[#allocation15_spill] sm:$0xff] }
 0x29f   :  { %1543 = vmatpush.msra.mxu2 %v5724_v30  ;;  %1584 = vmatpush.msra.mxu3 %v1329_v3  ;;  %v1324_v30 = vld [vmem:[#allocation2 + $0x2d0] sm:$0xff] }
 0x2a0   :  { %1335 = vmatpush.msrb.mxu1 %v1324_v30 }
 0x2a1   :  { %1544 = vmatpush.msra.mxu2 %v5728_v21  ;;  %1585 = vmatpush.msra.mxu3 %v1328_v12  ;;  %v1323_v21 = vld [vmem:[#allocation2 + $0x2c8] sm:$0xff] }
 0x2a2   :  { %1336 = vmatpush.msrb.mxu1 %v1323_v21 }
 0x2a3   :  { %1545 = vmatpush.msra.mxu2 %v5735_v34  ;;  %1586 = vmatpush.msra.mxu3 %v1327_v44  ;;  %v7705_v44 = vld [vmem:[#allocation16_spill] sm:$0xff] }
 0x2a4   :  { %1337 = vmatpush.msrb.mxu1 %v1322_v51 }
 0x2a5   :  { %1546 = vmatpush.msra.mxu2 %v5749_v0  ;;  %v1094_v60 = vpop.f32.mrf.mxu0  ;;  %v1152_v58 = vpop.f32.mrf.mxu1  ;;  %1587 = vmatpush.msra.mxu3 %v1326_v59  ;;  %v7708_v59 = vld [vmem:[#allocation19_spill] sm:$0xff] }
 0x2a6   :  { %1209 = vmatmul.f32.gmra.mxu2 %v1152_v58  ;;  %1250 = vmatmul.f32.gmra.mxu3 %v1094_v60  ;;  %v7706_v60 = vld [vmem:[#allocation17_spill] sm:$0xff]  ;;  %v7707_v58 = vld [vmem:[#allocation18_spill] sm:$0xff] }
 0x2a7   :  { %1547 = vmatpush.msra.mxu2 %v5757_v1  ;;  %1588 = vmatpush.msra.mxu3 %v1325_v22  ;;  %v1321_v1 = vld [vmem:[#allocation2 + $0x2b8] sm:$0xff] }
 0x2a8   :  { %1338 = vmatpush.msrb.mxu1 %v1321_v1 }
 0x2a9   :  { %1548 = vmatpush.msra.mxu2 %v5768_v28  ;;  %1589 = vmatpush.msra.mxu3 %v1324_v30  ;;  %v1320_v28 = vld [vmem:[#allocation2 + $0x2b0] sm:$0xff]  ;;  %v7709_v30 = vld [vmem:[#allocation20_spill] sm:$0xff] }
 0x2aa   :  { %1339 = vmatpush.msrb.mxu1 %v1320_v28 }
 0x2ab   :  { %1549 = vmatpush.msra.mxu2 %v5780_v41  ;;  %1590 = vmatpush.msra.mxu3 %v1323_v21  ;;  %v1319_v41 = vld [vmem:[#allocation2 + $0x2a8] sm:$0xff] }
 0x2ac   :  { %1340 = vmatpush.msrb.mxu1 %v1319_v41  ;;  %v7710_v21 = vld [vmem:[#allocation21_spill] sm:$0xff] }
 0x2ad   :  { %1550 = vmatpush.msra.mxu2 %v5790_v39  ;;  %v1097_v34 = vpop.f32.mrf.mxu0  ;;  %v1155_v0 = vpop.f32.mrf.mxu1  ;;  %1591 = vmatpush.msra.mxu3 %v1322_v51 }
 0x2ae   :  { %1212 = vmatmul.f32.gmra.mxu2 %v1155_v0  ;;  %1253 = vmatmul.f32.gmra.mxu3 %v1097_v34 }
 0x2af   :  { %1551 = vmatpush.msra.mxu2 %v5819_v15  ;;  %1592 = vmatpush.msra.mxu3 %v1321_v1  ;;  %v1317_v15 = vld [vmem:[#allocation2 + $0x298] sm:$0xff] }
 0x2b0   :  { %1341 = vmatpush.msrb.mxu1 %v1318_v17 }
 0x2b1   :  { %1552 = vmatpush.msra.mxu2 %v5827_v47  ;;  %v1316_v47 = vld [vmem:[#allocation2 + $0x290] sm:$0xff]  ;;  %1593 = vmatpush.msra.mxu3 %v1320_v28 }
 0x2b2   :  { %1342 = vmatpush.msrb.mxu1 %v1317_v15 }
 0x2b3   :  { %1553 = vmatpush.msra.mxu2 %v5833_v19  ;;  %v1315_v19 = vld [vmem:[#allocation2 + $0x288] sm:$0xff]  ;;  %1594 = vmatpush.msra.mxu3 %v1319_v41 }
 0x2b4   :  { %1343 = vmatpush.msrb.mxu1 %v1316_v47 }
 0x2b5   :  { %1554 = vmatpush.msra.mxu2 %v5855_v24  ;;  %v1100_v39 = vpop.f32.mrf.mxu0  ;;  %v1158_v40 = vpop.f32.mrf.mxu1  ;;  %1595 = vmatpush.msra.mxu3 %v1318_v17 }
 0x2b6   :  { %1215 = vmatmul.f32.gmra.mxu2 %v1158_v40  ;;  %1256 = vmatmul.f32.gmra.mxu3 %v1100_v39 }
 0x2b7   :  { %1555 = vmatpush.msra.mxu2 %v5870_v50  ;;  %1344 = vmatpush.msrb.mxu1 %v1315_v19  ;;  %v4886_v50 = vld [vmem:[#allocation2 + $0x1f8] sm:$0xff] }
 0x2b8   :  { %1596 = vmatpush.msra.mxu3 %v1317_v15 }
 0x2b9   :  { %1556 = vmatpush.msra.mxu2 %v5881_v53  ;;  %1345 = vmatpush.msrb.mxu1 %v1314_v31  ;;  %v4887_v53 = vld [vmem:[#allocation2 + $0x1f0] sm:$0xff] }
 0x2ba   :  { %1597 = vmatpush.msra.mxu3 %v1316_v47 }
 0x2bb   :  { %1557 = vmatpush.msra.mxu2 %v5894_v36  ;;  %1502 = vmatpush.msra.mxu1 %v4886_v50 }
 0x2bc   :  { %1598 = vmatpush.msra.mxu3 %v1315_v19 }
 0x2bd   :  { %1558 = vmatpush.msra.mxu2 %v5906_v32  ;;  %v1103_v24 = vpop.f32.mrf.mxu0  ;;  %v1161_v48 = vpop.f32.mrf.mxu1  ;;  %1503 = vmatpush.msra.mxu1 %v4887_v53  ;;  %v4889_v32 = vld [vmem:[#allocation2 + $0x1e0] sm:$0xff] }
 0x2be   :  { %1218 = vmatmul.f32.gmra.mxu2 %v1161_v48  ;;  %1259 = vmatmul.f32.gmra.mxu3 %v1103_v24 }
 0x2bf   :  { %1504 = vmatpush.msra.mxu1 %v4888_v63  ;;  %1599 = vmatpush.msra.mxu3 %v1314_v31 }
 0x2c1   :  { %1505 = vmatpush.msra.mxu1 %v4889_v32 }
 0x2c3   :  { %1506 = vmatpush.msra.mxu1 %v4890_v42 }
 0x2c5   :  { %v1106_v36 = vpop.f32.mrf.mxu0  ;;  %v1164_v4 = vpop.f32.mrf.mxu1  ;;  %1507 = vmatpush.msra.mxu1 %v7700_v35 }
 0x2c6   :  { %1221 = vmatmul.f32.gmra.mxu2 %v1164_v4  ;;  %1262 = vmatmul.f32.gmra.mxu3 %v1106_v36 }
 0x2c7   :  { %1508 = vmatpush.msra.mxu1 %v7701_v13 }
 0x2c9   :  { %1509 = vmatpush.msra.mxu1 %v7702_v46 }
 0x2cb   :  { %1510 = vmatpush.msra.mxu1 %v7703_v27 }
 0x2cd   :  { %v1109_v9 = vpop.f32.mrf.mxu0  ;;  %v1167_v2 = vpop.f32.mrf.mxu1  ;;  %1511 = vmatpush.msra.mxu1 %v7704_v54 }
 0x2ce   :  { %1224 = vmatmul.f32.gmra.mxu2 %v1167_v2  ;;  %1265 = vmatmul.f32.gmra.mxu3 %v1109_v9 }
 0x2cf   :  { %1512 = vmatpush.msra.mxu1 %v7705_v44 }
 0x2d1   :  { %1513 = vmatpush.msra.mxu1 %v7706_v60 }
 0x2d3   :  { %1514 = vmatpush.msra.mxu1 %v7707_v58 }
 0x2d5   :  { %v1112_v3 = vpop.f32.mrf.mxu0  ;;  %v1170_v12 = vpop.f32.mrf.mxu1  ;;  %1515 = vmatpush.msra.mxu1 %v7708_v59 }
 0x2d6   :  { %1227 = vmatmul.f32.gmra.mxu2 %v1170_v12  ;;  %1268 = vmatmul.f32.gmra.mxu3 %v1112_v3 }
 0x2d7   :  { %1516 = vmatpush.msra.mxu1 %v7709_v30 }
 0x2d9   :  { %1517 = vmatpush.msra.mxu1 %v7710_v21 }
 0x2dd   :  { %v1289_v22 = vpop.f32.mrf.mxu0 }
 0x2de   :  { %1346 = vmatmul.f32.vlgmr.msrb.gmra.mxu1 %v1289_v22  ;;  %4687 = vmatmul.msk.f32.vlgmr.msrb.gmra.mxu2 %vm994_vm3, %v4978_v49 }
 0x2df   :  { %4695 = vmatmul.msk.f32.vlgmr.msrb.gmra.mxu3 %vm1018_vm4, %v4978_v49 }
 0x2e5   :  { %v1292_v34 = vpop.f32.mrf.mxu0 }
 0x2e6   :  { %1349 = vmatmul.f32.gmra.mxu1 %v1292_v34  ;;  %4688 = vmatmul.msk.f32.gmra.mxu2 %vm995_vm5, %v4978_v49 }
 0x2e7   :  { %4696 = vmatmul.msk.f32.gmra.mxu3 %vm1019_vm6, %v4978_v49 }
 0x2ed   :  { %v1295_v0 = vpop.f32.mrf.mxu0 }
 0x2ee   :  { %1352 = vmatmul.f32.gmra.mxu1 %v1295_v0  ;;  %4689 = vmatmul.msk.f32.gmra.mxu2 %vm996_vm7, %v4978_v49 }
 0x2ef   :  { %4697 = vmatmul.msk.f32.gmra.mxu3 %vm1020_vm8, %v4978_v49 }
 0x2f5   :  { %v1298_v51 = vpop.f32.mrf.mxu0 }
 0x2f6   :  { %1355 = vmatmul.f32.gmra.mxu1 %v1298_v51  ;;  %4690 = vmatmul.msk.f32.gmra.mxu2 %vm997_vm9, %v4978_v49 }
 0x2f7   :  { %4698 = vmatmul.msk.f32.gmra.mxu3 %vm1021_vm10, %v4978_v49 }
 0x2fd   :  { %v1301_v1 = vpop.f32.mrf.mxu0 }
 0x2fe   :  { %1358 = vmatmul.f32.gmra.mxu1 %v1301_v1  ;;  %4691 = vmatmul.msk.f32.gmra.mxu2 %vm998_vm11, %v4978_v49  ;;  %vm7711_vm11 = vcmp.eq.s32.totalorder %v5886_v14, %v6014_v16 }
 0x2ff   :  { %4699 = vmatmul.msk.f32.gmra.mxu3 %vm1022_vm12, %v4978_v49  ;;  %vm7712_vm12 = vcmp.eq.s32.totalorder %v5886_v14, %v6049_v62 }
 0x305   :  { %v1304_v28 = vpop.f32.mrf.mxu0 }
 0x306   :  { %1361 = vmatmul.f32.gmra.mxu1 %v1304_v28  ;;  %4692 = vmatmul.msk.f32.gmra.mxu2 %vm999_vm13, %v4978_v49  ;;  %vm7713_vm13 = vcmp.eq.s32.totalorder %v5886_v14, %v6036_v29 }
 0x307   :  { %4700 = vmatmul.msk.f32.gmra.mxu3 %vm1023_vm14, %v4978_v49  ;;  %vm7714_vm14 = vcmp.eq.s32.totalorder %v5886_v14, %v6068_v11 }
 0x30d   :  { %v1307_v41 = vpop.f32.mrf.mxu0 }
 0x30e   :  { %1364 = vmatmul.f32.gmra.mxu1 %v1307_v41  ;;  %4693 = vmatmul.msk.f32.gmra.mxu2 %vm1000_vm15, %v4978_v49  ;;  %vm7715_vm15 = vcmp.eq.s32.totalorder %v5886_v14, %v6081_v18 }
 0x30f   :  { %4701 = vmatmul.msk.f32.gmra.mxu3 %vm7711_vm11, %v4978_v49  ;;  %vm7716_vm11 = vcmp.eq.s32.totalorder %v5886_v14, %v6090_v26  ;;  %v6483_v26 = vld [vmem:[#allocation2 + $0x388] sm:$0xff] }
 0x310   :  { %7724 = vst [vmem:[#allocation16_spill] sm:$0xff] %v6483_v26 }
 0x315   :  { %v1310_v10 = vpop.f32.mrf.mxu0 }
 0x316   :  { %1367 = vmatmul.f32.gmra.mxu1 %v1310_v10  ;;  %4694 = vmatmul.msk.f32.gmra.mxu2 %vm7712_vm12, %v4978_v49  ;;  %vm7717_vm12 = vcmp.eq.s32.totalorder %v5886_v14, %v6099_v61  ;;  %v6476_v61 = vld [vmem:[#allocation2 + $0x310] sm:$0xff] }
 0x317   :  { %4702 = vmatmul.msk.f32.gmra.mxu3 %vm7713_vm13, %v4978_v49  ;;  %vm7718_vm13 = vcmp.eq.s32.totalorder %v5886_v14, %v6108_v56 }
 0x31e   :  { %4703 = vmatmul.msk.f32.vlgmr.msra.gmra.mxu2 %vm7714_vm14, %v4978_v49 }
 0x321   :  { %v6238_v45 = vpop.f32.mrf.mxu2  ;;  %v6240_v8 = vpop.f32.mrf.mxu3 }
 0x326   :  { %4704 = vmatmul.msk.f32.gmra.mxu2 %vm7715_vm15, %v4978_v49 }
 0x329   :  { %v6246_v25 = vpop.f32.mrf.mxu2  ;;  %v6248_v16 = vpop.f32.mrf.mxu3 }
 0x32e   :  { %4705 = vmatmul.msk.f32.gmra.mxu2 %vm7716_vm11, %v4978_v49 }
 0x331   :  { %v6254_v20 = vpop.f32.mrf.mxu2  ;;  %v6256_v29 = vpop.f32.mrf.mxu3 }
 0x336   :  { %4706 = vmatmul.msk.f32.gmra.mxu2 %vm7717_vm12, %v4978_v49 }
 0x339   :  { %v6262_v62 = vpop.f32.mrf.mxu2  ;;  %v6264_v39 = vpop.f32.mrf.mxu3 }
 0x33e   :  { %4707 = vmatmul.msk.f32.gmra.mxu2 %vm7718_vm13, %v4978_v49 }
 0x341   :  { %v6270_v40 = vpop.f32.mrf.mxu2  ;;  %v6272_v17 = vpop.f32.mrf.mxu3 }
 0x346   :  { %4708 = vmatmul.msk.f32.gmra.mxu2 %vm1055_vm1, %v4978_v49 }
 0x349   :  { %v6278_v15 = vpop.f32.mrf.mxu2  ;;  %v6280_v47 = vpop.f32.mrf.mxu3 }
 0x34e   :  { %4709 = vmatmul.msk.f32.gmra.mxu2 %vm1056_vm0, %v4978_v49 }
 0x351   :  { %v6286_v56 = vpop.f32.mrf.mxu2  ;;  %v6288_v19 = vpop.f32.mrf.mxu3 }
 0x356   :  { %4710 = vmatmul.msk.f32.gmra.mxu2 %vm1057_vm2, %v4978_v49 }
 0x359   :  { %v6294_v57 = vpop.f32.mrf.mxu2  ;;  %v6296_v24 = vpop.f32.mrf.mxu3 }
 0x35b   :  { %v1347_v44 = vpop.f32.mrf.mxu1 }
 0x361   :  { %v1396_v48 = vpop.f32.mrf.mxu2 }
 0x362   :  { %v1437_v31 = vpop.f32.mrf.mxu3  ;;  %1518 = vmatmul.f32.vlgmr.msra.gmra.mxu1 %v1396_v48 }
 0x363   :  { %1477 = vmatmul.f32.vlgmr.msra.gmra.mxu0 %v1437_v31  ;;  %v1350_v58 = vpop.f32.mrf.mxu1 }
 0x369   :  { %v1399_v50 = vpop.f32.mrf.mxu2 }
 0x36a   :  { %v1440_v5 = vpop.f32.mrf.mxu3  ;;  %1521 = vmatmul.f32.gmra.mxu1 %v1399_v50 }
 0x36b   :  { %1480 = vmatmul.f32.gmra.mxu0 %v1440_v5  ;;  %v1353_v22 = vpop.f32.mrf.mxu1 }
 0x371   :  { %v1402_v53 = vpop.f32.mrf.mxu2 }
 0x372   :  { %v1443_v63 = vpop.f32.mrf.mxu3  ;;  %1524 = vmatmul.f32.gmra.mxu1 %v1402_v53 }
 0x373   :  { %1483 = vmatmul.f32.gmra.mxu0 %v1443_v63  ;;  %v1356_v21 = vpop.f32.mrf.mxu1 }
 0x379   :  { %v1405_v36 = vpop.f32.mrf.mxu2 }
 0x37a   :  { %v1446_v4 = vpop.f32.mrf.mxu3  ;;  %1527 = vmatmul.f32.gmra.mxu1 %v1405_v36 }
 0x37b   :  { %1486 = vmatmul.f32.gmra.mxu0 %v1446_v4  ;;  %v1359_v34 = vpop.f32.mrf.mxu1 }
 0x381   :  { %v1408_v49 = vpop.f32.mrf.mxu2 }
 0x382   :  { %v1449_v38 = vpop.f32.mrf.mxu3  ;;  %1530 = vmatmul.f32.gmra.mxu1 %v1408_v49 }
 0x383   :  { %1489 = vmatmul.f32.gmra.mxu0 %v1449_v38  ;;  %v1362_v0 = vpop.f32.mrf.mxu1 }
 0x389   :  { %v1411_v32 = vpop.f32.mrf.mxu2 }
 0x38a   :  { %v1452_v42 = vpop.f32.mrf.mxu3  ;;  %1533 = vmatmul.f32.gmra.mxu1 %v1411_v32 }
 0x38b   :  { %1492 = vmatmul.f32.gmra.mxu0 %v1452_v42  ;;  %v1365_v51 = vpop.f32.mrf.mxu1  ;;  %v1252_v42 = vadd.f32 %v6248_v16, %v6246_v25 }
 0x391   :  { %v1414_v35 = vpop.f32.mrf.mxu2 }
 0x392   :  { %v1455_v9 = vpop.f32.mrf.mxu3  ;;  %1536 = vmatmul.f32.gmra.mxu1 %v1414_v35  ;;  %v1249_v35 = vadd.f32 %v6240_v8, %v6238_v45 }
 0x393   :  { %1495 = vmatmul.f32.gmra.mxu0 %v1455_v9  ;;  %v1368_v1 = vpop.f32.mrf.mxu1  ;;  %v1255_v9 = vadd.f32 %v6256_v29, %v6254_v20  ;;  %v1264_v20 = vadd.f32 %v6280_v47, %v6278_v15 }
 0x395   :  { %v6333_v47 = vadd.f32 %v1362_v0, %v1264_v20 }
 0x399   :  { %v1417_v2 = vpop.f32.mrf.mxu2 }
 0x39a   :  { %v1458_v13 = vpop.f32.mrf.mxu3  ;;  %1539 = vmatmul.f32.gmra.mxu1 %v1417_v2  ;;  %v6304_v2 = vadd.f32 %v1350_v58, %v1252_v42 }
 0x39b   :  { %1498 = vmatmul.f32.gmra.mxu0 %v1458_v13  ;;  %v1258_v13 = vadd.f32 %v6264_v39, %v6262_v62 }
 0x39c   :  { %v1649_v25 = vmul.f32 %v6304_v2, %v6304_v2 }
 0x39d   :  { %v6316_v45 = vadd.f32 %v1356_v21, %v1258_v13 }
 0x39f   :  { %v1651_v15 = vmul.f32 %v6316_v45, %v6316_v45 }
 0x3a1   :  { %v1560_v46 = vpop.f32.mrf.mxu2 }
 0x3a2   :  { %1600 = vmatmul.f32.vlgmr.msra.gmra.mxu3 %v1560_v46  ;;  %v6308_v46 = vadd.f32 %v1347_v44, %v1249_v35 }
 0x3a4   :  { %v1648_v29 = vmul.f32 %v6308_v46, %v6308_v46  ;;  %v1635_v62 = vadd.f32 %v6304_v2, %v6308_v46 }
 0x3a9   :  { %v1563_v27 = vpop.f32.mrf.mxu2 }
 0x3aa   :  { %1603 = vmatmul.f32.gmra.mxu3 %v1563_v27  ;;  %v6310_v27 = vadd.f32 %v1353_v22, %v1255_v9 }
 0x3ac   :  { %v1650_v39 = vmul.f32 %v6310_v27, %v6310_v27  ;;  %v1636_v44 = vadd.f32 %v1635_v62, %v6310_v27 }
 0x3b1   :  { %v1566_v54 = vpop.f32.mrf.mxu2 }
 0x3b2   :  { %1606 = vmatmul.f32.gmra.mxu3 %v1566_v54 }
 0x3b9   :  { %v1569_v3 = vpop.f32.mrf.mxu2 }
 0x3ba   :  { %1609 = vmatmul.f32.gmra.mxu3 %v1569_v3  ;;  %v1261_v3 = vadd.f32 %v6272_v17, %v6270_v40  ;;  %v1267_v17 = vadd.f32 %v6288_v19, %v6286_v56 }
 0x3bc   :  { %v6326_v40 = vadd.f32 %v1359_v34, %v1261_v3  ;;  %v1653_v34 = vmul.f32 %v6333_v47, %v6333_v47 }
 0x3be   :  { %v1652_v22 = vmul.f32 %v6326_v40, %v6326_v40 }
 0x3c1   :  { %v1572_v12 = vpop.f32.mrf.mxu2 }
 0x3c2   :  { %1612 = vmatmul.f32.gmra.mxu3 %v1572_v12  ;;  %v1656_v12 = vadd.f32 %v1649_v25, %v1648_v29 }
 0x3c4   :  { %v1657_v58 = vadd.f32 %v1656_v12, %v1650_v39 }
 0x3c6   :  { %v1658_v19 = vadd.f32 %v1657_v58, %v1651_v15 }
 0x3c8   :  { %v1659_v9 = vadd.f32 %v1658_v19, %v1652_v22 }
 0x3c9   :  { %v1575_v60 = vpop.f32.mrf.mxu2 }
 0x3ca   :  { %1615 = vmatmul.f32.gmra.mxu3 %v1575_v60  ;;  %v1270_v60 = vadd.f32 %v6296_v24, %v6294_v57 }
 0x3cc   :  { %v6345_v0 = vadd.f32 %v1368_v1, %v1270_v60  ;;  %v1660_v1 = vadd.f32 %v1659_v9, %v1653_v34 }
 0x3d1   :  { %v1578_v59 = vpop.f32.mrf.mxu2 }
 0x3d2   :  { %1618 = vmatmul.f32.gmra.mxu3 %v1578_v59  ;;  %v1637_v59 = vadd.f32 %v1636_v44, %v6316_v45 }
 0x3d4   :  { %v1638_v21 = vadd.f32 %v1637_v59, %v6326_v40 }
 0x3d6   :  { %v1639_v13 = vadd.f32 %v1638_v21, %v6333_v47 }
 0x3d9   :  { %v1581_v30 = vpop.f32.mrf.mxu2 }
 0x3da   :  { %1621 = vmatmul.f32.gmra.mxu3 %v1581_v30  ;;  %v6340_v30 = vadd.f32 %v1365_v51, %v1267_v17 }
 0x3dc   :  { %v1654_v51 = vmul.f32 %v6340_v30, %v6340_v30  ;;  %v1640_v29 = vadd.f32 %v1639_v13, %v6340_v30 }
 0x3de   :  { %v1641_v62 = vadd.f32 %v1640_v29, %v6345_v0 }
 0x3df   :  { %v1519_v28 = vpop.f32.mrf.mxu1 }
 0x3e0   :  { %v1478_v41 = vpop.f32.mrf.mxu0  ;;  %v1642_v44 = vrot.slane %v1641_v62, 4 }
 0x3e1   :  { %v1520_v35 = vadd.f32 %v1519_v28, %v1478_v41  ;;  %v1655_v28 = vmul.f32 %v6345_v0, %v6345_v0 }
 0x3e7   :  { %v1522_v10 = vpop.f32.mrf.mxu1 }
 0x3e8   :  { %v1481_v48 = vpop.f32.mrf.mxu0 }
 0x3e9   :  { %v1523_v56 = vadd.f32 %v1522_v10, %v1481_v48 }
 0x3ef   :  { %v1525_v50 = vpop.f32.mrf.mxu1 }
 0x3f0   :  { %v1484_v5 = vpop.f32.mrf.mxu0 }
 0x3f1   :  { %v1526_v57 = vadd.f32 %v1525_v50, %v1484_v5 }
 0x3f7   :  { %v1528_v63 = vpop.f32.mrf.mxu1 }
 0x3f8   :  { %v1487_v36 = vpop.f32.mrf.mxu0 }
 0x3f9   :  { %v1529_v3 = vadd.f32 %v1528_v63, %v1487_v36 }
 0x3ff   :  { %v1531_v49 = vpop.f32.mrf.mxu1 }
 0x400   :  { %v1490_v38 = vpop.f32.mrf.mxu0 }
 0x401   :  { %v1532_v41 = vadd.f32 %v1531_v49, %v1490_v38 }
 0x407   :  { %v1534_v54 = vpop.f32.mrf.mxu1 }
 0x408   :  { %v1493_v8 = vpop.f32.mrf.mxu0 }
 0x409   :  { %v1535_v63 = vadd.f32 %v1534_v54, %v1493_v8 }
 0x40f   :  { %v1537_v48 = vpop.f32.mrf.mxu1 }
 0x410   :  { %v1496_v10 = vpop.f32.mrf.mxu0 }
 0x411   :  { %v1538_v38 = vadd.f32 %v1537_v48, %v1496_v10 }
 0x417   :  { %v1540_v22 = vpop.f32.mrf.mxu1 }
 0x418   :  { %v1499_v59 = vpop.f32.mrf.mxu0 }
 0x425   :  { %v1601_v31 = vpop.f32.mrf.mxu3 }
 0x426   :  { %v6352_v25 = vadd.f32 %v1601_v31, %v1520_v35  ;;  %v1541_v35 = vadd.f32 %v1540_v22, %v1499_v59 }
 0x428   :  { %v1683_v31 = vmul.f32 %v6352_v25, %v6352_v25 }
 0x42d   :  { %v1604_v53 = vpop.f32.mrf.mxu3 }
 0x42e   :  { %v6347_v24 = vadd.f32 %v1604_v53, %v1523_v56  ;;  %v1661_v53 = vadd.f32 %v1660_v1, %v1654_v51 }
 0x430   :  { %v1684_v50 = vmul.f32 %v6347_v24, %v6347_v24  ;;  %v1669_v36 = vadd.f32 %v6347_v24, %v6352_v25  ;;  %v1662_v49 = vadd.f32 %v1661_v53, %v1655_v28 }
 0x432   :  { %v1663_v56 = vrot.slane %v1662_v49, 4 }
 0x434   :  { %v1664_v10 = vadd.f32 %v1663_v56, %v1662_v49 }
 0x435   :  { %v1607_v4 = vpop.f32.mrf.mxu3 }
 0x436   :  { %v6354_v20 = vadd.f32 %v1607_v4, %v1526_v57  ;;  %v1665_v53 = vrot.slane %v1664_v10, 2 }
 0x438   :  { %v1685_v4 = vmul.f32 %v6354_v20, %v6354_v20  ;;  %v1670_v12 = vadd.f32 %v1669_v36, %v6354_v20 }
 0x43d   :  { %v1610_v32 = vpop.f32.mrf.mxu3 }
 0x43e   :  { %v6361_v5 = vadd.f32 %v1610_v32, %v1529_v3  ;;  %v1691_v32 = vadd.f32 %v1684_v50, %v1683_v31 }
 0x440   :  { %v1686_v54 = vmul.f32 %v6361_v5, %v6361_v5  ;;  %v1692_v15 = vadd.f32 %v1691_v32, %v1685_v4  ;;  %v1671_v60 = vadd.f32 %v1670_v12, %v6361_v5 }
 0x442   :  { %v1693_v19 = vadd.f32 %v1692_v15, %v1686_v54 }
 0x445   :  { %v1613_v16 = vpop.f32.mrf.mxu3 }
 0x446   :  { %v6370_v39 = vadd.f32 %v1613_v16, %v1532_v41 }
 0x448   :  { %v1687_v58 = vmul.f32 %v6370_v39, %v6370_v39  ;;  %v1672_v21 = vadd.f32 %v1671_v60, %v6370_v39 }
 0x44a   :  { %v1694_v57 = vadd.f32 %v1693_v19, %v1687_v58 }
 0x44d   :  { %v1616_v42 = vpop.f32.mrf.mxu3 }
 0x44e   :  { %v6375_v8 = vadd.f32 %v1616_v42, %v1535_v63  ;;  %v1643_v42 = vadd.f32 %v1642_v44, %v1641_v62 }
 0x450   :  { %v1688_v34 = vmul.f32 %v6375_v8, %v6375_v8  ;;  %v1673_v9 = vadd.f32 %v1672_v21, %v6375_v8  ;;  %v1644_v29 = vrot.slane %v1643_v42, 2 }
 0x452   :  { %v1695_v48 = vadd.f32 %v1694_v57, %v1688_v34  ;;  %v1645_v31 = vadd.f32 %v1644_v29, %v1643_v42  ;;  %v6408_v29 = vld [vmem:[#allocation2 + $0x3e8] sm:$0xff] }
 0x454   :  { %v1646_v32 = vrot.slane %v1645_v31, 1 }
 0x455   :  { %v1619_v17 = vpop.f32.mrf.mxu3 }
 0x456   :  { %v6380_v16 = vadd.f32 %v1619_v17, %v1538_v38  ;;  %v1666_v38 = vadd.f32 %v1665_v53, %v1664_v10  ;;  %v1647_v58 = vadd.f32 %v1646_v32, %v1645_v31  ;;  %v6402_v10 = vld [vmem:[#allocation2 + $0x3f0] sm:$0xff]  ;;  %v6416_v53 = vld [vmem:[#allocation2 + $0x360] sm:$0xff] }
 0x457   :  { %v6426_v31 = vld [vmem:[#allocation2 + $0x3d0] sm:$0xff]  ;;  %v6440_v32 = vld [vmem:[#allocation2 + $0x340] sm:$0xff] }
 0x458   :  { %v1689_v13 = vmul.f32 %v6380_v16, %v6380_v16  ;;  %v1674_v3 = vadd.f32 %v1673_v9, %v6380_v16  ;;  %v1667_v44 = vrot.slane %v1666_v38, 1 }
 0x45a   :  { %v1696_v28 = vadd.f32 %v1695_v48, %v1689_v13  ;;  %v1668_v56 = vadd.f32 %v1667_v44, %v1666_v38  ;;  %v6398_v13 = vld [vmem:[#allocation2 + $0x3f8] sm:$0xff]  ;;  %v6406_v48 = vld [vmem:[#allocation2 + $0x370] sm:$0xff]  ;;  %v6434_v38 = vld [vmem:[#allocation2 + $0x348] sm:$0xff] }
 0x45b   :  { %1926 = vmatpush.msrb.mxu2 %v6398_v13  ;;  %v6446_v44 = vld [vmem:[#allocation2 + $0x338] sm:$0xff] }
 0x45d   :  { %v1622_v51 = vpop.f32.mrf.mxu3  ;;  %1927 = vmatpush.msrb.mxu2 %v6402_v10 }
 0x45e   :  { %v6389_v1 = vadd.f32 %v1622_v51, %v1541_v35  ;;  %v6400_v51 = vld [vmem:[#allocation2 + $0x378] sm:$0xff] }
 0x45f   :  { %4795 = vmatpush.msrb.mxu3 %v6400_v51  ;;  %1928 = vmatpush.msrb.mxu2 %v6408_v29 }
 0x460   :  { %v1675_v41 = vadd.f32 %v1674_v3, %v6389_v1  ;;  %v1690_v50 = vmul.f32 %v6389_v1, %v6389_v1 }
 0x461   :  { %4796 = vmatpush.msrb.mxu3 %v6406_v48 }
 0x462   :  { %v1676_v62 = vrot.slane %v1675_v41, 4  ;;  %v1697_v63 = vadd.f32 %v1696_v28, %v1690_v50  ;;  %v6410_v28 = vld [vmem:[#allocation2 + $0x368] sm:$0xff]  ;;  %v6414_v50 = vld [vmem:[#allocation2 + $0x3e0] sm:$0xff] }
 0x463   :  { %4797 = vmatpush.msrb.mxu3 %v6410_v28  ;;  %1929 = vmatpush.msrb.mxu2 %v6414_v50 }
 0x464   :  { %v1677_v36 = vadd.f32 %v1676_v62, %v1675_v41  ;;  %v1698_v4 = vrot.slane %v1697_v63, 4  ;;  %v6420_v62 = vld [vmem:[#allocation2 + $0x3d8] sm:$0xff] }
 0x465   :  { %4798 = vmatpush.msrb.mxu3 %v6416_v53  ;;  %1930 = vmatpush.msrb.mxu2 %v6420_v62 }
 0x466   :  { %v1678_v49 = vrot.slane %v1677_v36, 2  ;;  %v1699_v17 = vadd.f32 %v1698_v4, %v1697_v63  ;;  %v6422_v63 = vld [vmem:[#allocation2 + $0x358] sm:$0xff]  ;;  %v6432_v4 = vld [vmem:[#allocation2 + $0x3c8] sm:$0xff] }
 0x467   :  { %4799 = vmatpush.msrb.mxu3 %v6422_v63  ;;  %1931 = vmatpush.msrb.mxu2 %v6426_v31 }
 0x468   :  { %v1679_v12 = vadd.f32 %v1678_v49, %v1677_v36  ;;  %v1700_v54 = vrot.slane %v1699_v17, 2  ;;  %v6428_v36 = vld [vmem:[#allocation2 + $0x350] sm:$0xff] }
 0x469   :  { %4800 = vmatpush.msrb.mxu3 %v6428_v36  ;;  %1932 = vmatpush.msrb.mxu2 %v6432_v4 }
 0x46a   :  { %v1680_v15 = vrot.slane %v1679_v12, 1  ;;  %v1701_v60 = vadd.f32 %v1700_v54, %v1699_v17  ;;  %v6438_v17 = vld [vmem:[#allocation2 + $0x3c0] sm:$0xff]  ;;  %v6444_v54 = vld [vmem:[#allocation2 + $0x3b8] sm:$0xff] }
 0x46b   :  { %4801 = vmatpush.msrb.mxu3 %v6434_v38  ;;  %1933 = vmatpush.msrb.mxu2 %v6438_v17 }
 0x46c   :  { %v1681_v59 = vadd.f32 %v1680_v15, %v1679_v12  ;;  %v1702_v22 = vrot.slane %v1701_v60, 1 }
 0x46d   :  { %4802 = vmatpush.msrb.mxu3 %v6440_v32  ;;  %1934 = vmatpush.msrb.mxu2 %v6444_v54 }
 0x46e   :  { %v1682_v19 = vadd.f32 %v1681_v59, %v1647_v58  ;;  %v1703_v21 = vadd.f32 %v1702_v22, %v1701_v60  ;;  %v6450_v60 = vld [vmem:[#allocation2 + $0x3b0] sm:$0xff]  ;;  %v6456_v22 = vld [vmem:[#allocation2 + $0x3a8] sm:$0xff] }
 0x46f   :  { %7719 = vst [vmem:[#allocation11_spill] sm:$0xff] %v6450_v60  ;;  %v6452_v58 = vld [vmem:[#allocation2 + $0x330] sm:$0xff]  ;;  %4803 = vmatpush.msrb.mxu3 %v6446_v44  ;;  %1935 = vmatpush.msrb.mxu2 %v6450_v60 }
 0x470   :  { %v1704_v34 = vadd.f32 %v1703_v21, %v1668_v56  ;;  %v6394_v35 = vmul.f32 0.0078125, %v1682_v19  ;;  %7720 = vst [vmem:[#allocation12_spill] sm:$0xff] %v6456_v22  ;;  %v6458_v56 = vld [vmem:[#allocation2 + $0x328] sm:$0xff]  ;;  %v6462_v21 = vld [vmem:[#allocation2 + $0x3a0] sm:$0xff] }
 0x471   :  { %4804 = vmatpush.msrb.mxu3 %v6452_v58  ;;  %7721 = vst [vmem:[#allocation13_spill] sm:$0xff] %v6462_v21  ;;  %1936 = vmatpush.msrb.mxu2 %v6456_v22 }
 0x472   :  { %v1706_v42 = vmul.f32 0.0078125, %v1704_v34  ;;  %v1707_v57 = vmul.f32 %v6394_v35, %v6394_v35  ;;  %v6464_v34 = vld [vmem:[#allocation2 + $0x320] sm:$0xff] }
 0x473   :  { %4805 = vmatpush.msrb.mxu3 %v6458_v56  ;;  %1937 = vmatpush.msrb.mxu2 %v6462_v21  ;;  %v6491_v21 = vld [vmem:[#allocation2 + $0x300] sm:$0xff] }
 0x474   :  { %v1708_v9 = vsub.f32 %v1706_v42, %v1707_v57  ;;  %v1634_v42 = vld [vmem:[#allocation5 + $0x2] sm:$0x3] }
 0x475   :  { %4806 = vmatpush.msrb.mxu3 %v6464_v34 }
 0x476   :  { %v1709_v3 = vmax.f32 %v1708_v9, 0.0  ;;  %v6468_v9 = vld [vmem:[#allocation2 + $0x398] sm:$0xff] }
 0x477   :  { %7722 = vst [vmem:[#allocation14_spill] sm:$0xff] %v6468_v9  ;;  %1938 = vmatpush.msrb.mxu2 %v6468_v9 }
 0x478   :  { %v1710_v41 = vadd.f32 1e-05, %v1709_v3  ;;  %v6470_v3 = vld [vmem:[#allocation2 + $0x318] sm:$0xff] }
 0x479   :  { %4807 = vmatpush.msrb.mxu3 %v6470_v3 }
 0x47a   :  { %4870 = vrsqrt.f32 %v1710_v41  ;;  %vm1717_vm1 = vweird.f32 %v1710_v41 }
 0x47b   :  { %4808 = vmatpush.msrb.mxu3 %v6476_v61 }
 0x480   :  { %v4871_v49 = vpop.eup %4870 }
 0x481   :  { %v1712_v12 = vmul.f32 %v4871_v49, %v1710_v41  ;;  %vm1718_vm0 = vweird.f32 %v4871_v49 }
 0x482   :  { %vm1719_vm2 = vmor %vm1717_vm1, %vm1718_vm0 }
 0x483   :  { %v1713_v15 = vmul.f32 %v4871_v49, %v1712_v12 }
 0x485   :  { %v1714_v59 = vmul.f32 0.5, %v1713_v15 }
 0x487   :  { %v1715_v19 = vsub.f32 1.5, %v1714_v59  ;;  %v6474_v59 = vld [vmem:[#allocation2 + $0x390] sm:$0xff] }
 0x488   :  { %7723 = vst [vmem:[#allocation15_spill] sm:$0xff] %v6474_v59  ;;  %1939 = vmatpush.msrb.mxu2 %v6474_v59 }
 0x489   :  { %v1716_v57 = vmul.f32 %v4871_v49, %v1715_v19 }
 0x48a   :  { %1940 = vmatpush.msrb.mxu2 %v6483_v26 }
 0x48b   :  { %v1720_v12 = vsel %vm1719_vm2, %v4871_v49, %v1716_v57  ;;  %v6485_v49 = vld [vmem:[#allocation2 + $0x308] sm:$0xff] }
 0x48c   :  { %v1721_v15 = vmul.f32 %v1720_v12, %v1634_v42  ;;  %v6489_v12 = vld [vmem:[#allocation2 + $0x380] sm:$0xff]  ;;  %4809 = vmatpush.msrb.mxu3 %v6485_v49 }
 0x48d   :  { %7725 = vst [vmem:[#allocation17_spill] sm:$0xff] %v6489_v12  ;;  %1941 = vmatpush.msrb.mxu2 %v6489_v12 }
 0x48e   :  { %v1722_v41 = vmul.f32 %v1721_v15, %v6394_v35  ;;  %v6481_v19 = vperm.slane %v1721_v15, 0  ;;  %4810 = vmatpush.msrb.mxu3 %v6491_v21 }
 0x490   :  { %v1724_v57 = vrot.slane %v1722_v41, 7  ;;  %v1776_v15 = vmul.f32 %v6481_v19, %v6389_v1  ;;  %v1735_v9 = vmul.f32 %v6481_v19, %v6345_v0  ;;  %v1734_v41 = vmul.f32 %v6481_v19, %v6340_v30 }
 0x491   :  { %v1775_v59 = vmul.f32 %v6481_v19, %v6380_v16  ;;  %v1733_v26 = vmul.f32 %v6481_v19, %v6333_v47  ;;  %v1774_v1 = vmul.f32 %v6481_v19, %v6375_v8  ;;  %v1732_v0 = vmul.f32 %v6481_v19, %v6326_v40 }
 0x492   :  { %v1726_v35 = vsub.f32 %v1634_v42, %v1724_v57  ;;  %v1773_v57 = vmul.f32 %v6481_v19, %v6370_v39  ;;  %v1731_v30 = vmul.f32 %v6481_v19, %v6316_v45  ;;  %v1772_v16 = vmul.f32 %v6481_v19, %v6361_v5 }
 0x493   :  { %v1730_v47 = vmul.f32 %v6481_v19, %v6310_v27  ;;  %v1729_v27 = vmul.f32 %v6481_v19, %v6304_v2 }
 0x494   :  { %v6507_v42 = vperm.slane %v1726_v35, 1  ;;  %v1771_v35 = vmul.f32 %v6481_v19, %v6354_v20 }
 0x496   :  { %v1744_v8 = vadd.f32 %v6507_v42, %v1735_v9  ;;  %v1784_v12 = vadd.f32 %v1776_v15, %v6507_v42  ;;  %v1743_v40 = vadd.f32 %v6507_v42, %v1734_v41  ;;  %v1783_v39 = vadd.f32 %v1775_v59, %v6507_v42 }
 0x497   :  { %v1742_v22 = vadd.f32 %v6507_v42, %v1733_v26  ;;  %v1782_v45 = vadd.f32 %v1774_v1, %v6507_v42  ;;  %v1741_v5 = vadd.f32 %v6507_v42, %v1732_v0  ;;  %v1781_v41 = vadd.f32 %v1773_v57, %v6507_v42 }
 0x498   :  { %vm1752_vm14 = vcmp.ge.f32.partialorder %v1744_v8, 0.0  ;;  %v1760_v18 = vmul.f32 0.01, %v1744_v8  ;;  %vm1792_vm15 = vcmp.ge.f32.partialorder %v1784_v12, 0.0  ;;  %v1800_v20 = vmul.f32 0.01, %v1784_v12 }
 0x499   :  { %vm1751_vm11 = vcmp.ge.f32.partialorder %v1743_v40, 0.0  ;;  %v1759_v9 = vmul.f32 0.01, %v1743_v40  ;;  %v1799_v15 = vmul.f32 0.01, %v1783_v39  ;;  %vm1791_vm12 = vcmp.ge.f32.partialorder %v1783_v39, 0.0 }
 0x49a   :  { %v6533_v60 = vsel %vm1752_vm14, %v1744_v8, %v1760_v18  ;;  %v6535_v59 = vsel %vm1792_vm15, %v1784_v12, %v1800_v20  ;;  %v1758_v26 = vmul.f32 0.01, %v1742_v22  ;;  %vm1750_vm13 = vcmp.ge.f32.partialorder %v1742_v22, 0.0 }
 0x49b   :  { %1830 = vmatpush.msrb.mxu0 %v6533_v60  ;;  %1888 = vmatpush.msrb.mxu1 %v6533_v60  ;;  %v1798_v2 = vmul.f32 0.01, %v1782_v45  ;;  %v1770_v1 = vmul.f32 %v6481_v19, %v6347_v24  ;;  %v1728_v0 = vmul.f32 %v6481_v19, %v6308_v46  ;;  %v6546_v18 = vsel %vm1751_vm11, %v1743_v40, %v1759_v9 }
 0x49c   :  { %2083 = vmatpush.msra.mxu2 %v6535_v59  ;;  %2112 = vmatpush.msra.mxu3 %v6535_v59  ;;  %vm1790_vm0 = vcmp.ge.f32.partialorder %v1782_v45, 0.0  ;;  %vm1749_vm1 = vcmp.ge.f32.partialorder %v1741_v5, 0.0  ;;  %v1757_v12 = vmul.f32 0.01, %v1741_v5  ;;  %v6551_v57 = vsel %vm1791_vm12, %v1783_v39, %v1799_v15 }
 0x49d   :  { %1831 = vmatpush.msrb.mxu0 %v6546_v18  ;;  %1889 = vmatpush.msrb.mxu1 %v6546_v18  ;;  %v1797_v24 = vmul.f32 0.01, %v1781_v41  ;;  %v1740_v46 = vadd.f32 %v6507_v42, %v1731_v30  ;;  %v1780_v8 = vadd.f32 %v1772_v16, %v6507_v42  ;;  %v6558_v40 = vsel %vm1750_vm13, %v1742_v22, %v1758_v26 }
 0x49e   :  { %2084 = vmatpush.msra.mxu2 %v6551_v57  ;;  %2113 = vmatpush.msra.mxu3 %v6551_v57  ;;  %vm1789_vm2 = vcmp.ge.f32.partialorder %v1781_v41, 0.0  ;;  %v1739_v20 = vadd.f32 %v6507_v42, %v1730_v47  ;;  %v1779_v9 = vadd.f32 %v1771_v35, %v6507_v42  ;;  %v6565_v30 = vsel %vm1790_vm0, %v1782_v45, %v1798_v2 }
 0x49f   :  { %1832 = vmatpush.msrb.mxu0 %v6558_v40  ;;  %1890 = vmatpush.msrb.mxu1 %v6558_v40  ;;  %v6568_v16 = vsel %vm1749_vm1, %v1741_v5, %v1757_v12  ;;  %vm1748_vm14 = vcmp.ge.f32.partialorder %v1740_v46, 0.0  ;;  %v1756_v39 = vmul.f32 0.01, %v1740_v46  ;;  %vm1788_vm15 = vcmp.ge.f32.partialorder %v1780_v8, 0.0 }
 0x4a0   :  { %2085 = vmatpush.msra.mxu2 %v6565_v30  ;;  %2114 = vmatpush.msra.mxu3 %v6565_v30  ;;  %v1796_v22 = vmul.f32 0.01, %v1780_v8  ;;  %vm1747_vm11 = vcmp.ge.f32.partialorder %v1739_v20, 0.0  ;;  %v1755_v47 = vmul.f32 0.01, %v1739_v20  ;;  %v6575_v35 = vsel %vm1789_vm2, %v1781_v41, %v1797_v24 }
 0x4a1   :  { %1833 = vmatpush.msrb.mxu0 %v6568_v16  ;;  %1891 = vmatpush.msrb.mxu1 %v6568_v16  ;;  %v1795_v45 = vmul.f32 0.01, %v1779_v9  ;;  %v1738_v5 = vadd.f32 %v6507_v42, %v1729_v27  ;;  %v1778_v15 = vadd.f32 %v1770_v1, %v6507_v42  ;;  %v6582_v26 = vsel %vm1748_vm14, %v1740_v46, %v1756_v39 }
 0x4a2   :  { %2086 = vmatpush.msra.mxu2 %v6575_v35  ;;  %2115 = vmatpush.msra.mxu3 %v6575_v35  ;;  %vm1787_vm12 = vcmp.ge.f32.partialorder %v1779_v9, 0.0  ;;  %v1737_v2 = vadd.f32 %v6507_v42, %v1728_v0  ;;  %v1769_v12 = vmul.f32 %v6481_v19, %v6352_v25  ;;  %v6590_v27 = vsel %vm1788_vm15, %v1780_v8, %v1796_v22 }
 0x4a3   :  { %1834 = vmatpush.msrb.mxu0 %v6582_v26  ;;  %1892 = vmatpush.msrb.mxu1 %v6582_v26  ;;  %v6593_v41 = vsel %vm1747_vm11, %v1739_v20, %v1755_v47  ;;  %vm1746_vm13 = vcmp.ge.f32.partialorder %v1738_v5, 0.0  ;;  %v1754_v1 = vmul.f32 0.01, %v1738_v5  ;;  %vm1786_vm0 = vcmp.ge.f32.partialorder %v1778_v15, 0.0 }
 0x4a4   :  { %2087 = vmatpush.msra.mxu2 %v6590_v27  ;;  %2116 = vmatpush.msra.mxu3 %v6590_v27  ;;  %v1794_v0 = vmul.f32 0.01, %v1778_v15  ;;  %v1753_v24 = vmul.f32 0.01, %v1737_v2  ;;  %v1777_v25 = vadd.f32 %v1769_v12, %v6507_v42  ;;  %v6601_v19 = vsel %vm1787_vm12, %v1779_v9, %v1795_v45  ;;  %v7738_v45 = vld [vmem:[#allocation24_spill] sm:$0xff] }
 0x4a5   :  { %1835 = vmatpush.msrb.mxu0 %v6593_v41  ;;  %1893 = vmatpush.msrb.mxu1 %v6593_v41  ;;  %vm1745_vm1 = vcmp.ge.f32.partialorder %v1737_v2, 0.0  ;;  %v1762_v46 = vsel %vm1746_vm13, %v1738_v5, %v1754_v1  ;;  %v4979_v42 = vmov 0.0   ;;  %vm1809_vm14 = vcmask 523264   ;;  %v2037_v12 = vld [vmem:[#allocation2 + $0x458] sm:$0xff]  ;;  %v2034_v1 = vld [vmem:[#allocation2 + $0x440] sm:$0xff] }
 0x4a6   :  { %2088 = vmatpush.msra.mxu2 %v6601_v19  ;;  %2117 = vmatpush.msra.mxu3 %v6601_v19  ;;  %vm1785_vm2 = vcmp.ge.f32.partialorder %v1777_v25, 0.0  ;;  %v1793_v8 = vmul.f32 0.01, %v1777_v25  ;;  %v6605_v20 = vsel %vm1786_vm0, %v1778_v15, %v1794_v0  ;;  %v6611_v39 = vsel %vm994_vm3, 1.0, %v4979_v42  ;;  %v2041_v15 = vld [vmem:[#allocation2 + $0x478] sm:$0xff] }
 0x4a7   :  { %1836 = vmatpush.msrb.mxu0 %v1762_v46  ;;  %1894 = vmatpush.msrb.mxu1 %v1762_v46  ;;  %v6617_v9 = vsel %vm1018_vm4, 1.0, %v4979_v42  ;;  %v1761_v22 = vsel %vm1745_vm1, %v1737_v2, %v1753_v24  ;;  %v6636_v33 = vsel %vm995_vm5, 1.0, %v4979_v42  ;;  %v6642_v55 = vsel %vm1019_vm6, 1.0, %v4979_v42  ;;  %v2038_v2 = vld [vmem:[#allocation2 + $0x460] sm:$0xff]  ;;  %v2033_v0 = vld [vmem:[#allocation2 + $0x438] sm:$0xff]  ;;  %v2032_v24 = vld [vmem:[#allocation2 + $0x430] sm:$0xff] }
 0x4a8   :  { %2089 = vmatpush.msra.mxu2 %v6605_v20  ;;  %2118 = vmatpush.msra.mxu3 %v6605_v20  ;;  %v6621_v47 = vsel %vm1785_vm2, %v1777_v25, %v1793_v8  ;;  %v6656_v6 = vsel %vm1020_vm8, 1.0, %v4979_v42  ;;  %v6662_v52 = vsel %vm996_vm7, 1.0, %v4979_v42  ;;  %v6676_v7 = vsel %vm1021_vm10, 1.0, %v4979_v42  ;;  %v2031_v25 = vld [vmem:[#allocation2 + $0x428] sm:$0xff]  ;;  %v2028_v8 = vld [vmem:[#allocation2 + $0x410] sm:$0xff] }
 0x4a9   :  { %1837 = vmatpush.msrb.mxu0 %v1761_v22  ;;  %1895 = vmatpush.msrb.mxu1 %v1761_v22  ;;  %v6682_v43 = vsel %vm997_vm9, 1.0, %v4979_v42  ;;  %vm7726_vm3 = vcmp.eq.s32.totalorder %v5886_v14, %v6068_v11  ;;  %v7727_v11 = vld [vmem:[#allocation11_spill] sm:$0xff]  ;;  %vm7739_vm6 = vcmp.eq.s32.totalorder %v5886_v14, %v7738_v45 }
 0x4aa   :  { %2090 = vmatpush.msra.mxu2 %v6621_v47  ;;  %2119 = vmatpush.msra.mxu3 %v6621_v47  ;;  %v4658_v5 = vsel %vm7739_vm6, 1.0, %v4979_v42 }
 0x4ab   :  { %4711 = vmatmul.msk.f32.vlgmr.msrb.gmra.mxu0 %vm1809_vm14, %v6611_v39  ;;  %4715 = vmatmul.msk.f32.vlgmr.msrb.gmra.mxu1 %vm1809_vm14, %v6617_v9 }
 0x4ac   :  { %1955 = vmatpush.msra.mxu0 %v6400_v51  ;;  %2042 = vmatpush.msra.mxu1 %v2041_v15 }
 0x4ae   :  { %1956 = vmatpush.msra.mxu0 %v6406_v48 }
 0x4b0   :  { %1957 = vmatpush.msra.mxu0 %v6410_v28 }
 0x4b2   :  { %1958 = vmatpush.msra.mxu0 %v6416_v53 }
 0x4b3   :  { %4712 = vmatmul.msk.f32.gmra.mxu0 %vm1809_vm14, %v6636_v33  ;;  %4716 = vmatmul.msk.f32.gmra.mxu1 %vm1809_vm14, %v6642_v55 }
 0x4b4   :  { %1959 = vmatpush.msra.mxu0 %v6422_v63 }
 0x4b6   :  { %1960 = vmatpush.msra.mxu0 %v6428_v36 }
 0x4b8   :  { %1961 = vmatpush.msra.mxu0 %v6434_v38 }
 0x4ba   :  { %1962 = vmatpush.msra.mxu0 %v6440_v32 }
 0x4bb   :  { %4717 = vmatmul.msk.f32.gmra.mxu1 %vm1809_vm14, %v6656_v6  ;;  %4713 = vmatmul.msk.f32.gmra.mxu0 %vm1809_vm14, %v6662_v52 }
 0x4bc   :  { %1963 = vmatpush.msra.mxu0 %v6446_v44 }
 0x4be   :  { %1964 = vmatpush.msra.mxu0 %v6452_v58 }
 0x4c0   :  { %1965 = vmatpush.msra.mxu0 %v6458_v56 }
 0x4c2   :  { %1966 = vmatpush.msra.mxu0 %v6464_v34 }
 0x4c3   :  { %4718 = vmatmul.msk.f32.gmra.mxu1 %vm1809_vm14, %v6676_v7  ;;  %4714 = vmatmul.msk.f32.gmra.mxu0 %vm1809_vm14, %v6682_v43 }
 0x4c4   :  { %1967 = vmatpush.msra.mxu0 %v6470_v3 }
 0x4c6   :  { %1968 = vmatpush.msra.mxu0 %v6476_v61 }
 0x4c8   :  { %1969 = vmatpush.msra.mxu0 %v6485_v49 }
 0x4ca   :  { %1970 = vmatpush.msra.mxu0 %v6491_v21 }
 0x4cc   :  { %2004 = vmatpush.msrb.mxu0 %v6533_v60 }
 0x4ce   :  { %2005 = vmatpush.msrb.mxu0 %v6546_v18 }
 0x4d0   :  { %2006 = vmatpush.msrb.mxu0 %v6558_v40  ;;  %v7734_v40 = vld [vmem:[#allocation23_spill] sm:$0xff] }
 0x4d1   :  { %vm7735_vm5 = vcmp.eq.s32.totalorder %v5886_v14, %v7734_v40 }
 0x4d2   :  { %2007 = vmatpush.msrb.mxu0 %v6568_v16  ;;  %v7736_v16 = vld [vmem:[#allocation16_spill] sm:$0xff] }
 0x4d4   :  { %2008 = vmatpush.msrb.mxu0 %v6582_v26  ;;  %v2039_v26 = vld [vmem:[#allocation2 + $0x468] sm:$0xff] }
 0x4d6   :  { %2009 = vmatpush.msrb.mxu0 %v6593_v41  ;;  %v2035_v41 = vld [vmem:[#allocation2 + $0x448] sm:$0xff] }
 0x4d8   :  { %2010 = vmatpush.msrb.mxu0 %v1762_v46  ;;  %v2029_v46 = vld [vmem:[#allocation2 + $0x418] sm:$0xff] }
 0x4da   :  { %2011 = vmatpush.msrb.mxu0 %v1761_v22 }
 0x528   :  { %v1839_v37 = vpop.f32.mrf.mxu0  ;;  %v1897_v23 = vpop.f32.mrf.mxu1 }
 0x529   :  { %1942 = vmatmul.f32.vlgmr.msrb.gmra.mxu2 %v1897_v23  ;;  %1971 = vmatmul.f32.vlgmr.msra.gmra.mxu0 %v1839_v37 }
 0x52a   :  { %2199 = vmatpush.msrb.mxu2 %v6535_v59  ;;  %2133 = vmatpush.msra.mxu0 %v6398_v13  ;;  %v6715_v13 = vsel %vm7726_vm3, 1.0, %v4979_v42 }
 0x52c   :  { %2200 = vmatpush.msrb.mxu2 %v6551_v57  ;;  %2134 = vmatpush.msra.mxu0 %v6402_v10  ;;  %v7733_v57 = vld [vmem:[#allocation15_spill] sm:$0xff] }
 0x52e   :  { %2201 = vmatpush.msrb.mxu2 %v6565_v30  ;;  %2135 = vmatpush.msra.mxu0 %v6408_v29  ;;  %v4657_v30 = vsel %vm7735_vm5, 1.0, %v4979_v42 }
 0x530   :  { %2202 = vmatpush.msrb.mxu2 %v6575_v35  ;;  %v1842_v60 = vpop.f32.mrf.mxu0  ;;  %v1900_v18 = vpop.f32.mrf.mxu1  ;;  %2136 = vmatpush.msra.mxu0 %v6414_v50  ;;  %v7728_v50 = vld [vmem:[#allocation22_spill] sm:$0xff]  ;;  %v7737_v35 = vld [vmem:[#allocation17_spill] sm:$0xff] }
 0x531   :  { %1945 = vmatmul.f32.gmra.mxu2 %v1900_v18  ;;  %1974 = vmatmul.f32.gmra.mxu0 %v1842_v60  ;;  %vm7729_vm4 = vcmp.eq.s32.totalorder %v5886_v14, %v7728_v50  ;;  %v2040_v14 = vld [vmem:[#allocation2 + $0x470] sm:$0xff] }
 0x532   :  { %2203 = vmatpush.msrb.mxu2 %v6590_v27  ;;  %2137 = vmatpush.msra.mxu0 %v6420_v62  ;;  %v6729_v62 = vsel %vm7729_vm4, 1.0, %v4979_v42  ;;  %v2036_v27 = vld [vmem:[#allocation2 + $0x450] sm:$0xff]  ;;  %v2026_v42 = vld [vmem:[#allocation2 + $0x400] sm:$0xff] }
 0x533   :  { %2043 = vmatpush.msra.mxu1 %v2040_v14 }
 0x534   :  { %2204 = vmatpush.msrb.mxu2 %v6601_v19  ;;  %2138 = vmatpush.msra.mxu0 %v6426_v31  ;;  %v7730_v31 = vld [vmem:[#allocation12_spill] sm:$0xff] }
 0x535   :  { %2044 = vmatpush.msra.mxu1 %v2039_v26  ;;  %v2030_v19 = vld [vmem:[#allocation2 + $0x420] sm:$0xff] }
 0x536   :  { %2205 = vmatpush.msrb.mxu2 %v6605_v20  ;;  %2139 = vmatpush.msra.mxu0 %v6432_v4  ;;  %v2027_v20 = vld [vmem:[#allocation2 + $0x408] sm:$0xff] }
 0x537   :  { %2045 = vmatpush.msra.mxu1 %v2038_v2 }
 0x538   :  { %2206 = vmatpush.msrb.mxu2 %v6621_v47  ;;  %v1903_v10 = vpop.f32.mrf.mxu1  ;;  %v1845_v29 = vpop.f32.mrf.mxu0  ;;  %2140 = vmatpush.msra.mxu0 %v6438_v17  ;;  %v7731_v17 = vld [vmem:[#allocation13_spill] sm:$0xff] }
 0x539   :  { %1948 = vmatmul.f32.gmra.mxu2 %v1903_v10  ;;  %4719 = vmatmul.msk.f32.vlgmr.msrb.gmra.mxu0 %vm1809_vm14, %v6715_v13 }
 0x53a   :  { %1977 = vmatmul.f32.vlgmr.msrb.gmra.mxu3 %v1845_v29  ;;  %2141 = vmatpush.msra.mxu0 %v6444_v54  ;;  %v7732_v54 = vld [vmem:[#allocation14_spill] sm:$0xff] }
 0x53b   :  { %2220 = vmatpush.msrb.mxu3 %v2041_v15  ;;  %2046 = vmatpush.msra.mxu1 %v2037_v12 }
 0x53c   :  { %2142 = vmatpush.msra.mxu0 %v7727_v11 }
 0x53d   :  { %2221 = vmatpush.msrb.mxu3 %v2040_v14  ;;  %2047 = vmatpush.msra.mxu1 %v2036_v27 }
 0x53e   :  { %2143 = vmatpush.msra.mxu0 %v7730_v31 }
 0x53f   :  { %2222 = vmatpush.msrb.mxu3 %v2039_v26  ;;  %2048 = vmatpush.msra.mxu1 %v2035_v41 }
 0x540   :  { %v1906_v4 = vpop.f32.mrf.mxu1  ;;  %v1848_v59 = vpop.f32.mrf.mxu0  ;;  %2144 = vmatpush.msra.mxu0 %v7731_v17 }
 0x541   :  { %1951 = vmatmul.f32.gmra.mxu2 %v1906_v4  ;;  %4720 = vmatmul.msk.f32.gmra.mxu0 %vm1809_vm14, %v6729_v62 }
 0x542   :  { %1980 = vmatmul.f32.gmra.mxu3 %v1848_v59  ;;  %2145 = vmatpush.msra.mxu0 %v7732_v54 }
 0x543   :  { %2223 = vmatpush.msrb.mxu3 %v2038_v2  ;;  %2049 = vmatpush.msra.mxu1 %v2034_v1 }
 0x544   :  { %2146 = vmatpush.msra.mxu0 %v7733_v57 }
 0x545   :  { %2224 = vmatpush.msrb.mxu3 %v2037_v12  ;;  %2050 = vmatpush.msra.mxu1 %v2033_v0 }
 0x546   :  { %2147 = vmatpush.msra.mxu0 %v7736_v16 }
 0x547   :  { %2225 = vmatpush.msrb.mxu3 %v2036_v27  ;;  %2051 = vmatpush.msra.mxu1 %v2032_v24 }
 0x548   :  { %2148 = vmatpush.msra.mxu0 %v7737_v35 }
 0x549   :  { %4721 = vmatmul.msk.f32.gmra.mxu0 %vm1809_vm14, %v4657_v30  ;;  %4723 = vmatmul.msk.f32.vlgmr.msra.gmra.mxu2 %vm1809_vm14, %v6611_v39 }
 0x54a   :  { %4727 = vmatmul.msk.f32.vlgmr.msra.gmra.mxu3 %vm1809_vm14, %v6617_v9  ;;  %2052 = vmatpush.msra.mxu1 %v2031_v25 }
 0x54b   :  { %2226 = vmatpush.msrb.mxu3 %v2035_v41 }
 0x54c   :  { %2053 = vmatpush.msra.mxu1 %v2030_v19 }
 0x54d   :  { %2227 = vmatpush.msrb.mxu3 %v2034_v1 }
 0x54e   :  { %2054 = vmatpush.msra.mxu1 %v2029_v46 }
 0x54f   :  { %2228 = vmatpush.msrb.mxu3 %v2033_v0 }
 0x550   :  { %2055 = vmatpush.msra.mxu1 %v2028_v8 }
 0x551   :  { %4722 = vmatmul.msk.f32.gmra.mxu0 %vm1809_vm14, %v4658_v5  ;;  %4724 = vmatmul.msk.f32.gmra.mxu2 %vm1809_vm14, %v6636_v33 }
 0x552   :  { %4728 = vmatmul.msk.f32.gmra.mxu3 %vm1809_vm14, %v6642_v55  ;;  %2056 = vmatpush.msra.mxu1 %v2027_v20 }
 0x553   :  { %2229 = vmatpush.msrb.mxu3 %v2032_v24 }
 0x554   :  { %2057 = vmatpush.msra.mxu1 %v2026_v42 }
 0x555   :  { %2230 = vmatpush.msrb.mxu3 %v2031_v25 }
 0x556   :  { %2162 = vmatpush.msrb.mxu1 %v6400_v51 }
 0x557   :  { %2231 = vmatpush.msrb.mxu3 %v2030_v19 }
 0x558   :  { %2163 = vmatpush.msrb.mxu1 %v6406_v48 }
 0x559   :  { %4725 = vmatmul.msk.f32.gmra.mxu2 %vm1809_vm14, %v6662_v52  ;;  %2232 = vmatpush.msrb.mxu3 %v2029_v46 }
 0x55a   :  { %4729 = vmatmul.msk.f32.gmra.mxu3 %vm1809_vm14, %v6656_v6  ;;  %2164 = vmatpush.msrb.mxu1 %v6410_v28 }
 0x55b   :  { %2233 = vmatpush.msrb.mxu3 %v2028_v8 }
 0x55c   :  { %2165 = vmatpush.msrb.mxu1 %v6416_v53 }
 0x55d   :  { %2234 = vmatpush.msrb.mxu3 %v2027_v20 }
 0x55e   :  { %2166 = vmatpush.msrb.mxu1 %v6422_v63 }
 0x55f   :  { %2235 = vmatpush.msrb.mxu3 %v2026_v42 }
 0x560   :  { %2167 = vmatpush.msrb.mxu1 %v6428_v36 }
 0x561   :  { %4726 = vmatmul.msk.f32.gmra.mxu2 %vm1809_vm14, %v6682_v43 }
 0x562   :  { %4730 = vmatmul.msk.f32.gmra.mxu3 %vm1809_vm14, %v6676_v7  ;;  %2168 = vmatpush.msrb.mxu1 %v6434_v38 }
 0x564   :  { %2169 = vmatpush.msrb.mxu1 %v6440_v32 }
 0x566   :  { %2170 = vmatpush.msrb.mxu1 %v6446_v44 }
 0x568   :  { %2171 = vmatpush.msrb.mxu1 %v6452_v58 }
 0x569   :  { %4731 = vmatmul.msk.f32.vlgmr.msrb.gmra.mxu2 %vm1809_vm14, %v6715_v13 }
 0x56a   :  { %2172 = vmatpush.msrb.mxu1 %v6458_v56 }
 0x56c   :  { %2173 = vmatpush.msrb.mxu1 %v6464_v34 }
 0x56e   :  { %2174 = vmatpush.msrb.mxu1 %v6470_v3 }
 0x570   :  { %2175 = vmatpush.msrb.mxu1 %v6476_v61 }
 0x571   :  { %4732 = vmatmul.msk.f32.gmra.mxu2 %vm1809_vm14, %v6729_v62 }
 0x572   :  { %2176 = vmatpush.msrb.mxu1 %v6485_v49 }
 0x574   :  { %2177 = vmatpush.msrb.mxu1 %v6491_v21 }
 0x579   :  { %4733 = vmatmul.msk.f32.gmra.mxu2 %vm1809_vm14, %v4657_v30 }
 0x581   :  { %4734 = vmatmul.msk.f32.gmra.mxu2 %vm1809_vm14, %v4658_v5  ;;  %vm2365_vm14 = vcmask 261120  }
 0x5a6   :  { %v1972_v22 = vpop.f32.mrf.mxu0 }
 0x5ac   :  { %v1943_v51 = vpop.f32.mrf.mxu2 }
 0x5ad   :  { %v1973_v54 = vadd.f32 %v1972_v22, %v1943_v51 }
 0x5ae   :  { %v1975_v48 = vpop.f32.mrf.mxu0 }
 0x5b4   :  { %v1946_v28 = vpop.f32.mrf.mxu2 }
 0x5b5   :  { %v1976_v17 = vadd.f32 %v1975_v48, %v1946_v28 }
 0x5b6   :  { %v2013_v53 = vpop.f32.mrf.mxu0 }
 0x5b7   :  { %2058 = vmatmul.f32.vlgmr.msra.gmra.mxu1 %v2013_v53 }
 0x5bc   :  { %v1949_v63 = vpop.f32.mrf.mxu2 }
 0x5bd   :  { %v1978_v36 = vpop.f32.mrf.mxu3 }
 0x5be   :  { %v2016_v38 = vpop.f32.mrf.mxu0  ;;  %v1979_v57 = vadd.f32 %v1978_v36, %v1949_v63 }
 0x5bf   :  { %2061 = vmatmul.f32.gmra.mxu1 %v2016_v38 }
 0x5c4   :  { %v1952_v32 = vpop.f32.mrf.mxu2 }
 0x5c5   :  { %v1981_v44 = vpop.f32.mrf.mxu3 }
 0x5c6   :  { %v2019_v58 = vpop.f32.mrf.mxu0  ;;  %v1982_v30 = vadd.f32 %v1981_v44, %v1952_v32 }
 0x5c7   :  { %2064 = vmatmul.f32.gmra.mxu1 %v2019_v58 }
 0x5cc   :  { %v2092_v56 = vpop.f32.mrf.mxu2 }
 0x5cd   :  { %v2121_v34 = vpop.f32.mrf.mxu3 }
 0x5ce   :  { %v2022_v3 = vpop.f32.mrf.mxu0  ;;  %2149 = vmatmul.f32.vlgmr.msra.gmra.mxu0 %v2121_v34 }
 0x5cf   :  { %2067 = vmatmul.f32.gmra.mxu1 %v2022_v3 }
 0x5d4   :  { %v2095_v61 = vpop.f32.mrf.mxu2 }
 0x5d5   :  { %v2124_v47 = vpop.f32.mrf.mxu3 }
 0x5d6   :  { %2152 = vmatmul.f32.gmra.mxu0 %v2124_v47 }
 0x5d7   :  { %2178 = vmatmul.f32.vlgmr.msrb.gmra.mxu1 %v2092_v56 }
 0x5dc   :  { %v2098_v49 = vpop.f32.mrf.mxu2 }
 0x5dd   :  { %v2127_v6 = vpop.f32.mrf.mxu3 }
 0x5de   :  { %2155 = vmatmul.f32.gmra.mxu0 %v2127_v6 }
 0x5df   :  { %2181 = vmatmul.f32.gmra.mxu1 %v2095_v61 }
 0x5e4   :  { %v2101_v21 = vpop.f32.mrf.mxu2 }
 0x5e5   :  { %v2130_v52 = vpop.f32.mrf.mxu3 }
 0x5e6   :  { %2158 = vmatmul.f32.gmra.mxu0 %v2130_v52 }
 0x5e7   :  { %2184 = vmatmul.f32.gmra.mxu1 %v2098_v49 }
 0x5ec   :  { %v2208_v7 = vpop.f32.mrf.mxu2 }
 0x5ed   :  { %2236 = vmatmul.f32.vlgmr.msrb.gmra.mxu3 %v2208_v7 }
 0x5ef   :  { %2187 = vmatmul.f32.gmra.mxu1 %v2101_v21 }
 0x5f4   :  { %v2211_v43 = vpop.f32.mrf.mxu2 }
 0x5f5   :  { %2239 = vmatmul.f32.gmra.mxu3 %v2211_v43 }
 0x5fc   :  { %v2214_v37 = vpop.f32.mrf.mxu2 }
 0x5fd   :  { %2242 = vmatmul.f32.gmra.mxu3 %v2214_v37 }
 0x604   :  { %v2217_v23 = vpop.f32.mrf.mxu2 }
 0x605   :  { %2245 = vmatmul.f32.gmra.mxu3 %v2217_v23 }
 0x634   :  { %v2059_v60 = vpop.f32.mrf.mxu1 }
 0x635   :  { %v6789_v16 = vadd.f32 %v2059_v60, %v1973_v54 }
 0x637   :  { %v2264_v12 = vmul.f32 %v6789_v16, %v6789_v16 }
 0x63c   :  { %v2062_v18 = vpop.f32.mrf.mxu1 }
 0x63d   :  { %v6787_v40 = vadd.f32 %v2062_v18, %v1976_v17 }
 0x63f   :  { %v2265_v5 = vmul.f32 %v6787_v40, %v6787_v40  ;;  %v2255_v14 = vadd.f32 %v6787_v40, %v6789_v16 }
 0x641   :  { %v2268_v1 = vadd.f32 %v2265_v5, %v2264_v12 }
 0x644   :  { %v2065_v10 = vpop.f32.mrf.mxu1 }
 0x645   :  { %v6791_v35 = vadd.f32 %v2065_v10, %v1979_v57 }
 0x647   :  { %v2266_v27 = vmul.f32 %v6791_v35, %v6791_v35  ;;  %v2256_v41 = vadd.f32 %v2255_v14, %v6791_v35 }
 0x649   :  { %v2269_v25 = vadd.f32 %v2268_v1, %v2266_v27 }
 0x64b   :  { %v2150_v11 = vpop.f32.mrf.mxu0 }
 0x64c   :  { %v2068_v29 = vpop.f32.mrf.mxu1 }
 0x64d   :  { %v6795_v15 = vadd.f32 %v2068_v29, %v1982_v30 }
 0x64f   :  { %v2267_v0 = vmul.f32 %v6795_v15, %v6795_v15  ;;  %v2257_v24 = vadd.f32 %v2256_v41, %v6795_v15 }
 0x651   :  { %v2270_v8 = vadd.f32 %v2269_v25, %v2267_v0  ;;  %v2258_v51 = vrot.slane %v2257_v24, 4  ;;  %v6831_v25 = vld [vmem:[#allocation2 + $0x578] sm:$0xff] }
 0x652   :  { %2454 = vmatpush.msra.mxu2 %v6831_v25 }
 0x653   :  { %v2153_v31 = vpop.f32.mrf.mxu0  ;;  %v2271_v36 = vrot.slane %v2270_v8, 4  ;;  %v2259_v32 = vadd.f32 %v2258_v51, %v2257_v24  ;;  %v6843_v51 = vld [vmem:[#allocation2 + $0x4e8] sm:$0xff] }
 0x654   :  { %v2179_v50 = vpop.f32.mrf.mxu1 }
 0x655   :  { %v2180_v20 = vadd.f32 %v2179_v50, %v2150_v11  ;;  %v2272_v61 = vadd.f32 %v2271_v36, %v2270_v8  ;;  %v2260_v21 = vrot.slane %v2259_v32, 2  ;;  %v6839_v8 = vld [vmem:[#allocation2 + $0x4f0] sm:$0xff]  ;;  %v6849_v36 = vld [vmem:[#allocation2 + $0x4e0] sm:$0xff] }
 0x657   :  { %v2273_v37 = vrot.slane %v2272_v61, 2  ;;  %v2261_v18 = vadd.f32 %v2260_v21, %v2259_v32  ;;  %v6855_v32 = vld [vmem:[#allocation2 + $0x4d8] sm:$0xff] }
 0x658   :  { %v6877_v21 = vld [vmem:[#allocation2 + $0x538] sm:$0xff] }
 0x659   :  { %v2274_v11 = vadd.f32 %v2273_v37, %v2272_v61  ;;  %v6871_v61 = vld [vmem:[#allocation2 + $0x540] sm:$0xff]  ;;  %v6885_v37 = vld [vmem:[#allocation2 + $0x4b0] sm:$0xff] }
 0x65b   :  { %v2156_v26 = vpop.f32.mrf.mxu0  ;;  %v2275_v54 = vrot.slane %v2274_v11, 1 }
 0x65c   :  { %v2182_v4 = vpop.f32.mrf.mxu1 }
 0x65d   :  { %v2183_v19 = vadd.f32 %v2182_v4, %v2153_v31  ;;  %v2262_v4 = vrot.slane %v2261_v18, 1 }
 0x663   :  { %v2159_v53 = vpop.f32.mrf.mxu0 }
 0x664   :  { %v2185_v2 = vpop.f32.mrf.mxu1 }
 0x665   :  { %v2186_v42 = vadd.f32 %v2185_v2, %v2156_v26  ;;  %v2276_v26 = vadd.f32 %v2275_v54, %v2274_v11  ;;  %v6897_v11 = vld [vmem:[#allocation2 + $0x4a0] sm:$0xff] }
 0x66c   :  { %v2188_v63 = vpop.f32.mrf.mxu1 }
 0x66d   :  { %v2189_v56 = vadd.f32 %v2188_v63, %v2159_v53  ;;  %v6847_v63 = vld [vmem:[#allocation2 + $0x560] sm:$0xff] }
 0x670   :  { %v2237_v59 = vpop.f32.mrf.mxu3 }
 0x671   :  { %v6809_v48 = vadd.f32 %v2237_v59, %v2180_v20 }
 0x673   :  { %v2287_v44 = vmul.f32 %v6809_v48, %v6809_v48 }
 0x678   :  { %v2240_v45 = vpop.f32.mrf.mxu3 }
 0x679   :  { %v6807_v22 = vadd.f32 %v2240_v45, %v2183_v19  ;;  %v2263_v45 = vadd.f32 %v2262_v4, %v2261_v18  ;;  %v6833_v19 = vld [vmem:[#allocation2 + $0x4f8] sm:$0xff]  ;;  %v6891_v18 = vld [vmem:[#allocation2 + $0x4a8] sm:$0xff] }
 0x67a   :  { %2477 = vmatpush.msra.mxu3 %v6833_v19  ;;  %v6901_v4 = vld [vmem:[#allocation2 + $0x518] sm:$0xff] }
 0x67b   :  { %v2288_v38 = vmul.f32 %v6807_v22, %v6807_v22  ;;  %v2277_v58 = vadd.f32 %v6807_v22, %v6809_v48 }
 0x67c   :  { %2478 = vmatpush.msra.mxu3 %v6839_v8 }
 0x67d   :  { %v2291_v47 = vadd.f32 %v2288_v38, %v2287_v44  ;;  %v6853_v38 = vld [vmem:[#allocation2 + $0x558] sm:$0xff]  ;;  %v6859_v44 = vld [vmem:[#allocation2 + $0x550] sm:$0xff] }
 0x67e   :  { %2479 = vmatpush.msra.mxu3 %v6843_v51 }
 0x680   :  { %v2243_v46 = vpop.f32.mrf.mxu3  ;;  %2480 = vmatpush.msra.mxu3 %v6849_v36 }
 0x681   :  { %v6811_v28 = vadd.f32 %v2243_v46, %v2186_v42  ;;  %v6835_v46 = vld [vmem:[#allocation2 + $0x570] sm:$0xff]  ;;  %v6841_v42 = vld [vmem:[#allocation2 + $0x568] sm:$0xff] }
 0x682   :  { %2455 = vmatpush.msra.mxu2 %v6835_v46  ;;  %2481 = vmatpush.msra.mxu3 %v6855_v32 }
 0x683   :  { %v2289_v34 = vmul.f32 %v6811_v28, %v6811_v28  ;;  %v2278_v49 = vadd.f32 %v2277_v58, %v6811_v28  ;;  %v6861_v58 = vld [vmem:[#allocation2 + $0x4d0] sm:$0xff] }
 0x684   :  { %2456 = vmatpush.msra.mxu2 %v6841_v42  ;;  %2482 = vmatpush.msra.mxu3 %v6861_v58 }
 0x685   :  { %v2292_v52 = vadd.f32 %v2291_v47, %v2289_v34  ;;  %v6867_v34 = vld [vmem:[#allocation2 + $0x4c8] sm:$0xff]  ;;  %v6873_v47 = vld [vmem:[#allocation2 + $0x4c0] sm:$0xff] }
 0x686   :  { %2457 = vmatpush.msra.mxu2 %v6847_v63  ;;  %2483 = vmatpush.msra.mxu3 %v6867_v34 }
 0x688   :  { %v2246_v3 = vpop.f32.mrf.mxu3  ;;  %2458 = vmatpush.msra.mxu2 %v6853_v38  ;;  %2484 = vmatpush.msra.mxu3 %v6873_v47 }
 0x689   :  { %v6822_v6 = vadd.f32 %v2246_v3, %v2189_v56  ;;  %v6865_v56 = vld [vmem:[#allocation2 + $0x548] sm:$0xff] }
 0x68a   :  { %2459 = vmatpush.msra.mxu2 %v6859_v44 }
 0x68b   :  { %v2279_v7 = vadd.f32 %v2278_v49, %v6822_v6  ;;  %v2290_v43 = vmul.f32 %v6822_v6, %v6822_v6 }
 0x68c   :  { %2460 = vmatpush.msra.mxu2 %v6865_v56 }
 0x68d   :  { %v2280_v23 = vrot.slane %v2279_v7, 4  ;;  %v2293_v60 = vadd.f32 %v2292_v52, %v2290_v43  ;;  %v6879_v52 = vld [vmem:[#allocation2 + $0x4b8] sm:$0xff]  ;;  %v6883_v43 = vld [vmem:[#allocation2 + $0x530] sm:$0xff] }
 0x68e   :  { %2461 = vmatpush.msra.mxu2 %v6871_v61  ;;  %2485 = vmatpush.msra.mxu3 %v6879_v52 }
 0x68f   :  { %v2281_v10 = vadd.f32 %v2280_v23, %v2279_v7  ;;  %v2294_v29 = vrot.slane %v2293_v60, 4 }
 0x690   :  { %2462 = vmatpush.msra.mxu2 %v6877_v21  ;;  %2486 = vmatpush.msra.mxu3 %v6885_v37 }
 0x691   :  { %v2282_v50 = vrot.slane %v2281_v10, 2  ;;  %v2295_v31 = vadd.f32 %v2294_v29, %v2293_v60  ;;  %v6889_v60 = vld [vmem:[#allocation2 + $0x528] sm:$0xff]  ;;  %v6895_v29 = vld [vmem:[#allocation2 + $0x520] sm:$0xff] }
 0x692   :  { %2463 = vmatpush.msra.mxu2 %v6883_v43  ;;  %2487 = vmatpush.msra.mxu3 %v6891_v18 }
 0x693   :  { %v2283_v59 = vadd.f32 %v2282_v50, %v2281_v10  ;;  %v2296_v17 = vrot.slane %v2295_v31, 2  ;;  %v2254_v50 = vld [vmem:[#allocation5 + $0x4] sm:$0x3] }
 0x694   :  { %2464 = vmatpush.msra.mxu2 %v6889_v60  ;;  %2488 = vmatpush.msra.mxu3 %v6897_v11 }
 0x695   :  { %v2284_v57 = vrot.slane %v2283_v59, 1  ;;  %v2297_v30 = vadd.f32 %v2296_v17, %v2295_v31 }
 0x696   :  { %2465 = vmatpush.msra.mxu2 %v6895_v29 }
 0x697   :  { %v2285_v5 = vadd.f32 %v2284_v57, %v2283_v59  ;;  %v2298_v14 = vrot.slane %v2297_v30, 1  ;;  %v6903_v59 = vld [vmem:[#allocation2 + $0x498] sm:$0xff]  ;;  %v6907_v57 = vld [vmem:[#allocation2 + $0x510] sm:$0xff] }
 0x698   :  { %2466 = vmatpush.msra.mxu2 %v6901_v4  ;;  %2489 = vmatpush.msra.mxu3 %v6903_v59 }
 0x699   :  { %v2286_v2 = vadd.f32 %v2285_v5, %v2263_v45  ;;  %v2299_v12 = vadd.f32 %v2298_v14, %v2297_v30  ;;  %v6909_v30 = vld [vmem:[#allocation2 + $0x490] sm:$0xff]  ;;  %v6914_v5 = vld [vmem:[#allocation2 + $0x508] sm:$0xff] }
 0x69a   :  { %v6916_v14 = vld [vmem:[#allocation2 + $0x488] sm:$0xff]  ;;  %2467 = vmatpush.msra.mxu2 %v6907_v57  ;;  %2490 = vmatpush.msra.mxu3 %v6909_v30 }
 0x69b   :  { %v2300_v27 = vadd.f32 %v2299_v12, %v2276_v26  ;;  %v6827_v41 = vmul.f32 0.015625, %v2286_v2  ;;  %v6920_v12 = vld [vmem:[#allocation2 + $0x500] sm:$0xff] }
 0x69c   :  { %2468 = vmatpush.msra.mxu2 %v6914_v5  ;;  %2491 = vmatpush.msra.mxu3 %v6916_v14 }
 0x69d   :  { %v2302_v1 = vmul.f32 0.015625, %v2300_v27  ;;  %v2303_v0 = vmul.f32 %v6827_v41, %v6827_v41  ;;  %v6922_v27 = vld [vmem:[#allocation2 + $0x480] sm:$0xff] }
 0x69e   :  { %2469 = vmatpush.msra.mxu2 %v6920_v12  ;;  %2492 = vmatpush.msra.mxu3 %v6922_v27 }
 0x69f   :  { %v2304_v24 = vsub.f32 %v2302_v1, %v2303_v0 }
 0x6a1   :  { %v2305_v20 = vmax.f32 %v2304_v24, 0.0 }
 0x6a3   :  { %v2306_v53 = vadd.f32 1e-05, %v2305_v20 }
 0x6a5   :  { %4872 = vrsqrt.f32 %v2306_v53  ;;  %vm2313_vm8 = vweird.f32 %v2306_v53 }
 0x6ab   :  { %v4873_v3 = vpop.eup %4872 }
 0x6ac   :  { %v2308_v49 = vmul.f32 %v4873_v3, %v2306_v53  ;;  %vm2314_vm7 = vweird.f32 %v4873_v3 }
 0x6ad   :  { %vm2315_vm9 = vmor %vm2313_vm8, %vm2314_vm7  ;;  %vm2789_vm8 = vcmask 130048  }
 0x6ae   :  { %v2309_v7 = vmul.f32 %v4873_v3, %v2308_v49 }
 0x6b0   :  { %v2310_v23 = vmul.f32 0.5, %v2309_v7 }
 0x6b2   :  { %v2311_v10 = vsub.f32 1.5, %v2310_v23 }
 0x6b4   :  { %v2312_v31 = vmul.f32 %v4873_v3, %v2311_v10 }
 0x6b6   :  { %v2316_v17 = vsel %vm2315_vm9, %v4873_v3, %v2312_v31 }
 0x6b7   :  { %v2317_v54 = vmul.f32 %v2316_v17, %v2254_v50 }
 0x6b9   :  { %v2318_v45 = vmul.f32 %v2317_v54, %v6827_v41  ;;  %v2323_v26 = vperm.slane %v2317_v54, 0 }
 0x6bb   :  { %v2320_v2 = vrot.slane %v2318_v45, 7  ;;  %v2348_v41 = vmul.f32 %v2323_v26, %v6822_v6  ;;  %v2327_v24 = vmul.f32 %v2323_v26, %v6795_v15  ;;  %v2326_v20 = vmul.f32 %v2323_v26, %v6791_v35 }
 0x6bc   :  { %v2347_v53 = vmul.f32 %v2323_v26, %v6811_v28  ;;  %v2325_v3 = vmul.f32 %v2323_v26, %v6787_v40  ;;  %v2346_v49 = vmul.f32 %v2323_v26, %v6807_v22  ;;  %v2324_v7 = vmul.f32 %v2323_v26, %v6789_v16 }
 0x6bd   :  { %v2322_v1 = vsub.f32 %v2254_v50, %v2320_v2  ;;  %v2345_v45 = vmul.f32 %v2323_v26, %v6809_v48 }
 0x6bf   :  { %v2328_v0 = vperm.slane %v2322_v1, 1 }
 0x6c1   :  { %v2332_v23 = vadd.f32 %v2328_v0, %v2327_v24  ;;  %v2352_v10 = vadd.f32 %v2348_v41, %v2328_v0  ;;  %v2331_v6 = vadd.f32 %v2328_v0, %v2326_v20  ;;  %v2351_v50 = vadd.f32 %v2347_v53, %v2328_v0 }
 0x6c2   :  { %v2330_v31 = vadd.f32 %v2328_v0, %v2325_v3  ;;  %v2350_v17 = vadd.f32 %v2346_v49, %v2328_v0  ;;  %v2329_v54 = vadd.f32 %v2328_v0, %v2324_v7  ;;  %v2349_v2 = vadd.f32 %v2345_v45, %v2328_v0 }
 0x6c3   :  { %vm2336_vm10 = vcmp.ge.f32.partialorder %v2332_v23, 0.0  ;;  %v2340_v15 = vmul.f32 0.01, %v2332_v23  ;;  %vm2356_vm15 = vcmp.ge.f32.partialorder %v2352_v10, 0.0  ;;  %v2360_v35 = vmul.f32 0.01, %v2352_v10 }
 0x6c4   :  { %vm2335_vm11 = vcmp.ge.f32.partialorder %v2331_v6, 0.0  ;;  %v2339_v28 = vmul.f32 0.01, %v2331_v6  ;;  %v2359_v40 = vmul.f32 0.01, %v2351_v50  ;;  %vm2355_vm12 = vcmp.ge.f32.partialorder %v2351_v50, 0.0 }
 0x6c5   :  { %v2344_v22 = vsel %vm2336_vm10, %v2332_v23, %v2340_v15  ;;  %v6936_v1 = vsel %vm2356_vm15, %v2352_v10, %v2360_v35  ;;  %v2338_v16 = vmul.f32 0.01, %v2330_v31  ;;  %vm2334_vm13 = vcmp.ge.f32.partialorder %v2330_v31, 0.0 }
 0x6c6   :  { %2382 = vmatpush.msrb.mxu0 %v2344_v22  ;;  %2426 = vmatpush.msra.mxu1 %v2344_v22  ;;  %v2358_v41 = vmul.f32 0.01, %v2350_v17  ;;  %v2343_v48 = vsel %vm2335_vm11, %v2331_v6, %v2339_v28  ;;  %vm2354_vm0 = vcmp.ge.f32.partialorder %v2350_v17, 0.0  ;;  %v2337_v26 = vmul.f32 0.01, %v2329_v54 }
 0x6c7   :  { %2581 = vmatpush.msrb.mxu2 %v6936_v1  ;;  %2604 = vmatpush.msrb.mxu3 %v6936_v1  ;;  %v6940_v24 = vsel %vm2355_vm12, %v2351_v50, %v2359_v40  ;;  %vm2333_vm1 = vcmp.ge.f32.partialorder %v2329_v54, 0.0  ;;  %v2357_v0 = vmul.f32 0.01, %v2349_v2  ;;  %v2342_v20 = vsel %vm2334_vm13, %v2330_v31, %v2338_v16 }
 0x6c8   :  { %2383 = vmatpush.msrb.mxu0 %v2343_v48  ;;  %2427 = vmatpush.msra.mxu1 %v2343_v48  ;;  %vm2353_vm2 = vcmp.ge.f32.partialorder %v2349_v2, 0.0  ;;  %v6944_v53 = vsel %vm2354_vm0, %v2350_v17, %v2358_v41  ;;  %v2341_v3 = vsel %vm2333_vm1, %v2329_v54, %v2337_v26  ;;  %vm3153_vm1 = vcmask 64512  }
 0x6c9   :  { %2582 = vmatpush.msrb.mxu2 %v6940_v24  ;;  %2605 = vmatpush.msrb.mxu3 %v6940_v24  ;;  %v6948_v49 = vsel %vm2353_vm2, %v2349_v2, %v2357_v0  ;;  %vm3455_vm2 = vcmask 1043456  }
 0x6ca   :  { %2384 = vmatpush.msrb.mxu0 %v2342_v20  ;;  %2428 = vmatpush.msra.mxu1 %v2342_v20 }
 0x6cb   :  { %2583 = vmatpush.msrb.mxu2 %v6944_v53  ;;  %2606 = vmatpush.msrb.mxu3 %v6944_v53 }
 0x6cc   :  { %2385 = vmatpush.msrb.mxu0 %v2341_v3  ;;  %2429 = vmatpush.msra.mxu1 %v2341_v3 }
 0x6cd   :  { %2584 = vmatpush.msrb.mxu2 %v6948_v49  ;;  %2607 = vmatpush.msrb.mxu3 %v6948_v49 }
 0x6ce   :  { %4735 = vmatmul.msk.f32.vlgmr.msrb.gmra.mxu0 %vm2365_vm14, %v6611_v39  ;;  %4737 = vmatmul.msk.f32.vlgmr.msra.gmra.mxu1 %vm2365_vm14, %v6617_v9 }
 0x6cf   :  { %2516 = vmatpush.msra.mxu0 %v2344_v22 }
 0x6d1   :  { %2517 = vmatpush.msra.mxu0 %v2343_v48 }
 0x6d3   :  { %2518 = vmatpush.msra.mxu0 %v2342_v20 }
 0x6d5   :  { %2519 = vmatpush.msra.mxu0 %v2341_v3 }
 0x6d6   :  { %4736 = vmatmul.msk.f32.gmra.mxu0 %vm2365_vm14, %v6636_v33  ;;  %4738 = vmatmul.msk.f32.gmra.mxu1 %vm2365_vm14, %v6642_v55 }
 0x6d7   :  { %2615 = vmatpush.msrb.mxu0 %v6831_v25  ;;  %v2543_v25 = vld [vmem:[#allocation2 + $0x5f8] sm:$0xff] }
 0x6d8   :  { %2544 = vmatpush.msrb.mxu1 %v2543_v25 }
 0x6d9   :  { %2616 = vmatpush.msrb.mxu0 %v6835_v46  ;;  %v2542_v46 = vld [vmem:[#allocation2 + $0x5f0] sm:$0xff] }
 0x6da   :  { %2545 = vmatpush.msrb.mxu1 %v2542_v46 }
 0x6db   :  { %2617 = vmatpush.msrb.mxu0 %v6841_v42  ;;  %v2541_v42 = vld [vmem:[#allocation2 + $0x5e8] sm:$0xff] }
 0x6dc   :  { %2546 = vmatpush.msrb.mxu1 %v2541_v42 }
 0x6dd   :  { %2618 = vmatpush.msrb.mxu0 %v6847_v63  ;;  %v2540_v63 = vld [vmem:[#allocation2 + $0x5e0] sm:$0xff] }
 0x6de   :  { %4739 = vmatmul.msk.f32.vlgmr.msra.gmra.mxu0 %vm2365_vm14, %v6715_v13  ;;  %2547 = vmatpush.msrb.mxu1 %v2540_v63 }
 0x6df   :  { %2619 = vmatpush.msrb.mxu0 %v6853_v38  ;;  %v2539_v38 = vld [vmem:[#allocation2 + $0x5d8] sm:$0xff] }
 0x6e0   :  { %2548 = vmatpush.msrb.mxu1 %v2539_v38 }
 0x6e1   :  { %2620 = vmatpush.msrb.mxu0 %v6859_v44  ;;  %v2538_v44 = vld [vmem:[#allocation2 + $0x5d0] sm:$0xff] }
 0x6e2   :  { %2549 = vmatpush.msrb.mxu1 %v2538_v44 }
 0x6e3   :  { %2621 = vmatpush.msrb.mxu0 %v6865_v56  ;;  %v2537_v56 = vld [vmem:[#allocation2 + $0x5c8] sm:$0xff] }
 0x6e4   :  { %2550 = vmatpush.msrb.mxu1 %v2537_v56 }
 0x6e5   :  { %2622 = vmatpush.msrb.mxu0 %v6871_v61  ;;  %v2536_v61 = vld [vmem:[#allocation2 + $0x5c0] sm:$0xff] }
 0x6e6   :  { %4740 = vmatmul.msk.f32.gmra.mxu0 %vm2365_vm14, %v6729_v62  ;;  %2551 = vmatpush.msrb.mxu1 %v2536_v61 }
 0x6e7   :  { %2623 = vmatpush.msrb.mxu0 %v6877_v21  ;;  %v2535_v21 = vld [vmem:[#allocation2 + $0x5b8] sm:$0xff] }
 0x6e8   :  { %2552 = vmatpush.msrb.mxu1 %v2535_v21 }
 0x6e9   :  { %2624 = vmatpush.msrb.mxu0 %v6883_v43  ;;  %v2534_v43 = vld [vmem:[#allocation2 + $0x5b0] sm:$0xff] }
 0x6ea   :  { %2553 = vmatpush.msrb.mxu1 %v2534_v43 }
 0x6eb   :  { %2625 = vmatpush.msrb.mxu0 %v6889_v60  ;;  %v2533_v60 = vld [vmem:[#allocation2 + $0x5a8] sm:$0xff] }
 0x6ec   :  { %2554 = vmatpush.msrb.mxu1 %v2533_v60 }
 0x6ed   :  { %2626 = vmatpush.msrb.mxu0 %v6895_v29  ;;  %v2532_v29 = vld [vmem:[#allocation2 + $0x5a0] sm:$0xff] }
 0x6ee   :  { %2555 = vmatpush.msrb.mxu1 %v2532_v29 }
 0x6ef   :  { %2627 = vmatpush.msrb.mxu0 %v6901_v4  ;;  %v2531_v4 = vld [vmem:[#allocation2 + $0x598] sm:$0xff] }
 0x6f0   :  { %2556 = vmatpush.msrb.mxu1 %v2531_v4 }
 0x6f1   :  { %2628 = vmatpush.msrb.mxu0 %v6907_v57  ;;  %v2530_v57 = vld [vmem:[#allocation2 + $0x590] sm:$0xff] }
 0x6f2   :  { %2557 = vmatpush.msrb.mxu1 %v2530_v57 }
 0x6f3   :  { %2629 = vmatpush.msrb.mxu0 %v6914_v5  ;;  %v2529_v5 = vld [vmem:[#allocation2 + $0x588] sm:$0xff] }
 0x6f4   :  { %2558 = vmatpush.msrb.mxu1 %v2529_v5 }
 0x6f5   :  { %2630 = vmatpush.msrb.mxu0 %v6920_v12  ;;  %v2528_v12 = vld [vmem:[#allocation2 + $0x580] sm:$0xff] }
 0x6f6   :  { %2559 = vmatpush.msrb.mxu1 %v2528_v12 }
 0x6f8   :  { %2684 = vmatpush.msra.mxu1 %v2543_v25 }
 0x6fa   :  { %2685 = vmatpush.msra.mxu1 %v2542_v46 }
 0x6fc   :  { %2686 = vmatpush.msra.mxu1 %v2541_v42 }
 0x6fe   :  { %2687 = vmatpush.msra.mxu1 %v2540_v63 }
 0x700   :  { %2688 = vmatpush.msra.mxu1 %v2539_v38 }
 0x702   :  { %2689 = vmatpush.msra.mxu1 %v2538_v44 }
 0x704   :  { %2690 = vmatpush.msra.mxu1 %v2537_v56 }
 0x706   :  { %2691 = vmatpush.msra.mxu1 %v2536_v61 }
 0x708   :  { %2692 = vmatpush.msra.mxu1 %v2535_v21 }
 0x70a   :  { %2693 = vmatpush.msra.mxu1 %v2534_v43 }
 0x70c   :  { %2694 = vmatpush.msra.mxu1 %v2533_v60 }
 0x70e   :  { %2695 = vmatpush.msra.mxu1 %v2532_v29 }
 0x710   :  { %2696 = vmatpush.msra.mxu1 %v2531_v4 }
 0x712   :  { %2697 = vmatpush.msra.mxu1 %v2530_v57 }
 0x714   :  { %2698 = vmatpush.msra.mxu1 %v2529_v5 }
 0x716   :  { %2699 = vmatpush.msra.mxu1 %v2528_v12 }
 0x74b   :  { %v2387_v7 = vpop.f32.mrf.mxu0  ;;  %v2431_v23 = vpop.f32.mrf.mxu1 }
 0x74c   :  { %2493 = vmatmul.f32.vlgmr.msra.gmra.mxu3 %v2387_v7  ;;  %2470 = vmatmul.f32.vlgmr.msra.gmra.mxu2 %v2431_v23 }
 0x74d   :  { %2673 = vmatpush.msra.mxu3 %v6936_v1  ;;  %2638 = vmatpush.msra.mxu2 %v6833_v19 }
 0x74f   :  { %2674 = vmatpush.msra.mxu3 %v6940_v24  ;;  %2639 = vmatpush.msra.mxu2 %v6839_v8 }
 0x751   :  { %2675 = vmatpush.msra.mxu3 %v6944_v53  ;;  %2640 = vmatpush.msra.mxu2 %v6843_v51 }
 0x753   :  { %2676 = vmatpush.msra.mxu3 %v6948_v49  ;;  %v2390_v10 = vpop.f32.mrf.mxu0  ;;  %v2434_v6 = vpop.f32.mrf.mxu1  ;;  %2641 = vmatpush.msra.mxu2 %v6849_v36 }
 0x754   :  { %2496 = vmatmul.f32.gmra.mxu3 %v2390_v10  ;;  %2473 = vmatmul.f32.gmra.mxu2 %v2434_v6 }
 0x755   :  { %2642 = vmatpush.msra.mxu2 %v6855_v32 }
 0x757   :  { %2643 = vmatpush.msra.mxu2 %v6861_v58 }
 0x759   :  { %2644 = vmatpush.msra.mxu2 %v6867_v34 }
 0x75b   :  { %v2521_v19 = vpop.f32.mrf.mxu0  ;;  %2645 = vmatpush.msra.mxu2 %v6873_v47 }
 0x75c   :  { %4743 = vmatmul.msk.f32.vlgmr.msrb.gmra.mxu3 %vm2365_vm14, %v6617_v9  ;;  %4741 = vmatmul.msk.f32.vlgmr.msrb.gmra.mxu2 %vm2365_vm14, %v6611_v39 }
 0x75d   :  { %2560 = vmatmul.f32.vlgmr.msrb.gmra.mxu1 %v2521_v19  ;;  %2646 = vmatpush.msra.mxu2 %v6879_v52 }
 0x75f   :  { %2647 = vmatpush.msra.mxu2 %v6885_v37 }
 0x761   :  { %2648 = vmatpush.msra.mxu2 %v6891_v18 }
 0x763   :  { %v2524_v8 = vpop.f32.mrf.mxu0  ;;  %2649 = vmatpush.msra.mxu2 %v6897_v11 }
 0x764   :  { %4744 = vmatmul.msk.f32.gmra.mxu3 %vm2365_vm14, %v6642_v55  ;;  %4742 = vmatmul.msk.f32.gmra.mxu2 %vm2365_vm14, %v6636_v33 }
 0x765   :  { %2563 = vmatmul.f32.gmra.mxu1 %v2524_v8  ;;  %2650 = vmatpush.msra.mxu2 %v6903_v59 }
 0x767   :  { %2651 = vmatpush.msra.mxu2 %v6909_v30 }
 0x769   :  { %2652 = vmatpush.msra.mxu2 %v6916_v14 }
 0x76b   :  { %2653 = vmatpush.msra.mxu2 %v6922_v27 }
 0x76c   :  { %4745 = vmatmul.msk.f32.vlgmr.msra.gmra.mxu3 %vm2365_vm14, %v6715_v13 }
 0x774   :  { %4746 = vmatmul.msk.f32.gmra.mxu3 %vm2365_vm14, %v6729_v62 }
 0x7cf   :  { %v2494_v33 = vpop.f32.mrf.mxu3  ;;  %v2471_v55 = vpop.f32.mrf.mxu2 }
 0x7d0   :  { %v2495_v34 = vadd.f32 %v2494_v33, %v2471_v55 }
 0x7d7   :  { %v2497_v51 = vpop.f32.mrf.mxu3  ;;  %v2474_v36 = vpop.f32.mrf.mxu2 }
 0x7d8   :  { %v2498_v32 = vadd.f32 %v2497_v51, %v2474_v36 }
 0x7da   :  { %v2561_v58 = vpop.f32.mrf.mxu1 }
 0x7db   :  { %v7012_v37 = vadd.f32 %v2561_v58, %v2495_v34 }
 0x7dd   :  { %v2718_v59 = vmul.f32 %v7012_v37, %v7012_v37 }
 0x7df   :  { %v2609_v47 = vpop.f32.mrf.mxu3  ;;  %v2586_v52 = vpop.f32.mrf.mxu2 }
 0x7e0   :  { %2654 = vmatmul.f32.vlgmr.msra.gmra.mxu2 %v2586_v52  ;;  %2631 = vmatmul.f32.vlgmr.msrb.gmra.mxu0 %v2609_v47 }
 0x7e2   :  { %v2564_v18 = vpop.f32.mrf.mxu1 }
 0x7e3   :  { %v7014_v11 = vadd.f32 %v2564_v18, %v2498_v32 }
 0x7e5   :  { %v2711_v62 = vadd.f32 %v7014_v11, %v7012_v37  ;;  %v2719_v30 = vmul.f32 %v7014_v11, %v7014_v11 }
 0x7e7   :  { %v2612_v14 = vpop.f32.mrf.mxu3  ;;  %v2720_v27 = vadd.f32 %v2719_v30, %v2718_v59  ;;  %v2589_v50 = vpop.f32.mrf.mxu2  ;;  %v2712_v35 = vrot.slane %v2711_v62, 4  ;;  %v2710_v59 = vld [vmem:[#allocation5 + $0x6] sm:$0x3] }
 0x7e8   :  { %2657 = vmatmul.f32.gmra.mxu2 %v2589_v50  ;;  %2634 = vmatmul.f32.gmra.mxu0 %v2612_v14 }
 0x7e9   :  { %v2721_v40 = vrot.slane %v2720_v27, 4  ;;  %v2713_v1 = vadd.f32 %v2712_v35, %v2711_v62 }
 0x7eb   :  { %v2722_v26 = vadd.f32 %v2721_v40, %v2720_v27  ;;  %v2714_v0 = vrot.slane %v2713_v1, 2 }
 0x7ed   :  { %v2723_v49 = vrot.slane %v2722_v26, 2  ;;  %v2715_v42 = vadd.f32 %v2714_v0, %v2713_v1 }
 0x7ef   :  { %v2678_v31 = vpop.f32.mrf.mxu3  ;;  %v2724_v44 = vadd.f32 %v2723_v49, %v2722_v26  ;;  %v2716_v21 = vrot.slane %v2715_v42, 1 }
 0x7f0   :  { %2700 = vmatmul.f32.vlgmr.msra.gmra.mxu1 %v2678_v31 }
 0x7f1   :  { %v2725_v29 = vrot.slane %v2724_v44, 1  ;;  %v2717_v5 = vadd.f32 %v2716_v21, %v2715_v42  ;;  %v7043_v42 = vld [vmem:[#allocation2 + $0x660] sm:$0xff]  ;;  %v7063_v21 = vld [vmem:[#allocation2 + $0x648] sm:$0xff] }
 0x7f3   :  { %v2726_v23 = vadd.f32 %v2725_v29, %v2724_v44  ;;  %v7053_v44 = vld [vmem:[#allocation2 + $0x6d8] sm:$0xff]  ;;  %v7073_v29 = vld [vmem:[#allocation2 + $0x6c0] sm:$0xff] }
 0x7f7   :  { %v2681_v17 = vpop.f32.mrf.mxu3 }
 0x7f8   :  { %2703 = vmatmul.f32.gmra.mxu1 %v2681_v17 }
 0x85d   :  { %v2632_v45 = vpop.f32.mrf.mxu0 }
 0x863   :  { %v2655_v54 = vpop.f32.mrf.mxu2 }
 0x864   :  { %v2656_v2 = vadd.f32 %v2655_v54, %v2632_v45 }
 0x865   :  { %v2635_v22 = vpop.f32.mrf.mxu0 }
 0x86b   :  { %v2658_v28 = vpop.f32.mrf.mxu2 }
 0x86c   :  { %v2659_v41 = vadd.f32 %v2658_v28, %v2635_v22 }
 0x86d   :  { %v2701_v15 = vpop.f32.mrf.mxu1 }
 0x86e   :  { %v2707_v16 = vadd.f32 %v2701_v15, %v2656_v2 }
 0x870   :  { %v2735_v20 = vmul.f32 %v2707_v16, %v2707_v16 }
 0x875   :  { %v2704_v48 = vpop.f32.mrf.mxu1 }
 0x876   :  { %v2708_v24 = vadd.f32 %v2704_v48, %v2659_v41 }
 0x878   :  { %v2727_v53 = vadd.f32 %v2708_v24, %v2707_v16  ;;  %v2736_v3 = vmul.f32 %v2708_v24, %v2708_v24 }
 0x87a   :  { %v2728_v25 = vrot.slane %v2727_v53, 4  ;;  %v2737_v46 = vadd.f32 %v2736_v3, %v2735_v20  ;;  %v7030_v20 = vld [vmem:[#allocation2 + $0x670] sm:$0xff] }
 0x87b   :  { %v7035_v3 = vld [vmem:[#allocation2 + $0x6f0] sm:$0xff] }
 0x87c   :  { %v2729_v63 = vadd.f32 %v2728_v25, %v2727_v53  ;;  %v2738_v38 = vrot.slane %v2737_v46, 4  ;;  %v7033_v53 = vld [vmem:[#allocation2 + $0x6f8] sm:$0xff]  ;;  %v7037_v25 = vld [vmem:[#allocation2 + $0x668] sm:$0xff] }
 0x87d   :  { %2868 = vmatpush.msra.mxu0 %v7033_v53 }
 0x87e   :  { %v2730_v56 = vrot.slane %v2729_v63, 2  ;;  %v2739_v61 = vadd.f32 %v2738_v38, %v2737_v46  ;;  %v7041_v46 = vld [vmem:[#allocation2 + $0x6e8] sm:$0xff]  ;;  %v7049_v38 = vld [vmem:[#allocation2 + $0x658] sm:$0xff] }
 0x87f   :  { %2869 = vmatpush.msra.mxu0 %v7035_v3 }
 0x880   :  { %v2731_v43 = vadd.f32 %v2730_v56, %v2729_v63  ;;  %v2740_v60 = vrot.slane %v2739_v61, 2  ;;  %v7047_v63 = vld [vmem:[#allocation2 + $0x6e0] sm:$0xff]  ;;  %v7057_v56 = vld [vmem:[#allocation2 + $0x650] sm:$0xff] }
 0x881   :  { %2870 = vmatpush.msra.mxu0 %v7041_v46 }
 0x882   :  { %v2732_v4 = vrot.slane %v2731_v43, 1  ;;  %v2741_v57 = vadd.f32 %v2740_v60, %v2739_v61  ;;  %v7061_v61 = vld [vmem:[#allocation2 + $0x6d0] sm:$0xff]  ;;  %v7069_v60 = vld [vmem:[#allocation2 + $0x640] sm:$0xff] }
 0x883   :  { %2871 = vmatpush.msra.mxu0 %v7047_v63 }
 0x884   :  { %v2733_v12 = vadd.f32 %v2732_v4, %v2731_v43  ;;  %v2742_v7 = vrot.slane %v2741_v57, 1  ;;  %v7067_v43 = vld [vmem:[#allocation2 + $0x6c8] sm:$0xff]  ;;  %v7075_v4 = vld [vmem:[#allocation2 + $0x638] sm:$0xff] }
 0x885   :  { %2872 = vmatpush.msra.mxu0 %v7053_v44 }
 0x886   :  { %v2734_v10 = vadd.f32 %v2733_v12, %v2717_v5  ;;  %v2743_v6 = vadd.f32 %v2742_v7, %v2741_v57  ;;  %v7079_v57 = vld [vmem:[#allocation2 + $0x6b8] sm:$0xff]  ;;  %v7083_v5 = vld [vmem:[#allocation2 + $0x630] sm:$0xff]  ;;  %v7087_v12 = vld [vmem:[#allocation2 + $0x628] sm:$0xff] }
 0x887   :  { %2873 = vmatpush.msra.mxu0 %v7061_v61  ;;  %v7091_v7 = vld [vmem:[#allocation2 + $0x620] sm:$0xff] }
 0x888   :  { %v2744_v19 = vadd.f32 %v2743_v6, %v2726_v23  ;;  %v2745_v8 = vmul.f32 0.03125, %v2734_v10  ;;  %v7099_v23 = vld [vmem:[#allocation2 + $0x6b0] sm:$0xff]  ;;  %v7101_v10 = vld [vmem:[#allocation2 + $0x618] sm:$0xff]  ;;  %v7103_v6 = vld [vmem:[#allocation2 + $0x6a8] sm:$0xff] }
 0x889   :  { %2874 = vmatpush.msra.mxu0 %v7067_v43 }
 0x88a   :  { %v2746_v33 = vmul.f32 0.03125, %v2744_v19  ;;  %v2747_v55 = vmul.f32 %v2745_v8, %v2745_v8  ;;  %v7107_v19 = vld [vmem:[#allocation2 + $0x610] sm:$0xff] }
 0x88b   :  { %2875 = vmatpush.msra.mxu0 %v7073_v29 }
 0x88c   :  { %v2748_v51 = vsub.f32 %v2746_v33, %v2747_v55  ;;  %v7111_v33 = vld [vmem:[#allocation2 + $0x608] sm:$0xff]  ;;  %v7115_v55 = vld [vmem:[#allocation2 + $0x698] sm:$0xff] }
 0x88d   :  { %2876 = vmatpush.msra.mxu0 %v7079_v57 }
 0x88e   :  { %v2749_v36 = vmax.f32 %v2748_v51, 0.0  ;;  %v7117_v51 = vld [vmem:[#allocation2 + $0x600] sm:$0xff] }
 0x88f   :  { %2877 = vmatpush.msra.mxu0 %v7099_v23 }
 0x890   :  { %v2750_v32 = vadd.f32 1e-05, %v2749_v36  ;;  %v7124_v36 = vld [vmem:[#allocation2 + $0x690] sm:$0xff] }
 0x891   :  { %2878 = vmatpush.msra.mxu0 %v7103_v6 }
 0x892   :  { %4874 = vrsqrt.f32 %v2750_v32  ;;  %vm2757_vm4 = vweird.f32 %v2750_v32 }
 0x898   :  { %v4875_v58 = vpop.eup %4874 }
 0x899   :  { %v2752_v34 = vmul.f32 %v4875_v58, %v2750_v32  ;;  %vm2758_vm3 = vweird.f32 %v4875_v58  ;;  %v2946_v32 = vld [vmem:[#allocation2 + $0x778] sm:$0xff] }
 0x89a   :  { %vm2759_vm5 = vmor %vm2757_vm4, %vm2758_vm3  ;;  %2947 = vmatpush.msrb.mxu1 %v2946_v32 }
 0x89b   :  { %v2753_v47 = vmul.f32 %v4875_v58, %v2752_v34  ;;  %v2945_v34 = vld [vmem:[#allocation2 + $0x770] sm:$0xff] }
 0x89c   :  { %2948 = vmatpush.msrb.mxu1 %v2945_v34 }
 0x89d   :  { %v2754_v52 = vmul.f32 0.5, %v2753_v47  ;;  %v7130_v47 = vld [vmem:[#allocation2 + $0x680] sm:$0xff] }
 0x89f   :  { %v2755_v18 = vsub.f32 1.5, %v2754_v52  ;;  %v2944_v52 = vld [vmem:[#allocation2 + $0x768] sm:$0xff] }
 0x8a0   :  { %2949 = vmatpush.msrb.mxu1 %v2944_v52 }
 0x8a1   :  { %v2756_v62 = vmul.f32 %v4875_v58, %v2755_v18  ;;  %v2943_v18 = vld [vmem:[#allocation2 + $0x760] sm:$0xff] }
 0x8a2   :  { %2950 = vmatpush.msrb.mxu1 %v2943_v18 }
 0x8a3   :  { %v2760_v30 = vsel %vm2759_vm5, %v4875_v58, %v2756_v62  ;;  %v7126_v58 = vld [vmem:[#allocation2 + $0x688] sm:$0xff]  ;;  %v2941_v62 = vld [vmem:[#allocation2 + $0x750] sm:$0xff] }
 0x8a4   :  { %v2761_v14 = vmul.f32 %v2760_v30, %v2710_v59  ;;  %v2940_v30 = vld [vmem:[#allocation2 + $0x748] sm:$0xff] }
 0x8a6   :  { %v2762_v27 = vmul.f32 %v2761_v14, %v2745_v8  ;;  %v2767_v50 = vperm.slane %v2761_v14, 0  ;;  %v7109_v8 = vld [vmem:[#allocation2 + $0x6a0] sm:$0xff] }
 0x8a7   :  { %2879 = vmatpush.msra.mxu0 %v7109_v8  ;;  %v2939_v14 = vld [vmem:[#allocation2 + $0x740] sm:$0xff] }
 0x8a8   :  { %v2764_v31 = vrot.slane %v2762_v27, 7  ;;  %v2780_v17 = vmul.f32 %v2767_v50, %v2708_v24  ;;  %v2769_v54 = vmul.f32 %v2767_v50, %v7014_v11  ;;  %v2768_v45 = vmul.f32 %v2767_v50, %v7012_v37  ;;  %v7028_v24 = vld [vmem:[#allocation2 + $0x678] sm:$0xff] }
 0x8a9   :  { %v2779_v15 = vmul.f32 %v2767_v50, %v2707_v16  ;;  %2888 = vmatpush.msrb.mxu2 %v7028_v24  ;;  %2880 = vmatpush.msra.mxu0 %v7115_v55  ;;  %v2938_v27 = vld [vmem:[#allocation2 + $0x738] sm:$0xff]  ;;  %v2937_v50 = vld [vmem:[#allocation2 + $0x730] sm:$0xff] }
 0x8aa   :  { %v2766_v35 = vsub.f32 %v2710_v59, %v2764_v31  ;;  %v2942_v59 = vld [vmem:[#allocation2 + $0x758] sm:$0xff]  ;;  %v2936_v31 = vld [vmem:[#allocation2 + $0x728] sm:$0xff] }
 0x8ab   :  { %2889 = vmatpush.msrb.mxu2 %v7030_v20  ;;  %2881 = vmatpush.msra.mxu0 %v7124_v36 }
 0x8ac   :  { %v2770_v28 = vperm.slane %v2766_v35, 1  ;;  %2951 = vmatpush.msrb.mxu1 %v2942_v59  ;;  %v2932_v35 = vld [vmem:[#allocation2 + $0x708] sm:$0xff] }
 0x8ad   :  { %2890 = vmatpush.msrb.mxu2 %v7037_v25  ;;  %2882 = vmatpush.msra.mxu0 %v7126_v58 }
 0x8ae   :  { %v2782_v40 = vadd.f32 %v2780_v17, %v2770_v28  ;;  %v2772_v2 = vadd.f32 %v2770_v28, %v2769_v54  ;;  %v2771_v22 = vadd.f32 %v2770_v28, %v2768_v45  ;;  %v2781_v1 = vadd.f32 %v2779_v15, %v2770_v28  ;;  %2952 = vmatpush.msrb.mxu1 %v2941_v62  ;;  %v2935_v54 = vld [vmem:[#allocation2 + $0x720] sm:$0xff]  ;;  %v2934_v45 = vld [vmem:[#allocation2 + $0x718] sm:$0xff]  ;;  %v2933_v15 = vld [vmem:[#allocation2 + $0x710] sm:$0xff] }
 0x8af   :  { %2891 = vmatpush.msrb.mxu2 %v7043_v42  ;;  %2883 = vmatpush.msra.mxu0 %v7130_v47 }
 0x8b0   :  { %vm2774_vm6 = vcmp.ge.f32.partialorder %v2772_v2, 0.0  ;;  %v2776_v41 = vmul.f32 0.01, %v2772_v2  ;;  %v2775_v48 = vmul.f32 0.01, %v2771_v22  ;;  %vm2773_vm7 = vcmp.ge.f32.partialorder %v2771_v22, 0.0  ;;  %2953 = vmatpush.msrb.mxu1 %v2940_v30 }
 0x8b1   :  { %v2786_v37 = vmul.f32 0.01, %v2782_v40  ;;  %vm2784_vm9 = vcmp.ge.f32.partialorder %v2782_v40, 0.0  ;;  %v2785_v11 = vmul.f32 0.01, %v2781_v1  ;;  %vm2783_vm10 = vcmp.ge.f32.partialorder %v2781_v1, 0.0  ;;  %2892 = vmatpush.msrb.mxu2 %v7049_v38  ;;  %3008 = vmatpush.msrb.mxu0 %v7033_v53 }
 0x8b2   :  { %v2778_v26 = vsel %vm2774_vm6, %v2772_v2, %v2776_v41  ;;  %v2777_v0 = vsel %vm2773_vm7, %v2771_v22, %v2775_v48  ;;  %2954 = vmatpush.msrb.mxu1 %v2939_v14  ;;  %vm3522_vm7 = vcmask 31744  }
 0x8b3   :  { %2806 = vmatpush.msrb.mxu3 %v2778_v26  ;;  %v2788_v16 = vsel %vm2784_vm9, %v2782_v40, %v2786_v37  ;;  %v2787_v49 = vsel %vm2783_vm10, %v2781_v1, %v2785_v11  ;;  %2893 = vmatpush.msrb.mxu2 %v7057_v56  ;;  %v2931_v40 = vld [vmem:[#allocation2 + $0x700] sm:$0xff] }
 0x8b4   :  { %3009 = vmatpush.msrb.mxu0 %v7035_v3  ;;  %2955 = vmatpush.msrb.mxu1 %v2938_v27 }
 0x8b5   :  { %2807 = vmatpush.msrb.mxu3 %v2777_v0  ;;  %2894 = vmatpush.msrb.mxu2 %v7063_v21 }
 0x8b6   :  { %4747 = vmatmul.msk.f32.vlgmr.msrb.gmra.mxu3 %vm2789_vm8, %v6611_v39  ;;  %3010 = vmatpush.msrb.mxu0 %v7041_v46 }
 0x8b7   :  { %2845 = vmatpush.msra.mxu3 %v2778_v26  ;;  %2895 = vmatpush.msrb.mxu2 %v7069_v60 }
 0x8b8   :  { %3011 = vmatpush.msrb.mxu0 %v7047_v63  ;;  %2956 = vmatpush.msrb.mxu1 %v2937_v50 }
 0x8b9   :  { %2846 = vmatpush.msra.mxu3 %v2777_v0  ;;  %2896 = vmatpush.msrb.mxu2 %v7075_v4 }
 0x8ba   :  { %3012 = vmatpush.msrb.mxu0 %v7053_v44  ;;  %2957 = vmatpush.msrb.mxu1 %v2936_v31 }
 0x8bb   :  { %2924 = vmatpush.msrb.mxu3 %v2778_v26  ;;  %2897 = vmatpush.msrb.mxu2 %v7083_v5 }
 0x8bc   :  { %3013 = vmatpush.msrb.mxu0 %v7061_v61  ;;  %2958 = vmatpush.msrb.mxu1 %v2935_v54 }
 0x8bd   :  { %2925 = vmatpush.msrb.mxu3 %v2777_v0  ;;  %2898 = vmatpush.msrb.mxu2 %v7087_v12 }
 0x8be   :  { %4748 = vmatmul.msk.f32.vlgmr.msra.gmra.mxu3 %vm2789_vm8, %v6617_v9  ;;  %3014 = vmatpush.msrb.mxu0 %v7067_v43 }
 0x8bf   :  { %2982 = vmatpush.msra.mxu3 %v2788_v16  ;;  %2899 = vmatpush.msrb.mxu2 %v7091_v7 }
 0x8c0   :  { %3015 = vmatpush.msrb.mxu0 %v7073_v29  ;;  %2959 = vmatpush.msrb.mxu1 %v2934_v45 }
 0x8c1   :  { %2983 = vmatpush.msra.mxu3 %v2787_v49  ;;  %2900 = vmatpush.msrb.mxu2 %v7101_v10 }
 0x8c2   :  { %3016 = vmatpush.msrb.mxu0 %v7079_v57  ;;  %2960 = vmatpush.msrb.mxu1 %v2933_v15 }
 0x8c3   :  { %2901 = vmatpush.msrb.mxu2 %v7107_v19 }
 0x8c4   :  { %3017 = vmatpush.msrb.mxu0 %v7099_v23  ;;  %2961 = vmatpush.msrb.mxu1 %v2932_v35 }
 0x8c5   :  { %2902 = vmatpush.msrb.mxu2 %v7111_v33 }
 0x8c6   :  { %4749 = vmatmul.msk.f32.vlgmr.msrb.gmra.mxu3 %vm2789_vm8, %v6715_v13  ;;  %3018 = vmatpush.msrb.mxu0 %v7103_v6 }
 0x8c7   :  { %3002 = vmatpush.msrb.mxu3 %v2788_v16  ;;  %2903 = vmatpush.msrb.mxu2 %v7117_v51 }
 0x8c8   :  { %3019 = vmatpush.msrb.mxu0 %v7109_v8  ;;  %2962 = vmatpush.msrb.mxu1 %v2931_v40 }
 0x8c9   :  { %3003 = vmatpush.msrb.mxu3 %v2787_v49  ;;  %3028 = vmatpush.msra.mxu2 %v7028_v24 }
 0x8ca   :  { %3020 = vmatpush.msrb.mxu0 %v7115_v55 }
 0x8cb   :  { %3029 = vmatpush.msra.mxu2 %v7030_v20 }
 0x8cc   :  { %3021 = vmatpush.msrb.mxu0 %v7124_v36 }
 0x8cd   :  { %3030 = vmatpush.msra.mxu2 %v7037_v25 }
 0x8ce   :  { %4750 = vmatmul.msk.f32.vlgmr.msra.gmra.mxu3 %vm2789_vm8, %v6611_v39  ;;  %3022 = vmatpush.msrb.mxu0 %v7126_v58 }
 0x8cf   :  { %3062 = vmatpush.msra.mxu3 %v2788_v16  ;;  %3031 = vmatpush.msra.mxu2 %v7043_v42 }
 0x8d0   :  { %3023 = vmatpush.msrb.mxu0 %v7130_v47 }
 0x8d1   :  { %3063 = vmatpush.msra.mxu3 %v2787_v49  ;;  %3032 = vmatpush.msra.mxu2 %v7049_v38 }
 0x8d3   :  { %3033 = vmatpush.msra.mxu2 %v7057_v56 }
 0x8d5   :  { %3034 = vmatpush.msra.mxu2 %v7063_v21 }
 0x8d6   :  { %4751 = vmatmul.msk.f32.vlgmr.msrb.gmra.mxu3 %vm2789_vm8, %v6617_v9 }
 0x8d7   :  { %3068 = vmatpush.msrb.mxu3 %v2946_v32  ;;  %3035 = vmatpush.msra.mxu2 %v7069_v60 }
 0x8d9   :  { %3069 = vmatpush.msrb.mxu3 %v2945_v34  ;;  %3036 = vmatpush.msra.mxu2 %v7075_v4 }
 0x8db   :  { %3070 = vmatpush.msrb.mxu3 %v2944_v52  ;;  %3037 = vmatpush.msra.mxu2 %v7083_v5 }
 0x8dd   :  { %3071 = vmatpush.msrb.mxu3 %v2943_v18  ;;  %3038 = vmatpush.msra.mxu2 %v7087_v12 }
 0x8de   :  { %4752 = vmatmul.msk.f32.vlgmr.msra.gmra.mxu3 %vm2789_vm8, %v6715_v13  ;;  %vm3830_vm8 = vcmask 1041408  }
 0x8df   :  { %3072 = vmatpush.msrb.mxu3 %v2942_v59  ;;  %3039 = vmatpush.msra.mxu2 %v7091_v7 }
 0x8e1   :  { %3073 = vmatpush.msrb.mxu3 %v2941_v62  ;;  %3040 = vmatpush.msra.mxu2 %v7101_v10 }
 0x8e3   :  { %3074 = vmatpush.msrb.mxu3 %v2940_v30  ;;  %3041 = vmatpush.msra.mxu2 %v7107_v19 }
 0x8e5   :  { %3075 = vmatpush.msrb.mxu3 %v2939_v14  ;;  %3042 = vmatpush.msra.mxu2 %v7111_v33 }
 0x8e7   :  { %3076 = vmatpush.msrb.mxu3 %v2938_v27  ;;  %3043 = vmatpush.msra.mxu2 %v7117_v51 }
 0x8e9   :  { %3077 = vmatpush.msrb.mxu3 %v2937_v50 }
 0x8eb   :  { %3078 = vmatpush.msrb.mxu3 %v2936_v31  ;;  %v3090_v31 = vld [vmem:[#allocation5 + $0x8] sm:$0x3] }
 0x8ed   :  { %3079 = vmatpush.msrb.mxu3 %v2935_v54 }
 0x8ef   :  { %3080 = vmatpush.msrb.mxu3 %v2934_v45 }
 0x8f1   :  { %3081 = vmatpush.msrb.mxu3 %v2933_v15 }
 0x8f3   :  { %3082 = vmatpush.msrb.mxu3 %v2932_v35 }
 0x8f5   :  { %3083 = vmatpush.msrb.mxu3 %v2931_v40 }
 0x939   :  { %v2809_v17 = vpop.f32.mrf.mxu3 }
 0x93a   :  { %2904 = vmatmul.f32.vlgmr.msrb.gmra.mxu2 %v2809_v17 }
 0x941   :  { %v2848_v28 = vpop.f32.mrf.mxu3 }
 0x942   :  { %2884 = vmatmul.f32.vlgmr.msra.gmra.mxu0 %v2848_v28 }
 0x949   :  { %v2927_v2 = vpop.f32.mrf.mxu3 }
 0x94a   :  { %2963 = vmatmul.f32.vlgmr.msrb.gmra.mxu1 %v2927_v2 }
 0x951   :  { %v2985_v22 = vpop.f32.mrf.mxu3 }
 0x952   :  { %3044 = vmatmul.f32.vlgmr.msra.gmra.mxu2 %v2985_v22 }
 0x959   :  { %v3005_v1 = vpop.f32.mrf.mxu3 }
 0x95a   :  { %3024 = vmatmul.f32.vlgmr.msrb.gmra.mxu0 %v3005_v1 }
 0x961   :  { %v3065_v41 = vpop.f32.mrf.mxu3 }
 0x962   :  { %3084 = vmatmul.f32.vlgmr.msrb.gmra.mxu3 %v3065_v41 }
 0x9bd   :  { %v2905_v26 = vpop.f32.mrf.mxu2 }
 0x9bf   :  { %v2885_v48 = vpop.f32.mrf.mxu0 }
 0x9c0   :  { %v2906_v37 = vadd.f32 %v2905_v26, %v2885_v48 }
 0x9c7   :  { %v2964_v0 = vpop.f32.mrf.mxu1 }
 0x9c8   :  { %v2967_v11 = vadd.f32 %v2964_v0, %v2906_v37 }
 0x9ca   :  { %v3097_v16 = vmul.f32 %v2967_v11, %v2967_v11  ;;  %v3091_v24 = vrot.slane %v2967_v11, 4 }
 0x9cc   :  { %v3098_v20 = vrot.slane %v3097_v16, 4  ;;  %v3092_v3 = vadd.f32 %v3091_v24, %v2967_v11  ;;  %v7164_v24 = vld [vmem:[#allocation2 + $0x7f8] sm:$0xff] }
 0x9ce   :  { %v3099_v25 = vadd.f32 %v3098_v20, %v3097_v16  ;;  %v3093_v63 = vrot.slane %v3092_v3, 2  ;;  %v7173_v20 = vld [vmem:[#allocation2 + $0x7e8] sm:$0xff] }
 0x9d0   :  { %v3100_v44 = vrot.slane %v3099_v25, 2  ;;  %v3094_v21 = vadd.f32 %v3093_v63, %v3092_v3  ;;  %v7181_v3 = vld [vmem:[#allocation2 + $0x7d8] sm:$0xff]  ;;  %v7200_v63 = vld [vmem:[#allocation2 + $0x7b0] sm:$0xff] }
 0x9d2   :  { %v3101_v29 = vadd.f32 %v3100_v44, %v3099_v25  ;;  %v3095_v5 = vrot.slane %v3094_v21, 1  ;;  %v7189_v25 = vld [vmem:[#allocation2 + $0x7c8] sm:$0xff]  ;;  %v7206_v44 = vld [vmem:[#allocation2 + $0x7a0] sm:$0xff] }
 0x9d4   :  { %v3102_v23 = vrot.slane %v3101_v29, 1  ;;  %v3096_v19 = vadd.f32 %v3095_v5, %v3094_v21  ;;  %v7215_v21 = vld [vmem:[#allocation2 + $0x788] sm:$0xff] }
 0x9d5   :  { %v3045_v49 = vpop.f32.mrf.mxu2  ;;  %v7227_v5 = vld [vmem:[#allocation2 + $0x8e8] sm:$0xff] }
 0x9d6   :  { %v3103_v55 = vadd.f32 %v3102_v23, %v3101_v29  ;;  %v7224_v29 = vld [vmem:[#allocation2 + $0x8f0] sm:$0xff]  ;;  %v7234_v23 = vld [vmem:[#allocation2 + $0x8d8] sm:$0xff] }
 0x9d7   :  { %v3025_v53 = vpop.f32.mrf.mxu0 }
 0x9d8   :  { %v3046_v46 = vadd.f32 %v3045_v49, %v3025_v53  ;;  %v7178_v53 = vld [vmem:[#allocation2 + $0x7e0] sm:$0xff]  ;;  %v7184_v49 = vld [vmem:[#allocation2 + $0x7d0] sm:$0xff] }
 0x9e5   :  { %v3085_v42 = vpop.f32.mrf.mxu3 }
 0x9e6   :  { %v3088_v38 = vadd.f32 %v3085_v42, %v3046_v46  ;;  %v7194_v46 = vld [vmem:[#allocation2 + $0x7c0] sm:$0xff]  ;;  %v7197_v42 = vld [vmem:[#allocation2 + $0x7b8] sm:$0xff] }
 0x9e8   :  { %v3104_v56 = vrot.slane %v3088_v38, 4  ;;  %v3111_v61 = vmul.f32 %v3088_v38, %v3088_v38 }
 0x9ea   :  { %v3105_v43 = vadd.f32 %v3104_v56, %v3088_v38  ;;  %v3112_v60 = vrot.slane %v3111_v61, 4  ;;  %v7209_v56 = vld [vmem:[#allocation2 + $0x798] sm:$0xff] }
 0x9ec   :  { %v3106_v4 = vrot.slane %v3105_v43, 2  ;;  %v3113_v57 = vadd.f32 %v3112_v60, %v3111_v61  ;;  %v7212_v61 = vld [vmem:[#allocation2 + $0x790] sm:$0xff]  ;;  %v7222_v60 = vld [vmem:[#allocation2 + $0x8f8] sm:$0xff] }
 0x9ee   :  { %v3107_v12 = vadd.f32 %v3106_v4, %v3105_v43  ;;  %v3114_v7 = vrot.slane %v3113_v57, 2  ;;  %v7218_v43 = vld [vmem:[#allocation2 + $0x780] sm:$0xff]  ;;  %v3231_v4 = vld [vmem:[#allocation2 + $0x878] sm:$0xff] }
 0x9ef   :  { %3232 = vmatpush.msra.mxu0 %v3231_v4 }
 0x9f0   :  { %v3108_v10 = vrot.slane %v3107_v12, 1  ;;  %v3115_v6 = vadd.f32 %v3114_v7, %v3113_v57  ;;  %v3230_v57 = vld [vmem:[#allocation2 + $0x870] sm:$0xff]  ;;  %v3229_v7 = vld [vmem:[#allocation2 + $0x868] sm:$0xff] }
 0x9f1   :  { %3233 = vmatpush.msra.mxu0 %v3230_v57 }
 0x9f2   :  { %v3109_v8 = vadd.f32 %v3108_v10, %v3107_v12  ;;  %v3116_v33 = vrot.slane %v3115_v6, 1  ;;  %v7230_v12 = vld [vmem:[#allocation2 + $0x8e0] sm:$0xff] }
 0x9f3   :  { %v3228_v10 = vld [vmem:[#allocation2 + $0x860] sm:$0xff]  ;;  %3234 = vmatpush.msra.mxu0 %v3229_v7 }
 0x9f4   :  { %v3110_v51 = vadd.f32 %v3109_v8, %v3096_v19  ;;  %v3117_v36 = vadd.f32 %v3116_v33, %v3115_v6  ;;  %v7237_v6 = vld [vmem:[#allocation2 + $0x8d0] sm:$0xff]  ;;  %v3227_v19 = vld [vmem:[#allocation2 + $0x858] sm:$0xff]  ;;  %v7239_v8 = vld [vmem:[#allocation2 + $0x8c8] sm:$0xff] }
 0x9f5   :  { %3235 = vmatpush.msra.mxu0 %v3228_v10  ;;  %v3226_v33 = vld [vmem:[#allocation2 + $0x850] sm:$0xff] }
 0x9f6   :  { %v3118_v32 = vadd.f32 %v3117_v36, %v3103_v55  ;;  %v3119_v58 = vmul.f32 0.0625, %v3110_v51  ;;  %v7242_v55 = vld [vmem:[#allocation2 + $0x8c0] sm:$0xff]  ;;  %v3225_v51 = vld [vmem:[#allocation2 + $0x848] sm:$0xff]  ;;  %v7245_v36 = vld [vmem:[#allocation2 + $0x8b8] sm:$0xff] }
 0x9f7   :  { %3236 = vmatpush.msra.mxu0 %v3227_v19 }
 0x9f8   :  { %v3120_v34 = vmul.f32 0.0625, %v3118_v32  ;;  %v3121_v47 = vmul.f32 %v3119_v58, %v3119_v58  ;;  %v3224_v32 = vld [vmem:[#allocation2 + $0x840] sm:$0xff] }
 0x9f9   :  { %3237 = vmatpush.msra.mxu0 %v3226_v33 }
 0x9fa   :  { %v3122_v52 = vsub.f32 %v3120_v34, %v3121_v47  ;;  %v3223_v34 = vld [vmem:[#allocation2 + $0x838] sm:$0xff]  ;;  %v7251_v47 = vld [vmem:[#allocation2 + $0x8a8] sm:$0xff] }
 0x9fb   :  { %3238 = vmatpush.msra.mxu0 %v3225_v51 }
 0x9fc   :  { %v3123_v18 = vmax.f32 %v3122_v52, 0.0  ;;  %v3222_v52 = vld [vmem:[#allocation2 + $0x830] sm:$0xff] }
 0x9fd   :  { %3239 = vmatpush.msra.mxu0 %v3224_v32 }
 0x9fe   :  { %v3124_v59 = vadd.f32 1e-05, %v3123_v18  ;;  %v3299_v18 = vld [vmem:[#allocation2 + $0x8a0] sm:$0xff] }
 0x9ff   :  { %3240 = vmatpush.msra.mxu0 %v3223_v34 }
 0xa00   :  { %4876 = vrsqrt.f32 %v3124_v59  ;;  %vm3131_vm11 = vweird.f32 %v3124_v59 }
 0xa01   :  { %3241 = vmatpush.msra.mxu0 %v3222_v52 }
 0xa06   :  { %v4877_v62 = vpop.eup %4876 }
 0xa07   :  { %v3126_v30 = vmul.f32 %v4877_v62, %v3124_v59  ;;  %vm3132_vm15 = vweird.f32 %v4877_v62  ;;  %v3221_v59 = vld [vmem:[#allocation2 + $0x828] sm:$0xff] }
 0xa08   :  { %vm3133_vm12 = vmor %vm3131_vm11, %vm3132_vm15  ;;  %3242 = vmatpush.msra.mxu0 %v3221_v59 }
 0xa09   :  { %v3127_v14 = vmul.f32 %v4877_v62, %v3126_v30  ;;  %v3220_v30 = vld [vmem:[#allocation2 + $0x820] sm:$0xff] }
 0xa0a   :  { %3243 = vmatpush.msra.mxu0 %v3220_v30 }
 0xa0b   :  { %v3128_v27 = vmul.f32 0.5, %v3127_v14  ;;  %v3297_v14 = vld [vmem:[#allocation2 + $0x890] sm:$0xff] }
 0xa0d   :  { %v3129_v50 = vsub.f32 1.5, %v3128_v27  ;;  %v3219_v27 = vld [vmem:[#allocation2 + $0x818] sm:$0xff] }
 0xa0e   :  { %3244 = vmatpush.msra.mxu0 %v3219_v27 }
 0xa0f   :  { %v3130_v17 = vmul.f32 %v4877_v62, %v3129_v50  ;;  %v3296_v50 = vld [vmem:[#allocation2 + $0x888] sm:$0xff] }
 0xa11   :  { %v3134_v54 = vsel %vm3133_vm12, %v4877_v62, %v3130_v17  ;;  %v3298_v62 = vld [vmem:[#allocation2 + $0x898] sm:$0xff]  ;;  %v3295_v17 = vld [vmem:[#allocation2 + $0x880] sm:$0xff] }
 0xa12   :  { %v3135_v45 = vmul.f32 %v3134_v54, %v3090_v31  ;;  %v3217_v54 = vld [vmem:[#allocation2 + $0x808] sm:$0xff] }
 0xa14   :  { %v3136_v15 = vmul.f32 %v3135_v45, %v3119_v58  ;;  %v3141_v35 = vperm.slane %v3135_v45, 0  ;;  %v7248_v58 = vld [vmem:[#allocation2 + $0x8b0] sm:$0xff] }
 0xa16   :  { %v3138_v28 = vrot.slane %v3136_v15, 7  ;;  %v3148_v2 = vmul.f32 %v3141_v35, %v3088_v38  ;;  %v3142_v22 = vmul.f32 %v3141_v35, %v2967_v11  ;;  %v7168_v11 = vld [vmem:[#allocation2 + $0x7f0] sm:$0xff]  ;;  %v7203_v38 = vld [vmem:[#allocation2 + $0x7a8] sm:$0xff]  ;;  %v3216_v15 = vld [vmem:[#allocation2 + $0x800] sm:$0xff] }
 0xa18   :  { %v3140_v40 = vsub.f32 %v3090_v31, %v3138_v28  ;;  %v3218_v31 = vld [vmem:[#allocation2 + $0x810] sm:$0xff] }
 0xa19   :  { %3245 = vmatpush.msra.mxu0 %v3218_v31 }
 0xa1a   :  { %v3143_v1 = vperm.slane %v3140_v40, 1 }
 0xa1b   :  { %3246 = vmatpush.msra.mxu0 %v3217_v54 }
 0xa1c   :  { %v3144_v41 = vadd.f32 %v3143_v1, %v3142_v22  ;;  %v3149_v48 = vadd.f32 %v3148_v2, %v3143_v1 }
 0xa1d   :  { %3247 = vmatpush.msra.mxu0 %v3216_v15 }
 0xa1e   :  { %vm3145_vm13 = vcmp.ge.f32.partialorder %v3144_v41, 0.0  ;;  %v3146_v26 = vmul.f32 0.01, %v3144_v41  ;;  %vm3150_vm0 = vcmp.ge.f32.partialorder %v3149_v48, 0.0  ;;  %v3151_v0 = vmul.f32 0.01, %v3149_v48 }
 0xa1f   :  { %3392 = vmatpush.msrb.mxu0 %v7164_v24 }
 0xa20   :  { %v3147_v37 = vsel %vm3145_vm13, %v3144_v41, %v3146_v26  ;;  %v3152_v16 = vsel %vm3150_vm0, %v3149_v48, %v3151_v0  ;;  %vm3897_vm13 = vcmask 15360  }
 0xa21   :  { %3171 = vmatpush.msra.mxu1 %v3147_v37  ;;  %3289 = vmatpush.msrb.mxu2 %v3147_v37 }
 0xa22   :  { %3347 = vmatpush.msra.mxu3 %v3152_v16  ;;  %4753 = vmatmul.msk.f32.vlgmr.msra.gmra.mxu1 %vm3153_vm1, %v6611_v39 }
 0xa23   :  { %3210 = vmatpush.msrb.mxu1 %v3147_v37  ;;  %4755 = vmatmul.msk.f32.vlgmr.msrb.gmra.mxu2 %vm3153_vm1, %v6715_v13 }
 0xa24   :  { %3367 = vmatpush.msrb.mxu3 %v3152_v16  ;;  %3311 = vmatpush.msra.mxu2 %v7222_v60 }
 0xa25   :  { %3252 = vmatpush.msra.mxu1 %v7164_v24  ;;  %4756 = vmatmul.msk.f32.vlgmr.msra.gmra.mxu3 %vm3153_vm1, %v6611_v39 }
 0xa26   :  { %3372 = vmatpush.msra.mxu3 %v3231_v4  ;;  %3312 = vmatpush.msra.mxu2 %v7224_v29 }
 0xa27   :  { %3253 = vmatpush.msra.mxu1 %v7168_v11  ;;  %3393 = vmatpush.msrb.mxu0 %v7168_v11 }
 0xa28   :  { %3373 = vmatpush.msra.mxu3 %v3230_v57  ;;  %3313 = vmatpush.msra.mxu2 %v7227_v5 }
 0xa29   :  { %3254 = vmatpush.msra.mxu1 %v7173_v20  ;;  %3394 = vmatpush.msrb.mxu0 %v7173_v20 }
 0xa2a   :  { %4754 = vmatmul.msk.f32.vlgmr.msrb.gmra.mxu1 %vm3153_vm1, %v6617_v9  ;;  %3314 = vmatpush.msra.mxu2 %v7230_v12 }
 0xa2b   :  { %3255 = vmatpush.msra.mxu1 %v7178_v53  ;;  %3374 = vmatpush.msra.mxu3 %v3229_v7 }
 0xa2c   :  { %3315 = vmatpush.msra.mxu2 %v7234_v23  ;;  %3395 = vmatpush.msrb.mxu0 %v7178_v53 }
 0xa2d   :  { %3256 = vmatpush.msra.mxu1 %v7181_v3  ;;  %4757 = vmatmul.msk.f32.vlgmr.msrb.gmra.mxu3 %vm3153_vm1, %v6617_v9 }
 0xa2e   :  { %3316 = vmatpush.msra.mxu2 %v7237_v6  ;;  %3375 = vmatpush.msra.mxu3 %v3228_v10 }
 0xa2f   :  { %3257 = vmatpush.msra.mxu1 %v7184_v49  ;;  %3396 = vmatpush.msrb.mxu0 %v7181_v3 }
 0xa30   :  { %3317 = vmatpush.msra.mxu2 %v7239_v8  ;;  %3376 = vmatpush.msra.mxu3 %v3227_v19 }
 0xa31   :  { %3258 = vmatpush.msra.mxu1 %v7189_v25  ;;  %3397 = vmatpush.msrb.mxu0 %v7184_v49 }
 0xa32   :  { %3318 = vmatpush.msra.mxu2 %v7242_v55  ;;  %3377 = vmatpush.msra.mxu3 %v3226_v33 }
 0xa33   :  { %3259 = vmatpush.msra.mxu1 %v7194_v46  ;;  %3398 = vmatpush.msrb.mxu0 %v7189_v25 }
 0xa34   :  { %3319 = vmatpush.msra.mxu2 %v7245_v36  ;;  %3378 = vmatpush.msra.mxu3 %v3225_v51 }
 0xa35   :  { %3260 = vmatpush.msra.mxu1 %v7197_v42  ;;  %3399 = vmatpush.msrb.mxu0 %v7194_v46 }
 0xa36   :  { %3320 = vmatpush.msra.mxu2 %v7248_v58  ;;  %3379 = vmatpush.msra.mxu3 %v3224_v32 }
 0xa37   :  { %3261 = vmatpush.msra.mxu1 %v7200_v63  ;;  %3400 = vmatpush.msrb.mxu0 %v7197_v42 }
 0xa38   :  { %3321 = vmatpush.msra.mxu2 %v7251_v47  ;;  %3380 = vmatpush.msra.mxu3 %v3223_v34 }
 0xa39   :  { %3262 = vmatpush.msra.mxu1 %v7203_v38  ;;  %3401 = vmatpush.msrb.mxu0 %v7200_v63 }
 0xa3a   :  { %3322 = vmatpush.msra.mxu2 %v3299_v18  ;;  %3381 = vmatpush.msra.mxu3 %v3222_v52 }
 0xa3b   :  { %3263 = vmatpush.msra.mxu1 %v7206_v44  ;;  %3402 = vmatpush.msrb.mxu0 %v7203_v38 }
 0xa3c   :  { %3323 = vmatpush.msra.mxu2 %v3298_v62  ;;  %3382 = vmatpush.msra.mxu3 %v3221_v59 }
 0xa3d   :  { %3264 = vmatpush.msra.mxu1 %v7209_v56  ;;  %3403 = vmatpush.msrb.mxu0 %v7206_v44 }
 0xa3e   :  { %3324 = vmatpush.msra.mxu2 %v3297_v14  ;;  %3383 = vmatpush.msra.mxu3 %v3220_v30  ;;  %v7298_v30 = vld [vmem:[#allocation2 + $0x978] sm:$0xff] }
 0xa3f   :  { %3265 = vmatpush.msra.mxu1 %v7212_v61  ;;  %3404 = vmatpush.msrb.mxu0 %v7209_v56 }
 0xa40   :  { %3325 = vmatpush.msra.mxu2 %v3296_v50  ;;  %3384 = vmatpush.msra.mxu3 %v3219_v27 }
 0xa41   :  { %3266 = vmatpush.msra.mxu1 %v7215_v21  ;;  %3405 = vmatpush.msrb.mxu0 %v7212_v61 }
 0xa42   :  { %3326 = vmatpush.msra.mxu2 %v3295_v17  ;;  %3385 = vmatpush.msra.mxu3 %v3218_v31  ;;  %v7306_v31 = vld [vmem:[#allocation2 + $0x960] sm:$0xff] }
 0xa43   :  { %3267 = vmatpush.msra.mxu1 %v7218_v43  ;;  %3406 = vmatpush.msrb.mxu0 %v7215_v21 }
 0xa44   :  { %3386 = vmatpush.msra.mxu3 %v3217_v54  ;;  %v7312_v54 = vld [vmem:[#allocation2 + $0x950] sm:$0xff] }
 0xa45   :  { %3427 = vmatpush.msrb.mxu1 %v3152_v16  ;;  %3407 = vmatpush.msrb.mxu0 %v7218_v43 }
 0xa46   :  { %3387 = vmatpush.msra.mxu3 %v3216_v15  ;;  %v7315_v15 = vld [vmem:[#allocation2 + $0x948] sm:$0xff] }
 0xa48   :  { %3624 = vmatpush.msrb.mxu3 %v7298_v30 }
 0xa9f   :  { %v3173_v45 = vpop.f32.mrf.mxu1 }
 0xaa0   :  { %3268 = vmatmul.f32.vlgmr.msra.gmra.mxu1 %v3173_v45 }
 0xaa1   :  { %3432 = vmatpush.msra.mxu1 %v7222_v60 }
 0xaa3   :  { %3433 = vmatpush.msra.mxu1 %v7224_v29 }
 0xaa5   :  { %3434 = vmatpush.msra.mxu1 %v7227_v5 }
 0xaa6   :  { %v3291_v35 = vpop.f32.mrf.mxu2 }
 0xaa7   :  { %3435 = vmatpush.msra.mxu1 %v7230_v12  ;;  %3327 = vmatmul.f32.vlgmr.msra.gmra.mxu2 %v3291_v35  ;;  %v3212_v28 = vpop.f32.mrf.mxu1 }
 0xaa8   :  { %4758 = vmatmul.msk.f32.vlgmr.msrb.gmra.mxu1 %vm3153_vm1, %v6715_v13  ;;  %3248 = vmatmul.f32.vlgmr.msra.gmra.mxu0 %v3212_v28  ;;  %v3349_v40 = vpop.f32.mrf.mxu3  ;;  %v7318_v28 = vld [vmem:[#allocation2 + $0x940] sm:$0xff] }
 0xaa9   :  { %3436 = vmatpush.msra.mxu1 %v7234_v23 }
 0xaab   :  { %3437 = vmatpush.msra.mxu1 %v7237_v6 }
 0xaad   :  { %3438 = vmatpush.msra.mxu1 %v7239_v8 }
 0xaaf   :  { %3439 = vmatpush.msra.mxu1 %v7242_v55 }
 0xab0   :  { %3408 = vmatmul.f32.vlgmr.msrb.gmra.mxu0 %v3349_v40  ;;  %v3369_v2 = vpop.f32.mrf.mxu3 }
 0xab1   :  { %3440 = vmatpush.msra.mxu1 %v7245_v36  ;;  %3388 = vmatmul.f32.vlgmr.msra.gmra.mxu3 %v3369_v2  ;;  %v7321_v2 = vld [vmem:[#allocation2 + $0x938] sm:$0xff] }
 0xab3   :  { %3441 = vmatpush.msra.mxu1 %v7248_v58 }
 0xab5   :  { %3442 = vmatpush.msra.mxu1 %v7251_v47 }
 0xab7   :  { %3443 = vmatpush.msra.mxu1 %v3299_v18 }
 0xab9   :  { %3444 = vmatpush.msra.mxu1 %v3298_v62 }
 0xabb   :  { %3445 = vmatpush.msra.mxu1 %v3297_v14  ;;  %v7300_v14 = vld [vmem:[#allocation2 + $0x970] sm:$0xff] }
 0xabc   :  { %3625 = vmatpush.msrb.mxu3 %v7300_v14 }
 0xabd   :  { %3446 = vmatpush.msra.mxu1 %v3296_v50  ;;  %v7303_v50 = vld [vmem:[#allocation2 + $0x968] sm:$0xff] }
 0xabe   :  { %3626 = vmatpush.msrb.mxu3 %v7303_v50 }
 0xabf   :  { %3447 = vmatpush.msra.mxu1 %v3295_v17  ;;  %v7309_v17 = vld [vmem:[#allocation2 + $0x958] sm:$0xff] }
 0xac0   :  { %3627 = vmatpush.msrb.mxu3 %v7306_v31 }
 0xac2   :  { %3628 = vmatpush.msrb.mxu3 %v7309_v17 }
 0xac4   :  { %3629 = vmatpush.msrb.mxu3 %v7312_v54 }
 0xac6   :  { %3630 = vmatpush.msrb.mxu3 %v7315_v15 }
 0xac8   :  { %3631 = vmatpush.msrb.mxu3 %v7318_v28 }
 0xaca   :  { %3632 = vmatpush.msrb.mxu3 %v7321_v2 }
 0xb1d   :  { %v3269_v22 = vpop.f32.mrf.mxu1 }
 0xb25   :  { %v3429_v1 = vpop.f32.mrf.mxu1  ;;  %v3249_v41 = vpop.f32.mrf.mxu0 }
 0xb26   :  { %3448 = vmatmul.f32.vlgmr.msra.gmra.mxu1 %v3429_v1  ;;  %v3270_v26 = vadd.f32 %v3269_v22, %v3249_v41  ;;  %v7324_v1 = vld [vmem:[#allocation2 + $0x930] sm:$0xff] }
 0xb27   :  { %3633 = vmatpush.msrb.mxu3 %v7324_v1 }
 0xb2a   :  { %v3328_v48 = vpop.f32.mrf.mxu2 }
 0xb2b   :  { %v7284_v0 = vadd.f32 %v3328_v48, %v3270_v26  ;;  %v7327_v48 = vld [vmem:[#allocation2 + $0x928] sm:$0xff] }
 0xb2c   :  { %v3454_v26 = vld [vmem:[#allocation5 + $0xa] sm:$0x3]  ;;  %3634 = vmatpush.msrb.mxu3 %v7327_v48 }
 0xb2d   :  { %v3463_v37 = vmul.f32 %v7284_v0, %v7284_v0  ;;  %v3456_v16 = vsel %vm3455_vm2, %v7284_v0, 0.0  ;;  %v3409_v3 = vpop.f32.mrf.mxu0 }
 0xb2e   :  { %v3457_v11 = vrot.slane %v3456_v16, 4 }
 0xb2f   :  { %v3464_v24 = vsel %vm3455_vm2, %v3463_v37, 0.0 }
 0xb30   :  { %v3465_v20 = vrot.slane %v3464_v24, 4  ;;  %v3458_v49 = vadd.f32 %v3457_v11, %v3456_v16  ;;  %v7330_v16 = vld [vmem:[#allocation2 + $0x920] sm:$0xff] }
 0xb31   :  { %3635 = vmatpush.msrb.mxu3 %v7330_v16 }
 0xb32   :  { %v3466_v46 = vadd.f32 %v3465_v20, %v3464_v24  ;;  %v3459_v38 = vrot.slane %v3458_v49, 2  ;;  %v7333_v20 = vld [vmem:[#allocation2 + $0x918] sm:$0xff] }
 0xb33   :  { %3636 = vmatpush.msrb.mxu3 %v7333_v20 }
 0xb34   :  { %v3389_v53 = vpop.f32.mrf.mxu3  ;;  %v3467_v61 = vrot.slane %v3466_v46, 2  ;;  %v3460_v60 = vadd.f32 %v3459_v38, %v3458_v49  ;;  %v7342_v38 = vld [vmem:[#allocation2 + $0x900] sm:$0xff] }
 0xb35   :  { %v3410_v25 = vadd.f32 %v3409_v3, %v3389_v53  ;;  %v7336_v3 = vld [vmem:[#allocation2 + $0x910] sm:$0xff] }
 0xb36   :  { %v3468_v57 = vadd.f32 %v3467_v61, %v3466_v46  ;;  %v3461_v7 = vrot.slane %v3460_v60, 1  ;;  %v7339_v46 = vld [vmem:[#allocation2 + $0x908] sm:$0xff]  ;;  %3637 = vmatpush.msrb.mxu3 %v7336_v3 }
 0xb38   :  { %v3469_v6 = vrot.slane %v3468_v57, 1  ;;  %v3462_v33 = vadd.f32 %v3461_v7, %v3460_v60  ;;  %3638 = vmatpush.msrb.mxu3 %v7339_v46  ;;  %v7364_v7 = vld [vmem:[#allocation2 + $0xa78] sm:$0xff] }
 0xb3a   :  { %v3470_v36 = vadd.f32 %v3469_v6, %v3468_v57  ;;  %3639 = vmatpush.msrb.mxu3 %v7342_v38  ;;  %v7369_v6 = vld [vmem:[#allocation2 + $0xa68] sm:$0xff] }
 0xba3   :  { %v3449_v42 = vpop.f32.mrf.mxu1 }
 0xba4   :  { %v7291_v63 = vadd.f32 %v3449_v42, %v3410_v25 }
 0xba6   :  { %v3471_v44 = vsel %vm3455_vm2, %v7291_v63, 0.0  ;;  %v3479_v56 = vmul.f32 %v7291_v63, %v7291_v63 }
 0xba7   :  { %v3472_v21 = vrot.slane %v3471_v44, 4 }
 0xba8   :  { %v3480_v43 = vsel %vm3455_vm2, %v3479_v56, 0.0 }
 0xba9   :  { %v3473_v29 = vadd.f32 %v3472_v21, %v3471_v44  ;;  %v3481_v4 = vrot.slane %v3480_v43, 4 }
 0xbab   :  { %v3474_v5 = vrot.slane %v3473_v29, 2  ;;  %v3482_v12 = vadd.f32 %v3481_v4, %v3480_v43 }
 0xbad   :  { %v3475_v23 = vadd.f32 %v3474_v5, %v3473_v29  ;;  %v3483_v10 = vrot.slane %v3482_v12, 2  ;;  %v3601_v5 = vld [vmem:[#allocation2 + $0x9e8] sm:$0xff] }
 0xbaf   :  { %v3476_v19 = vrot.slane %v3475_v23, 1  ;;  %v3484_v8 = vadd.f32 %v3483_v10, %v3482_v12  ;;  %v3600_v12 = vld [vmem:[#allocation2 + $0x9e0] sm:$0xff]  ;;  %v3599_v10 = vld [vmem:[#allocation2 + $0x9d8] sm:$0xff] }
 0xbb1   :  { %v3477_v55 = vadd.f32 %v3476_v19, %v3475_v23  ;;  %v3485_v51 = vrot.slane %v3484_v8, 1  ;;  %v7366_v23 = vld [vmem:[#allocation2 + $0xa70] sm:$0xff] }
 0xbb2   :  { %v3598_v19 = vld [vmem:[#allocation2 + $0x9d0] sm:$0xff] }
 0xbb3   :  { %v3478_v32 = vadd.f32 %v3477_v55, %v3462_v33  ;;  %v3486_v58 = vadd.f32 %v3485_v51, %v3484_v8  ;;  %v7372_v8 = vld [vmem:[#allocation2 + $0xa60] sm:$0xff]  ;;  %v3597_v33 = vld [vmem:[#allocation2 + $0x9c8] sm:$0xff]  ;;  %v7375_v55 = vld [vmem:[#allocation2 + $0xa58] sm:$0xff] }
 0xbb4   :  { %v3596_v51 = vld [vmem:[#allocation2 + $0x9c0] sm:$0xff] }
 0xbb5   :  { %v3487_v34 = vadd.f32 %v3486_v58, %v3470_v36  ;;  %v3488_v47 = vmul.f32 0.125, %v3478_v32  ;;  %v7378_v36 = vld [vmem:[#allocation2 + $0xa50] sm:$0xff]  ;;  %v3595_v32 = vld [vmem:[#allocation2 + $0x9b8] sm:$0xff]  ;;  %v3676_v58 = vld [vmem:[#allocation2 + $0xa48] sm:$0xff] }
 0xbb7   :  { %v3489_v52 = vmul.f32 0.125, %v3487_v34  ;;  %v3490_v18 = vmul.f32 %v3488_v47, %v3488_v47  ;;  %v3594_v34 = vld [vmem:[#allocation2 + $0x9b0] sm:$0xff] }
 0xbb9   :  { %v3491_v59 = vsub.f32 %v3489_v52, %v3490_v18  ;;  %v3593_v52 = vld [vmem:[#allocation2 + $0x9a8] sm:$0xff]  ;;  %v3674_v18 = vld [vmem:[#allocation2 + $0xa38] sm:$0xff] }
 0xbbb   :  { %v3492_v62 = vmax.f32 %v3491_v59, 0.0  ;;  %v3592_v59 = vld [vmem:[#allocation2 + $0x9a0] sm:$0xff] }
 0xbbd   :  { %v3493_v27 = vadd.f32 1e-05, %v3492_v62  ;;  %v3673_v62 = vld [vmem:[#allocation2 + $0xa30] sm:$0xff] }
 0xbbf   :  { %4878 = vrsqrt.f32 %v3493_v27  ;;  %vm3500_vm3 = vweird.f32 %v3493_v27 }
 0xbc5   :  { %v4879_v45 = vpop.eup %4878 }
 0xbc6   :  { %v3495_v35 = vmul.f32 %v4879_v45, %v3493_v27  ;;  %vm3501_vm14 = vweird.f32 %v4879_v45  ;;  %v3591_v27 = vld [vmem:[#allocation2 + $0x998] sm:$0xff] }
 0xbc7   :  { %vm3502_vm4 = vmor %vm3500_vm3, %vm3501_vm14  ;;  %vm4251_vm14 = vcmask 1040384  }
 0xbc8   :  { %v3496_v40 = vmul.f32 %v4879_v45, %v3495_v35  ;;  %v3590_v35 = vld [vmem:[#allocation2 + $0x990] sm:$0xff] }
 0xbca   :  { %v3497_v22 = vmul.f32 0.5, %v3496_v40  ;;  %v3671_v40 = vld [vmem:[#allocation2 + $0xa20] sm:$0xff] }
 0xbcc   :  { %v3498_v41 = vsub.f32 1.5, %v3497_v22  ;;  %v3589_v22 = vld [vmem:[#allocation2 + $0x988] sm:$0xff] }
 0xbce   :  { %v3499_v37 = vmul.f32 %v4879_v45, %v3498_v41 }
 0xbd0   :  { %v3503_v24 = vsel %vm3502_vm4, %v4879_v45, %v3499_v37  ;;  %v3672_v45 = vld [vmem:[#allocation2 + $0xa28] sm:$0xff]  ;;  %v3588_v37 = vld [vmem:[#allocation2 + $0x980] sm:$0xff] }
 0xbd1   :  { %v3504_v11 = vmul.f32 %v3503_v24, %v3454_v26  ;;  %v3669_v24 = vld [vmem:[#allocation2 + $0xa10] sm:$0xff] }
 0xbd3   :  { %v3505_v53 = vmul.f32 %v3504_v11, %v3488_v47  ;;  %v3510_v25 = vperm.slane %v3504_v11, 0  ;;  %v3675_v47 = vld [vmem:[#allocation2 + $0xa40] sm:$0xff]  ;;  %v3668_v11 = vld [vmem:[#allocation2 + $0xa08] sm:$0xff] }
 0xbd5   :  { %v3507_v49 = vrot.slane %v3505_v53, 7  ;;  %v3511_v44 = vmul.f32 %v3510_v25, %v7284_v0  ;;  %v3517_v61 = vmul.f32 %v3510_v25, %v7291_v63  ;;  %v3603_v0 = vld [vmem:[#allocation2 + $0x9f8] sm:$0xff]  ;;  %v3602_v63 = vld [vmem:[#allocation2 + $0x9f0] sm:$0xff]  ;;  %v3667_v53 = vld [vmem:[#allocation2 + $0xa00] sm:$0xff] }
 0xbd7   :  { %v3509_v42 = vsub.f32 %v3454_v26, %v3507_v49  ;;  %v3670_v26 = vld [vmem:[#allocation2 + $0xa18] sm:$0xff] }
 0xbd9   :  { %v3512_v56 = vperm.slane %v3509_v42, 1 }
 0xbdb   :  { %v3518_v21 = vadd.f32 %v3517_v61, %v3512_v56  ;;  %v3513_v43 = vadd.f32 %v3512_v56, %v3511_v44 }
 0xbdd   :  { %vm3514_vm5 = vcmp.ge.f32.partialorder %v3513_v43, 0.0  ;;  %v3515_v60 = vmul.f32 0.01, %v3513_v43  ;;  %vm3519_vm6 = vcmp.ge.f32.partialorder %v3518_v21, 0.0  ;;  %v3520_v29 = vmul.f32 0.01, %v3518_v21 }
 0xbdf   :  { %v3516_v4 = vsel %vm3514_vm5, %v3513_v43, %v3515_v60  ;;  %v3521_v57 = vsel %vm3519_vm6, %v3518_v21, %v3520_v29  ;;  %vm4248_vm5 = vcmask 7168  }
 0xbe0   :  { %4759 = vmatpush.msk.msrb.mxu2 %vm3455_vm2, %v3516_v4  ;;  %4763 = vmatpush.msk.msra.mxu0 %vm3455_vm2, %v3516_v4 }
 0xbe1   :  { %4765 = vmatpush.msk.msrb.mxu1 %vm3455_vm2, %v3521_v57  ;;  %4769 = vmatpush.msk.msra.mxu3 %vm3455_vm2, %v3521_v57 }
 0xbe2   :  { %4760 = vmatmul.msk.f32.vlgmr.msrb.gmra.mxu2 %vm3522_vm7, %v6611_v39  ;;  %4764 = vmatmul.msk.f32.vlgmr.msra.gmra.mxu0 %vm3522_vm7, %v6715_v13 }
 0xbe3   :  { %4767 = vmatpush.msk.msra.mxu1 %vm3455_vm2, %v3521_v57  ;;  %4761 = vmatpush.msk.msra.mxu2 %vm3455_vm2, %v3516_v4 }
 0xbe4   :  { %4766 = vmatmul.msk.f32.vlgmr.msrb.gmra.mxu1 %vm3522_vm7, %v6611_v39  ;;  %3683 = vmatpush.msrb.mxu0 %v7364_v7 }
 0xbe5   :  { %3604 = vmatpush.msrb.mxu2 %v3603_v0  ;;  %3747 = vmatpush.msrb.mxu1 %v3603_v0 }
 0xbe6   :  { %3684 = vmatpush.msrb.mxu0 %v7366_v23 }
 0xbe7   :  { %3605 = vmatpush.msrb.mxu2 %v3602_v63  ;;  %3748 = vmatpush.msrb.mxu1 %v3602_v63 }
 0xbe8   :  { %3685 = vmatpush.msrb.mxu0 %v7369_v6 }
 0xbe9   :  { %3606 = vmatpush.msrb.mxu2 %v3601_v5  ;;  %3749 = vmatpush.msrb.mxu1 %v3601_v5 }
 0xbea   :  { %4762 = vmatmul.msk.f32.vlgmr.msra.gmra.mxu2 %vm3522_vm7, %v6617_v9  ;;  %3686 = vmatpush.msrb.mxu0 %v7372_v8 }
 0xbeb   :  { %3607 = vmatpush.msrb.mxu2 %v3600_v12  ;;  %3750 = vmatpush.msrb.mxu1 %v3600_v12 }
 0xbec   :  { %4768 = vmatmul.msk.f32.vlgmr.msra.gmra.mxu1 %vm3522_vm7, %v6617_v9  ;;  %3687 = vmatpush.msrb.mxu0 %v7375_v55 }
 0xbed   :  { %3608 = vmatpush.msrb.mxu2 %v3599_v10  ;;  %3751 = vmatpush.msrb.mxu1 %v3599_v10 }
 0xbee   :  { %3688 = vmatpush.msrb.mxu0 %v7378_v36 }
 0xbef   :  { %3609 = vmatpush.msrb.mxu2 %v3598_v19  ;;  %3752 = vmatpush.msrb.mxu1 %v3598_v19 }
 0xbf0   :  { %3689 = vmatpush.msrb.mxu0 %v3676_v58 }
 0xbf1   :  { %3610 = vmatpush.msrb.mxu2 %v3597_v33  ;;  %3753 = vmatpush.msrb.mxu1 %v3597_v33 }
 0xbf2   :  { %3690 = vmatpush.msrb.mxu0 %v3675_v47 }
 0xbf3   :  { %3611 = vmatpush.msrb.mxu2 %v3596_v51  ;;  %3754 = vmatpush.msrb.mxu1 %v3596_v51 }
 0xbf4   :  { %3691 = vmatpush.msrb.mxu0 %v3674_v18 }
 0xbf5   :  { %3612 = vmatpush.msrb.mxu2 %v3595_v32  ;;  %3755 = vmatpush.msrb.mxu1 %v3595_v32 }
 0xbf6   :  { %3692 = vmatpush.msrb.mxu0 %v3673_v62 }
 0xbf7   :  { %3613 = vmatpush.msrb.mxu2 %v3594_v34  ;;  %3756 = vmatpush.msrb.mxu1 %v3594_v34 }
 0xbf8   :  { %3693 = vmatpush.msrb.mxu0 %v3672_v45 }
 0xbf9   :  { %3614 = vmatpush.msrb.mxu2 %v3593_v52  ;;  %3757 = vmatpush.msrb.mxu1 %v3593_v52 }
 0xbfa   :  { %3694 = vmatpush.msrb.mxu0 %v3671_v40 }
 0xbfb   :  { %3615 = vmatpush.msrb.mxu2 %v3592_v59  ;;  %3758 = vmatpush.msrb.mxu1 %v3592_v59 }
 0xbfc   :  { %3695 = vmatpush.msrb.mxu0 %v3670_v26 }
 0xbfd   :  { %3616 = vmatpush.msrb.mxu2 %v3591_v27  ;;  %3759 = vmatpush.msrb.mxu1 %v3591_v27 }
 0xbfe   :  { %3696 = vmatpush.msrb.mxu0 %v3669_v24 }
 0xbff   :  { %3617 = vmatpush.msrb.mxu2 %v3590_v35  ;;  %3760 = vmatpush.msrb.mxu1 %v3590_v35  ;;  %v7420_v35 = vld [vmem:[#allocation2 + $0xaf8] sm:$0xff] }
 0xc00   :  { %3697 = vmatpush.msrb.mxu0 %v3668_v11 }
 0xc01   :  { %3618 = vmatpush.msrb.mxu2 %v3589_v22  ;;  %3761 = vmatpush.msrb.mxu1 %v3589_v22 }
 0xc02   :  { %3698 = vmatpush.msrb.mxu0 %v3667_v53 }
 0xc03   :  { %3619 = vmatpush.msrb.mxu2 %v3588_v37  ;;  %3762 = vmatpush.msrb.mxu1 %v3588_v37  ;;  %v7431_v37 = vld [vmem:[#allocation2 + $0xad8] sm:$0xff] }
 0xc05   :  { %3767 = vmatpush.msra.mxu2 %v7298_v30  ;;  %3999 = vmatpush.msra.mxu1 %v7420_v35 }
 0xc07   :  { %3768 = vmatpush.msra.mxu2 %v7300_v14 }
 0xc09   :  { %3769 = vmatpush.msra.mxu2 %v7303_v50 }
 0xc0b   :  { %3770 = vmatpush.msra.mxu2 %v7306_v31 }
 0xc0d   :  { %3771 = vmatpush.msra.mxu2 %v7309_v17 }
 0xc0f   :  { %3772 = vmatpush.msra.mxu2 %v7312_v54 }
 0xc11   :  { %3773 = vmatpush.msra.mxu2 %v7315_v15 }
 0xc13   :  { %3774 = vmatpush.msra.mxu2 %v7318_v28 }
 0xc15   :  { %3775 = vmatpush.msra.mxu2 %v7321_v2 }
 0xc17   :  { %3776 = vmatpush.msra.mxu2 %v7324_v1 }
 0xc19   :  { %3777 = vmatpush.msra.mxu2 %v7327_v48 }
 0xc1b   :  { %3778 = vmatpush.msra.mxu2 %v7330_v16 }
 0xc1d   :  { %3779 = vmatpush.msra.mxu2 %v7333_v20 }
 0xc1f   :  { %3780 = vmatpush.msra.mxu2 %v7336_v3 }
 0xc21   :  { %3781 = vmatpush.msra.mxu2 %v7339_v46 }
 0xc23   :  { %3782 = vmatpush.msra.mxu2 %v7342_v38 }
 0xc5f   :  { %v3663_v25 = vpop.f32.mrf.mxu0 }
 0xc60   :  { %3699 = vmatmul.f32.vlgmr.msrb.gmra.mxu0 %v3663_v25  ;;  %v7440_v25 = vld [vmem:[#allocation2 + $0xac0] sm:$0xff] }
 0xc61   :  { %v3724_v30 = vpop.f32.mrf.mxu1 }
 0xc65   :  { %v3545_v41 = vpop.f32.mrf.mxu2 }
 0xc66   :  { %3640 = vmatmul.f32.vlgmr.msrb.gmra.mxu3 %v3545_v41  ;;  %v7425_v41 = vld [vmem:[#allocation2 + $0xae8] sm:$0xff] }
 0xc67   :  { %3807 = vmatpush.msrb.mxu3 %v7364_v7 }
 0xc69   :  { %3808 = vmatpush.msrb.mxu3 %v7366_v23  ;;  %v3744_v14 = vpop.f32.mrf.mxu1 }
 0xc6a   :  { %3763 = vmatmul.f32.vlgmr.msrb.gmra.mxu1 %v3744_v14  ;;  %v7443_v14 = vld [vmem:[#allocation2 + $0xab8] sm:$0xff] }
 0xc6b   :  { %3809 = vmatpush.msrb.mxu3 %v7369_v6 }
 0xc6d   :  { %v3584_v49 = vpop.f32.mrf.mxu2  ;;  %3810 = vmatpush.msrb.mxu3 %v7372_v8 }
 0xc6e   :  { %4770 = vmatmul.msk.f32.vlgmr.msra.gmra.mxu3 %vm3522_vm7, %v6715_v13  ;;  %3620 = vmatmul.f32.vlgmr.msrb.gmra.mxu2 %v3584_v49 }
 0xc6f   :  { %3811 = vmatpush.msrb.mxu3 %v7375_v55 }
 0xc71   :  { %3812 = vmatpush.msrb.mxu3 %v7378_v36 }
 0xc73   :  { %3813 = vmatpush.msrb.mxu3 %v3676_v58 }
 0xc75   :  { %3814 = vmatpush.msrb.mxu3 %v3675_v47 }
 0xc76   :  { %3783 = vmatmul.f32.vlgmr.msra.gmra.mxu2 %v3724_v30 }
 0xc77   :  { %3815 = vmatpush.msrb.mxu3 %v3674_v18 }
 0xc79   :  { %3816 = vmatpush.msrb.mxu3 %v3673_v62 }
 0xc7b   :  { %3817 = vmatpush.msrb.mxu3 %v3672_v45 }
 0xc7d   :  { %3818 = vmatpush.msrb.mxu3 %v3671_v40  ;;  %v7422_v40 = vld [vmem:[#allocation2 + $0xaf0] sm:$0xff] }
 0xc7e   :  { %4000 = vmatpush.msra.mxu1 %v7422_v40 }
 0xc7f   :  { %3819 = vmatpush.msrb.mxu3 %v3670_v26  ;;  %v7428_v26 = vld [vmem:[#allocation2 + $0xae0] sm:$0xff] }
 0xc80   :  { %4001 = vmatpush.msra.mxu1 %v7425_v41 }
 0xc81   :  { %3820 = vmatpush.msrb.mxu3 %v3669_v24  ;;  %v7434_v24 = vld [vmem:[#allocation2 + $0xad0] sm:$0xff] }
 0xc82   :  { %4002 = vmatpush.msra.mxu1 %v7428_v26 }
 0xc83   :  { %3821 = vmatpush.msrb.mxu3 %v3668_v11 }
 0xc84   :  { %4003 = vmatpush.msra.mxu1 %v7431_v37 }
 0xc85   :  { %3822 = vmatpush.msrb.mxu3 %v3667_v53  ;;  %v7437_v53 = vld [vmem:[#allocation2 + $0xac8] sm:$0xff] }
 0xc86   :  { %4004 = vmatpush.msra.mxu1 %v7434_v24 }
 0xc88   :  { %4005 = vmatpush.msra.mxu1 %v7437_v53 }
 0xc8a   :  { %4006 = vmatpush.msra.mxu1 %v7440_v25 }
 0xc8c   :  { %4007 = vmatpush.msra.mxu1 %v7443_v14 }
 0xcdd   :  { %v3700_v15 = vpop.f32.mrf.mxu0 }
 0xce7   :  { %v3764_v3 = vpop.f32.mrf.mxu1 }
 0xce9   :  { %v3641_v50 = vpop.f32.mrf.mxu3 }
 0xcf1   :  { %v3804_v31 = vpop.f32.mrf.mxu3  ;;  %v3621_v17 = vpop.f32.mrf.mxu2 }
 0xcf2   :  { %3823 = vmatmul.f32.vlgmr.msrb.gmra.mxu3 %v3804_v31  ;;  %v3642_v54 = vadd.f32 %v3641_v50, %v3621_v17  ;;  %v7446_v31 = vld [vmem:[#allocation2 + $0xab0] sm:$0xff] }
 0xcf3   :  { %4008 = vmatpush.msra.mxu1 %v7446_v31 }
 0xcf4   :  { %v7406_v28 = vadd.f32 %v3700_v15, %v3642_v54  ;;  %v7449_v54 = vld [vmem:[#allocation2 + $0xaa8] sm:$0xff] }
 0xcf5   :  { %v3829_v15 = vld [vmem:[#allocation5 + $0xc] sm:$0x3]  ;;  %4009 = vmatpush.msra.mxu1 %v7449_v54 }
 0xcf6   :  { %v3838_v2 = vmul.f32 %v7406_v28, %v7406_v28  ;;  %v3831_v1 = vsel %vm3830_vm8, %v7406_v28, 0.0 }
 0xcf7   :  { %v3832_v16 = vrot.slane %v3831_v1, 4 }
 0xcf8   :  { %v3839_v48 = vsel %vm3830_vm8, %v3838_v2, 0.0 }
 0xcf9   :  { %v3840_v20 = vrot.slane %v3839_v48, 4  ;;  %v3784_v46 = vpop.f32.mrf.mxu2  ;;  %v3833_v42 = vadd.f32 %v3832_v16, %v3831_v1  ;;  %v7452_v1 = vld [vmem:[#allocation2 + $0xaa0] sm:$0xff] }
 0xcfa   :  { %v3785_v38 = vadd.f32 %v3784_v46, %v3764_v3  ;;  %4010 = vmatpush.msra.mxu1 %v7452_v1  ;;  %v7458_v46 = vld [vmem:[#allocation2 + $0xa90] sm:$0xff] }
 0xcfb   :  { %v3841_v44 = vadd.f32 %v3840_v20, %v3839_v48  ;;  %v3834_v21 = vrot.slane %v3833_v42, 2  ;;  %v7455_v20 = vld [vmem:[#allocation2 + $0xa98] sm:$0xff] }
 0xcfc   :  { %4011 = vmatpush.msra.mxu1 %v7455_v20 }
 0xcfd   :  { %v3842_v29 = vrot.slane %v3841_v44, 2  ;;  %v3835_v0 = vadd.f32 %v3834_v21, %v3833_v42  ;;  %v7464_v21 = vld [vmem:[#allocation2 + $0xa80] sm:$0xff] }
 0xcfe   :  { %4012 = vmatpush.msra.mxu1 %v7458_v46 }
 0xcff   :  { %v3843_v12 = vadd.f32 %v3842_v29, %v3841_v44  ;;  %v3836_v10 = vrot.slane %v3835_v0, 1  ;;  %v7461_v44 = vld [vmem:[#allocation2 + $0xa88] sm:$0xff] }
 0xd00   :  { %4013 = vmatpush.msra.mxu1 %v7461_v44 }
 0xd01   :  { %v3844_v8 = vrot.slane %v3843_v12, 1  ;;  %v3837_v51 = vadd.f32 %v3836_v10, %v3835_v0  ;;  %v3977_v10 = vld [vmem:[#allocation2 + $0xb70] sm:$0xff] }
 0xd02   :  { %4014 = vmatpush.msra.mxu1 %v7464_v21 }
 0xd03   :  { %v3845_v58 = vadd.f32 %v3844_v8, %v3843_v12  ;;  %v7497_v8 = vld [vmem:[#allocation2 + $0xbd8] sm:$0xff] }
 0xd75   :  { %v3824_v56 = vpop.f32.mrf.mxu3 }
 0xd76   :  { %v7413_v61 = vadd.f32 %v3824_v56, %v3785_v38 }
 0xd78   :  { %v3846_v43 = vsel %vm3830_vm8, %v7413_v61, 0.0  ;;  %v3854_v60 = vmul.f32 %v7413_v61, %v7413_v61 }
 0xd79   :  { %v3847_v4 = vrot.slane %v3846_v43, 4 }
 0xd7a   :  { %v3855_v57 = vsel %vm3830_vm8, %v3854_v60, 0.0 }
 0xd7b   :  { %v3848_v63 = vadd.f32 %v3847_v4, %v3846_v43  ;;  %v3856_v5 = vrot.slane %v3855_v57, 4 }
 0xd7d   :  { %v3849_v7 = vrot.slane %v3848_v63, 2  ;;  %v3857_v23 = vadd.f32 %v3856_v5, %v3855_v57 }
 0xd7f   :  { %v3850_v6 = vadd.f32 %v3849_v7, %v3848_v63  ;;  %v3858_v19 = vrot.slane %v3857_v23, 2  ;;  %v3978_v7 = vld [vmem:[#allocation2 + $0xb78] sm:$0xff] }
 0xd81   :  { %v3851_v33 = vrot.slane %v3850_v6, 1  ;;  %v3859_v55 = vadd.f32 %v3858_v19, %v3857_v23  ;;  %v7492_v23 = vld [vmem:[#allocation2 + $0xbe8] sm:$0xff] }
 0xd82   :  { %v3976_v19 = vld [vmem:[#allocation2 + $0xb68] sm:$0xff] }
 0xd83   :  { %v3852_v36 = vadd.f32 %v3851_v33, %v3850_v6  ;;  %v3860_v32 = vrot.slane %v3859_v55, 1  ;;  %v7494_v6 = vld [vmem:[#allocation2 + $0xbe0] sm:$0xff] }
 0xd84   :  { %v3975_v33 = vld [vmem:[#allocation2 + $0xb60] sm:$0xff] }
 0xd85   :  { %v3853_v34 = vadd.f32 %v3852_v36, %v3837_v51  ;;  %v3861_v47 = vadd.f32 %v3860_v32, %v3859_v55  ;;  %v7500_v55 = vld [vmem:[#allocation2 + $0xbd0] sm:$0xff]  ;;  %v3974_v51 = vld [vmem:[#allocation2 + $0xb58] sm:$0xff]  ;;  %v7503_v36 = vld [vmem:[#allocation2 + $0xbc8] sm:$0xff] }
 0xd86   :  { %v3973_v32 = vld [vmem:[#allocation2 + $0xb50] sm:$0xff] }
 0xd87   :  { %v3862_v52 = vadd.f32 %v3861_v47, %v3845_v58  ;;  %v3863_v18 = vmul.f32 0.25, %v3853_v34  ;;  %v7506_v58 = vld [vmem:[#allocation2 + $0xbc0] sm:$0xff]  ;;  %v3972_v34 = vld [vmem:[#allocation2 + $0xb48] sm:$0xff]  ;;  %v7509_v47 = vld [vmem:[#allocation2 + $0xbb8] sm:$0xff] }
 0xd89   :  { %v3864_v59 = vmul.f32 0.25, %v3862_v52  ;;  %v3865_v62 = vmul.f32 %v3863_v18, %v3863_v18  ;;  %v3971_v52 = vld [vmem:[#allocation2 + $0xb40] sm:$0xff] }
 0xd8b   :  { %v3866_v27 = vsub.f32 %v3864_v59, %v3865_v62  ;;  %v3970_v59 = vld [vmem:[#allocation2 + $0xb38] sm:$0xff]  ;;  %v4047_v62 = vld [vmem:[#allocation2 + $0xba8] sm:$0xff] }
 0xd8d   :  { %v3867_v45 = vmax.f32 %v3866_v27, 0.0  ;;  %v3969_v27 = vld [vmem:[#allocation2 + $0xb30] sm:$0xff] }
 0xd8f   :  { %v3868_v22 = vadd.f32 1e-05, %v3867_v45  ;;  %v4046_v45 = vld [vmem:[#allocation2 + $0xba0] sm:$0xff] }
 0xd91   :  { %4880 = vrsqrt.f32 %v3868_v22  ;;  %vm3875_vm10 = vweird.f32 %v3868_v22 }
 0xd97   :  { %v4881_v11 = vpop.eup %4880 }
 0xd98   :  { %v3870_v49 = vmul.f32 %v4881_v11, %v3868_v22  ;;  %vm3876_vm9 = vweird.f32 %v4881_v11  ;;  %v3968_v22 = vld [vmem:[#allocation2 + $0xb28] sm:$0xff] }
 0xd99   :  { %vm3877_vm15 = vmor %vm3875_vm10, %vm3876_vm9 }
 0xd9a   :  { %v3871_v30 = vmul.f32 %v4881_v11, %v3870_v49  ;;  %v3967_v49 = vld [vmem:[#allocation2 + $0xb20] sm:$0xff] }
 0xd9c   :  { %v3872_v50 = vmul.f32 0.5, %v3871_v30  ;;  %v4044_v30 = vld [vmem:[#allocation2 + $0xb90] sm:$0xff] }
 0xd9e   :  { %v3873_v17 = vsub.f32 1.5, %v3872_v50  ;;  %v3966_v50 = vld [vmem:[#allocation2 + $0xb18] sm:$0xff] }
 0xda0   :  { %v3874_v2 = vmul.f32 %v4881_v11, %v3873_v17  ;;  %v4043_v17 = vld [vmem:[#allocation2 + $0xb88] sm:$0xff] }
 0xda2   :  { %v3878_v48 = vsel %vm3877_vm15, %v4881_v11, %v3874_v2  ;;  %v4045_v11 = vld [vmem:[#allocation2 + $0xb98] sm:$0xff] }
 0xda3   :  { %v3879_v16 = vmul.f32 %v3878_v48, %v3829_v15  ;;  %v4042_v48 = vld [vmem:[#allocation2 + $0xb80] sm:$0xff] }
 0xda5   :  { %v3880_v3 = vmul.f32 %v3879_v16, %v3863_v18  ;;  %v3885_v38 = vperm.slane %v3879_v16, 0  ;;  %v7512_v18 = vld [vmem:[#allocation2 + $0xbb0] sm:$0xff]  ;;  %v3964_v16 = vld [vmem:[#allocation2 + $0xb08] sm:$0xff] }
 0xda7   :  { %v3882_v42 = vrot.slane %v3880_v3, 7  ;;  %v3886_v43 = vmul.f32 %v3885_v38, %v7406_v28  ;;  %v3892_v29 = vmul.f32 %v3885_v38, %v7413_v61  ;;  %v7486_v28 = vld [vmem:[#allocation2 + $0xbf8] sm:$0xff]  ;;  %v7489_v61 = vld [vmem:[#allocation2 + $0xbf0] sm:$0xff]  ;;  %v3963_v3 = vld [vmem:[#allocation2 + $0xb00] sm:$0xff] }
 0xda9   :  { %v3884_v56 = vsub.f32 %v3829_v15, %v3882_v42  ;;  %v3965_v15 = vld [vmem:[#allocation2 + $0xb10] sm:$0xff] }
 0xdab   :  { %v3887_v60 = vperm.slane %v3884_v56, 1 }
 0xdad   :  { %v3893_v4 = vadd.f32 %v3892_v29, %v3887_v60  ;;  %v3888_v57 = vadd.f32 %v3887_v60, %v3886_v43 }
 0xdaf   :  { %vm3889_vm11 = vcmp.ge.f32.partialorder %v3888_v57, 0.0  ;;  %v3890_v0 = vmul.f32 0.01, %v3888_v57  ;;  %vm3894_vm12 = vcmp.ge.f32.partialorder %v3893_v4, 0.0  ;;  %v3895_v63 = vmul.f32 0.01, %v3893_v4 }
 0xdb1   :  { %v3891_v5 = vsel %vm3889_vm11, %v3888_v57, %v3890_v0  ;;  %v3896_v12 = vsel %vm3894_vm12, %v3893_v4, %v3895_v63  ;;  %v7549_v0 = vld [vmem:[#allocation2 + $0xc78] sm:$0xff]  ;;  %v7551_v63 = vld [vmem:[#allocation2 + $0xc70] sm:$0xff] }
 0xdb2   :  { %4771 = vmatpush.msk.msra.mxu0 %vm3830_vm8, %v3891_v5  ;;  %4775 = vmatpush.msk.msrb.mxu2 %vm3830_vm8, %v3891_v5 }
 0xdb3   :  { %4777 = vmatpush.msk.msra.mxu3 %vm3830_vm8, %v3896_v12  ;;  %4781 = vmatpush.msk.msrb.mxu1 %vm3830_vm8, %v3896_v12 }
 0xdb4   :  { %4772 = vmatmul.msk.f32.vlgmr.msra.gmra.mxu0 %vm3897_vm13, %v6611_v39  ;;  %4776 = vmatmul.msk.f32.vlgmr.msrb.gmra.mxu2 %vm3897_vm13, %v6715_v13 }
 0xdb5   :  { %4779 = vmatpush.msk.msrb.mxu3 %vm3830_vm8, %v3896_v12  ;;  %4773 = vmatpush.msk.msrb.mxu0 %vm3830_vm8, %v3891_v5  ;;  %v7554_v12 = vld [vmem:[#allocation2 + $0xc68] sm:$0xff] }
 0xdb6   :  { %4778 = vmatmul.msk.f32.vlgmr.msra.gmra.mxu3 %vm3897_vm13, %v6611_v39  ;;  %4058 = vmatpush.msra.mxu2 %v7486_v28 }
 0xdb7   :  { %3979 = vmatpush.msra.mxu0 %v3978_v7  ;;  %4122 = vmatpush.msra.mxu3 %v3978_v7  ;;  %v7563_v7 = vld [vmem:[#allocation2 + $0xc50] sm:$0xff] }
 0xdb8   :  { %4059 = vmatpush.msra.mxu2 %v7489_v61 }
 0xdb9   :  { %3980 = vmatpush.msra.mxu0 %v3977_v10  ;;  %4123 = vmatpush.msra.mxu3 %v3977_v10  ;;  %v7566_v10 = vld [vmem:[#allocation2 + $0xc48] sm:$0xff] }
 0xdba   :  { %4060 = vmatpush.msra.mxu2 %v7492_v23 }
 0xdbb   :  { %3981 = vmatpush.msra.mxu0 %v3976_v19  ;;  %4124 = vmatpush.msra.mxu3 %v3976_v19  ;;  %v7569_v19 = vld [vmem:[#allocation2 + $0xc40] sm:$0xff] }
 0xdbc   :  { %4774 = vmatmul.msk.f32.vlgmr.msrb.gmra.mxu0 %vm3897_vm13, %v6617_v9  ;;  %4061 = vmatpush.msra.mxu2 %v7494_v6 }
 0xdbd   :  { %3982 = vmatpush.msra.mxu0 %v3975_v33  ;;  %4125 = vmatpush.msra.mxu3 %v3975_v33  ;;  %v7572_v33 = vld [vmem:[#allocation2 + $0xc38] sm:$0xff] }
 0xdbe   :  { %4780 = vmatmul.msk.f32.vlgmr.msrb.gmra.mxu3 %vm3897_vm13, %v6617_v9  ;;  %4062 = vmatpush.msra.mxu2 %v7497_v8 }
 0xdbf   :  { %3983 = vmatpush.msra.mxu0 %v3974_v51  ;;  %4126 = vmatpush.msra.mxu3 %v3974_v51  ;;  %v7575_v51 = vld [vmem:[#allocation2 + $0xc30] sm:$0xff] }
 0xdc0   :  { %4063 = vmatpush.msra.mxu2 %v7500_v55 }
 0xdc1   :  { %3984 = vmatpush.msra.mxu0 %v3973_v32  ;;  %4127 = vmatpush.msra.mxu3 %v3973_v32  ;;  %v7578_v32 = vld [vmem:[#allocation2 + $0xc28] sm:$0xff] }
 0xdc2   :  { %4064 = vmatpush.msra.mxu2 %v7503_v36 }
 0xdc3   :  { %3985 = vmatpush.msra.mxu0 %v3972_v34  ;;  %4128 = vmatpush.msra.mxu3 %v3972_v34 }
 0xdc4   :  { %4065 = vmatpush.msra.mxu2 %v7506_v58 }
 0xdc5   :  { %3986 = vmatpush.msra.mxu0 %v3971_v52  ;;  %4129 = vmatpush.msra.mxu3 %v3971_v52 }
 0xdc6   :  { %4066 = vmatpush.msra.mxu2 %v7509_v47 }
 0xdc7   :  { %3987 = vmatpush.msra.mxu0 %v3970_v59  ;;  %4130 = vmatpush.msra.mxu3 %v3970_v59  ;;  %v7584_v59 = vld [vmem:[#allocation2 + $0xc18] sm:$0xff] }
 0xdc8   :  { %4067 = vmatpush.msra.mxu2 %v7512_v18 }
 0xdc9   :  { %3988 = vmatpush.msra.mxu0 %v3969_v27  ;;  %4131 = vmatpush.msra.mxu3 %v3969_v27  ;;  %v7587_v27 = vld [vmem:[#allocation2 + $0xc10] sm:$0xff] }
 0xdca   :  { %4068 = vmatpush.msra.mxu2 %v4047_v62 }
 0xdcb   :  { %3989 = vmatpush.msra.mxu0 %v3968_v22  ;;  %4132 = vmatpush.msra.mxu3 %v3968_v22  ;;  %v7590_v22 = vld [vmem:[#allocation2 + $0xc08] sm:$0xff] }
 0xdcc   :  { %4069 = vmatpush.msra.mxu2 %v4046_v45 }
 0xdcd   :  { %3990 = vmatpush.msra.mxu0 %v3967_v49  ;;  %4133 = vmatpush.msra.mxu3 %v3967_v49  ;;  %v7593_v49 = vld [vmem:[#allocation2 + $0xc00] sm:$0xff] }
 0xdce   :  { %4070 = vmatpush.msra.mxu2 %v4045_v11 }
 0xdcf   :  { %3991 = vmatpush.msra.mxu0 %v3966_v50  ;;  %4134 = vmatpush.msra.mxu3 %v3966_v50 }
 0xdd0   :  { %4071 = vmatpush.msra.mxu2 %v4044_v30 }
 0xdd1   :  { %3992 = vmatpush.msra.mxu0 %v3965_v15  ;;  %4135 = vmatpush.msra.mxu3 %v3965_v15 }
 0xdd2   :  { %4072 = vmatpush.msra.mxu2 %v4043_v17 }
 0xdd3   :  { %3993 = vmatpush.msra.mxu0 %v3964_v16  ;;  %4136 = vmatpush.msra.mxu3 %v3964_v16 }
 0xdd4   :  { %4073 = vmatpush.msra.mxu2 %v4042_v48 }
 0xdd5   :  { %3994 = vmatpush.msra.mxu0 %v3963_v3  ;;  %4137 = vmatpush.msra.mxu3 %v3963_v3 }
 0xdd7   :  { %4142 = vmatpush.msrb.mxu0 %v7420_v35  ;;  %4351 = vmatpush.msrb.mxu3 %v7549_v0 }
 0xdd9   :  { %4143 = vmatpush.msrb.mxu0 %v7422_v40  ;;  %4352 = vmatpush.msrb.mxu3 %v7551_v63 }
 0xddb   :  { %4144 = vmatpush.msrb.mxu0 %v7425_v41  ;;  %4353 = vmatpush.msrb.mxu3 %v7554_v12 }
 0xddd   :  { %4145 = vmatpush.msrb.mxu0 %v7428_v26 }
 0xddf   :  { %4146 = vmatpush.msrb.mxu0 %v7431_v37 }
 0xde1   :  { %4147 = vmatpush.msrb.mxu0 %v7434_v24 }
 0xde3   :  { %4148 = vmatpush.msrb.mxu0 %v7437_v53 }
 0xde5   :  { %4149 = vmatpush.msrb.mxu0 %v7440_v25 }
 0xde7   :  { %4150 = vmatpush.msrb.mxu0 %v7443_v14 }
 0xde9   :  { %4151 = vmatpush.msrb.mxu0 %v7446_v31 }
 0xdeb   :  { %4152 = vmatpush.msrb.mxu0 %v7449_v54 }
 0xded   :  { %4153 = vmatpush.msrb.mxu0 %v7452_v1 }
 0xdef   :  { %4154 = vmatpush.msrb.mxu0 %v7455_v20 }
 0xdf1   :  { %4155 = vmatpush.msrb.mxu0 %v7458_v46 }
 0xdf3   :  { %4156 = vmatpush.msrb.mxu0 %v7461_v44 }
 0xdf5   :  { %4157 = vmatpush.msrb.mxu0 %v7464_v21 }
 0xe31   :  { %v3920_v2 = vpop.f32.mrf.mxu0 }
 0xe32   :  { %4015 = vmatmul.f32.vlgmr.msra.gmra.mxu1 %v3920_v2 }
 0xe33   :  { %4182 = vmatpush.msra.mxu1 %v7486_v28  ;;  %v7557_v28 = vld [vmem:[#allocation2 + $0xc60] sm:$0xff] }
 0xe34   :  { %4354 = vmatpush.msrb.mxu3 %v7557_v28 }
 0xe35   :  { %4183 = vmatpush.msra.mxu1 %v7489_v61  ;;  %v7560_v61 = vld [vmem:[#allocation2 + $0xc58] sm:$0xff] }
 0xe36   :  { %4355 = vmatpush.msrb.mxu3 %v7560_v61 }
 0xe37   :  { %v4038_v42 = vpop.f32.mrf.mxu2  ;;  %4184 = vmatpush.msra.mxu1 %v7492_v23 }
 0xe38   :  { %4074 = vmatmul.f32.vlgmr.msra.gmra.mxu2 %v4038_v42  ;;  %4356 = vmatpush.msrb.mxu3 %v7563_v7 }
 0xe39   :  { %v3959_v38 = vpop.f32.mrf.mxu0  ;;  %4185 = vmatpush.msra.mxu1 %v7494_v6  ;;  %v4099_v35 = vpop.f32.mrf.mxu3 }
 0xe3a   :  { %4782 = vmatmul.msk.f32.vlgmr.msrb.gmra.mxu1 %vm3897_vm13, %v6715_v13  ;;  %3995 = vmatmul.f32.vlgmr.msra.gmra.mxu0 %v3959_v38  ;;  %v4330_v38 = vld [vmem:[#allocation2 + $0xcf8] sm:$0xff] }
 0xe3b   :  { %4186 = vmatpush.msra.mxu1 %v7497_v8  ;;  %4357 = vmatpush.msrb.mxu3 %v7566_v10 }
 0xe3d   :  { %4187 = vmatpush.msra.mxu1 %v7500_v55  ;;  %4358 = vmatpush.msrb.mxu3 %v7569_v19 }
 0xe3f   :  { %4188 = vmatpush.msra.mxu1 %v7503_v36  ;;  %4359 = vmatpush.msrb.mxu3 %v7572_v33 }
 0xe41   :  { %4189 = vmatpush.msra.mxu1 %v7506_v58  ;;  %v4119_v40 = vpop.f32.mrf.mxu3  ;;  %v4204_v58 = vld [vmem:[#allocation5 + $0xe] sm:$0x3]  ;;  %4360 = vmatpush.msrb.mxu3 %v7575_v51 }
 0xe42   :  { %4158 = vmatmul.f32.vlgmr.msrb.gmra.mxu0 %v4099_v35  ;;  %4138 = vmatmul.f32.vlgmr.msra.gmra.mxu3 %v4119_v40  ;;  %v4329_v35 = vld [vmem:[#allocation2 + $0xcf0] sm:$0xff]  ;;  %v4328_v40 = vld [vmem:[#allocation2 + $0xce8] sm:$0xff] }
 0xe43   :  { %4190 = vmatpush.msra.mxu1 %v7509_v47  ;;  %v7581_v47 = vld [vmem:[#allocation2 + $0xc20] sm:$0xff]  ;;  %4361 = vmatpush.msrb.mxu3 %v7578_v32 }
 0xe45   :  { %4191 = vmatpush.msra.mxu1 %v7512_v18  ;;  %4362 = vmatpush.msrb.mxu3 %v7581_v47 }
 0xe47   :  { %4192 = vmatpush.msra.mxu1 %v4047_v62  ;;  %4363 = vmatpush.msrb.mxu3 %v7584_v59 }
 0xe49   :  { %4193 = vmatpush.msra.mxu1 %v4046_v45  ;;  %4364 = vmatpush.msrb.mxu3 %v7587_v27 }
 0xe4b   :  { %4194 = vmatpush.msra.mxu1 %v4045_v11  ;;  %4365 = vmatpush.msrb.mxu3 %v7590_v22 }
 0xe4d   :  { %4195 = vmatpush.msra.mxu1 %v4044_v30  ;;  %4366 = vmatpush.msrb.mxu3 %v7593_v49 }
 0xe4f   :  { %4196 = vmatpush.msra.mxu1 %v4043_v17 }
 0xe51   :  { %4197 = vmatpush.msra.mxu1 %v4042_v48 }
 0xeaf   :  { %v4016_v41 = vpop.f32.mrf.mxu1 }
 0xeb7   :  { %v4179_v26 = vpop.f32.mrf.mxu1  ;;  %v3996_v37 = vpop.f32.mrf.mxu0 }
 0xeb8   :  { %4198 = vmatmul.f32.vlgmr.msra.gmra.mxu1 %v4179_v26  ;;  %v4017_v14 = vadd.f32 %v4016_v41, %v3996_v37  ;;  %v4327_v41 = vld [vmem:[#allocation2 + $0xce0] sm:$0xff]  ;;  %v4409_v26 = vld [vmem:[#allocation2 + $0xd78] sm:$0xff]  ;;  %v7608_v37 = vld [vmem:[#allocation2 + $0xd70] sm:$0xff] }
 0xebb   :  { %v4075_v24 = vpop.f32.mrf.mxu2 }
 0xebc   :  { %v7544_v31 = vadd.f32 %v4075_v24, %v4017_v14  ;;  %v7610_v24 = vld [vmem:[#allocation2 + $0xd68] sm:$0xff]  ;;  %v7616_v14 = vld [vmem:[#allocation2 + $0xd58] sm:$0xff] }
 0xebe   :  { %v4206_v46 = vmul.f32 %v7544_v31, %v7544_v31 }
 0xebf   :  { %v4159_v25 = vpop.f32.mrf.mxu0 }
 0xec5   :  { %v4139_v53 = vpop.f32.mrf.mxu3 }
 0xec6   :  { %v4160_v54 = vadd.f32 %v4159_v25, %v4139_v53  ;;  %v7613_v53 = vld [vmem:[#allocation2 + $0xd60] sm:$0xff]  ;;  %v4324_v25 = vld [vmem:[#allocation2 + $0xcc8] sm:$0xff] }
 0xf35   :  { %v4199_v1 = vpop.f32.mrf.mxu1 }
 0xf36   :  { %v4202_v20 = vadd.f32 %v4199_v1, %v4160_v54  ;;  %v7619_v54 = vld [vmem:[#allocation2 + $0xd50] sm:$0xff]  ;;  %v4322_v1 = vld [vmem:[#allocation2 + $0xcb8] sm:$0xff] }
 0xf38   :  { %v4209_v44 = vadd.f32 %v4202_v20, %v7544_v31  ;;  %v4210_v56 = vmul.f32 %v4202_v20, %v4202_v20 }
 0xf3a   :  { %v4212_v21 = vadd.f32 %v4210_v56, %v4206_v46  ;;  %v4213_v43 = vmul.f32 0.5, %v4209_v44  ;;  %v4321_v46 = vld [vmem:[#allocation2 + $0xcb0] sm:$0xff]  ;;  %v4402_v44 = vld [vmem:[#allocation2 + $0xd40] sm:$0xff]  ;;  %v4320_v56 = vld [vmem:[#allocation2 + $0xca8] sm:$0xff] }
 0xf3c   :  { %v4214_v60 = vmul.f32 0.5, %v4212_v21  ;;  %v4215_v29 = vmul.f32 %v4213_v43, %v4213_v43  ;;  %v4401_v21 = vld [vmem:[#allocation2 + $0xd38] sm:$0xff] }
 0xf3e   :  { %v4216_v4 = vsub.f32 %v4214_v60, %v4215_v29  ;;  %v4400_v60 = vld [vmem:[#allocation2 + $0xd30] sm:$0xff]  ;;  %v4318_v29 = vld [vmem:[#allocation2 + $0xc98] sm:$0xff] }
 0xf40   :  { %v4217_v57 = vmax.f32 %v4216_v4, 0.0  ;;  %v4399_v4 = vld [vmem:[#allocation2 + $0xd28] sm:$0xff] }
 0xf42   :  { %v4218_v5 = vadd.f32 1e-05, %v4217_v57  ;;  %v4317_v57 = vld [vmem:[#allocation2 + $0xc90] sm:$0xff] }
 0xf44   :  { %4882 = vrsqrt.f32 %v4218_v5  ;;  %vm4225_vm1 = vweird.f32 %v4218_v5 }
 0xf4a   :  { %v4883_v23 = vpop.eup %4882 }
 0xf4b   :  { %v4220_v6 = vmul.f32 %v4883_v23, %v4218_v5  ;;  %vm4226_vm0 = vweird.f32 %v4883_v23  ;;  %v4398_v5 = vld [vmem:[#allocation2 + $0xd20] sm:$0xff] }
 0xf4c   :  { %vm4227_vm2 = vmor %vm4225_vm1, %vm4226_vm0 }
 0xf4d   :  { %v4221_v8 = vmul.f32 %v4883_v23, %v4220_v6  ;;  %v4316_v6 = vld [vmem:[#allocation2 + $0xc88] sm:$0xff] }
 0xf4f   :  { %v4222_v55 = vmul.f32 0.5, %v4221_v8  ;;  %v4397_v8 = vld [vmem:[#allocation2 + $0xd18] sm:$0xff] }
 0xf51   :  { %v4223_v36 = vsub.f32 1.5, %v4222_v55  ;;  %v4315_v55 = vld [vmem:[#allocation2 + $0xc80] sm:$0xff] }
 0xf53   :  { %v4224_v34 = vmul.f32 %v4883_v23, %v4223_v36  ;;  %v4396_v36 = vld [vmem:[#allocation2 + $0xd10] sm:$0xff] }
 0xf55   :  { %v4228_v52 = vsel %vm4227_vm2, %v4883_v23, %v4224_v34  ;;  %v4394_v34 = vld [vmem:[#allocation2 + $0xd00] sm:$0xff] }
 0xf56   :  { %v4229_v18 = vmul.f32 %v4228_v52, %v4204_v58 }
 0xf58   :  { %v4230_v62 = vmul.f32 %v4229_v18, %v4213_v43  ;;  %v4243_v50 = vmul.f32 %v4229_v18, %v4202_v20  ;;  %v4235_v17 = vmul.f32 %v4229_v18, %v7544_v31  ;;  %v4323_v31 = vld [vmem:[#allocation2 + $0xcc0] sm:$0xff]  ;;  %v7622_v20 = vld [vmem:[#allocation2 + $0xd48] sm:$0xff] }
 0xf59   :  { %v4319_v43 = vld [vmem:[#allocation2 + $0xca0] sm:$0xff] }
 0xf5a   :  { %v4232_v45 = vrot.slane %v4230_v62, 7 }
 0xf5c   :  { %v4234_v11 = vsub.f32 %v4204_v58, %v4232_v45  ;;  %v4395_v58 = vld [vmem:[#allocation2 + $0xd08] sm:$0xff] }
 0xf5e   :  { %v4237_v30 = vrot.slane %v4234_v11, 1 }
 0xf60   :  { %v4244_v15 = vadd.f32 %v4243_v50, %v4237_v30  ;;  %v4239_v2 = vadd.f32 %v4237_v30, %v4235_v17 }
 0xf62   :  { %vm4240_vm3 = vcmp.ge.f32.partialorder %v4239_v2, 0.0  ;;  %v4241_v48 = vmul.f32 0.01, %v4239_v2  ;;  %vm4245_vm4 = vcmp.ge.f32.partialorder %v4244_v15, 0.0  ;;  %v4246_v16 = vmul.f32 0.01, %v4244_v15 }
 0xf64   :  { %v4242_v3 = vsel %vm4240_vm3, %v4239_v2, %v4241_v48  ;;  %v4247_v42 = vsel %vm4245_vm4, %v4244_v15, %v4246_v16 }
 0xf65   :  { %4783 = vmatpush.msk.msrb.mxu2 %vm4251_vm14, %v4242_v3  ;;  %4787 = vmatpush.msk.msra.mxu0 %vm4251_vm14, %v4242_v3 }
 0xf66   :  { %4789 = vmatpush.msk.msrb.mxu1 %vm4251_vm14, %v4247_v42  ;;  %4793 = vmatpush.msk.msra.mxu3 %vm4251_vm14, %v4247_v42 }
 0xf67   :  { %4784 = vmatmul.msk.f32.vlgmr.msrb.gmra.mxu2 %vm4248_vm5, %v6611_v39  ;;  %4788 = vmatmul.msk.f32.vlgmr.msra.gmra.mxu0 %vm4248_vm5, %v6715_v13 }
 0xf68   :  { %4791 = vmatpush.msk.msra.mxu1 %vm4251_vm14, %v4247_v42  ;;  %4785 = vmatpush.msk.msra.mxu2 %vm4251_vm14, %v4242_v3  ;;  %v4556_v42 = vld [vmem:[#allocation5 + $0x10] sm:$0x3] }
 0xf69   :  { %4790 = vmatmul.msk.f32.vlgmr.msrb.gmra.mxu1 %vm4248_vm5, %v6611_v39  ;;  %4410 = vmatpush.msrb.mxu0 %v4409_v26  ;;  %v4326_v39 = vld [vmem:[#allocation2 + $0xcd8] sm:$0xff] }
 0xf6a   :  { %4331 = vmatpush.msrb.mxu2 %v4330_v38  ;;  %4474 = vmatpush.msrb.mxu1 %v4330_v38 }
 0xf6b   :  { %4411 = vmatpush.msrb.mxu0 %v7608_v37 }
 0xf6c   :  { %4332 = vmatpush.msrb.mxu2 %v4329_v35  ;;  %4475 = vmatpush.msrb.mxu1 %v4329_v35 }
 0xf6d   :  { %4412 = vmatpush.msrb.mxu0 %v7610_v24 }
 0xf6e   :  { %4333 = vmatpush.msrb.mxu2 %v4328_v40  ;;  %4476 = vmatpush.msrb.mxu1 %v4328_v40 }
 0xf6f   :  { %4786 = vmatmul.msk.f32.vlgmr.msra.gmra.mxu2 %vm4248_vm5, %v6617_v9  ;;  %4413 = vmatpush.msrb.mxu0 %v7613_v53 }
 0xf70   :  { %4334 = vmatpush.msrb.mxu2 %v4327_v41  ;;  %4477 = vmatpush.msrb.mxu1 %v4327_v41 }
 0xf71   :  { %4792 = vmatmul.msk.f32.vlgmr.msra.gmra.mxu1 %vm4248_vm5, %v6617_v9  ;;  %v4325_v9 = vld [vmem:[#allocation2 + $0xcd0] sm:$0xff]  ;;  %4414 = vmatpush.msrb.mxu0 %v7616_v14 }
 0xf72   :  { %4335 = vmatpush.msrb.mxu2 %v4326_v39  ;;  %4478 = vmatpush.msrb.mxu1 %v4326_v39 }
 0xf73   :  { %4415 = vmatpush.msrb.mxu0 %v7619_v54 }
 0xf74   :  { %4336 = vmatpush.msrb.mxu2 %v4325_v9  ;;  %4479 = vmatpush.msrb.mxu1 %v4325_v9 }
 0xf75   :  { %4416 = vmatpush.msrb.mxu0 %v7622_v20 }
 0xf76   :  { %4337 = vmatpush.msrb.mxu2 %v4324_v25  ;;  %4480 = vmatpush.msrb.mxu1 %v4324_v25 }
 0xf77   :  { %4417 = vmatpush.msrb.mxu0 %v4402_v44 }
 0xf78   :  { %4338 = vmatpush.msrb.mxu2 %v4323_v31  ;;  %4481 = vmatpush.msrb.mxu1 %v4323_v31 }
 0xf79   :  { %4418 = vmatpush.msrb.mxu0 %v4401_v21 }
 0xf7a   :  { %4339 = vmatpush.msrb.mxu2 %v4322_v1  ;;  %4482 = vmatpush.msrb.mxu1 %v4322_v1 }
 0xf7b   :  { %4419 = vmatpush.msrb.mxu0 %v4400_v60 }
 0xf7c   :  { %4340 = vmatpush.msrb.mxu2 %v4321_v46  ;;  %4483 = vmatpush.msrb.mxu1 %v4321_v46 }
 0xf7d   :  { %4420 = vmatpush.msrb.mxu0 %v4399_v4 }
 0xf7e   :  { %4341 = vmatpush.msrb.mxu2 %v4320_v56  ;;  %4484 = vmatpush.msrb.mxu1 %v4320_v56 }
 0xf7f   :  { %4421 = vmatpush.msrb.mxu0 %v4398_v5 }
 0xf80   :  { %4342 = vmatpush.msrb.mxu2 %v4319_v43  ;;  %4485 = vmatpush.msrb.mxu1 %v4319_v43 }
 0xf81   :  { %4422 = vmatpush.msrb.mxu0 %v4397_v8 }
 0xf82   :  { %4343 = vmatpush.msrb.mxu2 %v4318_v29  ;;  %4486 = vmatpush.msrb.mxu1 %v4318_v29 }
 0xf83   :  { %4423 = vmatpush.msrb.mxu0 %v4396_v36 }
 0xf84   :  { %4344 = vmatpush.msrb.mxu2 %v4317_v57  ;;  %4487 = vmatpush.msrb.mxu1 %v4317_v57 }
 0xf85   :  { %4424 = vmatpush.msrb.mxu0 %v4395_v58 }
 0xf86   :  { %4345 = vmatpush.msrb.mxu2 %v4316_v6  ;;  %4488 = vmatpush.msrb.mxu1 %v4316_v6 }
 0xf87   :  { %4425 = vmatpush.msrb.mxu0 %v4394_v34 }
 0xf88   :  { %4346 = vmatpush.msrb.mxu2 %v4315_v55  ;;  %4489 = vmatpush.msrb.mxu1 %v4315_v55 }
 0xf8a   :  { %4494 = vmatpush.msra.mxu2 %v7549_v0 }
 0xf8c   :  { %4495 = vmatpush.msra.mxu2 %v7551_v63 }
 0xf8e   :  { %4496 = vmatpush.msra.mxu2 %v7554_v12 }
 0xf90   :  { %4497 = vmatpush.msra.mxu2 %v7557_v28 }
 0xf92   :  { %4498 = vmatpush.msra.mxu2 %v7560_v61 }
 0xf94   :  { %4499 = vmatpush.msra.mxu2 %v7563_v7 }
 0xf96   :  { %4500 = vmatpush.msra.mxu2 %v7566_v10 }
 0xf98   :  { %4501 = vmatpush.msra.mxu2 %v7569_v19 }
 0xf9a   :  { %4502 = vmatpush.msra.mxu2 %v7572_v33 }
 0xf9c   :  { %4503 = vmatpush.msra.mxu2 %v7575_v51 }
 0xf9e   :  { %4504 = vmatpush.msra.mxu2 %v7578_v32 }
 0xfa0   :  { %4505 = vmatpush.msra.mxu2 %v7581_v47 }
 0xfa2   :  { %4506 = vmatpush.msra.mxu2 %v7584_v59 }
 0xfa4   :  { %4507 = vmatpush.msra.mxu2 %v7587_v27 }
 0xfa6   :  { %4508 = vmatpush.msra.mxu2 %v7590_v22 }
 0xfa8   :  { %4509 = vmatpush.msra.mxu2 %v7593_v49 }
 0xfe4   :  { %v4390_v18 = vpop.f32.mrf.mxu0 }
 0xfe5   :  { %4426 = vmatmul.f32.vlgmr.msrb.gmra.mxu0 %v4390_v18 }
 0xfea   :  { %v4272_v23 = vpop.f32.mrf.mxu2 }
 0xfeb   :  { %4367 = vmatmul.f32.vlgmr.msrb.gmra.mxu3 %v4272_v23 }
 0xfec   :  { %4534 = vmatpush.msrb.mxu3 %v4409_v26 }
 0xfee   :  { %4535 = vmatpush.msrb.mxu3 %v7608_v37 }
 0xff0   :  { %4536 = vmatpush.msrb.mxu3 %v7610_v24 }
 0xff2   :  { %v4311_v52 = vpop.f32.mrf.mxu2  ;;  %4537 = vmatpush.msrb.mxu3 %v7613_v53 }
 0xff3   :  { %4794 = vmatmul.msk.f32.vlgmr.msra.gmra.mxu3 %vm4248_vm5, %v6715_v13  ;;  %4347 = vmatmul.f32.vlgmr.msrb.gmra.mxu2 %v4311_v52  ;;  %v4451_v13 = vpop.f32.mrf.mxu1 }
 0xff4   :  { %4538 = vmatpush.msrb.mxu3 %v7616_v14 }
 0xff6   :  { %4539 = vmatpush.msrb.mxu3 %v7619_v54 }
 0xff8   :  { %4540 = vmatpush.msrb.mxu3 %v7622_v20 }
 0xffa   :  { %4541 = vmatpush.msrb.mxu3 %v4402_v44 }
 0xffb   :  { %4510 = vmatmul.f32.vlgmr.msra.gmra.mxu2 %v4451_v13  ;;  %v4471_v0 = vpop.f32.mrf.mxu1 }
 0xffc   :  { %4542 = vmatpush.msrb.mxu3 %v4401_v21  ;;  %4490 = vmatmul.f32.vlgmr.msrb.gmra.mxu1 %v4471_v0 }
 0xffe   :  { %4543 = vmatpush.msrb.mxu3 %v4400_v60 }
0x1000   :  { %4544 = vmatpush.msrb.mxu3 %v4399_v4 }
0x1002   :  { %4545 = vmatpush.msrb.mxu3 %v4398_v5 }
0x1004   :  { %4546 = vmatpush.msrb.mxu3 %v4397_v8 }
0x1006   :  { %4547 = vmatpush.msrb.mxu3 %v4396_v36 }
0x1008   :  { %4548 = vmatpush.msrb.mxu3 %v4395_v58 }
0x100a   :  { %4549 = vmatpush.msrb.mxu3 %v4394_v34 }
0x1062   :  { %v4427_v7 = vpop.f32.mrf.mxu0 }
0x106e   :  { %v4368_v63 = vpop.f32.mrf.mxu3 }
0x1076   :  { %v4531_v12 = vpop.f32.mrf.mxu3  ;;  %v4348_v28 = vpop.f32.mrf.mxu2 }
0x1077   :  { %4550 = vmatmul.f32.vlgmr.msrb.gmra.mxu3 %v4531_v12  ;;  %v4369_v61 = vadd.f32 %v4368_v63, %v4348_v28 }
0x1079   :  { %v4491_v10 = vpop.f32.mrf.mxu1  ;;  %v4430_v33 = vadd.f32 %v4427_v7, %v4369_v61 }
0x107b   :  { %v4558_v59 = vmul.f32 %v4430_v33, %v4430_v33 }
0x107e   :  { %v4511_v19 = vpop.f32.mrf.mxu2 }
0x107f   :  { %v4512_v51 = vadd.f32 %v4511_v19, %v4491_v10 }
0x10fa   :  { %v4551_v32 = vpop.f32.mrf.mxu3 }
0x10fb   :  { %v4554_v47 = vadd.f32 %v4551_v32, %v4512_v51 }
0x10fd   :  { %v4561_v62 = vadd.f32 %v4554_v47, %v4430_v33  ;;  %v4562_v27 = vmul.f32 %v4554_v47, %v4554_v47 }
0x10ff   :  { %v4564_v45 = vadd.f32 %v4562_v27, %v4558_v59  ;;  %v4565_v22 = vmul.f32 0.5, %v4561_v62 }
0x1101   :  { %v4566_v11 = vmul.f32 0.5, %v4564_v45  ;;  %v4567_v49 = vmul.f32 %v4565_v22, %v4565_v22 }
0x1103   :  { %v4568_v30 = vsub.f32 %v4566_v11, %v4567_v49 }
0x1105   :  { %v4569_v50 = vmax.f32 %v4568_v30, 0.0 }
0x1107   :  { %v4570_v17 = vadd.f32 1e-05, %v4569_v50 }
0x1109   :  { %4884 = vrsqrt.f32 %v4570_v17  ;;  %vm4577_vm7 = vweird.f32 %v4570_v17 }
0x110f   :  { %v4885_v15 = vpop.eup %4884 }
0x1110   :  { %v4572_v2 = vmul.f32 %v4885_v15, %v4570_v17  ;;  %vm4578_vm6 = vweird.f32 %v4885_v15 }
0x1111   :  { %vm4579_vm8 = vmor %vm4577_vm7, %vm4578_vm6 }
0x1112   :  { %v4573_v48 = vmul.f32 %v4885_v15, %v4572_v2 }
0x1114   :  { %v4574_v16 = vmul.f32 0.5, %v4573_v48 }
0x1116   :  { %v4575_v3 = vsub.f32 1.5, %v4574_v16 }
0x1118   :  { %v4576_v38 = vmul.f32 %v4885_v15, %v4575_v3 }
0x111a   :  { %v4580_v35 = vsel %vm4579_vm8, %v4885_v15, %v4576_v38 }
0x111b   :  { %v4581_v40 = vmul.f32 %v4580_v35, %v4556_v42 }
0x111d   :  { %v4582_v41 = vmul.f32 %v4581_v40, %v4565_v22  ;;  %v4587_v39 = vmul.f32 %v4581_v40, %v4430_v33  ;;  %v4595_v9 = vmul.f32 %v4581_v40, %v4554_v47 }
0x111f   :  { %v4584_v26 = vrot.slane %v4582_v41, 7 }
0x1121   :  { %v4586_v37 = vsub.f32 %v4556_v42, %v4584_v26 }
0x1123   :  { %v4589_v24 = vrot.slane %v4586_v37, 1 }
0x1125   :  { %v4591_v53 = vadd.f32 %v4589_v24, %v4587_v39  ;;  %v4596_v25 = vadd.f32 %v4595_v9, %v4589_v24 }
0x1127   :  { %v4593_v14 = vmul.f32 0.01, %v4591_v53  ;;  %vm4597_vm9 = vcmp.ge.f32.partialorder %v4596_v25, 0.0  ;;  %v4598_v31 = vmul.f32 0.01, %v4596_v25  ;;  %vm4592_vm10 = vcmp.ge.f32.partialorder %v4591_v53, 0.0 }
0x1129   :  { %v4599_v54 = vsel %vm4597_vm9, %v4596_v25, %v4598_v31  ;;  %v4594_v1 = vsel %vm4592_vm10, %v4591_v53, %v4593_v14 }
0x112a   :  { %4602 = vst [vmem:[#allocation7 + $0x1] sm:$0x1] %v4599_v54 }
0x112b   :  { %4600 = vst [vmem:[#allocation7] sm:$0x1] %v4594_v1 }
0x112c   :  { %4615 = dma.vmem_to_hbm [thread:$0]  %s4608_s30, 32, %s4610_s6, [#allocation4], %s4981_s7, %s4981_s7, %s4982_s8  }
0x112d   :  { %4967 = dma.done.wait [#allocation4], 32  }
0x112e   :  { %4968 = vsyncadd [#allocation4], 4294967264 }
0x112f   :  { %4620 = vsyncpa [#allocation3], 1 }
0x1130   :  { %4621 = vsyncpa [#allocation6], 1 }
0x1131   :  { %4622 = vsyncpa [#allocation4], 1 }

</bundles_post_ra>
